<compile_context>
chip_gen: v6e
topology: v6e:2x2x1
jax: 0.10.0
libtpu: 0.0.40
codegen_flags: <defaults>
</compile_context>

<pallas_src>
import functools

import numpy as np

import jax
import jax.numpy as jnp
from jax import lax
from jax.experimental import pallas as pl
from jax.experimental.pallas import tpu as pltpu

_EPS = 1e-5      # PyTorch InstanceNorm2d default eps
_PAD = 128       # left/right padding (in lanes) of the im2col row buffer
_CIN0 = 8        # conv1 input channels zero-padded to this (aligned concat)


# ---------------------------------------------------------------------------
# The fused generator kernel (runs once per image / grid step)
# ---------------------------------------------------------------------------
def _generator_kernel(x_ref, w1_ref, w2_ref, w3_ref, wres_ref, gres_ref,
                      bres_ref, wu1_ref, wu2_ref, w4_ref, d1_ref, d2_ref,
                      u1_ref, u2_ref, em_ref, o_ref, buf_ref, *, H, W):
    H2, W2 = H // 2, W // 2
    H4, W4 = H // 4, W // 4
    P, P2, P4 = H * W, H2 * W2, H4 * W4
    mask_off = {W: 0, W2: P, W4: P + P2}   # per-resolution offset into em_ref

    # Staging stores below only touch lanes >= _PAD, so one clear of the left
    # pad keeps every dh=-1 tap of every conv reading zeros there.
    buf_ref[:, 0:_PAD] = jnp.zeros((buf_ref.shape[0], _PAD), jnp.float32)

    def inorm(y):
        # one-pass stats: s1 and s2 are independent reduces (overlap in XLU)
        inv_n = 1.0 / y.shape[1]
        s1 = jnp.sum(y, axis=1, keepdims=True)
        s2 = jnp.sum(y * y, axis=1, keepdims=True)
        m = s1 * inv_n
        v = jnp.maximum(s2 * inv_n - m * m, 0.0)
        return (y - m) * lax.rsqrt(v + _EPS)

    def conv3x3(x, w, Wd, Pd):
        # x: (Cin, Pd) f32.  w: (Cout, 9*Cin) bf16, tap-major contraction dim.
        cin = x.shape[0]
        mo = mask_off[Wd]
        # Clear only the (Wd+1)-lane slice right of the fresh data (stale
        # larger-resolution data from an earlier conv may sit there), then
        # stage x into the padded row buffer.
        buf_ref[:cin, _PAD + Pd:_PAD + Pd + Wd + 1] = jnp.zeros(
            (cin, Wd + 1), jnp.float32)
        buf_ref[:cin, _PAD:_PAD + Pd] = x
        taps = []
        for dh in (-1, 0, 1):
            for dw in (-1, 0, 1):
                off = _PAD + dh * Wd + dw
                xt = buf_ref[:cin, off:off + Pd]          # shifted window
                if dw == -1:                              # kill col-0 wrap
                    xt = xt * em_ref[0:1, mo:mo + Pd]
                elif dw == 1:                             # kill col-(W-1) wrap
                    xt = xt * em_ref[1:2, mo:mo + Pd]
                taps.append(xt)
        # single stacked-tap matmul: (Cout, 9*Cin) @ (9*Cin, Pd)
        im2col = jnp.concatenate(taps, axis=0).astype(jnp.bfloat16)
        return jnp.dot(w, im2col, preferred_element_type=jnp.float32)

    def resample(y, sel_ref):
        # exact 0/1 selection matmul (stride-2 sampling / nearest-2x upsample)
        return jnp.dot(y.astype(jnp.bfloat16), sel_ref[...],
                       preferred_element_type=jnp.float32)

    relu = lambda t: jnp.maximum(t, 0.0)

    x = x_ref[0]                                                      # (8, P)

    # conv1 + in1 + relu
    y = relu(inorm(conv3x3(x, w1_ref[...], W, P)))                    # (8, P)

    # conv2 (stride 2) + in2 + relu: stride-1 conv then even-position select
    y = conv3x3(y, w2_ref[...], W, P)                                 # (16, P)
    y = relu(inorm(resample(y, d1_ref)))                              # (16, P2)

    # conv3 (stride 2) + in3 + relu
    y = conv3x3(y, w3_ref[...], W2, P2)                               # (32, P2)
    y = relu(inorm(resample(y, d2_ref)))                              # (32, P4)

    # 4 residual blocks at (H/4, W/4), InstanceNorm(affine=True)
    for i in range(4):
        res = y
        t = conv3x3(y, wres_ref[2 * i], W4, P4)
        t = relu(inorm(t) * gres_ref[2 * i] + bres_ref[2 * i])
        t = conv3x3(t, wres_ref[2 * i + 1], W4, P4)
        y = inorm(t) * gres_ref[2 * i + 1] + bres_ref[2 * i + 1] + res

    # up1: nearest-2x upsample (selection matmul) + conv + in4 + relu
    y = resample(y, u1_ref)                                           # (32, P2)
    y = relu(inorm(conv3x3(y, wu1_ref[...], W2, P2)))                 # (16, P2)

    # up2
    y = resample(y, u2_ref)                                           # (16, P)
    y = relu(inorm(conv3x3(y, wu2_ref[...], W, P)))                   # (8, P)

    # conv4 + in6 (no relu)
    o_ref[0] = inorm(conv3x3(y, w4_ref[...], W, P))                   # (C, P)


# ---------------------------------------------------------------------------
# Host-side constant builders (trace-time numpy -> embedded constants)
# ---------------------------------------------------------------------------
def _down_mat(h, w):
    """(h*w, (h//2)*(w//2)) 0/1 matrix selecting even spatial positions (bf16 exact)."""
    ho, wo = h // 2, w // 2
    d = np.zeros((h * w, ho * wo), np.float32)
    for i in range(ho):
        for j in range(wo):
            d[2 * i * w + 2 * j, i * wo + j] = 1.0
    return jnp.asarray(d, dtype=jnp.bfloat16)


def _up_mat(h, w):
    """(h*w, 4*h*w) 0/1 matrix for nearest-neighbor 2x upsampling (bf16 exact)."""
    ho, wo = 2 * h, 2 * w
    u = np.zeros((h * w, ho * wo), np.float32)
    for i in range(ho):
        for j in range(wo):
            u[(i // 2) * w + (j // 2), i * wo + j] = 1.0
    return jnp.asarray(u, dtype=jnp.bfloat16)


def _edge_masks(res_list):
    """(2, sum P) masks: row 0 zeroes column-0 wrap, row 1 zeroes column-(W-1)."""
    total = sum(p for _, p in res_list)
    m = np.zeros((2, total), np.float32)
    off = 0
    for w, p in res_list:
        col = np.arange(p) % w
        m[0, off:off + p] = (col != 0).astype(np.float32)
        m[1, off:off + p] = (col != w - 1).astype(np.float32)
        off += p
    return jnp.asarray(m)


# ---------------------------------------------------------------------------
# Parameters (deterministic init, PyTorch-shaped) and packing for the kernel
# ---------------------------------------------------------------------------
def _conv_params(key, cout, cin):
    kw, kb = jax.random.split(key)
    w = jax.random.normal(kw, (cout, cin, 3, 3), jnp.float32) * 0.1
    b = jax.random.normal(kb, (cout,), jnp.float32) * 0.01
    return w, b


def init_generator_params(dataset_name, key):
    if dataset_name in ["mnist", "fmnist"]:
        channels = 1
    elif dataset_name == "cifar10":
        channels = 3
    else:
        raise Exception("dataset must be one of mnist, fmnist and cifar10")

    keys = jax.random.split(key, 16)
    p = {}
    p["conv1"] = _conv_params(keys[0], 8, channels)
    p["conv2"] = _conv_params(keys[1], 16, 8)
    p["conv3"] = _conv_params(keys[2], 32, 16)
    for i in range(4):
        p[f"res{i+1}_conv1"] = _conv_params(keys[3 + 2 * i], 32, 32)
        p[f"res{i+1}_conv2"] = _conv_params(keys[4 + 2 * i], 32, 32)
        # InstanceNorm2d(affine=True) PyTorch init: gamma=1, beta=0
        p[f"res{i+1}_in1"] = (jnp.ones((32,), jnp.float32),
                              jnp.zeros((32,), jnp.float32))
        p[f"res{i+1}_in2"] = (jnp.ones((32,), jnp.float32),
                              jnp.zeros((32,), jnp.float32))
    p["up1"] = _conv_params(keys[11], 16, 32)
    p["up2"] = _conv_params(keys[12], 8, 16)
    p["conv4"] = _conv_params(keys[13], channels, 8)
    p["channels"] = channels
    return p


def _prep_w(w, cin_pad=None):
    # (Cout, Cin, 3, 3) -> (Cout, 9*Cin) bf16 with tap-major contraction dim so
    # rows of the kernel's concatenated im2col [tap0 c0..c(Cin-1), tap1 ...]
    # line up; tap index t = 3*(dh+1) + (dw+1).
    cout, cin = int(w.shape[0]), int(w.shape[1])
    if cin_pad is not None and cin_pad > cin:
        w = jnp.pad(w, ((0, 0), (0, cin_pad - cin), (0, 0), (0, 0)))
        cin = cin_pad
    return jnp.transpose(w, (0, 2, 3, 1)).reshape(cout, 9 * cin).astype(jnp.bfloat16)


def pack_generator_params(params):
    # Conv biases are intentionally dropped: every conv feeds an InstanceNorm,
    # where a per-channel constant cancels exactly.
    packed = {
        "w1": _prep_w(params["conv1"][0], cin_pad=_CIN0),
        "w2": _prep_w(params["conv2"][0]),
        "w3": _prep_w(params["conv3"][0]),
        "wu1": _prep_w(params["up1"][0]),
        "wu2": _prep_w(params["up2"][0]),
        "w4": _prep_w(params["conv4"][0]),
    }
    wres, g, b = [], [], []
    for i in range(4):
        for k in (1, 2):
            wres.append(_prep_w(params[f"res{i+1}_conv{k}"][0]))
            gg, bb = params[f"res{i+1}_in{k}"]
            g.append(gg)
            b.append(bb)
    packed["wres"] = jnp.stack(wres, axis=0)                        # (8, 32, 288) bf16
    packed["gres"] = jnp.stack(g).reshape(8, 32, 1).astype(jnp.float32)
    packed["bres"] = jnp.stack(b).reshape(8, 32, 1).astype(jnp.float32)
    return packed


# ---------------------------------------------------------------------------
# Forward pass: one fused pallas_call for the whole generator
# ---------------------------------------------------------------------------
def generator_forward(packed, x_nchw):
    N, C, H, W = x_nchw.shape
    assert H % 4 == 0 and W % 4 == 0, "spatial dims must be divisible by 4"
    assert W + 1 <= _PAD
    H2, W2, H4, W4 = H // 2, W // 2, H // 4, W // 4
    P, P2, P4 = H * W, H2 * W2, H4 * W4

    d1 = _down_mat(H, W)        # (P,  P2) bf16
    d2 = _down_mat(H2, W2)      # (P2, P4) bf16
    u1 = _up_mat(H4, W4)        # (P4, P2) bf16
    u2 = _up_mat(H2, W2)        # (P2, P)  bf16
    em = _edge_masks([(W, P), (W2, P2), (W4, P4)])

    x_flat = x_nchw.reshape(N, C, P).astype(jnp.float32)
    if C < _CIN0:               # zero-pad channels so all im2col pieces are 8-row aligned
        x_flat = jnp.pad(x_flat, ((0, 0), (0, _CIN0 - C), (0, 0)))

    def full(a):
        shape = a.shape
        return pl.BlockSpec(shape, lambda n: (0,) * len(shape))

    kernel = functools.partial(_generator_kernel, H=H, W=W)
    operands = (x_flat, packed["w1"], packed["w2"], packed["w3"], packed["wres"],
                packed["gres"], packed["bres"], packed["wu1"], packed["wu2"],
                packed["w4"], d1, d2, u1, u2, em)

    out = pl.pallas_call(
        kernel,
        out_shape=jax.ShapeDtypeStruct((N, C, P), jnp.float32),
        grid=(N,),
        in_specs=[pl.BlockSpec((1, _CIN0, P), lambda n: (n, 0, 0))] +
                 [full(a) for a in operands[1:]],
        out_specs=pl.BlockSpec((1, C, P), lambda n: (n, 0, 0)),
        scratch_shapes=[pltpu.VMEM((32, P + 2 * _PAD), jnp.float32)],
        compiler_params=pltpu.CompilerParams(
            dimension_semantics=("parallel",)),
    )(*operands)
    return out.reshape(N, C, H, W)


# ---------------------------------------------------------------------------
# Pure-JAX reference (straightforward port of the PyTorch module) for checking
# ---------------------------------------------------------------------------
def _reference_forward(params, x):
    def conv(x, w, b, stride):
        y = lax.conv_general_dilated(
            x, w, (stride, stride), ((1, 1), (1, 1)),
            dimension_numbers=("NCHW", "OIHW", "NCHW"))
        return y + b.reshape(1, -1, 1, 1)

    def inorm(y, g=None, b=None):
        m = y.mean(axis=(2, 3), keepdims=True)
        v = ((y - m) ** 2).mean(axis=(2, 3), keepdims=True)
        y = (y - m) * lax.rsqrt(v + _EPS)
        if g is not None:
            y = y * g.reshape(1, -1, 1, 1) + b.reshape(1, -1, 1, 1)
        return y

    up2 = lambda t: jnp.repeat(jnp.repeat(t, 2, axis=2), 2, axis=3)
    relu = lambda t: jnp.maximum(t, 0.0)

    w, b = params["conv1"]; y = relu(inorm(conv(x, w, b, 1)))
    w, b = params["conv2"]; y = relu(inorm(conv(y, w, b, 2)))
    w, b = params["conv3"]; y = relu(inorm(conv(y, w, b, 2)))
    for i in range(4):
        r = y
        w, b = params[f"res{i+1}_conv1"]; g, bb = params[f"res{i+1}_in1"]
        t = relu(inorm(conv(y, w, b, 1), g, bb))
        w, b = params[f"res{i+1}_conv2"]; g, bb = params[f"res{i+1}_in2"]
        y = inorm(conv(t, w, b, 1), g, bb) + r
    w, b = params["up1"]; y = relu(inorm(conv(up2(y), w, b, 1)))
    w, b = params["up2"]; y = relu(inorm(conv(up2(y), w, b, 1)))
    w, b = params["conv4"]; y = inorm(conv(y, w, b, 1))
    return y


if __name__ == "__main__":
    key = jax.random.PRNGKey(0)
    pkey, xkey = jax.random.split(key)

    dataset_name = "cifar10"            # channels = 3
    params = init_generator_params(dataset_name, pkey)
    packed = pack_generator_params(params)

    N, C, H, W = 2, params["channels"], 16, 16
    x = jax.random.normal(xkey, (N, C, H, W), jnp.float32)

    fwd = jax.jit(functools.partial(generator_forward, packed))
    out = fwd(x)
    jax.block_until_ready(out)

    assert out.shape == (N, C, H, W), out.shape
    out_np = np.asarray(jax.device_get(out))
    assert np.all(np.isfinite(out_np))

    # sanity check against a pure-JAX/XLA reference (bf16 MXU operands inside
    # the kernel -> small numerical differences expected)
    ref = np.asarray(jax.device_get(_reference_forward(params, x)))
    err = np.abs(out_np - ref)
    assert float(err.mean()) < 0.15 and float(err.max()) < 1.5, \
        (float(err.mean()), float(err.max()))

    print("KERNEL_OK")
</pallas_src>

<mosaic_0001>
module attributes {stable_mosaic.version = 11 : i64} {
  func.func @_generator_kernel(%arg0: i32, %arg1: memref<1x8x256xf32, #tpu.memory_space<vmem>>, %arg2: memref<8x72xbf16, #tpu.memory_space<vmem>>, %arg3: memref<16x72xbf16, #tpu.memory_space<vmem>>, %arg4: memref<32x144xbf16, #tpu.memory_space<vmem>>, %arg5: memref<8x32x288xbf16, #tpu.memory_space<vmem>>, %arg6: memref<8x32x1xf32, #tpu.memory_space<vmem>>, %arg7: memref<8x32x1xf32, #tpu.memory_space<vmem>>, %arg8: memref<16x288xbf16, #tpu.memory_space<vmem>>, %arg9: memref<8x144xbf16, #tpu.memory_space<vmem>>, %arg10: memref<3x72xbf16, #tpu.memory_space<vmem>>, %arg11: memref<256x64xbf16, #tpu.memory_space<vmem>>, %arg12: memref<64x16xbf16, #tpu.memory_space<vmem>>, %arg13: memref<16x64xbf16, #tpu.memory_space<vmem>>, %arg14: memref<64x256xbf16, #tpu.memory_space<vmem>>, %arg15: memref<2x336xf32, #tpu.memory_space<vmem>>, %arg16: memref<1x3x256xf32, #tpu.memory_space<vmem>>, %arg17: memref<32x512xf32, #tpu.memory_space<vmem>>) attributes {dimension_semantics = [#tpu.dimension_semantics<parallel>], iteration_bounds = array<i64: 2>, scalar_prefetch = 0 : i64, scratch_operands = 1 : i64, tpu.core_type = #tpu.core_type<tc>, window_params = [{transform_indices = @transform_0, window_bounds = array<i64: 1, 8, 256>}, {pipeline_mode = #tpu.pipeline_mode<synchronous>, transform_indices = @transform_1, window_bounds = array<i64: 8, 72>}, {pipeline_mode = #tpu.pipeline_mode<synchronous>, transform_indices = @transform_2, window_bounds = array<i64: 16, 72>}, {pipeline_mode = #tpu.pipeline_mode<synchronous>, transform_indices = @transform_3, window_bounds = array<i64: 32, 144>}, {pipeline_mode = #tpu.pipeline_mode<synchronous>, transform_indices = @transform_4, window_bounds = array<i64: 8, 32, 288>}, {pipeline_mode = #tpu.pipeline_mode<synchronous>, transform_indices = @transform_5, window_bounds = array<i64: 8, 32, 1>}, {pipeline_mode = #tpu.pipeline_mode<synchronous>, transform_indices = @transform_6, window_bounds = array<i64: 8, 32, 1>}, {pipeline_mode = #tpu.pipeline_mode<synchronous>, transform_indices = @transform_7, window_bounds = array<i64: 16, 288>}, {pipeline_mode = #tpu.pipeline_mode<synchronous>, transform_indices = @transform_8, window_bounds = array<i64: 8, 144>}, {pipeline_mode = #tpu.pipeline_mode<synchronous>, transform_indices = @transform_9, window_bounds = array<i64: 3, 72>}, {pipeline_mode = #tpu.pipeline_mode<synchronous>, transform_indices = @transform_10, window_bounds = array<i64: 256, 64>}, {pipeline_mode = #tpu.pipeline_mode<synchronous>, transform_indices = @transform_11, window_bounds = array<i64: 64, 16>}, {pipeline_mode = #tpu.pipeline_mode<synchronous>, transform_indices = @transform_12, window_bounds = array<i64: 16, 64>}, {pipeline_mode = #tpu.pipeline_mode<synchronous>, transform_indices = @transform_13, window_bounds = array<i64: 64, 256>}, {pipeline_mode = #tpu.pipeline_mode<synchronous>, transform_indices = @transform_14, window_bounds = array<i64: 2, 336>}, {transform_indices = @transform_15, window_bounds = array<i64: 1, 3, 256>}]} {
    %cst = arith.constant 0.000000e+00 : f32
    %0 = vector.broadcast %cst : f32 to vector<32x128xf32>
    %c0 = arith.constant 0 : index
    %c0_0 = arith.constant 0 : index
    %1 = vector.load %arg17[%c0, %c0_0] : memref<32x512xf32, #tpu.memory_space<vmem>>, vector<32x128xf32>
    tpu.vector_store %arg17[%c0, %c0_0], %0 {strides = array<i32>} : memref<32x512xf32, #tpu.memory_space<vmem>>, vector<32x128xf32>,
    %c0_1 = arith.constant 0 : index
    %c0_2 = arith.constant 0 : index
    %c0_3 = arith.constant 0 : index
    %2 = vector.load %arg1[%c0_1, %c0_2, %c0_3] : memref<1x8x256xf32, #tpu.memory_space<vmem>>, vector<1x8x256xf32>
    %3 = vector.shape_cast %2 : vector<1x8x256xf32> to vector<8x256xf32>
    %c0_4 = arith.constant 0 : index
    %c0_5 = arith.constant 0 : index
    %4 = vector.load %arg2[%c0_4, %c0_5] : memref<8x72xbf16, #tpu.memory_space<vmem>>, vector<8x72xbf16>
    %cst_6 = arith.constant 0.000000e+00 : f32
    %5 = vector.broadcast %cst_6 : f32 to vector<8x17xf32>
    %c0_7 = arith.constant 0 : index
    %c384 = arith.constant 384 : index
    %6 = vector.load %arg17[%c0_7, %c384] : memref<32x512xf32, #tpu.memory_space<vmem>>, vector<8x17xf32>
    tpu.vector_store %arg17[%c0_7, %c384], %5 {strides = array<i32>} : memref<32x512xf32, #tpu.memory_space<vmem>>, vector<8x17xf32>,
    %c0_8 = arith.constant 0 : index
    %c128 = arith.constant 128 : index
    %7 = vector.load %arg17[%c0_8, %c128] : memref<32x512xf32, #tpu.memory_space<vmem>>, vector<8x256xf32>
    tpu.vector_store %arg17[%c0_8, %c128], %3 {strides = array<i32>} : memref<32x512xf32, #tpu.memory_space<vmem>>, vector<8x256xf32>,
    %c0_9 = arith.constant 0 : index
    %c111 = arith.constant 111 : index
    %8 = vector.load %arg17[%c0_9, %c111] : memref<32x512xf32, #tpu.memory_space<vmem>>, vector<8x256xf32>
    %c0_10 = arith.constant 0 : index
    %c0_11 = arith.constant 0 : index
    %9 = vector.load %arg15[%c0_10, %c0_11] : memref<2x336xf32, #tpu.memory_space<vmem>>, vector<1x256xf32>
    %10 = vector.broadcast %9 : vector<1x256xf32> to vector<8x256xf32>
    %11 = arith.mulf %8, %10 : vector<8x256xf32>
    %c0_12 = arith.constant 0 : index
    %c112 = arith.constant 112 : index
    %12 = vector.load %arg17[%c0_12, %c112] : memref<32x512xf32, #tpu.memory_space<vmem>>, vector<8x256xf32>
    %c0_13 = arith.constant 0 : index
    %c113 = arith.constant 113 : index
    %13 = vector.load %arg17[%c0_13, %c113] : memref<32x512xf32, #tpu.memory_space<vmem>>, vector<8x256xf32>
    %c1 = arith.constant 1 : index
    %c0_14 = arith.constant 0 : index
    %14 = vector.load %arg15[%c1, %c0_14] : memref<2x336xf32, #tpu.memory_space<vmem>>, vector<1x256xf32>
    %15 = vector.broadcast %14 : vector<1x256xf32> to vector<8x256xf32>
    %16 = arith.mulf %13, %15 : vector<8x256xf32>
    %c0_15 = arith.constant 0 : index
    %c127 = arith.constant 127 : index
    %17 = vector.load %arg17[%c0_15, %c127] : memref<32x512xf32, #tpu.memory_space<vmem>>, vector<8x256xf32>
    %c0_16 = arith.constant 0 : index
    %c0_17 = arith.constant 0 : index
    %18 = vector.load %arg15[%c0_16, %c0_17] : memref<2x336xf32, #tpu.memory_space<vmem>>, vector<1x256xf32>
    %19 = vector.broadcast %18 : vector<1x256xf32> to vector<8x256xf32>
    %20 = arith.mulf %17, %19 : vector<8x256xf32>
    %c0_18 = arith.constant 0 : index
    %c128_19 = arith.constant 128 : index
    %21 = vector.load %arg17[%c0_18, %c128_19] : memref<32x512xf32, #tpu.memory_space<vmem>>, vector<8x256xf32>
    %c0_20 = arith.constant 0 : index
    %c129 = arith.constant 129 : index
    %22 = vector.load %arg17[%c0_20, %c129] : memref<32x512xf32, #tpu.memory_space<vmem>>, vector<8x256xf32>
    %c1_21 = arith.constant 1 : index
    %c0_22 = arith.constant 0 : index
    %23 = vector.load %arg15[%c1_21, %c0_22] : memref<2x336xf32, #tpu.memory_space<vmem>>, vector<1x256xf32>
    %24 = vector.broadcast %23 : vector<1x256xf32> to vector<8x256xf32>
    %25 = arith.mulf %22, %24 : vector<8x256xf32>
    %c0_23 = arith.constant 0 : index
    %c143 = arith.constant 143 : index
    %26 = vector.load %arg17[%c0_23, %c143] : memref<32x512xf32, #tpu.memory_space<vmem>>, vector<8x256xf32>
    %c0_24 = arith.constant 0 : index
    %c0_25 = arith.constant 0 : index
    %27 = vector.load %arg15[%c0_24, %c0_25] : memref<2x336xf32, #tpu.memory_space<vmem>>, vector<1x256xf32>
    %28 = vector.broadcast %27 : vector<1x256xf32> to vector<8x256xf32>
    %29 = arith.mulf %26, %28 : vector<8x256xf32>
    %c0_26 = arith.constant 0 : index
    %c144 = arith.constant 144 : index
    %30 = vector.load %arg17[%c0_26, %c144] : memref<32x512xf32, #tpu.memory_space<vmem>>, vector<8x256xf32>
    %c0_27 = arith.constant 0 : index
    %c145 = arith.constant 145 : index
    %31 = vector.load %arg17[%c0_27, %c145] : memref<32x512xf32, #tpu.memory_space<vmem>>, vector<8x256xf32>
    %c1_28 = arith.constant 1 : index
    %c0_29 = arith.constant 0 : index
    %32 = vector.load %arg15[%c1_28, %c0_29] : memref<2x336xf32, #tpu.memory_space<vmem>>, vector<1x256xf32>
    %33 = vector.broadcast %32 : vector<1x256xf32> to vector<8x256xf32>
    %34 = arith.mulf %31, %33 : vector<8x256xf32>
    %35 = tpu.concatenate %11, %12, %16, %20, %21, %25, %29, %30, %34 in 0 : vector<8x256xf32>, vector<8x256xf32>, vector<8x256xf32>, vector<8x256xf32>, vector<8x256xf32>, vector<8x256xf32>, vector<8x256xf32>, vector<8x256xf32>, vector<8x256xf32> -> vector<72x256xf32>
    %36 = arith.truncf %35 : vector<72x256xf32> to vector<72x256xbf16>
    %cst_30 = arith.constant dense<0.000000e+00> : vector<8x256xf32>
    %37 = tpu.matmul %4, %36, %cst_30 {dimension_numbers = #tpu.dot_dimension_numbers<[1], [0], [0], [1], [0, 0, 1, 1], [], []>} : vector<8x72xbf16>, vector<72x256xbf16>, vector<8x256xf32> -> vector<8x256xf32>
    %cst_31 = arith.constant dense<0.000000e+00> : vector<8xf32>
    %38 = vector.multi_reduction <add>, %37, %cst_31 [1] : vector<8x256xf32> to vector<8xf32>
    %39 = vector.shape_cast %38 : vector<8xf32> to vector<8x1xf32>
    %40 = arith.mulf %37, %37 : vector<8x256xf32>
    %cst_32 = arith.constant dense<0.000000e+00> : vector<8xf32>
    %41 = vector.multi_reduction <add>, %40, %cst_32 [1] : vector<8x256xf32> to vector<8xf32>
    %42 = vector.shape_cast %41 : vector<8xf32> to vector<8x1xf32>
    %cst_33 = arith.constant 3.906250e-03 : f32
    %43 = vector.broadcast %cst_33 : f32 to vector<8x1xf32>
    %44 = arith.mulf %39, %43 : vector<8x1xf32>
    %cst_34 = arith.constant 3.906250e-03 : f32
    %45 = vector.broadcast %cst_34 : f32 to vector<8x1xf32>
    %46 = arith.mulf %42, %45 : vector<8x1xf32>
    %47 = arith.mulf %44, %44 : vector<8x1xf32>
    %48 = arith.subf %46, %47 : vector<8x1xf32>
    %cst_35 = arith.constant 0.000000e+00 : f32
    %49 = vector.broadcast %cst_35 : f32 to vector<8x1xf32>
    %50 = arith.maximumf %48, %49 : vector<8x1xf32>
    %51 = vector.broadcast %44 : vector<8x1xf32> to vector<8x256xf32>
    %52 = arith.subf %37, %51 : vector<8x256xf32>
    %cst_36 = arith.constant 9.99999974E-6 : f32
    %53 = vector.broadcast %cst_36 : f32 to vector<8x1xf32>
    %54 = arith.addf %50, %53 : vector<8x1xf32>
    %55 = math.rsqrt %54 : vector<8x1xf32>
    %56 = vector.broadcast %55 : vector<8x1xf32> to vector<8x256xf32>
    %57 = arith.mulf %52, %56 : vector<8x256xf32>
    %cst_37 = arith.constant 0.000000e+00 : f32
    %58 = vector.broadcast %cst_37 : f32 to vector<8x256xf32>
    %59 = arith.maximumf %57, %58 : vector<8x256xf32>
    %c0_38 = arith.constant 0 : index
    %c0_39 = arith.constant 0 : index
    %60 = vector.load %arg3[%c0_38, %c0_39] : memref<16x72xbf16, #tpu.memory_space<vmem>>, vector<16x72xbf16>
    %cst_40 = arith.constant 0.000000e+00 : f32
    %61 = vector.broadcast %cst_40 : f32 to vector<8x17xf32>
    %c0_41 = arith.constant 0 : index
    %c384_42 = arith.constant 384 : index
    %62 = vector.load %arg17[%c0_41, %c384_42] : memref<32x512xf32, #tpu.memory_space<vmem>>, vector<8x17xf32>
    tpu.vector_store %arg17[%c0_41, %c384_42], %61 {strides = array<i32>} : memref<32x512xf32, #tpu.memory_space<vmem>>, vector<8x17xf32>,
    %c0_43 = arith.constant 0 : index
    %c128_44 = arith.constant 128 : index
    %63 = vector.load %arg17[%c0_43, %c128_44] : memref<32x512xf32, #tpu.memory_space<vmem>>, vector<8x256xf32>
    tpu.vector_store %arg17[%c0_43, %c128_44], %59 {strides = array<i32>} : memref<32x512xf32, #tpu.memory_space<vmem>>, vector<8x256xf32>,
    %c0_45 = arith.constant 0 : index
    %c111_46 = arith.constant 111 : index
    %64 = vector.load %arg17[%c0_45, %c111_46] : memref<32x512xf32, #tpu.memory_space<vmem>>, vector<8x256xf32>
    %c0_47 = arith.constant 0 : index
    %c0_48 = arith.constant 0 : index
    %65 = vector.load %arg15[%c0_47, %c0_48] : memref<2x336xf32, #tpu.memory_space<vmem>>, vector<1x256xf32>
    %66 = vector.broadcast %65 : vector<1x256xf32> to vector<8x256xf32>
    %67 = arith.mulf %64, %66 : vector<8x256xf32>
    %c0_49 = arith.constant 0 : index
    %c112_50 = arith.constant 112 : index
    %68 = vector.load %arg17[%c0_49, %c112_50] : memref<32x512xf32, #tpu.memory_space<vmem>>, vector<8x256xf32>
    %c0_51 = arith.constant 0 : index
    %c113_52 = arith.constant 113 : index
    %69 = vector.load %arg17[%c0_51, %c113_52] : memref<32x512xf32, #tpu.memory_space<vmem>>, vector<8x256xf32>
    %c1_53 = arith.constant 1 : index
    %c0_54 = arith.constant 0 : index
    %70 = vector.load %arg15[%c1_53, %c0_54] : memref<2x336xf32, #tpu.memory_space<vmem>>, vector<1x256xf32>
    %71 = vector.broadcast %70 : vector<1x256xf32> to vector<8x256xf32>
    %72 = arith.mulf %69, %71 : vector<8x256xf32>
    %c0_55 = arith.constant 0 : index
    %c127_56 = arith.constant 127 : index
    %73 = vector.load %arg17[%c0_55, %c127_56] : memref<32x512xf32, #tpu.memory_space<vmem>>, vector<8x256xf32>
    %c0_57 = arith.constant 0 : index
    %c0_58 = arith.constant 0 : index
    %74 = vector.load %arg15[%c0_57, %c0_58] : memref<2x336xf32, #tpu.memory_space<vmem>>, vector<1x256xf32>
    %75 = vector.broadcast %74 : vector<1x256xf32> to vector<8x256xf32>
    %76 = arith.mulf %73, %75 : vector<8x256xf32>
    %c0_59 = arith.constant 0 : index
    %c128_60 = arith.constant 128 : index
    %77 = vector.load %arg17[%c0_59, %c128_60] : memref<32x512xf32, #tpu.memory_space<vmem>>, vector<8x256xf32>
    %c0_61 = arith.constant 0 : index
    %c129_62 = arith.constant 129 : index
    %78 = vector.load %arg17[%c0_61, %c129_62] : memref<32x512xf32, #tpu.memory_space<vmem>>, vector<8x256xf32>
    %c1_63 = arith.constant 1 : index
    %c0_64 = arith.constant 0 : index
    %79 = vector.load %arg15[%c1_63, %c0_64] : memref<2x336xf32, #tpu.memory_space<vmem>>, vector<1x256xf32>
    %80 = vector.broadcast %79 : vector<1x256xf32> to vector<8x256xf32>
    %81 = arith.mulf %78, %80 : vector<8x256xf32>
    %c0_65 = arith.constant 0 : index
    %c143_66 = arith.constant 143 : index
    %82 = vector.load %arg17[%c0_65, %c143_66] : memref<32x512xf32, #tpu.memory_space<vmem>>, vector<8x256xf32>
    %c0_67 = arith.constant 0 : index
    %c0_68 = arith.constant 0 : index
    %83 = vector.load %arg15[%c0_67, %c0_68] : memref<2x336xf32, #tpu.memory_space<vmem>>, vector<1x256xf32>
    %84 = vector.broadcast %83 : vector<1x256xf32> to vector<8x256xf32>
    %85 = arith.mulf %82, %84 : vector<8x256xf32>
    %c0_69 = arith.constant 0 : index
    %c144_70 = arith.constant 144 : index
    %86 = vector.load %arg17[%c0_69, %c144_70] : memref<32x512xf32, #tpu.memory_space<vmem>>, vector<8x256xf32>
    %c0_71 = arith.constant 0 : index
    %c145_72 = arith.constant 145 : index
    %87 = vector.load %arg17[%c0_71, %c145_72] : memref<32x512xf32, #tpu.memory_space<vmem>>, vector<8x256xf32>
    %c1_73 = arith.constant 1 : index
    %c0_74 = arith.constant 0 : index
    %88 = vector.load %arg15[%c1_73, %c0_74] : memref<2x336xf32, #tpu.memory_space<vmem>>, vector<1x256xf32>
    %89 = vector.broadcast %88 : vector<1x256xf32> to vector<8x256xf32>
    %90 = arith.mulf %87, %89 : vector<8x256xf32>
    %91 = tpu.concatenate %67, %68, %72, %76, %77, %81, %85, %86, %90 in 0 : vector<8x256xf32>, vector<8x256xf32>, vector<8x256xf32>, vector<8x256xf32>, vector<8x256xf32>, vector<8x256xf32>, vector<8x256xf32>, vector<8x256xf32>, vector<8x256xf32> -> vector<72x256xf32>
    %92 = arith.truncf %91 : vector<72x256xf32> to vector<72x256xbf16>
    %cst_75 = arith.constant dense<0.000000e+00> : vector<16x256xf32>
    %93 = tpu.matmul %60, %92, %cst_75 {dimension_numbers = #tpu.dot_dimension_numbers<[1], [0], [0], [1], [0, 0, 1, 1], [], []>} : vector<16x72xbf16>, vector<72x256xbf16>, vector<16x256xf32> -> vector<16x256xf32>
    %94 = arith.truncf %93 : vector<16x256xf32> to vector<16x256xbf16>
    %c0_76 = arith.constant 0 : index
    %c0_77 = arith.constant 0 : index
    %95 = vector.load %arg11[%c0_76, %c0_77] : memref<256x64xbf16, #tpu.memory_space<vmem>>, vector<256x64xbf16>
    %cst_78 = arith.constant dense<0.000000e+00> : vector<16x64xf32>
    %96 = tpu.matmul %94, %95, %cst_78 {dimension_numbers = #tpu.dot_dimension_numbers<[1], [0], [0], [1], [0, 0, 1, 1], [], []>} : vector<16x256xbf16>, vector<256x64xbf16>, vector<16x64xf32> -> vector<16x64xf32>
    %cst_79 = arith.constant dense<0.000000e+00> : vector<16xf32>
    %97 = vector.multi_reduction <add>, %96, %cst_79 [1] : vector<16x64xf32> to vector<16xf32>
    %98 = vector.shape_cast %97 : vector<16xf32> to vector<16x1xf32>
    %99 = arith.mulf %96, %96 : vector<16x64xf32>
    %cst_80 = arith.constant dense<0.000000e+00> : vector<16xf32>
    %100 = vector.multi_reduction <add>, %99, %cst_80 [1] : vector<16x64xf32> to vector<16xf32>
    %101 = vector.shape_cast %100 : vector<16xf32> to vector<16x1xf32>
    %cst_81 = arith.constant 1.562500e-02 : f32
    %102 = vector.broadcast %cst_81 : f32 to vector<16x1xf32>
    %103 = arith.mulf %98, %102 : vector<16x1xf32>
    %cst_82 = arith.constant 1.562500e-02 : f32
    %104 = vector.broadcast %cst_82 : f32 to vector<16x1xf32>
    %105 = arith.mulf %101, %104 : vector<16x1xf32>
    %106 = arith.mulf %103, %103 : vector<16x1xf32>
    %107 = arith.subf %105, %106 : vector<16x1xf32>
    %cst_83 = arith.constant 0.000000e+00 : f32
    %108 = vector.broadcast %cst_83 : f32 to vector<16x1xf32>
    %109 = arith.maximumf %107, %108 : vector<16x1xf32>
    %110 = vector.broadcast %103 : vector<16x1xf32> to vector<16x64xf32>
    %111 = arith.subf %96, %110 : vector<16x64xf32>
    %cst_84 = arith.constant 9.99999974E-6 : f32
    %112 = vector.broadcast %cst_84 : f32 to vector<16x1xf32>
    %113 = arith.addf %109, %112 : vector<16x1xf32>
    %114 = math.rsqrt %113 : vector<16x1xf32>
    %115 = vector.broadcast %114 : vector<16x1xf32> to vector<16x64xf32>
    %116 = arith.mulf %111, %115 : vector<16x64xf32>
    %cst_85 = arith.constant 0.000000e+00 : f32
    %117 = vector.broadcast %cst_85 : f32 to vector<16x64xf32>
    %118 = arith.maximumf %116, %117 : vector<16x64xf32>
    %c0_86 = arith.constant 0 : index
    %c0_87 = arith.constant 0 : index
    %119 = vector.load %arg4[%c0_86, %c0_87] : memref<32x144xbf16, #tpu.memory_space<vmem>>, vector<32x144xbf16>
    %cst_88 = arith.constant 0.000000e+00 : f32
    %120 = vector.broadcast %cst_88 : f32 to vector<16x9xf32>
    %c0_89 = arith.constant 0 : index
    %c192 = arith.constant 192 : index
    %121 = vector.load %arg17[%c0_89, %c192] : memref<32x512xf32, #tpu.memory_space<vmem>>, vector<16x9xf32>
    tpu.vector_store %arg17[%c0_89, %c192], %120 {strides = array<i32>} : memref<32x512xf32, #tpu.memory_space<vmem>>, vector<16x9xf32>,
    %c0_90 = arith.constant 0 : index
    %c128_91 = arith.constant 128 : index
    %122 = vector.load %arg17[%c0_90, %c128_91] : memref<32x512xf32, #tpu.memory_space<vmem>>, vector<16x64xf32>
    tpu.vector_store %arg17[%c0_90, %c128_91], %118 {strides = array<i32>} : memref<32x512xf32, #tpu.memory_space<vmem>>, vector<16x64xf32>,
    %c0_92 = arith.constant 0 : index
    %c119 = arith.constant 119 : index
    %123 = vector.load %arg17[%c0_92, %c119] : memref<32x512xf32, #tpu.memory_space<vmem>>, vector<16x64xf32>
    %c0_93 = arith.constant 0 : index
    %c256 = arith.constant 256 : index
    %124 = vector.load %arg15[%c0_93, %c256] : memref<2x336xf32, #tpu.memory_space<vmem>>, vector<1x64xf32>
    %125 = vector.broadcast %124 : vector<1x64xf32> to vector<16x64xf32>
    %126 = arith.mulf %123, %125 : vector<16x64xf32>
    %c0_94 = arith.constant 0 : index
    %c120 = arith.constant 120 : index
    %127 = vector.load %arg17[%c0_94, %c120] : memref<32x512xf32, #tpu.memory_space<vmem>>, vector<16x64xf32>
    %c0_95 = arith.constant 0 : index
    %c121 = arith.constant 121 : index
    %128 = vector.load %arg17[%c0_95, %c121] : memref<32x512xf32, #tpu.memory_space<vmem>>, vector<16x64xf32>
    %c1_96 = arith.constant 1 : index
    %c256_97 = arith.constant 256 : index
    %129 = vector.load %arg15[%c1_96, %c256_97] : memref<2x336xf32, #tpu.memory_space<vmem>>, vector<1x64xf32>
    %130 = vector.broadcast %129 : vector<1x64xf32> to vector<16x64xf32>
    %131 = arith.mulf %128, %130 : vector<16x64xf32>
    %c0_98 = arith.constant 0 : index
    %c127_99 = arith.constant 127 : index
    %132 = vector.load %arg17[%c0_98, %c127_99] : memref<32x512xf32, #tpu.memory_space<vmem>>, vector<16x64xf32>
    %c0_100 = arith.constant 0 : index
    %c256_101 = arith.constant 256 : index
    %133 = vector.load %arg15[%c0_100, %c256_101] : memref<2x336xf32, #tpu.memory_space<vmem>>, vector<1x64xf32>
    %134 = vector.broadcast %133 : vector<1x64xf32> to vector<16x64xf32>
    %135 = arith.mulf %132, %134 : vector<16x64xf32>
    %c0_102 = arith.constant 0 : index
    %c128_103 = arith.constant 128 : index
    %136 = vector.load %arg17[%c0_102, %c128_103] : memref<32x512xf32, #tpu.memory_space<vmem>>, vector<16x64xf32>
    %c0_104 = arith.constant 0 : index
    %c129_105 = arith.constant 129 : index
    %137 = vector.load %arg17[%c0_104, %c129_105] : memref<32x512xf32, #tpu.memory_space<vmem>>, vector<16x64xf32>
    %c1_106 = arith.constant 1 : index
    %c256_107 = arith.constant 256 : index
    %138 = vector.load %arg15[%c1_106, %c256_107] : memref<2x336xf32, #tpu.memory_space<vmem>>, vector<1x64xf32>
    %139 = vector.broadcast %138 : vector<1x64xf32> to vector<16x64xf32>
    %140 = arith.mulf %137, %139 : vector<16x64xf32>
    %c0_108 = arith.constant 0 : index
    %c135 = arith.constant 135 : index
    %141 = vector.load %arg17[%c0_108, %c135] : memref<32x512xf32, #tpu.memory_space<vmem>>, vector<16x64xf32>
    %c0_109 = arith.constant 0 : index
    %c256_110 = arith.constant 256 : index
    %142 = vector.load %arg15[%c0_109, %c256_110] : memref<2x336xf32, #tpu.memory_space<vmem>>, vector<1x64xf32>
    %143 = vector.broadcast %142 : vector<1x64xf32> to vector<16x64xf32>
    %144 = arith.mulf %141, %143 : vector<16x64xf32>
    %c0_111 = arith.constant 0 : index
    %c136 = arith.constant 136 : index
    %145 = vector.load %arg17[%c0_111, %c136] : memref<32x512xf32, #tpu.memory_space<vmem>>, vector<16x64xf32>
    %c0_112 = arith.constant 0 : index
    %c137 = arith.constant 137 : index
    %146 = vector.load %arg17[%c0_112, %c137] : memref<32x512xf32, #tpu.memory_space<vmem>>, vector<16x64xf32>
    %c1_113 = arith.constant 1 : index
    %c256_114 = arith.constant 256 : index
    %147 = vector.load %arg15[%c1_113, %c256_114] : memref<2x336xf32, #tpu.memory_space<vmem>>, vector<1x64xf32>
    %148 = vector.broadcast %147 : vector<1x64xf32> to vector<16x64xf32>
    %149 = arith.mulf %146, %148 : vector<16x64xf32>
    %150 = tpu.concatenate %126, %127, %131, %135, %136, %140, %144, %145, %149 in 0 : vector<16x64xf32>, vector<16x64xf32>, vector<16x64xf32>, vector<16x64xf32>, vector<16x64xf32>, vector<16x64xf32>, vector<16x64xf32>, vector<16x64xf32>, vector<16x64xf32> -> vector<144x64xf32>
    %151 = arith.truncf %150 : vector<144x64xf32> to vector<144x64xbf16>
    %cst_115 = arith.constant dense<0.000000e+00> : vector<32x64xf32>
    %152 = tpu.matmul %119, %151, %cst_115 {dimension_numbers = #tpu.dot_dimension_numbers<[1], [0], [0], [1], [0, 0, 1, 1], [], []>} : vector<32x144xbf16>, vector<144x64xbf16>, vector<32x64xf32> -> vector<32x64xf32>
    %153 = arith.truncf %152 : vector<32x64xf32> to vector<32x64xbf16>
    %c0_116 = arith.constant 0 : index
    %c0_117 = arith.constant 0 : index
    %154 = vector.load %arg12[%c0_116, %c0_117] : memref<64x16xbf16, #tpu.memory_space<vmem>>, vector<64x16xbf16>
    %cst_118 = arith.constant dense<0.000000e+00> : vector<32x16xf32>
    %155 = tpu.matmul %153, %154, %cst_118 {dimension_numbers = #tpu.dot_dimension_numbers<[1], [0], [0], [1], [0, 0, 1, 1], [], []>} : vector<32x64xbf16>, vector<64x16xbf16>, vector<32x16xf32> -> vector<32x16xf32>
    %cst_119 = arith.constant dense<0.000000e+00> : vector<32xf32>
    %156 = vector.multi_reduction <add>, %155, %cst_119 [1] : vector<32x16xf32> to vector<32xf32>
    %157 = vector.shape_cast %156 : vector<32xf32> to vector<32x1xf32>
    %158 = arith.mulf %155, %155 : vector<32x16xf32>
    %cst_120 = arith.constant dense<0.000000e+00> : vector<32xf32>
    %159 = vector.multi_reduction <add>, %158, %cst_120 [1] : vector<32x16xf32> to vector<32xf32>
    %160 = vector.shape_cast %159 : vector<32xf32> to vector<32x1xf32>
    %cst_121 = arith.constant 6.250000e-02 : f32
    %161 = vector.broadcast %cst_121 : f32 to vector<32x1xf32>
    %162 = arith.mulf %157, %161 : vector<32x1xf32>
    %cst_122 = arith.constant 6.250000e-02 : f32
    %163 = vector.broadcast %cst_122 : f32 to vector<32x1xf32>
    %164 = arith.mulf %160, %163 : vector<32x1xf32>
    %165 = arith.mulf %162, %162 : vector<32x1xf32>
    %166 = arith.subf %164, %165 : vector<32x1xf32>
    %cst_123 = arith.constant 0.000000e+00 : f32
    %167 = vector.broadcast %cst_123 : f32 to vector<32x1xf32>
    %168 = arith.maximumf %166, %167 : vector<32x1xf32>
    %169 = vector.broadcast %162 : vector<32x1xf32> to vector<32x16xf32>
    %170 = arith.subf %155, %169 : vector<32x16xf32>
    %cst_124 = arith.constant 9.99999974E-6 : f32
    %171 = vector.broadcast %cst_124 : f32 to vector<32x1xf32>
    %172 = arith.addf %168, %171 : vector<32x1xf32>
    %173 = math.rsqrt %172 : vector<32x1xf32>
    %174 = vector.broadcast %173 : vector<32x1xf32> to vector<32x16xf32>
    %175 = arith.mulf %170, %174 : vector<32x16xf32>
    %cst_125 = arith.constant 0.000000e+00 : f32
    %176 = vector.broadcast %cst_125 : f32 to vector<32x16xf32>
    %177 = arith.maximumf %175, %176 : vector<32x16xf32>
    %c0_126 = arith.constant 0 : index
    %c0_127 = arith.constant 0 : index
    %c0_128 = arith.constant 0 : index
    %178 = vector.load %arg5[%c0_126, %c0_127, %c0_128] : memref<8x32x288xbf16, #tpu.memory_space<vmem>>, vector<1x32x288xbf16>
    %179 = vector.shape_cast %178 : vector<1x32x288xbf16> to vector<32x288xbf16>
    %cst_129 = arith.constant 0.000000e+00 : f32
    %180 = vector.broadcast %cst_129 : f32 to vector<32x5xf32>
    %c0_130 = arith.constant 0 : index
    %c144_131 = arith.constant 144 : index
    %181 = vector.load %arg17[%c0_130, %c144_131] : memref<32x512xf32, #tpu.memory_space<vmem>>, vector<32x5xf32>
    tpu.vector_store %arg17[%c0_130, %c144_131], %180 {strides = array<i32>} : memref<32x512xf32, #tpu.memory_space<vmem>>, vector<32x5xf32>,
    %c0_132 = arith.constant 0 : index
    %c128_133 = arith.constant 128 : index
    %182 = vector.load %arg17[%c0_132, %c128_133] : memref<32x512xf32, #tpu.memory_space<vmem>>, vector<32x16xf32>
    tpu.vector_store %arg17[%c0_132, %c128_133], %177 {strides = array<i32>} : memref<32x512xf32, #tpu.memory_space<vmem>>, vector<32x16xf32>,
    %c0_134 = arith.constant 0 : index
    %c123 = arith.constant 123 : index
    %183 = vector.load %arg17[%c0_134, %c123] : memref<32x512xf32, #tpu.memory_space<vmem>>, vector<32x16xf32>
    %c0_135 = arith.constant 0 : index
    %c320 = arith.constant 320 : index
    %184 = vector.load %arg15[%c0_135, %c320] : memref<2x336xf32, #tpu.memory_space<vmem>>, vector<1x16xf32>
    %185 = vector.broadcast %184 : vector<1x16xf32> to vector<32x16xf32>
    %186 = arith.mulf %183, %185 : vector<32x16xf32>
    %c0_136 = arith.constant 0 : index
    %c124 = arith.constant 124 : index
    %187 = vector.load %arg17[%c0_136, %c124] : memref<32x512xf32, #tpu.memory_space<vmem>>, vector<32x16xf32>
    %c0_137 = arith.constant 0 : index
    %c125 = arith.constant 125 : index
    %188 = vector.load %arg17[%c0_137, %c125] : memref<32x512xf32, #tpu.memory_space<vmem>>, vector<32x16xf32>
    %c1_138 = arith.constant 1 : index
    %c320_139 = arith.constant 320 : index
    %189 = vector.load %arg15[%c1_138, %c320_139] : memref<2x336xf32, #tpu.memory_space<vmem>>, vector<1x16xf32>
    %190 = vector.broadcast %189 : vector<1x16xf32> to vector<32x16xf32>
    %191 = arith.mulf %188, %190 : vector<32x16xf32>
    %c0_140 = arith.constant 0 : index
    %c127_141 = arith.constant 127 : index
    %192 = vector.load %arg17[%c0_140, %c127_141] : memref<32x512xf32, #tpu.memory_space<vmem>>, vector<32x16xf32>
    %c0_142 = arith.constant 0 : index
    %c320_143 = arith.constant 320 : index
    %193 = vector.load %arg15[%c0_142, %c320_143] : memref<2x336xf32, #tpu.memory_space<vmem>>, vector<1x16xf32>
    %194 = vector.broadcast %193 : vector<1x16xf32> to vector<32x16xf32>
    %195 = arith.mulf %192, %194 : vector<32x16xf32>
    %c0_144 = arith.constant 0 : index
    %c128_145 = arith.constant 128 : index
    %196 = vector.load %arg17[%c0_144, %c128_145] : memref<32x512xf32, #tpu.memory_space<vmem>>, vector<32x16xf32>
    %c0_146 = arith.constant 0 : index
    %c129_147 = arith.constant 129 : index
    %197 = vector.load %arg17[%c0_146, %c129_147] : memref<32x512xf32, #tpu.memory_space<vmem>>, vector<32x16xf32>
    %c1_148 = arith.constant 1 : index
    %c320_149 = arith.constant 320 : index
    %198 = vector.load %arg15[%c1_148, %c320_149] : memref<2x336xf32, #tpu.memory_space<vmem>>, vector<1x16xf32>
    %199 = vector.broadcast %198 : vector<1x16xf32> to vector<32x16xf32>
    %200 = arith.mulf %197, %199 : vector<32x16xf32>
    %c0_150 = arith.constant 0 : index
    %c131 = arith.constant 131 : index
    %201 = vector.load %arg17[%c0_150, %c131] : memref<32x512xf32, #tpu.memory_space<vmem>>, vector<32x16xf32>
    %c0_151 = arith.constant 0 : index
    %c320_152 = arith.constant 320 : index
    %202 = vector.load %arg15[%c0_151, %c320_152] : memref<2x336xf32, #tpu.memory_space<vmem>>, vector<1x16xf32>
    %203 = vector.broadcast %202 : vector<1x16xf32> to vector<32x16xf32>
    %204 = arith.mulf %201, %203 : vector<32x16xf32>
    %c0_153 = arith.constant 0 : index
    %c132 = arith.constant 132 : index
    %205 = vector.load %arg17[%c0_153, %c132] : memref<32x512xf32, #tpu.memory_space<vmem>>, vector<32x16xf32>
    %c0_154 = arith.constant 0 : index
    %c133 = arith.constant 133 : index
    %206 = vector.load %arg17[%c0_154, %c133] : memref<32x512xf32, #tpu.memory_space<vmem>>, vector<32x16xf32>
    %c1_155 = arith.constant 1 : index
    %c320_156 = arith.constant 320 : index
    %207 = vector.load %arg15[%c1_155, %c320_156] : memref<2x336xf32, #tpu.memory_space<vmem>>, vector<1x16xf32>
    %208 = vector.broadcast %207 : vector<1x16xf32> to vector<32x16xf32>
    %209 = arith.mulf %206, %208 : vector<32x16xf32>
    %210 = tpu.concatenate %186, %187, %191, %195, %196, %200, %204, %205, %209 in 0 : vector<32x16xf32>, vector<32x16xf32>, vector<32x16xf32>, vector<32x16xf32>, vector<32x16xf32>, vector<32x16xf32>, vector<32x16xf32>, vector<32x16xf32>, vector<32x16xf32> -> vector<288x16xf32>
    %211 = arith.truncf %210 : vector<288x16xf32> to vector<288x16xbf16>
    %cst_157 = arith.constant dense<0.000000e+00> : vector<32x16xf32>
    %212 = tpu.matmul %179, %211, %cst_157 {dimension_numbers = #tpu.dot_dimension_numbers<[1], [0], [0], [1], [0, 0, 1, 1], [], []>} : vector<32x288xbf16>, vector<288x16xbf16>, vector<32x16xf32> -> vector<32x16xf32>
    %cst_158 = arith.constant dense<0.000000e+00> : vector<32xf32>
    %213 = vector.multi_reduction <add>, %212, %cst_158 [1] : vector<32x16xf32> to vector<32xf32>
    %214 = vector.shape_cast %213 : vector<32xf32> to vector<32x1xf32>
    %215 = arith.mulf %212, %212 : vector<32x16xf32>
    %cst_159 = arith.constant dense<0.000000e+00> : vector<32xf32>
    %216 = vector.multi_reduction <add>, %215, %cst_159 [1] : vector<32x16xf32> to vector<32xf32>
    %217 = vector.shape_cast %216 : vector<32xf32> to vector<32x1xf32>
    %cst_160 = arith.constant 6.250000e-02 : f32
    %218 = vector.broadcast %cst_160 : f32 to vector<32x1xf32>
    %219 = arith.mulf %214, %218 : vector<32x1xf32>
    %cst_161 = arith.constant 6.250000e-02 : f32
    %220 = vector.broadcast %cst_161 : f32 to vector<32x1xf32>
    %221 = arith.mulf %217, %220 : vector<32x1xf32>
    %222 = arith.mulf %219, %219 : vector<32x1xf32>
    %223 = arith.subf %221, %222 : vector<32x1xf32>
    %cst_162 = arith.constant 0.000000e+00 : f32
    %224 = vector.broadcast %cst_162 : f32 to vector<32x1xf32>
    %225 = arith.maximumf %223, %224 : vector<32x1xf32>
    %226 = vector.broadcast %219 : vector<32x1xf32> to vector<32x16xf32>
    %227 = arith.subf %212, %226 : vector<32x16xf32>
    %cst_163 = arith.constant 9.99999974E-6 : f32
    %228 = vector.broadcast %cst_163 : f32 to vector<32x1xf32>
    %229 = arith.addf %225, %228 : vector<32x1xf32>
    %230 = math.rsqrt %229 : vector<32x1xf32>
    %231 = vector.broadcast %230 : vector<32x1xf32> to vector<32x16xf32>
    %232 = arith.mulf %227, %231 : vector<32x16xf32>
    %c0_164 = arith.constant 0 : index
    %c0_165 = arith.constant 0 : index
    %c0_166 = arith.constant 0 : index
    %233 = vector.load %arg6[%c0_164, %c0_165, %c0_166] : memref<8x32x1xf32, #tpu.memory_space<vmem>>, vector<1x32x1xf32>
    %234 = vector.shape_cast %233 : vector<1x32x1xf32> to vector<32x1xf32>
    %235 = vector.broadcast %234 : vector<32x1xf32> to vector<32x16xf32>
    %236 = arith.mulf %232, %235 : vector<32x16xf32>
    %c0_167 = arith.constant 0 : index
    %c0_168 = arith.constant 0 : index
    %c0_169 = arith.constant 0 : index
    %237 = vector.load %arg7[%c0_167, %c0_168, %c0_169] : memref<8x32x1xf32, #tpu.memory_space<vmem>>, vector<1x32x1xf32>
    %238 = vector.shape_cast %237 : vector<1x32x1xf32> to vector<32x1xf32>
    %239 = vector.broadcast %238 : vector<32x1xf32> to vector<32x16xf32>
    %240 = arith.addf %236, %239 : vector<32x16xf32>
    %cst_170 = arith.constant 0.000000e+00 : f32
    %241 = vector.broadcast %cst_170 : f32 to vector<32x16xf32>
    %242 = arith.maximumf %240, %241 : vector<32x16xf32>
    %c1_171 = arith.constant 1 : index
    %c0_172 = arith.constant 0 : index
    %c0_173 = arith.constant 0 : index
    %243 = vector.load %arg5[%c1_171, %c0_172, %c0_173] : memref<8x32x288xbf16, #tpu.memory_space<vmem>>, vector<1x32x288xbf16>
    %244 = vector.shape_cast %243 : vector<1x32x288xbf16> to vector<32x288xbf16>
    %cst_174 = arith.constant 0.000000e+00 : f32
    %245 = vector.broadcast %cst_174 : f32 to vector<32x5xf32>
    %c0_175 = arith.constant 0 : index
    %c144_176 = arith.constant 144 : index
    %246 = vector.load %arg17[%c0_175, %c144_176] : memref<32x512xf32, #tpu.memory_space<vmem>>, vector<32x5xf32>
    tpu.vector_store %arg17[%c0_175, %c144_176], %245 {strides = array<i32>} : memref<32x512xf32, #tpu.memory_space<vmem>>, vector<32x5xf32>,
    %c0_177 = arith.constant 0 : index
    %c128_178 = arith.constant 128 : index
    %247 = vector.load %arg17[%c0_177, %c128_178] : memref<32x512xf32, #tpu.memory_space<vmem>>, vector<32x16xf32>
    tpu.vector_store %arg17[%c0_177, %c128_178], %242 {strides = array<i32>} : memref<32x512xf32, #tpu.memory_space<vmem>>, vector<32x16xf32>,
    %c0_179 = arith.constant 0 : index
    %c123_180 = arith.constant 123 : index
    %248 = vector.load %arg17[%c0_179, %c123_180] : memref<32x512xf32, #tpu.memory_space<vmem>>, vector<32x16xf32>
    %c0_181 = arith.constant 0 : index
    %c320_182 = arith.constant 320 : index
    %249 = vector.load %arg15[%c0_181, %c320_182] : memref<2x336xf32, #tpu.memory_space<vmem>>, vector<1x16xf32>
    %250 = vector.broadcast %249 : vector<1x16xf32> to vector<32x16xf32>
    %251 = arith.mulf %248, %250 : vector<32x16xf32>
    %c0_183 = arith.constant 0 : index
    %c124_184 = arith.constant 124 : index
    %252 = vector.load %arg17[%c0_183, %c124_184] : memref<32x512xf32, #tpu.memory_space<vmem>>, vector<32x16xf32>
    %c0_185 = arith.constant 0 : index
    %c125_186 = arith.constant 125 : index
    %253 = vector.load %arg17[%c0_185, %c125_186] : memref<32x512xf32, #tpu.memory_space<vmem>>, vector<32x16xf32>
    %c1_187 = arith.constant 1 : index
    %c320_188 = arith.constant 320 : index
    %254 = vector.load %arg15[%c1_187, %c320_188] : memref<2x336xf32, #tpu.memory_space<vmem>>, vector<1x16xf32>
    %255 = vector.broadcast %254 : vector<1x16xf32> to vector<32x16xf32>
    %256 = arith.mulf %253, %255 : vector<32x16xf32>
    %c0_189 = arith.constant 0 : index
    %c127_190 = arith.constant 127 : index
    %257 = vector.load %arg17[%c0_189, %c127_190] : memref<32x512xf32, #tpu.memory_space<vmem>>, vector<32x16xf32>
    %c0_191 = arith.constant 0 : index
    %c320_192 = arith.constant 320 : index
    %258 = vector.load %arg15[%c0_191, %c320_192] : memref<2x336xf32, #tpu.memory_space<vmem>>, vector<1x16xf32>
    %259 = vector.broadcast %258 : vector<1x16xf32> to vector<32x16xf32>
    %260 = arith.mulf %257, %259 : vector<32x16xf32>
    %c0_193 = arith.constant 0 : index
    %c128_194 = arith.constant 128 : index
    %261 = vector.load %arg17[%c0_193, %c128_194] : memref<32x512xf32, #tpu.memory_space<vmem>>, vector<32x16xf32>
    %c0_195 = arith.constant 0 : index
    %c129_196 = arith.constant 129 : index
    %262 = vector.load %arg17[%c0_195, %c129_196] : memref<32x512xf32, #tpu.memory_space<vmem>>, vector<32x16xf32>
    %c1_197 = arith.constant 1 : index
    %c320_198 = arith.constant 320 : index
    %263 = vector.load %arg15[%c1_197, %c320_198] : memref<2x336xf32, #tpu.memory_space<vmem>>, vector<1x16xf32>
    %264 = vector.broadcast %263 : vector<1x16xf32> to vector<32x16xf32>
    %265 = arith.mulf %262, %264 : vector<32x16xf32>
    %c0_199 = arith.constant 0 : index
    %c131_200 = arith.constant 131 : index
    %266 = vector.load %arg17[%c0_199, %c131_200] : memref<32x512xf32, #tpu.memory_space<vmem>>, vector<32x16xf32>
    %c0_201 = arith.constant 0 : index
    %c320_202 = arith.constant 320 : index
    %267 = vector.load %arg15[%c0_201, %c320_202] : memref<2x336xf32, #tpu.memory_space<vmem>>, vector<1x16xf32>
    %268 = vector.broadcast %267 : vector<1x16xf32> to vector<32x16xf32>
    %269 = arith.mulf %266, %268 : vector<32x16xf32>
    %c0_203 = arith.constant 0 : index
    %c132_204 = arith.constant 132 : index
    %270 = vector.load %arg17[%c0_203, %c132_204] : memref<32x512xf32, #tpu.memory_space<vmem>>, vector<32x16xf32>
    %c0_205 = arith.constant 0 : index
    %c133_206 = arith.constant 133 : index
    %271 = vector.load %arg17[%c0_205, %c133_206] : memref<32x512xf32, #tpu.memory_space<vmem>>, vector<32x16xf32>
    %c1_207 = arith.constant 1 : index
    %c320_208 = arith.constant 320 : index
    %272 = vector.load %arg15[%c1_207, %c320_208] : memref<2x336xf32, #tpu.memory_space<vmem>>, vector<1x16xf32>
    %273 = vector.broadcast %272 : vector<1x16xf32> to vector<32x16xf32>
    %274 = arith.mulf %271, %273 : vector<32x16xf32>
    %275 = tpu.concatenate %251, %252, %256, %260, %261, %265, %269, %270, %274 in 0 : vector<32x16xf32>, vector<32x16xf32>, vector<32x16xf32>, vector<32x16xf32>, vector<32x16xf32>, vector<32x16xf32>, vector<32x16xf32>, vector<32x16xf32>, vector<32x16xf32> -> vector<288x16xf32>
    %276 = arith.truncf %275 : vector<288x16xf32> to vector<288x16xbf16>
    %cst_209 = arith.constant dense<0.000000e+00> : vector<32x16xf32>
    %277 = tpu.matmul %244, %276, %cst_209 {dimension_numbers = #tpu.dot_dimension_numbers<[1], [0], [0], [1], [0, 0, 1, 1], [], []>} : vector<32x288xbf16>, vector<288x16xbf16>, vector<32x16xf32> -> vector<32x16xf32>
    %cst_210 = arith.constant dense<0.000000e+00> : vector<32xf32>
    %278 = vector.multi_reduction <add>, %277, %cst_210 [1] : vector<32x16xf32> to vector<32xf32>
    %279 = vector.shape_cast %278 : vector<32xf32> to vector<32x1xf32>
    %280 = arith.mulf %277, %277 : vector<32x16xf32>
    %cst_211 = arith.constant dense<0.000000e+00> : vector<32xf32>
    %281 = vector.multi_reduction <add>, %280, %cst_211 [1] : vector<32x16xf32> to vector<32xf32>
    %282 = vector.shape_cast %281 : vector<32xf32> to vector<32x1xf32>
    %cst_212 = arith.constant 6.250000e-02 : f32
    %283 = vector.broadcast %cst_212 : f32 to vector<32x1xf32>
    %284 = arith.mulf %279, %283 : vector<32x1xf32>
    %cst_213 = arith.constant 6.250000e-02 : f32
    %285 = vector.broadcast %cst_213 : f32 to vector<32x1xf32>
    %286 = arith.mulf %282, %285 : vector<32x1xf32>
    %287 = arith.mulf %284, %284 : vector<32x1xf32>
    %288 = arith.subf %286, %287 : vector<32x1xf32>
    %cst_214 = arith.constant 0.000000e+00 : f32
    %289 = vector.broadcast %cst_214 : f32 to vector<32x1xf32>
    %290 = arith.maximumf %288, %289 : vector<32x1xf32>
    %291 = vector.broadcast %284 : vector<32x1xf32> to vector<32x16xf32>
    %292 = arith.subf %277, %291 : vector<32x16xf32>
    %cst_215 = arith.constant 9.99999974E-6 : f32
    %293 = vector.broadcast %cst_215 : f32 to vector<32x1xf32>
    %294 = arith.addf %290, %293 : vector<32x1xf32>
    %295 = math.rsqrt %294 : vector<32x1xf32>
    %296 = vector.broadcast %295 : vector<32x1xf32> to vector<32x16xf32>
    %297 = arith.mulf %292, %296 : vector<32x16xf32>
    %c1_216 = arith.constant 1 : index
    %c0_217 = arith.constant 0 : index
    %c0_218 = arith.constant 0 : index
    %298 = vector.load %arg6[%c1_216, %c0_217, %c0_218] : memref<8x32x1xf32, #tpu.memory_space<vmem>>, vector<1x32x1xf32>
    %299 = vector.shape_cast %298 : vector<1x32x1xf32> to vector<32x1xf32>
    %300 = vector.broadcast %299 : vector<32x1xf32> to vector<32x16xf32>
    %301 = arith.mulf %297, %300 : vector<32x16xf32>
    %c1_219 = arith.constant 1 : index
    %c0_220 = arith.constant 0 : index
    %c0_221 = arith.constant 0 : index
    %302 = vector.load %arg7[%c1_219, %c0_220, %c0_221] : memref<8x32x1xf32, #tpu.memory_space<vmem>>, vector<1x32x1xf32>
    %303 = vector.shape_cast %302 : vector<1x32x1xf32> to vector<32x1xf32>
    %304 = vector.broadcast %303 : vector<32x1xf32> to vector<32x16xf32>
    %305 = arith.addf %301, %304 : vector<32x16xf32>
    %306 = arith.addf %305, %177 : vector<32x16xf32>
    %c2 = arith.constant 2 : index
    %c0_222 = arith.constant 0 : index
    %c0_223 = arith.constant 0 : index
    %307 = vector.load %arg5[%c2, %c0_222, %c0_223] : memref<8x32x288xbf16, #tpu.memory_space<vmem>>, vector<1x32x288xbf16>
    %308 = vector.shape_cast %307 : vector<1x32x288xbf16> to vector<32x288xbf16>
    %cst_224 = arith.constant 0.000000e+00 : f32
    %309 = vector.broadcast %cst_224 : f32 to vector<32x5xf32>
    %c0_225 = arith.constant 0 : index
    %c144_226 = arith.constant 144 : index
    %310 = vector.load %arg17[%c0_225, %c144_226] : memref<32x512xf32, #tpu.memory_space<vmem>>, vector<32x5xf32>
    tpu.vector_store %arg17[%c0_225, %c144_226], %309 {strides = array<i32>} : memref<32x512xf32, #tpu.memory_space<vmem>>, vector<32x5xf32>,
    %c0_227 = arith.constant 0 : index
    %c128_228 = arith.constant 128 : index
    %311 = vector.load %arg17[%c0_227, %c128_228] : memref<32x512xf32, #tpu.memory_space<vmem>>, vector<32x16xf32>
    tpu.vector_store %arg17[%c0_227, %c128_228], %306 {strides = array<i32>} : memref<32x512xf32, #tpu.memory_space<vmem>>, vector<32x16xf32>,
    %c0_229 = arith.constant 0 : index
    %c123_230 = arith.constant 123 : index
    %312 = vector.load %arg17[%c0_229, %c123_230] : memref<32x512xf32, #tpu.memory_space<vmem>>, vector<32x16xf32>
    %c0_231 = arith.constant 0 : index
    %c320_232 = arith.constant 320 : index
    %313 = vector.load %arg15[%c0_231, %c320_232] : memref<2x336xf32, #tpu.memory_space<vmem>>, vector<1x16xf32>
    %314 = vector.broadcast %313 : vector<1x16xf32> to vector<32x16xf32>
    %315 = arith.mulf %312, %314 : vector<32x16xf32>
    %c0_233 = arith.constant 0 : index
    %c124_234 = arith.constant 124 : index
    %316 = vector.load %arg17[%c0_233, %c124_234] : memref<32x512xf32, #tpu.memory_space<vmem>>, vector<32x16xf32>
    %c0_235 = arith.constant 0 : index
    %c125_236 = arith.constant 125 : index
    %317 = vector.load %arg17[%c0_235, %c125_236] : memref<32x512xf32, #tpu.memory_space<vmem>>, vector<32x16xf32>
    %c1_237 = arith.constant 1 : index
    %c320_238 = arith.constant 320 : index
    %318 = vector.load %arg15[%c1_237, %c320_238] : memref<2x336xf32, #tpu.memory_space<vmem>>, vector<1x16xf32>
    %319 = vector.broadcast %318 : vector<1x16xf32> to vector<32x16xf32>
    %320 = arith.mulf %317, %319 : vector<32x16xf32>
    %c0_239 = arith.constant 0 : index
    %c127_240 = arith.constant 127 : index
    %321 = vector.load %arg17[%c0_239, %c127_240] : memref<32x512xf32, #tpu.memory_space<vmem>>, vector<32x16xf32>
    %c0_241 = arith.constant 0 : index
    %c320_242 = arith.constant 320 : index
    %322 = vector.load %arg15[%c0_241, %c320_242] : memref<2x336xf32, #tpu.memory_space<vmem>>, vector<1x16xf32>
    %323 = vector.broadcast %322 : vector<1x16xf32> to vector<32x16xf32>
    %324 = arith.mulf %321, %323 : vector<32x16xf32>
    %c0_243 = arith.constant 0 : index
    %c128_244 = arith.constant 128 : index
    %325 = vector.load %arg17[%c0_243, %c128_244] : memref<32x512xf32, #tpu.memory_space<vmem>>, vector<32x16xf32>
    %c0_245 = arith.constant 0 : index
    %c129_246 = arith.constant 129 : index
    %326 = vector.load %arg17[%c0_245, %c129_246] : memref<32x512xf32, #tpu.memory_space<vmem>>, vector<32x16xf32>
    %c1_247 = arith.constant 1 : index
    %c320_248 = arith.constant 320 : index
    %327 = vector.load %arg15[%c1_247, %c320_248] : memref<2x336xf32, #tpu.memory_space<vmem>>, vector<1x16xf32>
    %328 = vector.broadcast %327 : vector<1x16xf32> to vector<32x16xf32>
    %329 = arith.mulf %326, %328 : vector<32x16xf32>
    %c0_249 = arith.constant 0 : index
    %c131_250 = arith.constant 131 : index
    %330 = vector.load %arg17[%c0_249, %c131_250] : memref<32x512xf32, #tpu.memory_space<vmem>>, vector<32x16xf32>
    %c0_251 = arith.constant 0 : index
    %c320_252 = arith.constant 320 : index
    %331 = vector.load %arg15[%c0_251, %c320_252] : memref<2x336xf32, #tpu.memory_space<vmem>>, vector<1x16xf32>
    %332 = vector.broadcast %331 : vector<1x16xf32> to vector<32x16xf32>
    %333 = arith.mulf %330, %332 : vector<32x16xf32>
    %c0_253 = arith.constant 0 : index
    %c132_254 = arith.constant 132 : index
    %334 = vector.load %arg17[%c0_253, %c132_254] : memref<32x512xf32, #tpu.memory_space<vmem>>, vector<32x16xf32>
    %c0_255 = arith.constant 0 : index
    %c133_256 = arith.constant 133 : index
    %335 = vector.load %arg17[%c0_255, %c133_256] : memref<32x512xf32, #tpu.memory_space<vmem>>, vector<32x16xf32>
    %c1_257 = arith.constant 1 : index
    %c320_258 = arith.constant 320 : index
    %336 = vector.load %arg15[%c1_257, %c320_258] : memref<2x336xf32, #tpu.memory_space<vmem>>, vector<1x16xf32>
    %337 = vector.broadcast %336 : vector<1x16xf32> to vector<32x16xf32>
    %338 = arith.mulf %335, %337 : vector<32x16xf32>
    %339 = tpu.concatenate %315, %316, %320, %324, %325, %329, %333, %334, %338 in 0 : vector<32x16xf32>, vector<32x16xf32>, vector<32x16xf32>, vector<32x16xf32>, vector<32x16xf32>, vector<32x16xf32>, vector<32x16xf32>, vector<32x16xf32>, vector<32x16xf32> -> vector<288x16xf32>
    %340 = arith.truncf %339 : vector<288x16xf32> to vector<288x16xbf16>
    %cst_259 = arith.constant dense<0.000000e+00> : vector<32x16xf32>
    %341 = tpu.matmul %308, %340, %cst_259 {dimension_numbers = #tpu.dot_dimension_numbers<[1], [0], [0], [1], [0, 0, 1, 1], [], []>} : vector<32x288xbf16>, vector<288x16xbf16>, vector<32x16xf32> -> vector<32x16xf32>
    %cst_260 = arith.constant dense<0.000000e+00> : vector<32xf32>
    %342 = vector.multi_reduction <add>, %341, %cst_260 [1] : vector<32x16xf32> to vector<32xf32>
    %343 = vector.shape_cast %342 : vector<32xf32> to vector<32x1xf32>
    %344 = arith.mulf %341, %341 : vector<32x16xf32>
    %cst_261 = arith.constant dense<0.000000e+00> : vector<32xf32>
    %345 = vector.multi_reduction <add>, %344, %cst_261 [1] : vector<32x16xf32> to vector<32xf32>
    %346 = vector.shape_cast %345 : vector<32xf32> to vector<32x1xf32>
    %cst_262 = arith.constant 6.250000e-02 : f32
    %347 = vector.broadcast %cst_262 : f32 to vector<32x1xf32>
    %348 = arith.mulf %343, %347 : vector<32x1xf32>
    %cst_263 = arith.constant 6.250000e-02 : f32
    %349 = vector.broadcast %cst_263 : f32 to vector<32x1xf32>
    %350 = arith.mulf %346, %349 : vector<32x1xf32>
    %351 = arith.mulf %348, %348 : vector<32x1xf32>
    %352 = arith.subf %350, %351 : vector<32x1xf32>
    %cst_264 = arith.constant 0.000000e+00 : f32
    %353 = vector.broadcast %cst_264 : f32 to vector<32x1xf32>
    %354 = arith.maximumf %352, %353 : vector<32x1xf32>
    %355 = vector.broadcast %348 : vector<32x1xf32> to vector<32x16xf32>
    %356 = arith.subf %341, %355 : vector<32x16xf32>
    %cst_265 = arith.constant 9.99999974E-6 : f32
    %357 = vector.broadcast %cst_265 : f32 to vector<32x1xf32>
    %358 = arith.addf %354, %357 : vector<32x1xf32>
    %359 = math.rsqrt %358 : vector<32x1xf32>
    %360 = vector.broadcast %359 : vector<32x1xf32> to vector<32x16xf32>
    %361 = arith.mulf %356, %360 : vector<32x16xf32>
    %c2_266 = arith.constant 2 : index
    %c0_267 = arith.constant 0 : index
    %c0_268 = arith.constant 0 : index
    %362 = vector.load %arg6[%c2_266, %c0_267, %c0_268] : memref<8x32x1xf32, #tpu.memory_space<vmem>>, vector<1x32x1xf32>
    %363 = vector.shape_cast %362 : vector<1x32x1xf32> to vector<32x1xf32>
    %364 = vector.broadcast %363 : vector<32x1xf32> to vector<32x16xf32>
    %365 = arith.mulf %361, %364 : vector<32x16xf32>
    %c2_269 = arith.constant 2 : index
    %c0_270 = arith.constant 0 : index
    %c0_271 = arith.constant 0 : index
    %366 = vector.load %arg7[%c2_269, %c0_270, %c0_271] : memref<8x32x1xf32, #tpu.memory_space<vmem>>, vector<1x32x1xf32>
    %367 = vector.shape_cast %366 : vector<1x32x1xf32> to vector<32x1xf32>
    %368 = vector.broadcast %367 : vector<32x1xf32> to vector<32x16xf32>
    %369 = arith.addf %365, %368 : vector<32x16xf32>
    %cst_272 = arith.constant 0.000000e+00 : f32
    %370 = vector.broadcast %cst_272 : f32 to vector<32x16xf32>
    %371 = arith.maximumf %369, %370 : vector<32x16xf32>
    %c3 = arith.constant 3 : index
    %c0_273 = arith.constant 0 : index
    %c0_274 = arith.constant 0 : index
    %372 = vector.load %arg5[%c3, %c0_273, %c0_274] : memref<8x32x288xbf16, #tpu.memory_space<vmem>>, vector<1x32x288xbf16>
    %373 = vector.shape_cast %372 : vector<1x32x288xbf16> to vector<32x288xbf16>
    %cst_275 = arith.constant 0.000000e+00 : f32
    %374 = vector.broadcast %cst_275 : f32 to vector<32x5xf32>
    %c0_276 = arith.constant 0 : index
    %c144_277 = arith.constant 144 : index
    %375 = vector.load %arg17[%c0_276, %c144_277] : memref<32x512xf32, #tpu.memory_space<vmem>>, vector<32x5xf32>
    tpu.vector_store %arg17[%c0_276, %c144_277], %374 {strides = array<i32>} : memref<32x512xf32, #tpu.memory_space<vmem>>, vector<32x5xf32>,
    %c0_278 = arith.constant 0 : index
    %c128_279 = arith.constant 128 : index
    %376 = vector.load %arg17[%c0_278, %c128_279] : memref<32x512xf32, #tpu.memory_space<vmem>>, vector<32x16xf32>
    tpu.vector_store %arg17[%c0_278, %c128_279], %371 {strides = array<i32>} : memref<32x512xf32, #tpu.memory_space<vmem>>, vector<32x16xf32>,
    %c0_280 = arith.constant 0 : index
    %c123_281 = arith.constant 123 : index
    %377 = vector.load %arg17[%c0_280, %c123_281] : memref<32x512xf32, #tpu.memory_space<vmem>>, vector<32x16xf32>
    %c0_282 = arith.constant 0 : index
    %c320_283 = arith.constant 320 : index
    %378 = vector.load %arg15[%c0_282, %c320_283] : memref<2x336xf32, #tpu.memory_space<vmem>>, vector<1x16xf32>
    %379 = vector.broadcast %378 : vector<1x16xf32> to vector<32x16xf32>
    %380 = arith.mulf %377, %379 : vector<32x16xf32>
    %c0_284 = arith.constant 0 : index
    %c124_285 = arith.constant 124 : index
    %381 = vector.load %arg17[%c0_284, %c124_285] : memref<32x512xf32, #tpu.memory_space<vmem>>, vector<32x16xf32>
    %c0_286 = arith.constant 0 : index
    %c125_287 = arith.constant 125 : index
    %382 = vector.load %arg17[%c0_286, %c125_287] : memref<32x512xf32, #tpu.memory_space<vmem>>, vector<32x16xf32>
    %c1_288 = arith.constant 1 : index
    %c320_289 = arith.constant 320 : index
    %383 = vector.load %arg15[%c1_288, %c320_289] : memref<2x336xf32, #tpu.memory_space<vmem>>, vector<1x16xf32>
    %384 = vector.broadcast %383 : vector<1x16xf32> to vector<32x16xf32>
    %385 = arith.mulf %382, %384 : vector<32x16xf32>
    %c0_290 = arith.constant 0 : index
    %c127_291 = arith.constant 127 : index
    %386 = vector.load %arg17[%c0_290, %c127_291] : memref<32x512xf32, #tpu.memory_space<vmem>>, vector<32x16xf32>
    %c0_292 = arith.constant 0 : index
    %c320_293 = arith.constant 320 : index
    %387 = vector.load %arg15[%c0_292, %c320_293] : memref<2x336xf32, #tpu.memory_space<vmem>>, vector<1x16xf32>
    %388 = vector.broadcast %387 : vector<1x16xf32> to vector<32x16xf32>
    %389 = arith.mulf %386, %388 : vector<32x16xf32>
    %c0_294 = arith.constant 0 : index
    %c128_295 = arith.constant 128 : index
    %390 = vector.load %arg17[%c0_294, %c128_295] : memref<32x512xf32, #tpu.memory_space<vmem>>, vector<32x16xf32>
    %c0_296 = arith.constant 0 : index
    %c129_297 = arith.constant 129 : index
    %391 = vector.load %arg17[%c0_296, %c129_297] : memref<32x512xf32, #tpu.memory_space<vmem>>, vector<32x16xf32>
    %c1_298 = arith.constant 1 : index
    %c320_299 = arith.constant 320 : index
    %392 = vector.load %arg15[%c1_298, %c320_299] : memref<2x336xf32, #tpu.memory_space<vmem>>, vector<1x16xf32>
    %393 = vector.broadcast %392 : vector<1x16xf32> to vector<32x16xf32>
    %394 = arith.mulf %391, %393 : vector<32x16xf32>
    %c0_300 = arith.constant 0 : index
    %c131_301 = arith.constant 131 : index
    %395 = vector.load %arg17[%c0_300, %c131_301] : memref<32x512xf32, #tpu.memory_space<vmem>>, vector<32x16xf32>
    %c0_302 = arith.constant 0 : index
    %c320_303 = arith.constant 320 : index
    %396 = vector.load %arg15[%c0_302, %c320_303] : memref<2x336xf32, #tpu.memory_space<vmem>>, vector<1x16xf32>
    %397 = vector.broadcast %396 : vector<1x16xf32> to vector<32x16xf32>
    %398 = arith.mulf %395, %397 : vector<32x16xf32>
    %c0_304 = arith.constant 0 : index
    %c132_305 = arith.constant 132 : index
    %399 = vector.load %arg17[%c0_304, %c132_305] : memref<32x512xf32, #tpu.memory_space<vmem>>, vector<32x16xf32>
    %c0_306 = arith.constant 0 : index
    %c133_307 = arith.constant 133 : index
    %400 = vector.load %arg17[%c0_306, %c133_307] : memref<32x512xf32, #tpu.memory_space<vmem>>, vector<32x16xf32>
    %c1_308 = arith.constant 1 : index
    %c320_309 = arith.constant 320 : index
    %401 = vector.load %arg15[%c1_308, %c320_309] : memref<2x336xf32, #tpu.memory_space<vmem>>, vector<1x16xf32>
    %402 = vector.broadcast %401 : vector<1x16xf32> to vector<32x16xf32>
    %403 = arith.mulf %400, %402 : vector<32x16xf32>
    %404 = tpu.concatenate %380, %381, %385, %389, %390, %394, %398, %399, %403 in 0 : vector<32x16xf32>, vector<32x16xf32>, vector<32x16xf32>, vector<32x16xf32>, vector<32x16xf32>, vector<32x16xf32>, vector<32x16xf32>, vector<32x16xf32>, vector<32x16xf32> -> vector<288x16xf32>
    %405 = arith.truncf %404 : vector<288x16xf32> to vector<288x16xbf16>
    %cst_310 = arith.constant dense<0.000000e+00> : vector<32x16xf32>
    %406 = tpu.matmul %373, %405, %cst_310 {dimension_numbers = #tpu.dot_dimension_numbers<[1], [0], [0], [1], [0, 0, 1, 1], [], []>} : vector<32x288xbf16>, vector<288x16xbf16>, vector<32x16xf32> -> vector<32x16xf32>
    %cst_311 = arith.constant dense<0.000000e+00> : vector<32xf32>
    %407 = vector.multi_reduction <add>, %406, %cst_311 [1] : vector<32x16xf32> to vector<32xf32>
    %408 = vector.shape_cast %407 : vector<32xf32> to vector<32x1xf32>
    %409 = arith.mulf %406, %406 : vector<32x16xf32>
    %cst_312 = arith.constant dense<0.000000e+00> : vector<32xf32>
    %410 = vector.multi_reduction <add>, %409, %cst_312 [1] : vector<32x16xf32> to vector<32xf32>
    %411 = vector.shape_cast %410 : vector<32xf32> to vector<32x1xf32>
    %cst_313 = arith.constant 6.250000e-02 : f32
    %412 = vector.broadcast %cst_313 : f32 to vector<32x1xf32>
    %413 = arith.mulf %408, %412 : vector<32x1xf32>
    %cst_314 = arith.constant 6.250000e-02 : f32
    %414 = vector.broadcast %cst_314 : f32 to vector<32x1xf32>
    %415 = arith.mulf %411, %414 : vector<32x1xf32>
    %416 = arith.mulf %413, %413 : vector<32x1xf32>
    %417 = arith.subf %415, %416 : vector<32x1xf32>
    %cst_315 = arith.constant 0.000000e+00 : f32
    %418 = vector.broadcast %cst_315 : f32 to vector<32x1xf32>
    %419 = arith.maximumf %417, %418 : vector<32x1xf32>
    %420 = vector.broadcast %413 : vector<32x1xf32> to vector<32x16xf32>
    %421 = arith.subf %406, %420 : vector<32x16xf32>
    %cst_316 = arith.constant 9.99999974E-6 : f32
    %422 = vector.broadcast %cst_316 : f32 to vector<32x1xf32>
    %423 = arith.addf %419, %422 : vector<32x1xf32>
    %424 = math.rsqrt %423 : vector<32x1xf32>
    %425 = vector.broadcast %424 : vector<32x1xf32> to vector<32x16xf32>
    %426 = arith.mulf %421, %425 : vector<32x16xf32>
    %c3_317 = arith.constant 3 : index
    %c0_318 = arith.constant 0 : index
    %c0_319 = arith.constant 0 : index
    %427 = vector.load %arg6[%c3_317, %c0_318, %c0_319] : memref<8x32x1xf32, #tpu.memory_space<vmem>>, vector<1x32x1xf32>
    %428 = vector.shape_cast %427 : vector<1x32x1xf32> to vector<32x1xf32>
    %429 = vector.broadcast %428 : vector<32x1xf32> to vector<32x16xf32>
    %430 = arith.mulf %426, %429 : vector<32x16xf32>
    %c3_320 = arith.constant 3 : index
    %c0_321 = arith.constant 0 : index
    %c0_322 = arith.constant 0 : index
    %431 = vector.load %arg7[%c3_320, %c0_321, %c0_322] : memref<8x32x1xf32, #tpu.memory_space<vmem>>, vector<1x32x1xf32>
    %432 = vector.shape_cast %431 : vector<1x32x1xf32> to vector<32x1xf32>
    %433 = vector.broadcast %432 : vector<32x1xf32> to vector<32x16xf32>
    %434 = arith.addf %430, %433 : vector<32x16xf32>
    %435 = arith.addf %434, %306 : vector<32x16xf32>
    %c4 = arith.constant 4 : index
    %c0_323 = arith.constant 0 : index
    %c0_324 = arith.constant 0 : index
    %436 = vector.load %arg5[%c4, %c0_323, %c0_324] : memref<8x32x288xbf16, #tpu.memory_space<vmem>>, vector<1x32x288xbf16>
    %437 = vector.shape_cast %436 : vector<1x32x288xbf16> to vector<32x288xbf16>
    %cst_325 = arith.constant 0.000000e+00 : f32
    %438 = vector.broadcast %cst_325 : f32 to vector<32x5xf32>
    %c0_326 = arith.constant 0 : index
    %c144_327 = arith.constant 144 : index
    %439 = vector.load %arg17[%c0_326, %c144_327] : memref<32x512xf32, #tpu.memory_space<vmem>>, vector<32x5xf32>
    tpu.vector_store %arg17[%c0_326, %c144_327], %438 {strides = array<i32>} : memref<32x512xf32, #tpu.memory_space<vmem>>, vector<32x5xf32>,
    %c0_328 = arith.constant 0 : index
    %c128_329 = arith.constant 128 : index
    %440 = vector.load %arg17[%c0_328, %c128_329] : memref<32x512xf32, #tpu.memory_space<vmem>>, vector<32x16xf32>
    tpu.vector_store %arg17[%c0_328, %c128_329], %435 {strides = array<i32>} : memref<32x512xf32, #tpu.memory_space<vmem>>, vector<32x16xf32>,
    %c0_330 = arith.constant 0 : index
    %c123_331 = arith.constant 123 : index
    %441 = vector.load %arg17[%c0_330, %c123_331] : memref<32x512xf32, #tpu.memory_space<vmem>>, vector<32x16xf32>
    %c0_332 = arith.constant 0 : index
    %c320_333 = arith.constant 320 : index
    %442 = vector.load %arg15[%c0_332, %c320_333] : memref<2x336xf32, #tpu.memory_space<vmem>>, vector<1x16xf32>
    %443 = vector.broadcast %442 : vector<1x16xf32> to vector<32x16xf32>
    %444 = arith.mulf %441, %443 : vector<32x16xf32>
    %c0_334 = arith.constant 0 : index
    %c124_335 = arith.constant 124 : index
    %445 = vector.load %arg17[%c0_334, %c124_335] : memref<32x512xf32, #tpu.memory_space<vmem>>, vector<32x16xf32>
    %c0_336 = arith.constant 0 : index
    %c125_337 = arith.constant 125 : index
    %446 = vector.load %arg17[%c0_336, %c125_337] : memref<32x512xf32, #tpu.memory_space<vmem>>, vector<32x16xf32>
    %c1_338 = arith.constant 1 : index
    %c320_339 = arith.constant 320 : index
    %447 = vector.load %arg15[%c1_338, %c320_339] : memref<2x336xf32, #tpu.memory_space<vmem>>, vector<1x16xf32>
    %448 = vector.broadcast %447 : vector<1x16xf32> to vector<32x16xf32>
    %449 = arith.mulf %446, %448 : vector<32x16xf32>
    %c0_340 = arith.constant 0 : index
    %c127_341 = arith.constant 127 : index
    %450 = vector.load %arg17[%c0_340, %c127_341] : memref<32x512xf32, #tpu.memory_space<vmem>>, vector<32x16xf32>
    %c0_342 = arith.constant 0 : index
    %c320_343 = arith.constant 320 : index
    %451 = vector.load %arg15[%c0_342, %c320_343] : memref<2x336xf32, #tpu.memory_space<vmem>>, vector<1x16xf32>
    %452 = vector.broadcast %451 : vector<1x16xf32> to vector<32x16xf32>
    %453 = arith.mulf %450, %452 : vector<32x16xf32>
    %c0_344 = arith.constant 0 : index
    %c128_345 = arith.constant 128 : index
    %454 = vector.load %arg17[%c0_344, %c128_345] : memref<32x512xf32, #tpu.memory_space<vmem>>, vector<32x16xf32>
    %c0_346 = arith.constant 0 : index
    %c129_347 = arith.constant 129 : index
    %455 = vector.load %arg17[%c0_346, %c129_347] : memref<32x512xf32, #tpu.memory_space<vmem>>, vector<32x16xf32>
    %c1_348 = arith.constant 1 : index
    %c320_349 = arith.constant 320 : index
    %456 = vector.load %arg15[%c1_348, %c320_349] : memref<2x336xf32, #tpu.memory_space<vmem>>, vector<1x16xf32>
    %457 = vector.broadcast %456 : vector<1x16xf32> to vector<32x16xf32>
    %458 = arith.mulf %455, %457 : vector<32x16xf32>
    %c0_350 = arith.constant 0 : index
    %c131_351 = arith.constant 131 : index
    %459 = vector.load %arg17[%c0_350, %c131_351] : memref<32x512xf32, #tpu.memory_space<vmem>>, vector<32x16xf32>
    %c0_352 = arith.constant 0 : index
    %c320_353 = arith.constant 320 : index
    %460 = vector.load %arg15[%c0_352, %c320_353] : memref<2x336xf32, #tpu.memory_space<vmem>>, vector<1x16xf32>
    %461 = vector.broadcast %460 : vector<1x16xf32> to vector<32x16xf32>
    %462 = arith.mulf %459, %461 : vector<32x16xf32>
    %c0_354 = arith.constant 0 : index
    %c132_355 = arith.constant 132 : index
    %463 = vector.load %arg17[%c0_354, %c132_355] : memref<32x512xf32, #tpu.memory_space<vmem>>, vector<32x16xf32>
    %c0_356 = arith.constant 0 : index
    %c133_357 = arith.constant 133 : index
    %464 = vector.load %arg17[%c0_356, %c133_357] : memref<32x512xf32, #tpu.memory_space<vmem>>, vector<32x16xf32>
    %c1_358 = arith.constant 1 : index
    %c320_359 = arith.constant 320 : index
    %465 = vector.load %arg15[%c1_358, %c320_359] : memref<2x336xf32, #tpu.memory_space<vmem>>, vector<1x16xf32>
    %466 = vector.broadcast %465 : vector<1x16xf32> to vector<32x16xf32>
    %467 = arith.mulf %464, %466 : vector<32x16xf32>
    %468 = tpu.concatenate %444, %445, %449, %453, %454, %458, %462, %463, %467 in 0 : vector<32x16xf32>, vector<32x16xf32>, vector<32x16xf32>, vector<32x16xf32>, vector<32x16xf32>, vector<32x16xf32>, vector<32x16xf32>, vector<32x16xf32>, vector<32x16xf32> -> vector<288x16xf32>
    %469 = arith.truncf %468 : vector<288x16xf32> to vector<288x16xbf16>
    %cst_360 = arith.constant dense<0.000000e+00> : vector<32x16xf32>
    %470 = tpu.matmul %437, %469, %cst_360 {dimension_numbers = #tpu.dot_dimension_numbers<[1], [0], [0], [1], [0, 0, 1, 1], [], []>} : vector<32x288xbf16>, vector<288x16xbf16>, vector<32x16xf32> -> vector<32x16xf32>
    %cst_361 = arith.constant dense<0.000000e+00> : vector<32xf32>
    %471 = vector.multi_reduction <add>, %470, %cst_361 [1] : vector<32x16xf32> to vector<32xf32>
    %472 = vector.shape_cast %471 : vector<32xf32> to vector<32x1xf32>
    %473 = arith.mulf %470, %470 : vector<32x16xf32>
    %cst_362 = arith.constant dense<0.000000e+00> : vector<32xf32>
    %474 = vector.multi_reduction <add>, %473, %cst_362 [1] : vector<32x16xf32> to vector<32xf32>
    %475 = vector.shape_cast %474 : vector<32xf32> to vector<32x1xf32>
    %cst_363 = arith.constant 6.250000e-02 : f32
    %476 = vector.broadcast %cst_363 : f32 to vector<32x1xf32>
    %477 = arith.mulf %472, %476 : vector<32x1xf32>
    %cst_364 = arith.constant 6.250000e-02 : f32
    %478 = vector.broadcast %cst_364 : f32 to vector<32x1xf32>
    %479 = arith.mulf %475, %478 : vector<32x1xf32>
    %480 = arith.mulf %477, %477 : vector<32x1xf32>
    %481 = arith.subf %479, %480 : vector<32x1xf32>
    %cst_365 = arith.constant 0.000000e+00 : f32
    %482 = vector.broadcast %cst_365 : f32 to vector<32x1xf32>
    %483 = arith.maximumf %481, %482 : vector<32x1xf32>
    %484 = vector.broadcast %477 : vector<32x1xf32> to vector<32x16xf32>
    %485 = arith.subf %470, %484 : vector<32x16xf32>
    %cst_366 = arith.constant 9.99999974E-6 : f32
    %486 = vector.broadcast %cst_366 : f32 to vector<32x1xf32>
    %487 = arith.addf %483, %486 : vector<32x1xf32>
    %488 = math.rsqrt %487 : vector<32x1xf32>
    %489 = vector.broadcast %488 : vector<32x1xf32> to vector<32x16xf32>
    %490 = arith.mulf %485, %489 : vector<32x16xf32>
    %c4_367 = arith.constant 4 : index
    %c0_368 = arith.constant 0 : index
    %c0_369 = arith.constant 0 : index
    %491 = vector.load %arg6[%c4_367, %c0_368, %c0_369] : memref<8x32x1xf32, #tpu.memory_space<vmem>>, vector<1x32x1xf32>
    %492 = vector.shape_cast %491 : vector<1x32x1xf32> to vector<32x1xf32>
    %493 = vector.broadcast %492 : vector<32x1xf32> to vector<32x16xf32>
    %494 = arith.mulf %490, %493 : vector<32x16xf32>
    %c4_370 = arith.constant 4 : index
    %c0_371 = arith.constant 0 : index
    %c0_372 = arith.constant 0 : index
    %495 = vector.load %arg7[%c4_370, %c0_371, %c0_372] : memref<8x32x1xf32, #tpu.memory_space<vmem>>, vector<1x32x1xf32>
    %496 = vector.shape_cast %495 : vector<1x32x1xf32> to vector<32x1xf32>
    %497 = vector.broadcast %496 : vector<32x1xf32> to vector<32x16xf32>
    %498 = arith.addf %494, %497 : vector<32x16xf32>
    %cst_373 = arith.constant 0.000000e+00 : f32
    %499 = vector.broadcast %cst_373 : f32 to vector<32x16xf32>
    %500 = arith.maximumf %498, %499 : vector<32x16xf32>
    %c5 = arith.constant 5 : index
    %c0_374 = arith.constant 0 : index
    %c0_375 = arith.constant 0 : index
    %501 = vector.load %arg5[%c5, %c0_374, %c0_375] : memref<8x32x288xbf16, #tpu.memory_space<vmem>>, vector<1x32x288xbf16>
    %502 = vector.shape_cast %501 : vector<1x32x288xbf16> to vector<32x288xbf16>
    %cst_376 = arith.constant 0.000000e+00 : f32
    %503 = vector.broadcast %cst_376 : f32 to vector<32x5xf32>
    %c0_377 = arith.constant 0 : index
    %c144_378 = arith.constant 144 : index
    %504 = vector.load %arg17[%c0_377, %c144_378] : memref<32x512xf32, #tpu.memory_space<vmem>>, vector<32x5xf32>
    tpu.vector_store %arg17[%c0_377, %c144_378], %503 {strides = array<i32>} : memref<32x512xf32, #tpu.memory_space<vmem>>, vector<32x5xf32>,
    %c0_379 = arith.constant 0 : index
    %c128_380 = arith.constant 128 : index
    %505 = vector.load %arg17[%c0_379, %c128_380] : memref<32x512xf32, #tpu.memory_space<vmem>>, vector<32x16xf32>
    tpu.vector_store %arg17[%c0_379, %c128_380], %500 {strides = array<i32>} : memref<32x512xf32, #tpu.memory_space<vmem>>, vector<32x16xf32>,
    %c0_381 = arith.constant 0 : index
    %c123_382 = arith.constant 123 : index
    %506 = vector.load %arg17[%c0_381, %c123_382] : memref<32x512xf32, #tpu.memory_space<vmem>>, vector<32x16xf32>
    %c0_383 = arith.constant 0 : index
    %c320_384 = arith.constant 320 : index
    %507 = vector.load %arg15[%c0_383, %c320_384] : memref<2x336xf32, #tpu.memory_space<vmem>>, vector<1x16xf32>
    %508 = vector.broadcast %507 : vector<1x16xf32> to vector<32x16xf32>
    %509 = arith.mulf %506, %508 : vector<32x16xf32>
    %c0_385 = arith.constant 0 : index
    %c124_386 = arith.constant 124 : index
    %510 = vector.load %arg17[%c0_385, %c124_386] : memref<32x512xf32, #tpu.memory_space<vmem>>, vector<32x16xf32>
    %c0_387 = arith.constant 0 : index
    %c125_388 = arith.constant 125 : index
    %511 = vector.load %arg17[%c0_387, %c125_388] : memref<32x512xf32, #tpu.memory_space<vmem>>, vector<32x16xf32>
    %c1_389 = arith.constant 1 : index
    %c320_390 = arith.constant 320 : index
    %512 = vector.load %arg15[%c1_389, %c320_390] : memref<2x336xf32, #tpu.memory_space<vmem>>, vector<1x16xf32>
    %513 = vector.broadcast %512 : vector<1x16xf32> to vector<32x16xf32>
    %514 = arith.mulf %511, %513 : vector<32x16xf32>
    %c0_391 = arith.constant 0 : index
    %c127_392 = arith.constant 127 : index
    %515 = vector.load %arg17[%c0_391, %c127_392] : memref<32x512xf32, #tpu.memory_space<vmem>>, vector<32x16xf32>
    %c0_393 = arith.constant 0 : index
    %c320_394 = arith.constant 320 : index
    %516 = vector.load %arg15[%c0_393, %c320_394] : memref<2x336xf32, #tpu.memory_space<vmem>>, vector<1x16xf32>
    %517 = vector.broadcast %516 : vector<1x16xf32> to vector<32x16xf32>
    %518 = arith.mulf %515, %517 : vector<32x16xf32>
    %c0_395 = arith.constant 0 : index
    %c128_396 = arith.constant 128 : index
    %519 = vector.load %arg17[%c0_395, %c128_396] : memref<32x512xf32, #tpu.memory_space<vmem>>, vector<32x16xf32>
    %c0_397 = arith.constant 0 : index
    %c129_398 = arith.constant 129 : index
    %520 = vector.load %arg17[%c0_397, %c129_398] : memref<32x512xf32, #tpu.memory_space<vmem>>, vector<32x16xf32>
    %c1_399 = arith.constant 1 : index
    %c320_400 = arith.constant 320 : index
    %521 = vector.load %arg15[%c1_399, %c320_400] : memref<2x336xf32, #tpu.memory_space<vmem>>, vector<1x16xf32>
    %522 = vector.broadcast %521 : vector<1x16xf32> to vector<32x16xf32>
    %523 = arith.mulf %520, %522 : vector<32x16xf32>
    %c0_401 = arith.constant 0 : index
    %c131_402 = arith.constant 131 : index
    %524 = vector.load %arg17[%c0_401, %c131_402] : memref<32x512xf32, #tpu.memory_space<vmem>>, vector<32x16xf32>
    %c0_403 = arith.constant 0 : index
    %c320_404 = arith.constant 320 : index
    %525 = vector.load %arg15[%c0_403, %c320_404] : memref<2x336xf32, #tpu.memory_space<vmem>>, vector<1x16xf32>
    %526 = vector.broadcast %525 : vector<1x16xf32> to vector<32x16xf32>
    %527 = arith.mulf %524, %526 : vector<32x16xf32>
    %c0_405 = arith.constant 0 : index
    %c132_406 = arith.constant 132 : index
    %528 = vector.load %arg17[%c0_405, %c132_406] : memref<32x512xf32, #tpu.memory_space<vmem>>, vector<32x16xf32>
    %c0_407 = arith.constant 0 : index
    %c133_408 = arith.constant 133 : index
    %529 = vector.load %arg17[%c0_407, %c133_408] : memref<32x512xf32, #tpu.memory_space<vmem>>, vector<32x16xf32>
    %c1_409 = arith.constant 1 : index
    %c320_410 = arith.constant 320 : index
    %530 = vector.load %arg15[%c1_409, %c320_410] : memref<2x336xf32, #tpu.memory_space<vmem>>, vector<1x16xf32>
    %531 = vector.broadcast %530 : vector<1x16xf32> to vector<32x16xf32>
    %532 = arith.mulf %529, %531 : vector<32x16xf32>
    %533 = tpu.concatenate %509, %510, %514, %518, %519, %523, %527, %528, %532 in 0 : vector<32x16xf32>, vector<32x16xf32>, vector<32x16xf32>, vector<32x16xf32>, vector<32x16xf32>, vector<32x16xf32>, vector<32x16xf32>, vector<32x16xf32>, vector<32x16xf32> -> vector<288x16xf32>
    %534 = arith.truncf %533 : vector<288x16xf32> to vector<288x16xbf16>
    %cst_411 = arith.constant dense<0.000000e+00> : vector<32x16xf32>
    %535 = tpu.matmul %502, %534, %cst_411 {dimension_numbers = #tpu.dot_dimension_numbers<[1], [0], [0], [1], [0, 0, 1, 1], [], []>} : vector<32x288xbf16>, vector<288x16xbf16>, vector<32x16xf32> -> vector<32x16xf32>
    %cst_412 = arith.constant dense<0.000000e+00> : vector<32xf32>
    %536 = vector.multi_reduction <add>, %535, %cst_412 [1] : vector<32x16xf32> to vector<32xf32>
    %537 = vector.shape_cast %536 : vector<32xf32> to vector<32x1xf32>
    %538 = arith.mulf %535, %535 : vector<32x16xf32>
    %cst_413 = arith.constant dense<0.000000e+00> : vector<32xf32>
    %539 = vector.multi_reduction <add>, %538, %cst_413 [1] : vector<32x16xf32> to vector<32xf32>
    %540 = vector.shape_cast %539 : vector<32xf32> to vector<32x1xf32>
    %cst_414 = arith.constant 6.250000e-02 : f32
    %541 = vector.broadcast %cst_414 : f32 to vector<32x1xf32>
    %542 = arith.mulf %537, %541 : vector<32x1xf32>
    %cst_415 = arith.constant 6.250000e-02 : f32
    %543 = vector.broadcast %cst_415 : f32 to vector<32x1xf32>
    %544 = arith.mulf %540, %543 : vector<32x1xf32>
    %545 = arith.mulf %542, %542 : vector<32x1xf32>
    %546 = arith.subf %544, %545 : vector<32x1xf32>
    %cst_416 = arith.constant 0.000000e+00 : f32
    %547 = vector.broadcast %cst_416 : f32 to vector<32x1xf32>
    %548 = arith.maximumf %546, %547 : vector<32x1xf32>
    %549 = vector.broadcast %542 : vector<32x1xf32> to vector<32x16xf32>
    %550 = arith.subf %535, %549 : vector<32x16xf32>
    %cst_417 = arith.constant 9.99999974E-6 : f32
    %551 = vector.broadcast %cst_417 : f32 to vector<32x1xf32>
    %552 = arith.addf %548, %551 : vector<32x1xf32>
    %553 = math.rsqrt %552 : vector<32x1xf32>
    %554 = vector.broadcast %553 : vector<32x1xf32> to vector<32x16xf32>
    %555 = arith.mulf %550, %554 : vector<32x16xf32>
    %c5_418 = arith.constant 5 : index
    %c0_419 = arith.constant 0 : index
    %c0_420 = arith.constant 0 : index
    %556 = vector.load %arg6[%c5_418, %c0_419, %c0_420] : memref<8x32x1xf32, #tpu.memory_space<vmem>>, vector<1x32x1xf32>
    %557 = vector.shape_cast %556 : vector<1x32x1xf32> to vector<32x1xf32>
    %558 = vector.broadcast %557 : vector<32x1xf32> to vector<32x16xf32>
    %559 = arith.mulf %555, %558 : vector<32x16xf32>
    %c5_421 = arith.constant 5 : index
    %c0_422 = arith.constant 0 : index
    %c0_423 = arith.constant 0 : index
    %560 = vector.load %arg7[%c5_421, %c0_422, %c0_423] : memref<8x32x1xf32, #tpu.memory_space<vmem>>, vector<1x32x1xf32>
    %561 = vector.shape_cast %560 : vector<1x32x1xf32> to vector<32x1xf32>
    %562 = vector.broadcast %561 : vector<32x1xf32> to vector<32x16xf32>
    %563 = arith.addf %559, %562 : vector<32x16xf32>
    %564 = arith.addf %563, %435 : vector<32x16xf32>
    %c6 = arith.constant 6 : index
    %c0_424 = arith.constant 0 : index
    %c0_425 = arith.constant 0 : index
    %565 = vector.load %arg5[%c6, %c0_424, %c0_425] : memref<8x32x288xbf16, #tpu.memory_space<vmem>>, vector<1x32x288xbf16>
    %566 = vector.shape_cast %565 : vector<1x32x288xbf16> to vector<32x288xbf16>
    %cst_426 = arith.constant 0.000000e+00 : f32
    %567 = vector.broadcast %cst_426 : f32 to vector<32x5xf32>
    %c0_427 = arith.constant 0 : index
    %c144_428 = arith.constant 144 : index
    %568 = vector.load %arg17[%c0_427, %c144_428] : memref<32x512xf32, #tpu.memory_space<vmem>>, vector<32x5xf32>
    tpu.vector_store %arg17[%c0_427, %c144_428], %567 {strides = array<i32>} : memref<32x512xf32, #tpu.memory_space<vmem>>, vector<32x5xf32>,
    %c0_429 = arith.constant 0 : index
    %c128_430 = arith.constant 128 : index
    %569 = vector.load %arg17[%c0_429, %c128_430] : memref<32x512xf32, #tpu.memory_space<vmem>>, vector<32x16xf32>
    tpu.vector_store %arg17[%c0_429, %c128_430], %564 {strides = array<i32>} : memref<32x512xf32, #tpu.memory_space<vmem>>, vector<32x16xf32>,
    %c0_431 = arith.constant 0 : index
    %c123_432 = arith.constant 123 : index
    %570 = vector.load %arg17[%c0_431, %c123_432] : memref<32x512xf32, #tpu.memory_space<vmem>>, vector<32x16xf32>
    %c0_433 = arith.constant 0 : index
    %c320_434 = arith.constant 320 : index
    %571 = vector.load %arg15[%c0_433, %c320_434] : memref<2x336xf32, #tpu.memory_space<vmem>>, vector<1x16xf32>
    %572 = vector.broadcast %571 : vector<1x16xf32> to vector<32x16xf32>
    %573 = arith.mulf %570, %572 : vector<32x16xf32>
    %c0_435 = arith.constant 0 : index
    %c124_436 = arith.constant 124 : index
    %574 = vector.load %arg17[%c0_435, %c124_436] : memref<32x512xf32, #tpu.memory_space<vmem>>, vector<32x16xf32>
    %c0_437 = arith.constant 0 : index
    %c125_438 = arith.constant 125 : index
    %575 = vector.load %arg17[%c0_437, %c125_438] : memref<32x512xf32, #tpu.memory_space<vmem>>, vector<32x16xf32>
    %c1_439 = arith.constant 1 : index
    %c320_440 = arith.constant 320 : index
    %576 = vector.load %arg15[%c1_439, %c320_440] : memref<2x336xf32, #tpu.memory_space<vmem>>, vector<1x16xf32>
    %577 = vector.broadcast %576 : vector<1x16xf32> to vector<32x16xf32>
    %578 = arith.mulf %575, %577 : vector<32x16xf32>
    %c0_441 = arith.constant 0 : index
    %c127_442 = arith.constant 127 : index
    %579 = vector.load %arg17[%c0_441, %c127_442] : memref<32x512xf32, #tpu.memory_space<vmem>>, vector<32x16xf32>
    %c0_443 = arith.constant 0 : index
    %c320_444 = arith.constant 320 : index
    %580 = vector.load %arg15[%c0_443, %c320_444] : memref<2x336xf32, #tpu.memory_space<vmem>>, vector<1x16xf32>
    %581 = vector.broadcast %580 : vector<1x16xf32> to vector<32x16xf32>
    %582 = arith.mulf %579, %581 : vector<32x16xf32>
    %c0_445 = arith.constant 0 : index
    %c128_446 = arith.constant 128 : index
    %583 = vector.load %arg17[%c0_445, %c128_446] : memref<32x512xf32, #tpu.memory_space<vmem>>, vector<32x16xf32>
    %c0_447 = arith.constant 0 : index
    %c129_448 = arith.constant 129 : index
    %584 = vector.load %arg17[%c0_447, %c129_448] : memref<32x512xf32, #tpu.memory_space<vmem>>, vector<32x16xf32>
    %c1_449 = arith.constant 1 : index
    %c320_450 = arith.constant 320 : index
    %585 = vector.load %arg15[%c1_449, %c320_450] : memref<2x336xf32, #tpu.memory_space<vmem>>, vector<1x16xf32>
    %586 = vector.broadcast %585 : vector<1x16xf32> to vector<32x16xf32>
    %587 = arith.mulf %584, %586 : vector<32x16xf32>
    %c0_451 = arith.constant 0 : index
    %c131_452 = arith.constant 131 : index
    %588 = vector.load %arg17[%c0_451, %c131_452] : memref<32x512xf32, #tpu.memory_space<vmem>>, vector<32x16xf32>
    %c0_453 = arith.constant 0 : index
    %c320_454 = arith.constant 320 : index
    %589 = vector.load %arg15[%c0_453, %c320_454] : memref<2x336xf32, #tpu.memory_space<vmem>>, vector<1x16xf32>
    %590 = vector.broadcast %589 : vector<1x16xf32> to vector<32x16xf32>
    %591 = arith.mulf %588, %590 : vector<32x16xf32>
    %c0_455 = arith.constant 0 : index
    %c132_456 = arith.constant 132 : index
    %592 = vector.load %arg17[%c0_455, %c132_456] : memref<32x512xf32, #tpu.memory_space<vmem>>, vector<32x16xf32>
    %c0_457 = arith.constant 0 : index
    %c133_458 = arith.constant 133 : index
    %593 = vector.load %arg17[%c0_457, %c133_458] : memref<32x512xf32, #tpu.memory_space<vmem>>, vector<32x16xf32>
    %c1_459 = arith.constant 1 : index
    %c320_460 = arith.constant 320 : index
    %594 = vector.load %arg15[%c1_459, %c320_460] : memref<2x336xf32, #tpu.memory_space<vmem>>, vector<1x16xf32>
    %595 = vector.broadcast %594 : vector<1x16xf32> to vector<32x16xf32>
    %596 = arith.mulf %593, %595 : vector<32x16xf32>
    %597 = tpu.concatenate %573, %574, %578, %582, %583, %587, %591, %592, %596 in 0 : vector<32x16xf32>, vector<32x16xf32>, vector<32x16xf32>, vector<32x16xf32>, vector<32x16xf32>, vector<32x16xf32>, vector<32x16xf32>, vector<32x16xf32>, vector<32x16xf32> -> vector<288x16xf32>
    %598 = arith.truncf %597 : vector<288x16xf32> to vector<288x16xbf16>
    %cst_461 = arith.constant dense<0.000000e+00> : vector<32x16xf32>
    %599 = tpu.matmul %566, %598, %cst_461 {dimension_numbers = #tpu.dot_dimension_numbers<[1], [0], [0], [1], [0, 0, 1, 1], [], []>} : vector<32x288xbf16>, vector<288x16xbf16>, vector<32x16xf32> -> vector<32x16xf32>
    %cst_462 = arith.constant dense<0.000000e+00> : vector<32xf32>
    %600 = vector.multi_reduction <add>, %599, %cst_462 [1] : vector<32x16xf32> to vector<32xf32>
    %601 = vector.shape_cast %600 : vector<32xf32> to vector<32x1xf32>
    %602 = arith.mulf %599, %599 : vector<32x16xf32>
    %cst_463 = arith.constant dense<0.000000e+00> : vector<32xf32>
    %603 = vector.multi_reduction <add>, %602, %cst_463 [1] : vector<32x16xf32> to vector<32xf32>
    %604 = vector.shape_cast %603 : vector<32xf32> to vector<32x1xf32>
    %cst_464 = arith.constant 6.250000e-02 : f32
    %605 = vector.broadcast %cst_464 : f32 to vector<32x1xf32>
    %606 = arith.mulf %601, %605 : vector<32x1xf32>
    %cst_465 = arith.constant 6.250000e-02 : f32
    %607 = vector.broadcast %cst_465 : f32 to vector<32x1xf32>
    %608 = arith.mulf %604, %607 : vector<32x1xf32>
    %609 = arith.mulf %606, %606 : vector<32x1xf32>
    %610 = arith.subf %608, %609 : vector<32x1xf32>
    %cst_466 = arith.constant 0.000000e+00 : f32
    %611 = vector.broadcast %cst_466 : f32 to vector<32x1xf32>
    %612 = arith.maximumf %610, %611 : vector<32x1xf32>
    %613 = vector.broadcast %606 : vector<32x1xf32> to vector<32x16xf32>
    %614 = arith.subf %599, %613 : vector<32x16xf32>
    %cst_467 = arith.constant 9.99999974E-6 : f32
    %615 = vector.broadcast %cst_467 : f32 to vector<32x1xf32>
    %616 = arith.addf %612, %615 : vector<32x1xf32>
    %617 = math.rsqrt %616 : vector<32x1xf32>
    %618 = vector.broadcast %617 : vector<32x1xf32> to vector<32x16xf32>
    %619 = arith.mulf %614, %618 : vector<32x16xf32>
    %c6_468 = arith.constant 6 : index
    %c0_469 = arith.constant 0 : index
    %c0_470 = arith.constant 0 : index
    %620 = vector.load %arg6[%c6_468, %c0_469, %c0_470] : memref<8x32x1xf32, #tpu.memory_space<vmem>>, vector<1x32x1xf32>
    %621 = vector.shape_cast %620 : vector<1x32x1xf32> to vector<32x1xf32>
    %622 = vector.broadcast %621 : vector<32x1xf32> to vector<32x16xf32>
    %623 = arith.mulf %619, %622 : vector<32x16xf32>
    %c6_471 = arith.constant 6 : index
    %c0_472 = arith.constant 0 : index
    %c0_473 = arith.constant 0 : index
    %624 = vector.load %arg7[%c6_471, %c0_472, %c0_473] : memref<8x32x1xf32, #tpu.memory_space<vmem>>, vector<1x32x1xf32>
    %625 = vector.shape_cast %624 : vector<1x32x1xf32> to vector<32x1xf32>
    %626 = vector.broadcast %625 : vector<32x1xf32> to vector<32x16xf32>
    %627 = arith.addf %623, %626 : vector<32x16xf32>
    %cst_474 = arith.constant 0.000000e+00 : f32
    %628 = vector.broadcast %cst_474 : f32 to vector<32x16xf32>
    %629 = arith.maximumf %627, %628 : vector<32x16xf32>
    %c7 = arith.constant 7 : index
    %c0_475 = arith.constant 0 : index
    %c0_476 = arith.constant 0 : index
    %630 = vector.load %arg5[%c7, %c0_475, %c0_476] : memref<8x32x288xbf16, #tpu.memory_space<vmem>>, vector<1x32x288xbf16>
    %631 = vector.shape_cast %630 : vector<1x32x288xbf16> to vector<32x288xbf16>
    %cst_477 = arith.constant 0.000000e+00 : f32
    %632 = vector.broadcast %cst_477 : f32 to vector<32x5xf32>
    %c0_478 = arith.constant 0 : index
    %c144_479 = arith.constant 144 : index
    %633 = vector.load %arg17[%c0_478, %c144_479] : memref<32x512xf32, #tpu.memory_space<vmem>>, vector<32x5xf32>
    tpu.vector_store %arg17[%c0_478, %c144_479], %632 {strides = array<i32>} : memref<32x512xf32, #tpu.memory_space<vmem>>, vector<32x5xf32>,
    %c0_480 = arith.constant 0 : index
    %c128_481 = arith.constant 128 : index
    %634 = vector.load %arg17[%c0_480, %c128_481] : memref<32x512xf32, #tpu.memory_space<vmem>>, vector<32x16xf32>
    tpu.vector_store %arg17[%c0_480, %c128_481], %629 {strides = array<i32>} : memref<32x512xf32, #tpu.memory_space<vmem>>, vector<32x16xf32>,
    %c0_482 = arith.constant 0 : index
    %c123_483 = arith.constant 123 : index
    %635 = vector.load %arg17[%c0_482, %c123_483] : memref<32x512xf32, #tpu.memory_space<vmem>>, vector<32x16xf32>
    %c0_484 = arith.constant 0 : index
    %c320_485 = arith.constant 320 : index
    %636 = vector.load %arg15[%c0_484, %c320_485] : memref<2x336xf32, #tpu.memory_space<vmem>>, vector<1x16xf32>
    %637 = vector.broadcast %636 : vector<1x16xf32> to vector<32x16xf32>
    %638 = arith.mulf %635, %637 : vector<32x16xf32>
    %c0_486 = arith.constant 0 : index
    %c124_487 = arith.constant 124 : index
    %639 = vector.load %arg17[%c0_486, %c124_487] : memref<32x512xf32, #tpu.memory_space<vmem>>, vector<32x16xf32>
    %c0_488 = arith.constant 0 : index
    %c125_489 = arith.constant 125 : index
    %640 = vector.load %arg17[%c0_488, %c125_489] : memref<32x512xf32, #tpu.memory_space<vmem>>, vector<32x16xf32>
    %c1_490 = arith.constant 1 : index
    %c320_491 = arith.constant 320 : index
    %641 = vector.load %arg15[%c1_490, %c320_491] : memref<2x336xf32, #tpu.memory_space<vmem>>, vector<1x16xf32>
    %642 = vector.broadcast %641 : vector<1x16xf32> to vector<32x16xf32>
    %643 = arith.mulf %640, %642 : vector<32x16xf32>
    %c0_492 = arith.constant 0 : index
    %c127_493 = arith.constant 127 : index
    %644 = vector.load %arg17[%c0_492, %c127_493] : memref<32x512xf32, #tpu.memory_space<vmem>>, vector<32x16xf32>
    %c0_494 = arith.constant 0 : index
    %c320_495 = arith.constant 320 : index
    %645 = vector.load %arg15[%c0_494, %c320_495] : memref<2x336xf32, #tpu.memory_space<vmem>>, vector<1x16xf32>
    %646 = vector.broadcast %645 : vector<1x16xf32> to vector<32x16xf32>
    %647 = arith.mulf %644, %646 : vector<32x16xf32>
    %c0_496 = arith.constant 0 : index
    %c128_497 = arith.constant 128 : index
    %648 = vector.load %arg17[%c0_496, %c128_497] : memref<32x512xf32, #tpu.memory_space<vmem>>, vector<32x16xf32>
    %c0_498 = arith.constant 0 : index
    %c129_499 = arith.constant 129 : index
    %649 = vector.load %arg17[%c0_498, %c129_499] : memref<32x512xf32, #tpu.memory_space<vmem>>, vector<32x16xf32>
    %c1_500 = arith.constant 1 : index
    %c320_501 = arith.constant 320 : index
    %650 = vector.load %arg15[%c1_500, %c320_501] : memref<2x336xf32, #tpu.memory_space<vmem>>, vector<1x16xf32>
    %651 = vector.broadcast %650 : vector<1x16xf32> to vector<32x16xf32>
    %652 = arith.mulf %649, %651 : vector<32x16xf32>
    %c0_502 = arith.constant 0 : index
    %c131_503 = arith.constant 131 : index
    %653 = vector.load %arg17[%c0_502, %c131_503] : memref<32x512xf32, #tpu.memory_space<vmem>>, vector<32x16xf32>
    %c0_504 = arith.constant 0 : index
    %c320_505 = arith.constant 320 : index
    %654 = vector.load %arg15[%c0_504, %c320_505] : memref<2x336xf32, #tpu.memory_space<vmem>>, vector<1x16xf32>
    %655 = vector.broadcast %654 : vector<1x16xf32> to vector<32x16xf32>
    %656 = arith.mulf %653, %655 : vector<32x16xf32>
    %c0_506 = arith.constant 0 : index
    %c132_507 = arith.constant 132 : index
    %657 = vector.load %arg17[%c0_506, %c132_507] : memref<32x512xf32, #tpu.memory_space<vmem>>, vector<32x16xf32>
    %c0_508 = arith.constant 0 : index
    %c133_509 = arith.constant 133 : index
    %658 = vector.load %arg17[%c0_508, %c133_509] : memref<32x512xf32, #tpu.memory_space<vmem>>, vector<32x16xf32>
    %c1_510 = arith.constant 1 : index
    %c320_511 = arith.constant 320 : index
    %659 = vector.load %arg15[%c1_510, %c320_511] : memref<2x336xf32, #tpu.memory_space<vmem>>, vector<1x16xf32>
    %660 = vector.broadcast %659 : vector<1x16xf32> to vector<32x16xf32>
    %661 = arith.mulf %658, %660 : vector<32x16xf32>
    %662 = tpu.concatenate %638, %639, %643, %647, %648, %652, %656, %657, %661 in 0 : vector<32x16xf32>, vector<32x16xf32>, vector<32x16xf32>, vector<32x16xf32>, vector<32x16xf32>, vector<32x16xf32>, vector<32x16xf32>, vector<32x16xf32>, vector<32x16xf32> -> vector<288x16xf32>
    %663 = arith.truncf %662 : vector<288x16xf32> to vector<288x16xbf16>
    %cst_512 = arith.constant dense<0.000000e+00> : vector<32x16xf32>
    %664 = tpu.matmul %631, %663, %cst_512 {dimension_numbers = #tpu.dot_dimension_numbers<[1], [0], [0], [1], [0, 0, 1, 1], [], []>} : vector<32x288xbf16>, vector<288x16xbf16>, vector<32x16xf32> -> vector<32x16xf32>
    %cst_513 = arith.constant dense<0.000000e+00> : vector<32xf32>
    %665 = vector.multi_reduction <add>, %664, %cst_513 [1] : vector<32x16xf32> to vector<32xf32>
    %666 = vector.shape_cast %665 : vector<32xf32> to vector<32x1xf32>
    %667 = arith.mulf %664, %664 : vector<32x16xf32>
    %cst_514 = arith.constant dense<0.000000e+00> : vector<32xf32>
    %668 = vector.multi_reduction <add>, %667, %cst_514 [1] : vector<32x16xf32> to vector<32xf32>
    %669 = vector.shape_cast %668 : vector<32xf32> to vector<32x1xf32>
    %cst_515 = arith.constant 6.250000e-02 : f32
    %670 = vector.broadcast %cst_515 : f32 to vector<32x1xf32>
    %671 = arith.mulf %666, %670 : vector<32x1xf32>
    %cst_516 = arith.constant 6.250000e-02 : f32
    %672 = vector.broadcast %cst_516 : f32 to vector<32x1xf32>
    %673 = arith.mulf %669, %672 : vector<32x1xf32>
    %674 = arith.mulf %671, %671 : vector<32x1xf32>
    %675 = arith.subf %673, %674 : vector<32x1xf32>
    %cst_517 = arith.constant 0.000000e+00 : f32
    %676 = vector.broadcast %cst_517 : f32 to vector<32x1xf32>
    %677 = arith.maximumf %675, %676 : vector<32x1xf32>
    %678 = vector.broadcast %671 : vector<32x1xf32> to vector<32x16xf32>
    %679 = arith.subf %664, %678 : vector<32x16xf32>
    %cst_518 = arith.constant 9.99999974E-6 : f32
    %680 = vector.broadcast %cst_518 : f32 to vector<32x1xf32>
    %681 = arith.addf %677, %680 : vector<32x1xf32>
    %682 = math.rsqrt %681 : vector<32x1xf32>
    %683 = vector.broadcast %682 : vector<32x1xf32> to vector<32x16xf32>
    %684 = arith.mulf %679, %683 : vector<32x16xf32>
    %c7_519 = arith.constant 7 : index
    %c0_520 = arith.constant 0 : index
    %c0_521 = arith.constant 0 : index
    %685 = vector.load %arg6[%c7_519, %c0_520, %c0_521] : memref<8x32x1xf32, #tpu.memory_space<vmem>>, vector<1x32x1xf32>
    %686 = vector.shape_cast %685 : vector<1x32x1xf32> to vector<32x1xf32>
    %687 = vector.broadcast %686 : vector<32x1xf32> to vector<32x16xf32>
    %688 = arith.mulf %684, %687 : vector<32x16xf32>
    %c7_522 = arith.constant 7 : index
    %c0_523 = arith.constant 0 : index
    %c0_524 = arith.constant 0 : index
    %689 = vector.load %arg7[%c7_522, %c0_523, %c0_524] : memref<8x32x1xf32, #tpu.memory_space<vmem>>, vector<1x32x1xf32>
    %690 = vector.shape_cast %689 : vector<1x32x1xf32> to vector<32x1xf32>
    %691 = vector.broadcast %690 : vector<32x1xf32> to vector<32x16xf32>
    %692 = arith.addf %688, %691 : vector<32x16xf32>
    %693 = arith.addf %692, %564 : vector<32x16xf32>
    %694 = arith.truncf %693 : vector<32x16xf32> to vector<32x16xbf16>
    %c0_525 = arith.constant 0 : index
    %c0_526 = arith.constant 0 : index
    %695 = vector.load %arg13[%c0_525, %c0_526] : memref<16x64xbf16, #tpu.memory_space<vmem>>, vector<16x64xbf16>
    %cst_527 = arith.constant dense<0.000000e+00> : vector<32x64xf32>
    %696 = tpu.matmul %694, %695, %cst_527 {dimension_numbers = #tpu.dot_dimension_numbers<[1], [0], [0], [1], [0, 0, 1, 1], [], []>} : vector<32x16xbf16>, vector<16x64xbf16>, vector<32x64xf32> -> vector<32x64xf32>
    %c0_528 = arith.constant 0 : index
    %c0_529 = arith.constant 0 : index
    %697 = vector.load %arg8[%c0_528, %c0_529] : memref<16x288xbf16, #tpu.memory_space<vmem>>, vector<16x288xbf16>
    %cst_530 = arith.constant 0.000000e+00 : f32
    %698 = vector.broadcast %cst_530 : f32 to vector<32x9xf32>
    %c0_531 = arith.constant 0 : index
    %c192_532 = arith.constant 192 : index
    %699 = vector.load %arg17[%c0_531, %c192_532] : memref<32x512xf32, #tpu.memory_space<vmem>>, vector<32x9xf32>
    tpu.vector_store %arg17[%c0_531, %c192_532], %698 {strides = array<i32>} : memref<32x512xf32, #tpu.memory_space<vmem>>, vector<32x9xf32>,
    %c0_533 = arith.constant 0 : index
    %c128_534 = arith.constant 128 : index
    %700 = vector.load %arg17[%c0_533, %c128_534] : memref<32x512xf32, #tpu.memory_space<vmem>>, vector<32x64xf32>
    tpu.vector_store %arg17[%c0_533, %c128_534], %696 {strides = array<i32>} : memref<32x512xf32, #tpu.memory_space<vmem>>, vector<32x64xf32>,
    %c0_535 = arith.constant 0 : index
    %c119_536 = arith.constant 119 : index
    %701 = vector.load %arg17[%c0_535, %c119_536] : memref<32x512xf32, #tpu.memory_space<vmem>>, vector<32x64xf32>
    %c0_537 = arith.constant 0 : index
    %c256_538 = arith.constant 256 : index
    %702 = vector.load %arg15[%c0_537, %c256_538] : memref<2x336xf32, #tpu.memory_space<vmem>>, vector<1x64xf32>
    %703 = vector.broadcast %702 : vector<1x64xf32> to vector<32x64xf32>
    %704 = arith.mulf %701, %703 : vector<32x64xf32>
    %c0_539 = arith.constant 0 : index
    %c120_540 = arith.constant 120 : index
    %705 = vector.load %arg17[%c0_539, %c120_540] : memref<32x512xf32, #tpu.memory_space<vmem>>, vector<32x64xf32>
    %c0_541 = arith.constant 0 : index
    %c121_542 = arith.constant 121 : index
    %706 = vector.load %arg17[%c0_541, %c121_542] : memref<32x512xf32, #tpu.memory_space<vmem>>, vector<32x64xf32>
    %c1_543 = arith.constant 1 : index
    %c256_544 = arith.constant 256 : index
    %707 = vector.load %arg15[%c1_543, %c256_544] : memref<2x336xf32, #tpu.memory_space<vmem>>, vector<1x64xf32>
    %708 = vector.broadcast %707 : vector<1x64xf32> to vector<32x64xf32>
    %709 = arith.mulf %706, %708 : vector<32x64xf32>
    %c0_545 = arith.constant 0 : index
    %c127_546 = arith.constant 127 : index
    %710 = vector.load %arg17[%c0_545, %c127_546] : memref<32x512xf32, #tpu.memory_space<vmem>>, vector<32x64xf32>
    %c0_547 = arith.constant 0 : index
    %c256_548 = arith.constant 256 : index
    %711 = vector.load %arg15[%c0_547, %c256_548] : memref<2x336xf32, #tpu.memory_space<vmem>>, vector<1x64xf32>
    %712 = vector.broadcast %711 : vector<1x64xf32> to vector<32x64xf32>
    %713 = arith.mulf %710, %712 : vector<32x64xf32>
    %c0_549 = arith.constant 0 : index
    %c128_550 = arith.constant 128 : index
    %714 = vector.load %arg17[%c0_549, %c128_550] : memref<32x512xf32, #tpu.memory_space<vmem>>, vector<32x64xf32>
    %c0_551 = arith.constant 0 : index
    %c129_552 = arith.constant 129 : index
    %715 = vector.load %arg17[%c0_551, %c129_552] : memref<32x512xf32, #tpu.memory_space<vmem>>, vector<32x64xf32>
    %c1_553 = arith.constant 1 : index
    %c256_554 = arith.constant 256 : index
    %716 = vector.load %arg15[%c1_553, %c256_554] : memref<2x336xf32, #tpu.memory_space<vmem>>, vector<1x64xf32>
    %717 = vector.broadcast %716 : vector<1x64xf32> to vector<32x64xf32>
    %718 = arith.mulf %715, %717 : vector<32x64xf32>
    %c0_555 = arith.constant 0 : index
    %c135_556 = arith.constant 135 : index
    %719 = vector.load %arg17[%c0_555, %c135_556] : memref<32x512xf32, #tpu.memory_space<vmem>>, vector<32x64xf32>
    %c0_557 = arith.constant 0 : index
    %c256_558 = arith.constant 256 : index
    %720 = vector.load %arg15[%c0_557, %c256_558] : memref<2x336xf32, #tpu.memory_space<vmem>>, vector<1x64xf32>
    %721 = vector.broadcast %720 : vector<1x64xf32> to vector<32x64xf32>
    %722 = arith.mulf %719, %721 : vector<32x64xf32>
    %c0_559 = arith.constant 0 : index
    %c136_560 = arith.constant 136 : index
    %723 = vector.load %arg17[%c0_559, %c136_560] : memref<32x512xf32, #tpu.memory_space<vmem>>, vector<32x64xf32>
    %c0_561 = arith.constant 0 : index
    %c137_562 = arith.constant 137 : index
    %724 = vector.load %arg17[%c0_561, %c137_562] : memref<32x512xf32, #tpu.memory_space<vmem>>, vector<32x64xf32>
    %c1_563 = arith.constant 1 : index
    %c256_564 = arith.constant 256 : index
    %725 = vector.load %arg15[%c1_563, %c256_564] : memref<2x336xf32, #tpu.memory_space<vmem>>, vector<1x64xf32>
    %726 = vector.broadcast %725 : vector<1x64xf32> to vector<32x64xf32>
    %727 = arith.mulf %724, %726 : vector<32x64xf32>
    %728 = tpu.concatenate %704, %705, %709, %713, %714, %718, %722, %723, %727 in 0 : vector<32x64xf32>, vector<32x64xf32>, vector<32x64xf32>, vector<32x64xf32>, vector<32x64xf32>, vector<32x64xf32>, vector<32x64xf32>, vector<32x64xf32>, vector<32x64xf32> -> vector<288x64xf32>
    %729 = arith.truncf %728 : vector<288x64xf32> to vector<288x64xbf16>
    %cst_565 = arith.constant dense<0.000000e+00> : vector<16x64xf32>
    %730 = tpu.matmul %697, %729, %cst_565 {dimension_numbers = #tpu.dot_dimension_numbers<[1], [0], [0], [1], [0, 0, 1, 1], [], []>} : vector<16x288xbf16>, vector<288x64xbf16>, vector<16x64xf32> -> vector<16x64xf32>
    %cst_566 = arith.constant dense<0.000000e+00> : vector<16xf32>
    %731 = vector.multi_reduction <add>, %730, %cst_566 [1] : vector<16x64xf32> to vector<16xf32>
    %732 = vector.shape_cast %731 : vector<16xf32> to vector<16x1xf32>
    %733 = arith.mulf %730, %730 : vector<16x64xf32>
    %cst_567 = arith.constant dense<0.000000e+00> : vector<16xf32>
    %734 = vector.multi_reduction <add>, %733, %cst_567 [1] : vector<16x64xf32> to vector<16xf32>
    %735 = vector.shape_cast %734 : vector<16xf32> to vector<16x1xf32>
    %cst_568 = arith.constant 1.562500e-02 : f32
    %736 = vector.broadcast %cst_568 : f32 to vector<16x1xf32>
    %737 = arith.mulf %732, %736 : vector<16x1xf32>
    %cst_569 = arith.constant 1.562500e-02 : f32
    %738 = vector.broadcast %cst_569 : f32 to vector<16x1xf32>
    %739 = arith.mulf %735, %738 : vector<16x1xf32>
    %740 = arith.mulf %737, %737 : vector<16x1xf32>
    %741 = arith.subf %739, %740 : vector<16x1xf32>
    %cst_570 = arith.constant 0.000000e+00 : f32
    %742 = vector.broadcast %cst_570 : f32 to vector<16x1xf32>
    %743 = arith.maximumf %741, %742 : vector<16x1xf32>
    %744 = vector.broadcast %737 : vector<16x1xf32> to vector<16x64xf32>
    %745 = arith.subf %730, %744 : vector<16x64xf32>
    %cst_571 = arith.constant 9.99999974E-6 : f32
    %746 = vector.broadcast %cst_571 : f32 to vector<16x1xf32>
    %747 = arith.addf %743, %746 : vector<16x1xf32>
    %748 = math.rsqrt %747 : vector<16x1xf32>
    %749 = vector.broadcast %748 : vector<16x1xf32> to vector<16x64xf32>
    %750 = arith.mulf %745, %749 : vector<16x64xf32>
    %cst_572 = arith.constant 0.000000e+00 : f32
    %751 = vector.broadcast %cst_572 : f32 to vector<16x64xf32>
    %752 = arith.maximumf %750, %751 : vector<16x64xf32>
    %753 = arith.truncf %752 : vector<16x64xf32> to vector<16x64xbf16>
    %c0_573 = arith.constant 0 : index
    %c0_574 = arith.constant 0 : index
    %754 = vector.load %arg14[%c0_573, %c0_574] : memref<64x256xbf16, #tpu.memory_space<vmem>>, vector<64x256xbf16>
    %cst_575 = arith.constant dense<0.000000e+00> : vector<16x256xf32>
    %755 = tpu.matmul %753, %754, %cst_575 {dimension_numbers = #tpu.dot_dimension_numbers<[1], [0], [0], [1], [0, 0, 1, 1], [], []>} : vector<16x64xbf16>, vector<64x256xbf16>, vector<16x256xf32> -> vector<16x256xf32>
    %c0_576 = arith.constant 0 : index
    %c0_577 = arith.constant 0 : index
    %756 = vector.load %arg9[%c0_576, %c0_577] : memref<8x144xbf16, #tpu.memory_space<vmem>>, vector<8x144xbf16>
    %cst_578 = arith.constant 0.000000e+00 : f32
    %757 = vector.broadcast %cst_578 : f32 to vector<16x17xf32>
    %c0_579 = arith.constant 0 : index
    %c384_580 = arith.constant 384 : index
    %758 = vector.load %arg17[%c0_579, %c384_580] : memref<32x512xf32, #tpu.memory_space<vmem>>, vector<16x17xf32>
    tpu.vector_store %arg17[%c0_579, %c384_580], %757 {strides = array<i32>} : memref<32x512xf32, #tpu.memory_space<vmem>>, vector<16x17xf32>,
    %c0_581 = arith.constant 0 : index
    %c128_582 = arith.constant 128 : index
    %759 = vector.load %arg17[%c0_581, %c128_582] : memref<32x512xf32, #tpu.memory_space<vmem>>, vector<16x256xf32>
    tpu.vector_store %arg17[%c0_581, %c128_582], %755 {strides = array<i32>} : memref<32x512xf32, #tpu.memory_space<vmem>>, vector<16x256xf32>,
    %c0_583 = arith.constant 0 : index
    %c111_584 = arith.constant 111 : index
    %760 = vector.load %arg17[%c0_583, %c111_584] : memref<32x512xf32, #tpu.memory_space<vmem>>, vector<16x256xf32>
    %c0_585 = arith.constant 0 : index
    %c0_586 = arith.constant 0 : index
    %761 = vector.load %arg15[%c0_585, %c0_586] : memref<2x336xf32, #tpu.memory_space<vmem>>, vector<1x256xf32>
    %762 = vector.broadcast %761 : vector<1x256xf32> to vector<16x256xf32>
    %763 = arith.mulf %760, %762 : vector<16x256xf32>
    %c0_587 = arith.constant 0 : index
    %c112_588 = arith.constant 112 : index
    %764 = vector.load %arg17[%c0_587, %c112_588] : memref<32x512xf32, #tpu.memory_space<vmem>>, vector<16x256xf32>
    %c0_589 = arith.constant 0 : index
    %c113_590 = arith.constant 113 : index
    %765 = vector.load %arg17[%c0_589, %c113_590] : memref<32x512xf32, #tpu.memory_space<vmem>>, vector<16x256xf32>
    %c1_591 = arith.constant 1 : index
    %c0_592 = arith.constant 0 : index
    %766 = vector.load %arg15[%c1_591, %c0_592] : memref<2x336xf32, #tpu.memory_space<vmem>>, vector<1x256xf32>
    %767 = vector.broadcast %766 : vector<1x256xf32> to vector<16x256xf32>
    %768 = arith.mulf %765, %767 : vector<16x256xf32>
    %c0_593 = arith.constant 0 : index
    %c127_594 = arith.constant 127 : index
    %769 = vector.load %arg17[%c0_593, %c127_594] : memref<32x512xf32, #tpu.memory_space<vmem>>, vector<16x256xf32>
    %c0_595 = arith.constant 0 : index
    %c0_596 = arith.constant 0 : index
    %770 = vector.load %arg15[%c0_595, %c0_596] : memref<2x336xf32, #tpu.memory_space<vmem>>, vector<1x256xf32>
    %771 = vector.broadcast %770 : vector<1x256xf32> to vector<16x256xf32>
    %772 = arith.mulf %769, %771 : vector<16x256xf32>
    %c0_597 = arith.constant 0 : index
    %c128_598 = arith.constant 128 : index
    %773 = vector.load %arg17[%c0_597, %c128_598] : memref<32x512xf32, #tpu.memory_space<vmem>>, vector<16x256xf32>
    %c0_599 = arith.constant 0 : index
    %c129_600 = arith.constant 129 : index
    %774 = vector.load %arg17[%c0_599, %c129_600] : memref<32x512xf32, #tpu.memory_space<vmem>>, vector<16x256xf32>
    %c1_601 = arith.constant 1 : index
    %c0_602 = arith.constant 0 : index
    %775 = vector.load %arg15[%c1_601, %c0_602] : memref<2x336xf32, #tpu.memory_space<vmem>>, vector<1x256xf32>
    %776 = vector.broadcast %775 : vector<1x256xf32> to vector<16x256xf32>
    %777 = arith.mulf %774, %776 : vector<16x256xf32>
    %c0_603 = arith.constant 0 : index
    %c143_604 = arith.constant 143 : index
    %778 = vector.load %arg17[%c0_603, %c143_604] : memref<32x512xf32, #tpu.memory_space<vmem>>, vector<16x256xf32>
    %c0_605 = arith.constant 0 : index
    %c0_606 = arith.constant 0 : index
    %779 = vector.load %arg15[%c0_605, %c0_606] : memref<2x336xf32, #tpu.memory_space<vmem>>, vector<1x256xf32>
    %780 = vector.broadcast %779 : vector<1x256xf32> to vector<16x256xf32>
    %781 = arith.mulf %778, %780 : vector<16x256xf32>
    %c0_607 = arith.constant 0 : index
    %c144_608 = arith.constant 144 : index
    %782 = vector.load %arg17[%c0_607, %c144_608] : memref<32x512xf32, #tpu.memory_space<vmem>>, vector<16x256xf32>
    %c0_609 = arith.constant 0 : index
    %c145_610 = arith.constant 145 : index
    %783 = vector.load %arg17[%c0_609, %c145_610] : memref<32x512xf32, #tpu.memory_space<vmem>>, vector<16x256xf32>
    %c1_611 = arith.constant 1 : index
    %c0_612 = arith.constant 0 : index
    %784 = vector.load %arg15[%c1_611, %c0_612] : memref<2x336xf32, #tpu.memory_space<vmem>>, vector<1x256xf32>
    %785 = vector.broadcast %784 : vector<1x256xf32> to vector<16x256xf32>
    %786 = arith.mulf %783, %785 : vector<16x256xf32>
    %787 = tpu.concatenate %763, %764, %768, %772, %773, %777, %781, %782, %786 in 0 : vector<16x256xf32>, vector<16x256xf32>, vector<16x256xf32>, vector<16x256xf32>, vector<16x256xf32>, vector<16x256xf32>, vector<16x256xf32>, vector<16x256xf32>, vector<16x256xf32> -> vector<144x256xf32>
    %788 = arith.truncf %787 : vector<144x256xf32> to vector<144x256xbf16>
    %cst_613 = arith.constant dense<0.000000e+00> : vector<8x256xf32>
    %789 = tpu.matmul %756, %788, %cst_613 {dimension_numbers = #tpu.dot_dimension_numbers<[1], [0], [0], [1], [0, 0, 1, 1], [], []>} : vector<8x144xbf16>, vector<144x256xbf16>, vector<8x256xf32> -> vector<8x256xf32>
    %cst_614 = arith.constant dense<0.000000e+00> : vector<8xf32>
    %790 = vector.multi_reduction <add>, %789, %cst_614 [1] : vector<8x256xf32> to vector<8xf32>
    %791 = vector.shape_cast %790 : vector<8xf32> to vector<8x1xf32>
    %792 = arith.mulf %789, %789 : vector<8x256xf32>
    %cst_615 = arith.constant dense<0.000000e+00> : vector<8xf32>
    %793 = vector.multi_reduction <add>, %792, %cst_615 [1] : vector<8x256xf32> to vector<8xf32>
    %794 = vector.shape_cast %793 : vector<8xf32> to vector<8x1xf32>
    %cst_616 = arith.constant 3.906250e-03 : f32
    %795 = vector.broadcast %cst_616 : f32 to vector<8x1xf32>
    %796 = arith.mulf %791, %795 : vector<8x1xf32>
    %cst_617 = arith.constant 3.906250e-03 : f32
    %797 = vector.broadcast %cst_617 : f32 to vector<8x1xf32>
    %798 = arith.mulf %794, %797 : vector<8x1xf32>
    %799 = arith.mulf %796, %796 : vector<8x1xf32>
    %800 = arith.subf %798, %799 : vector<8x1xf32>
    %cst_618 = arith.constant 0.000000e+00 : f32
    %801 = vector.broadcast %cst_618 : f32 to vector<8x1xf32>
    %802 = arith.maximumf %800, %801 : vector<8x1xf32>
    %803 = vector.broadcast %796 : vector<8x1xf32> to vector<8x256xf32>
    %804 = arith.subf %789, %803 : vector<8x256xf32>
    %cst_619 = arith.constant 9.99999974E-6 : f32
    %805 = vector.broadcast %cst_619 : f32 to vector<8x1xf32>
    %806 = arith.addf %802, %805 : vector<8x1xf32>
    %807 = math.rsqrt %806 : vector<8x1xf32>
    %808 = vector.broadcast %807 : vector<8x1xf32> to vector<8x256xf32>
    %809 = arith.mulf %804, %808 : vector<8x256xf32>
    %cst_620 = arith.constant 0.000000e+00 : f32
    %810 = vector.broadcast %cst_620 : f32 to vector<8x256xf32>
    %811 = arith.maximumf %809, %810 : vector<8x256xf32>
    %c0_621 = arith.constant 0 : index
    %c0_622 = arith.constant 0 : index
    %812 = vector.load %arg10[%c0_621, %c0_622] : memref<3x72xbf16, #tpu.memory_space<vmem>>, vector<3x72xbf16>
    %cst_623 = arith.constant 0.000000e+00 : f32
    %813 = vector.broadcast %cst_623 : f32 to vector<8x17xf32>
    %c0_624 = arith.constant 0 : index
    %c384_625 = arith.constant 384 : index
    %814 = vector.load %arg17[%c0_624, %c384_625] : memref<32x512xf32, #tpu.memory_space<vmem>>, vector<8x17xf32>
    tpu.vector_store %arg17[%c0_624, %c384_625], %813 {strides = array<i32>} : memref<32x512xf32, #tpu.memory_space<vmem>>, vector<8x17xf32>,
    %c0_626 = arith.constant 0 : index
    %c128_627 = arith.constant 128 : index
    %815 = vector.load %arg17[%c0_626, %c128_627] : memref<32x512xf32, #tpu.memory_space<vmem>>, vector<8x256xf32>
    tpu.vector_store %arg17[%c0_626, %c128_627], %811 {strides = array<i32>} : memref<32x512xf32, #tpu.memory_space<vmem>>, vector<8x256xf32>,
    %c0_628 = arith.constant 0 : index
    %c111_629 = arith.constant 111 : index
    %816 = vector.load %arg17[%c0_628, %c111_629] : memref<32x512xf32, #tpu.memory_space<vmem>>, vector<8x256xf32>
    %c0_630 = arith.constant 0 : index
    %c0_631 = arith.constant 0 : index
    %817 = vector.load %arg15[%c0_630, %c0_631] : memref<2x336xf32, #tpu.memory_space<vmem>>, vector<1x256xf32>
    %818 = vector.broadcast %817 : vector<1x256xf32> to vector<8x256xf32>
    %819 = arith.mulf %816, %818 : vector<8x256xf32>
    %c0_632 = arith.constant 0 : index
    %c112_633 = arith.constant 112 : index
    %820 = vector.load %arg17[%c0_632, %c112_633] : memref<32x512xf32, #tpu.memory_space<vmem>>, vector<8x256xf32>
    %c0_634 = arith.constant 0 : index
    %c113_635 = arith.constant 113 : index
    %821 = vector.load %arg17[%c0_634, %c113_635] : memref<32x512xf32, #tpu.memory_space<vmem>>, vector<8x256xf32>
    %c1_636 = arith.constant 1 : index
    %c0_637 = arith.constant 0 : index
    %822 = vector.load %arg15[%c1_636, %c0_637] : memref<2x336xf32, #tpu.memory_space<vmem>>, vector<1x256xf32>
    %823 = vector.broadcast %822 : vector<1x256xf32> to vector<8x256xf32>
    %824 = arith.mulf %821, %823 : vector<8x256xf32>
    %c0_638 = arith.constant 0 : index
    %c127_639 = arith.constant 127 : index
    %825 = vector.load %arg17[%c0_638, %c127_639] : memref<32x512xf32, #tpu.memory_space<vmem>>, vector<8x256xf32>
    %c0_640 = arith.constant 0 : index
    %c0_641 = arith.constant 0 : index
    %826 = vector.load %arg15[%c0_640, %c0_641] : memref<2x336xf32, #tpu.memory_space<vmem>>, vector<1x256xf32>
    %827 = vector.broadcast %826 : vector<1x256xf32> to vector<8x256xf32>
    %828 = arith.mulf %825, %827 : vector<8x256xf32>
    %c0_642 = arith.constant 0 : index
    %c128_643 = arith.constant 128 : index
    %829 = vector.load %arg17[%c0_642, %c128_643] : memref<32x512xf32, #tpu.memory_space<vmem>>, vector<8x256xf32>
    %c0_644 = arith.constant 0 : index
    %c129_645 = arith.constant 129 : index
    %830 = vector.load %arg17[%c0_644, %c129_645] : memref<32x512xf32, #tpu.memory_space<vmem>>, vector<8x256xf32>
    %c1_646 = arith.constant 1 : index
    %c0_647 = arith.constant 0 : index
    %831 = vector.load %arg15[%c1_646, %c0_647] : memref<2x336xf32, #tpu.memory_space<vmem>>, vector<1x256xf32>
    %832 = vector.broadcast %831 : vector<1x256xf32> to vector<8x256xf32>
    %833 = arith.mulf %830, %832 : vector<8x256xf32>
    %c0_648 = arith.constant 0 : index
    %c143_649 = arith.constant 143 : index
    %834 = vector.load %arg17[%c0_648, %c143_649] : memref<32x512xf32, #tpu.memory_space<vmem>>, vector<8x256xf32>
    %c0_650 = arith.constant 0 : index
    %c0_651 = arith.constant 0 : index
    %835 = vector.load %arg15[%c0_650, %c0_651] : memref<2x336xf32, #tpu.memory_space<vmem>>, vector<1x256xf32>
    %836 = vector.broadcast %835 : vector<1x256xf32> to vector<8x256xf32>
    %837 = arith.mulf %834, %836 : vector<8x256xf32>
    %c0_652 = arith.constant 0 : index
    %c144_653 = arith.constant 144 : index
    %838 = vector.load %arg17[%c0_652, %c144_653] : memref<32x512xf32, #tpu.memory_space<vmem>>, vector<8x256xf32>
    %c0_654 = arith.constant 0 : index
    %c145_655 = arith.constant 145 : index
    %839 = vector.load %arg17[%c0_654, %c145_655] : memref<32x512xf32, #tpu.memory_space<vmem>>, vector<8x256xf32>
    %c1_656 = arith.constant 1 : index
    %c0_657 = arith.constant 0 : index
    %840 = vector.load %arg15[%c1_656, %c0_657] : memref<2x336xf32, #tpu.memory_space<vmem>>, vector<1x256xf32>
    %841 = vector.broadcast %840 : vector<1x256xf32> to vector<8x256xf32>
    %842 = arith.mulf %839, %841 : vector<8x256xf32>
    %843 = tpu.concatenate %819, %820, %824, %828, %829, %833, %837, %838, %842 in 0 : vector<8x256xf32>, vector<8x256xf32>, vector<8x256xf32>, vector<8x256xf32>, vector<8x256xf32>, vector<8x256xf32>, vector<8x256xf32>, vector<8x256xf32>, vector<8x256xf32> -> vector<72x256xf32>
    %844 = arith.truncf %843 : vector<72x256xf32> to vector<72x256xbf16>
    %cst_658 = arith.constant dense<0.000000e+00> : vector<3x256xf32>
    %845 = tpu.matmul %812, %844, %cst_658 {dimension_numbers = #tpu.dot_dimension_numbers<[1], [0], [0], [1], [0, 0, 1, 1], [], []>} : vector<3x72xbf16>, vector<72x256xbf16>, vector<3x256xf32> -> vector<3x256xf32>
    %cst_659 = arith.constant dense<0.000000e+00> : vector<3xf32>
    %846 = vector.multi_reduction <add>, %845, %cst_659 [1] : vector<3x256xf32> to vector<3xf32>
    %847 = vector.shape_cast %846 : vector<3xf32> to vector<3x1xf32>
    %848 = arith.mulf %845, %845 : vector<3x256xf32>
    %cst_660 = arith.constant dense<0.000000e+00> : vector<3xf32>
    %849 = vector.multi_reduction <add>, %848, %cst_660 [1] : vector<3x256xf32> to vector<3xf32>
    %850 = vector.shape_cast %849 : vector<3xf32> to vector<3x1xf32>
    %cst_661 = arith.constant 3.906250e-03 : f32
    %851 = vector.broadcast %cst_661 : f32 to vector<3x1xf32>
    %852 = arith.mulf %847, %851 : vector<3x1xf32>
    %cst_662 = arith.constant 3.906250e-03 : f32
    %853 = vector.broadcast %cst_662 : f32 to vector<3x1xf32>
    %854 = arith.mulf %850, %853 : vector<3x1xf32>
    %855 = arith.mulf %852, %852 : vector<3x1xf32>
    %856 = arith.subf %854, %855 : vector<3x1xf32>
    %cst_663 = arith.constant 0.000000e+00 : f32
    %857 = vector.broadcast %cst_663 : f32 to vector<3x1xf32>
    %858 = arith.maximumf %856, %857 : vector<3x1xf32>
    %859 = vector.broadcast %852 : vector<3x1xf32> to vector<3x256xf32>
    %860 = arith.subf %845, %859 : vector<3x256xf32>
    %cst_664 = arith.constant 9.99999974E-6 : f32
    %861 = vector.broadcast %cst_664 : f32 to vector<3x1xf32>
    %862 = arith.addf %858, %861 : vector<3x1xf32>
    %863 = math.rsqrt %862 : vector<3x1xf32>
    %864 = vector.broadcast %863 : vector<3x1xf32> to vector<3x256xf32>
    %865 = arith.mulf %860, %864 : vector<3x256xf32>
    %c0_665 = arith.constant 0 : index
    %c0_666 = arith.constant 0 : index
    %c0_667 = arith.constant 0 : index
    %866 = vector.load %arg16[%c0_665, %c0_666, %c0_667] : memref<1x3x256xf32, #tpu.memory_space<vmem>>, vector<1x3x256xf32>
    %867 = vector.shape_cast %866 : vector<1x3x256xf32> to vector<3x256xf32>
    %868 = vector.shape_cast %865 : vector<3x256xf32> to vector<1x3x256xf32>
    tpu.vector_store %arg16[%c0_665, %c0_666, %c0_667], %868 {strides = array<i32>} : memref<1x3x256xf32, #tpu.memory_space<vmem>>, vector<1x3x256xf32>,
    return
  }
  func.func @transform_0(%arg0: i32) -> (i32, i32, i32) {
    %c0_i32 = arith.constant 0 : i32
    %c0_i32_0 = arith.constant 0 : i32
    %c0_i32_1 = arith.constant 0 : i32
    return %arg0, %c0_i32, %c0_i32_0 : i32, i32, i32
  }
  func.func @transform_1(%arg0: i32) -> (i32, i32) {
    %c0_i32 = arith.constant 0 : i32
    %c0_i32_0 = arith.constant 0 : i32
    %c0_i32_1 = arith.constant 0 : i32
    return %c0_i32, %c0_i32_0 : i32, i32
  }
  func.func @transform_2(%arg0: i32) -> (i32, i32) {
    %c0_i32 = arith.constant 0 : i32
    %c0_i32_0 = arith.constant 0 : i32
    %c0_i32_1 = arith.constant 0 : i32
    return %c0_i32, %c0_i32_0 : i32, i32
  }
  func.func @transform_3(%arg0: i32) -> (i32, i32) {
    %c0_i32 = arith.constant 0 : i32
    %c0_i32_0 = arith.constant 0 : i32
    %c0_i32_1 = arith.constant 0 : i32
    return %c0_i32, %c0_i32_0 : i32, i32
  }
  func.func @transform_4(%arg0: i32) -> (i32, i32, i32) {
    %c0_i32 = arith.constant 0 : i32
    %c0_i32_0 = arith.constant 0 : i32
    %c0_i32_1 = arith.constant 0 : i32
    %c0_i32_2 = arith.constant 0 : i32
    return %c0_i32, %c0_i32_0, %c0_i32_1 : i32, i32, i32
  }
  func.func @transform_5(%arg0: i32) -> (i32, i32, i32) {
    %c0_i32 = arith.constant 0 : i32
    %c0_i32_0 = arith.constant 0 : i32
    %c0_i32_1 = arith.constant 0 : i32
    %c0_i32_2 = arith.constant 0 : i32
    return %c0_i32, %c0_i32_0, %c0_i32_1 : i32, i32, i32
  }
  func.func @transform_6(%arg0: i32) -> (i32, i32, i32) {
    %c0_i32 = arith.constant 0 : i32
    %c0_i32_0 = arith.constant 0 : i32
    %c0_i32_1 = arith.constant 0 : i32
    %c0_i32_2 = arith.constant 0 : i32
    return %c0_i32, %c0_i32_0, %c0_i32_1 : i32, i32, i32
  }
  func.func @transform_7(%arg0: i32) -> (i32, i32) {
    %c0_i32 = arith.constant 0 : i32
    %c0_i32_0 = arith.constant 0 : i32
    %c0_i32_1 = arith.constant 0 : i32
    return %c0_i32, %c0_i32_0 : i32, i32
  }
  func.func @transform_8(%arg0: i32) -> (i32, i32) {
    %c0_i32 = arith.constant 0 : i32
    %c0_i32_0 = arith.constant 0 : i32
    %c0_i32_1 = arith.constant 0 : i32
    return %c0_i32, %c0_i32_0 : i32, i32
  }
  func.func @transform_9(%arg0: i32) -> (i32, i32) {
    %c0_i32 = arith.constant 0 : i32
    %c0_i32_0 = arith.constant 0 : i32
    %c0_i32_1 = arith.constant 0 : i32
    return %c0_i32, %c0_i32_0 : i32, i32
  }
  func.func @transform_10(%arg0: i32) -> (i32, i32) {
    %c0_i32 = arith.constant 0 : i32
    %c0_i32_0 = arith.constant 0 : i32
    %c0_i32_1 = arith.constant 0 : i32
    return %c0_i32, %c0_i32_0 : i32, i32
  }
  func.func @transform_11(%arg0: i32) -> (i32, i32) {
    %c0_i32 = arith.constant 0 : i32
    %c0_i32_0 = arith.constant 0 : i32
    %c0_i32_1 = arith.constant 0 : i32
    return %c0_i32, %c0_i32_0 : i32, i32
  }
  func.func @transform_12(%arg0: i32) -> (i32, i32) {
    %c0_i32 = arith.constant 0 : i32
    %c0_i32_0 = arith.constant 0 : i32
    %c0_i32_1 = arith.constant 0 : i32
    return %c0_i32, %c0_i32_0 : i32, i32
  }
  func.func @transform_13(%arg0: i32) -> (i32, i32) {
    %c0_i32 = arith.constant 0 : i32
    %c0_i32_0 = arith.constant 0 : i32
    %c0_i32_1 = arith.constant 0 : i32
    return %c0_i32, %c0_i32_0 : i32, i32
  }
  func.func @transform_14(%arg0: i32) -> (i32, i32) {
    %c0_i32 = arith.constant 0 : i32
    %c0_i32_0 = arith.constant 0 : i32
    %c0_i32_1 = arith.constant 0 : i32
    return %c0_i32, %c0_i32_0 : i32, i32
  }
  func.func @transform_15(%arg0: i32) -> (i32, i32, i32) {
    %c0_i32 = arith.constant 0 : i32
    %c0_i32_0 = arith.constant 0 : i32
    %c0_i32_1 = arith.constant 0 : i32
    return %arg0, %c0_i32, %c0_i32_0 : i32, i32, i32
  }
}

</mosaic_0001>

<bundles_post_ra>
// kernel: generator_forward.1
= control target key start
LH: loop header
LB: loop body
LE: loop exit
PB: predicated region body
PF: predicated region fallthrough
CT: control target
= control target key end

     0   :  { %s14101_s0 = inlined_call_operand.vmem [shape: f32[2,8,256], index: 0, kind: input, shape index: {}]   ;;  %s14102_s1 = inlined_call_operand.vmem [shape: bf16[8,72], index: 1, kind: input, shape index: {}]   ;;  %s14103_s2 = inlined_call_operand.vmem [shape: bf16[16,72], index: 2, kind: input, shape index: {}]   ;;  %s14104_s3 = inlined_call_operand.vmem [shape: bf16[32,144], index: 3, kind: input, shape index: {}]   ;;  %s14105_s4 = inlined_call_operand.vmem [shape: bf16[8,32,288], index: 4, kind: input, shape index: {}]   ;;  %s14106_s5 = inlined_call_operand.vmem [shape: f32[8,32,1], index: 5, kind: input, shape index: {}]   ;;  %s14107_s6 = inlined_call_operand.vmem [shape: f32[8,32,1], index: 6, kind: input, shape index: {}]   ;;  %s14108_s7 = inlined_call_operand.vmem [shape: bf16[16,288], index: 7, kind: input, shape index: {}]   ;;  %s14109_s8 = inlined_call_operand.vmem [shape: bf16[8,144], index: 8, kind: input, shape index: {}]   ;;  %s14110_s9 = inlined_call_operand.vmem [shape: bf16[3,72], index: 9, kind: input, shape index: {}]   ;;  %s14111_s10 = inlined_call_operand.vmem [shape: bf16[256,64], index: 10, kind: input, shape index: {}]   ;;  %s14112_s11 = inlined_call_operand.vmem [shape: bf16[64,16], index: 11, kind: input, shape index: {}]   ;;  %s14113_s12 = inlined_call_operand.vmem [shape: bf16[16,64], index: 12, kind: input, shape index: {}]   ;;  %s14114_s13 = inlined_call_operand.vmem [shape: bf16[64,256], index: 13, kind: input, shape index: {}]   ;;  %s14115_s14 = inlined_call_operand.hbm [shape: f32[2,336], index: 14, kind: input, shape index: {}]   ;;  %s14116_s15 = inlined_call_operand.vmem [shape: f32[2,3,256], index: 15, kind: output, shape index: {}]  }
   0x1   :  { %14182 = sst [smem:[#allocation8_spill]] %s14101_s0 }
   0x2   :  { %14183 = sst [smem:[#allocation9_spill]] %s14102_s1 }
   0x3   :  { %14184 = sst [smem:[#allocation10_spill]] %s14103_s2 }
   0x4   :  { %14185 = sst [smem:[#allocation11_spill]] %s14104_s3 }
   0x5   :  { %14186 = sst [smem:[#allocation12_spill]] %s14108_s7 }
   0x6   :  { %14187 = sst [smem:[#allocation13_spill]] %s14109_s8 }
   0x7   :  { %14188 = sst [smem:[#allocation14_spill]] %s14110_s9 }
   0x8   :  { %14189 = sst [smem:[#allocation15_spill]] %s14111_s10 }
   0x9   :  { %14190 = sst [smem:[#allocation16_spill]] %s14112_s11 }
   0xa   :  { %14191 = sst [smem:[#allocation17_spill]] %s14114_s13 }
   0xb   :  { %14192 = sst [smem:[#allocation18_spill]] %s14115_s14 }
   0xc   :  { %14193 = sst [smem:[#allocation19_spill]] %s14116_s15 }
   0xd   :  { %20 = vsyncpa [#allocation4], 0  ;;  %s11167_s18 = smov 0  }
   0xe LB: > { %14194 = sst [smem:[#allocation6_spill]] %s11053_s18  ;;  %s11173_s19 = sadd.s32 4294967295, %s11053_s18   ;;  %s11053_s18 = sphi %s11167_s18, %s26_s18  }
   0xf   : > { %p8812_p0 = scmp.ge.s32.totalorder %s11053_s18, 1  ;;  %p377_p1 = scmp.lt.s32.totalorder %s11053_s18, 3 }
  0x10   : > { %p9485_p3 = scmp.eq.s32.totalorder %s11173_s19, 0  ;;  %s11055_s21 = smov [#allocation3]  }
  0x11   : > { %p11177_p2 = pnand %p8812_p0, %p377_p1  ;;  %s429_s22 = sshll.u32 %s11055_s21, 4  ;;  %s430_s22 = int_to_ptr.vmem [resolvable:$true] %s429_s22 }
  0x12   : > { %s11028_s23 = scalar_lea.vmem %s430_s22, 96  ;;  %p11036_p10 = scmp.lt.s32.totalorder %s430_s22, %s430_s22 }
  0x13   : > { %p9481_p4 = pneg %p11177_p2  ;;  %p11029_p7 = scmp.ne.s32.totalorder %s430_s22, %s11028_s23 }
  0x14   : > { %p11037_p11 = scmp.lt.s32.totalorder %s11028_s23, %s11028_s23 }
  0x15   : > { %p9482_p5 = pnand %p9485_p3, %p9481_p4 }
  0x16   : > { %p11038_p12 = por %p11037_p11, %p11036_p10 }
  0x17   : > { %p11019_p6 = pneg %p9482_p5 }
  0x19   : > { %p11031_p8 = pnand %p11029_p7, %p11019_p6 }
  0x1b   : > { %p11032_p9 = pneg %p11031_p8 }
  0x1d   : > { %p11039_p13 = pnand %p11038_p12, %p11032_p9 }
  0x1f   : > { %11042 = shalt.err (!%p11039_p13)
}
  0x20   : > { %s14196_s14 = sld [smem:[#allocation18_spill]] }
  0x22   : > { %450 = sbr.rel (%p11177_p2) target bundleno = 10482 (0x28f2), region = 80 }
  0x26   : > { %9484 = dma.hbm_to_vmem [thread:$0]  (!%p9482_p5), %s14196_s14, 96, %s430_s22, [#allocation4]  }
  0x27   : > { %11048 = dma.done.wait (%p9485_p3), [#allocation4], 96  }
  0x28   : > { %11050 = vsyncadd (%p9485_p3), [#allocation4], 4294967200  ;;  %v525_v0 = vlaneseq  ;;  %vm516_vm0 = vcmask 138240   ;;  %v11056_v1 = vmov 0.0   ;;  %p498_p0 = scmp.lt.s32.totalorder %s11173_s19, 1  ;;  %s14133_s26 = smov 17  }
  0x29   : > { %517 = vst.msk [vmem:[#allocation2 + $0x18] sm:$0xff] %vm516_vm0, %v11056_v1  ;;  %509 = vst [vmem:[#allocation2] sm:$0xff] %v11056_v1  ;;  %v546_v5 = vld [vmem:[#allocation3 + $0x1] ss:$2 sm:$0x3]  ;;  %s14127_s27 = smov 15  }
  0x2a   : > { %7848 = vst.msk [vmem:[#allocation2 + $0x38] sm:$0xff] %vm516_vm0, %v11056_v1  ;;  %v526_v2 = vshrl.u32 %v525_v0, 7  ;;  %v523_v6 = vld [vmem:[#allocation3] ss:$2 sm:$0x3]  ;;  %s14272_s19 = smov (!%p498_p0, %s11173_s19), 1 }
  0x2b   : > { %14197 = sst [smem:[#allocation7_spill]] %s14272_s19  ;;  %s9073_s28 = sshll.u32 %s14272_s19, 4  ;;  %vm597_vm1 = vcmask 121856   ;;  %vm585_vm2 = vcmask 7168   ;;  %vm572_vm3 = vcmask 1039360   ;;  %vm560_vm4 = vcmask 924672  }
  0x2c   : > { %v11200_v3 = vsub.s32 0, %v526_v2  ;;  %v11202_v4 = vsub.s32 1, %v526_v2  ;;  %s14140_s29 = smov 1   ;;  %s14198_s0 = sld [smem:[#allocation8_spill]]  ;;  %vm14143_vm5 = vcmask 769024   ;;  %vm14163_vm6 = vcmask 785408  }
  0x2d   : > { %s14125_s20 = smov 113   ;;  %s14148_s21 = smov 127   ;;  %vm14152_vm7 = vcmask 900096   ;;  %vm705_vm8 = vcmask 777216   ;;  %vm639_vm9 = vcmask 1031168   ;;  %vm14172_vm10 = vcmask 916480  }
  0x2e   : > { %v551_v7 = vrot.slane %v546_v5, %v11200_v3  ;;  %v11207_v8 = vrot.slane %v523_v6, %v11200_v3  ;;  %v555_v10 = vrot.slane %v546_v5, %v11202_v4  ;;  %v11216_v11 = vrot.slane %v523_v6, %v11202_v4  ;;  %s14123_s22 = smov 95   ;;  %s14135_s23 = smov 111  }
  0x2f   : > { %s14119_s24 = smov 94   ;;  %s14121_s25 = smov 96   ;;  %vm14173_vm11 = vcmask 908288   ;;  %vm14139_vm12 = vcmask 1043456   ;;  %vm14137_vm13 = vcmask 588800   ;;  %vm1383_vm14 = vcmask 523264  }
  0x30   : > { %v580_v9 = vld [vmem:[#allocation2 + $0x18] sm:$0xff]  ;;  %605 = vrot.lane.b32.xlu0 %v551_v7, %s14133_s26  ;;  %593 = vrot.lane.b32.xlu1 %v11207_v8, %s14127_s27  ;;  %s14131_s30 = smov 126   ;;  %s14117_s16 = smov 112   ;;  %vm1422_vm15 = vcmask 597504  }
  0x31   : > { %880 = vst.msk [vmem:[#allocation2 + $0x18] sm:$0xff] %vm516_vm0, %v11056_v1  ;;  %s14199_s1 = sld [smem:[#allocation9_spill]]  ;;  %s14224_s15 = smov 7  }
  0x32   : > { %s502_s17 = scalar_lea.vmem %s14198_s0, %s9073_s28  ;;  %s14129_s28 = smov 110  }
  0x33   : > { %v11230_v12 = vld [vmem:[%s502_s17] sm:$0xff]  ;;  %v11232_v13 = vld [vmem:[%s502_s17 + $0x8] sm:$0xff]  ;;  %s14201_s10 = sld [smem:[#allocation15_spill]]  ;;  %s14204_s17 = smov 126  }
  0x34   : > { %607 = vrot.lane.b32.xlu0 %v555_v10, %s14133_s26  ;;  %595 = vrot.lane.b32.xlu1 %v11216_v11, %s14127_s27  ;;  %v9527_v14 = vpack.i.bf16 %v11232_v13, %v11230_v12  ;;  %s14202_s2 = sld [smem:[#allocation10_spill]]  ;;  %s14217_s0 = smov 119  }
  0x35   : > { %s14206_s3 = sld [smem:[#allocation11_spill]]  ;;  %s14225_s18 = smov 9  }
  0x36   : > { %s14207_s11 = sld [smem:[#allocation16_spill]]  ;;  %s14229_s7 = smov 15  }
  0x37   : > { %s14231_s8 = smov 17   ;;  %s14232_s9 = smov 95  }
  0x38   : > { %581 = vrot.lane.b32.xlu0 %v551_v7, %s14140_s29  ;;  %583 = vrot.lane.b32.xlu1 %v555_v10, %s14140_s29 }
  0x3c   : > { %556 = vrot.lane.b32.xlu0 %v551_v7, %s14125_s20  ;;  %558 = vrot.lane.b32.xlu1 %v555_v10, %s14125_s20 }
  0x40   : > { %568 = vrot.lane.b32.xlu0 %v11207_v8, %s14148_s21  ;;  %570 = vrot.lane.b32.xlu1 %v11216_v11, %s14148_s21 }
  0x44   : > { %9528 = vrot.lane.b32.xlu0 %v9527_v14, %s14123_s22  ;;  %703 = vrot.lane.b32.xlu1 %v580_v9, %s14123_s22 }
  0x48   : > { %9533 = vrot.lane.b32.xlu0 %v9527_v14, %s14135_s23 }
  0xa2   : > { %v606_v15 = vpop.permute.xlu0 %605  ;;  %v594_v16 = vpop.permute.xlu1 %593 }
  0xa3   : > { %v613_v27 = vmul.f32 %v606_v15, %v11230_v12  ;;  %v602_v34 = vmul.f32 %v594_v16, %v11230_v12 }
  0xa6   : > { %v608_v17 = vpop.permute.xlu0 %607  ;;  %v596_v18 = vpop.permute.xlu1 %595 }
  0xa7   : > { %v615_v19 = vmul.f32 %v608_v17, %v580_v9  ;;  %v609_v20 = vsel %vm516_vm0, %v606_v15, %v608_v17  ;;  %v604_v21 = vmul.f32 %v596_v18, %v580_v9  ;;  %v598_v26 = vsel %vm597_vm1, %v594_v16, %v596_v18 }
  0xa8   : > { %v614_v24 = vmul.f32 %v609_v20, %v11232_v13  ;;  %v603_v30 = vmul.f32 %v598_v26, %v11232_v13 }
  0xa9   : > { %718 = vrot.lane.b32.xlu1 %v615_v19, %s14119_s24 }
  0xaa   : > { %v582_v22 = vpop.permute.xlu0 %581  ;;  %v584_v23 = vpop.permute.xlu1 %583  ;;  %v9537_v32 = vpack.i.bf16 %v614_v24, %v613_v27  ;;  %v9542_v39 = vpack.i.bf16 %v603_v30, %v602_v34 }
  0xab   : > { %v592_v25 = vmul.f32 %v584_v23, %v580_v9  ;;  %v586_v33 = vsel %vm585_vm2, %v582_v22, %v584_v23  ;;  %v590_v37 = vmul.f32 %v582_v22, %v11230_v12 }
  0xac   : > { %v591_v38 = vmul.f32 %v586_v33, %v11232_v13 }
  0xad   : > { %690 = vrot.lane.b32.xlu1 %v604_v21, %s14121_s25  ;;  %675 = vrot.lane.b32.xlu0 %v592_v25, %s14129_s28 }
  0xae   : > { %v557_v28 = vpop.permute.xlu0 %556  ;;  %v559_v29 = vpop.permute.xlu1 %558  ;;  %v9547_v47 = vpack.i.bf16 %v591_v38, %v590_v37 }
  0xaf   : > { %v565_v31 = vmul.f32 0.0, %v557_v28  ;;  %v561_v41 = vsel %vm560_vm4, %v557_v28, %v559_v29  ;;  %v567_v46 = vmul.f32 %v559_v29, %v11232_v13 }
  0xb0   : > { %v566_v45 = vmul.f32 %v561_v41, %v11230_v12 }
  0xb1   : > { %9538 = vrot.lane.b32.xlu0 %v9537_v32, %s14119_s24  ;;  %633 = vrot.lane.b32.xlu1 %v565_v31, %s14131_s30 }
  0xb2   : > { %v569_v35 = vpop.permute.xlu0 %568  ;;  %v571_v36 = vpop.permute.xlu1 %570  ;;  %v9552_v49 = vpack.i.bf16 %v567_v46, %v566_v45 }
  0xb3   : > { %v573_v40 = vsel %vm572_vm3, %v569_v35, %v571_v36  ;;  %v577_v42 = vmul.f32 0.0, %v569_v35  ;;  %v579_v44 = vmul.f32 %v571_v36, %v11232_v13 }
  0xb4   : > { %v578_v43 = vmul.f32 %v573_v40, %v11230_v12 }
  0xb5   : > { %9543 = vrot.lane.b32.xlu0 %v9542_v39, %s14121_s25  ;;  %533 = vrot.lane.b32.xlu1 %v11207_v8, %s14135_s23 }
  0xb6   : > { %v9557_v48 = vpack.i.bf16 %v579_v44, %v578_v43  ;;  %v9529_v50 = vpop.permute.xlu0 %9528  ;;  %v704_v51 = vpop.permute.xlu1 %703 }
  0xb7   : > { %v9530_v63 = vunpack.i.l.bf16 %v9529_v50  ;;  %v9531_v16 = vunpack.i.h.bf16 %v9529_v50 }
  0xb9   : > { %648 = vrot.lane.b32.xlu0 %v577_v42, %s14117_s16  ;;  %9548 = vrot.lane.b32.xlu1 %v9547_v47, %s14129_s28  ;;  %v706_v21 = vsel %vm705_vm8, %v9530_v63, %v9531_v16  ;;  %v707_v31 = vsel %vm705_vm8, %v9531_v16, %v704_v51 }
  0xba   : > { %v11277_v52 = vpop.permute.xlu0 %9533 }
  0xbb   : > { %v9535_v9 = vunpack.i.l.bf16 %v11277_v52  ;;  %v9536_v30 = vunpack.i.h.bf16 %v11277_v52 }
  0xbd   : > { %9558 = vrot.lane.b32.xlu0 %v9557_v48, %s14117_s16  ;;  %9553 = vrot.lane.b32.xlu1 %v9552_v49, %s14131_s30  ;;  %v664_v39 = vsel %vm14173_vm11, %v9535_v9, %v9536_v30  ;;  %v11069_v48 = vmov 0   ;;  %s14200_s16 = smov 112  }
  0xbe   : > { %848 = vmatprep.mubr.bf16.mxu0 %v11069_v48  ;;  %1201 = vmatprep.mubr.bf16.mxu1 %v11069_v48 }
  0xbf   : > { %9772 = vset.pattern.permute.xlu1 %v11069_v48  ;;  %9773 = vset.pattern.permute.xlu0 %v11069_v48 }
  0xc1   : > { %535 = vrot.lane.b32.xlu0 %v11216_v11, %s14135_s23  ;;  %9563 = vrot.lane.b32.xlu1 %v9527_v14, %s14148_s21 }
  0xc5   : > { %619 = vrot.lane.b32.xlu0 %v11056_v1, %s14148_s21 }
 0x11b   : > { %v719_v53 = vpop.permute.xlu1 %718 }
 0x11f   : > { %v691_v54 = vpop.permute.xlu1 %690  ;;  %v676_v55 = vpop.permute.xlu0 %675 }
 0x123   : > { %v9539_v56 = vpop.permute.xlu0 %9538  ;;  %v634_v57 = vpop.permute.xlu1 %633 }
 0x124   : > { %v9540_v58 = vunpack.i.l.bf16 %v9539_v56  ;;  %v9541_v60 = vunpack.i.h.bf16 %v9539_v56 }
 0x126   : > { %v738_v59 = vpack.c.bf16 %v9540_v58, %v9540_v58  ;;  %v721_v8 = vsel %vm14143_vm5, %v9540_v58, %v9541_v60  ;;  %v722_v18 = vsel %vm14143_vm5, %v9541_v60, %v719_v53 }
 0x127   : > { %v9544_v61 = vpop.permute.xlu0 %9543  ;;  %v11279_v62 = vpop.permute.xlu1 %533  ;;  %v739_v14 = vpack.c.bf16 %v721_v8, %v721_v8  ;;  %v740_v23 = vpack.c.bf16 %v722_v18, %v722_v18 }
 0x128   : > { %v9545_v0 = vunpack.i.l.bf16 %v9544_v61  ;;  %780 = vrot.lane.b32.xlu1 %v738_v59, %s14133_s26  ;;  %v9546_v5 = vunpack.i.h.bf16 %v9544_v61  ;;  %v542_v56 = vmul.f32 0.0, %v11279_v62 }
 0x12a   : > { %v735_v2 = vpack.c.bf16 %v9530_v63, %v9545_v0  ;;  %v693_v17 = vsel %vm14163_vm6, %v9545_v0, %v9546_v5  ;;  %v694_v25 = vsel %vm14163_vm6, %v9546_v5, %v691_v54 }
 0x12b   : > { %v649_v6 = vpop.permute.xlu0 %648  ;;  %v9549_v7 = vpop.permute.xlu1 %9548  ;;  %v736_v22 = vpack.c.bf16 %v706_v21, %v693_v17  ;;  %v737_v33 = vpack.c.bf16 %v707_v31, %v694_v25 }
 0x12c   : > { %v9550_v10 = vunpack.i.l.bf16 %v9549_v7  ;;  %774 = vrot.lane.b32.xlu0 %v735_v2, %s14133_s26  ;;  %v9551_v11 = vunpack.i.h.bf16 %v9549_v7 }
 0x12e   : > { %v732_v15 = vpack.c.bf16 %v9550_v10, %v9535_v9  ;;  %v679_v24 = vsel %vm14152_vm7, %v9551_v11, %v676_v55  ;;  %v678_v36 = vsel %vm14152_vm7, %v9550_v10, %v9551_v11 }
 0x12f   : > { %v9559_v19 = vpop.permute.xlu0 %9558  ;;  %v9554_v20 = vpop.permute.xlu1 %9553  ;;  %v734_v32 = vpack.c.bf16 %v679_v24, %v9536_v30  ;;  %v733_v41 = vpack.c.bf16 %v678_v36, %v664_v39  ;;  %v515_v24 = vld [vmem:[%s14199_s1] sm:$0xf]  ;;  %s14218_s1 = smov 122  }
 0x130   : > { %782 = vrot.lane.b32.xlu0 %v739_v14, %s14133_s26  ;;  %768 = vrot.lane.b32.xlu1 %v732_v15, %s14133_s26  ;;  %v9561_v26 = vunpack.i.h.bf16 %v9559_v19  ;;  %v9560_v27 = vunpack.i.l.bf16 %v9559_v19  ;;  %v9556_v28 = vunpack.i.h.bf16 %v9554_v20  ;;  %v9555_v29 = vunpack.i.l.bf16 %v9554_v20 }
 0x132   : > { %v641_v34 = vsel %vm639_vm9, %v9555_v29, %v9556_v28  ;;  %v656_v35 = vsel %vm14172_vm10, %v9560_v27, %v9561_v26  ;;  %v640_v42 = vsel %vm639_vm9, %v634_v57, %v9555_v29  ;;  %v655_v46 = vsel %vm14172_vm10, %v649_v6, %v9560_v27 }
 0x133   : > { %v536_v37 = vpop.permute.xlu0 %535  ;;  %v9564_v38 = vpop.permute.xlu1 %9563  ;;  %v730_v40 = vpack.c.bf16 %v656_v35, %v641_v34  ;;  %v729_v50 = vpack.c.bf16 %v655_v46, %v640_v42  ;;  %v731_v51 = vpack.c.bf16 %v9561_v26, %v9556_v28  ;;  %v886_v35 = vld [vmem:[#allocation3] ss:$2 sm:$0x3] }
 0x134   : > { %776 = vrot.lane.b32.xlu0 %v736_v22, %s14133_s26  ;;  %784 = vrot.lane.b32.xlu1 %v740_v23, %s14133_s26  ;;  %v538_v43 = vsel %vm14173_vm11, %v11279_v62, %v536_v37  ;;  %v9566_v44 = vunpack.i.h.bf16 %v9564_v38  ;;  %v9565_v45 = vunpack.i.l.bf16 %v9564_v38  ;;  %v544_v47 = vmul.f32 %v536_v37, %v11232_v13  ;;  %v939_v38 = vld [vmem:[#allocation2 + $0x18] sm:$0xff] }
 0x135   : > { %v543_v49 = vmul.f32 %v538_v43, %v11230_v12  ;;  %v11342_v37 = vrot.slane %v886_v35, %v11202_v4  ;;  %7847 = vst.msk [vmem:[#allocation2 + $0x18] sm:$0xff] %vm516_vm0, %v11056_v1  ;;  %v891_v39 = vrot.slane %v886_v35, %v11200_v3 }
 0x136   : > { %v626_v52 = vsel %vm572_vm3, %v9565_v45, %v9566_v44  ;;  %v728_v53 = vpack.c.bf16 %v9566_v44, %v544_v47 }
 0x137   : > { %v620_v13 = vpop.permute.xlu0 %619  ;;  %v727_v54 = vpack.c.bf16 %v626_v52, %v543_v49 }
 0x138   : > { %772 = vrot.lane.b32.xlu0 %v734_v32, %s14133_s26  ;;  %778 = vrot.lane.b32.xlu1 %v737_v33, %s14133_s26  ;;  %v625_v55 = vsel %vm572_vm3, %v620_v13, %v9565_v45  ;;  %v907_v33 = vld [vmem:[#allocation3 + $0x1] ss:$2 sm:$0x3] }
 0x139   : > { %v726_v12 = vpack.c.bf16 %v625_v55, %v542_v56  ;;  %v916_v34 = vrot.slane %v907_v33, %v11202_v4  ;;  %v912_v36 = vrot.slane %v907_v33, %v11200_v3 }
 0x13c   : > { %764 = vrot.lane.b32.xlu0 %v730_v40, %s14133_s26  ;;  %770 = vrot.lane.b32.xlu1 %v733_v41, %s14133_s26 }
 0x140   : > { %762 = vrot.lane.b32.xlu0 %v729_v50, %s14133_s26  ;;  %766 = vrot.lane.b32.xlu1 %v731_v51, %s14133_s26 }
 0x144   : > { %760 = vrot.lane.b32.xlu0 %v728_v53, %s14133_s26  ;;  %758 = vrot.lane.b32.xlu1 %v727_v54, %s14133_s26 }
 0x148   : > { %756 = vrot.lane.b32.xlu1 %v726_v12, %s14133_s26 }
 0x19a   : > { %v781_v57 = vpop.permute.xlu1 %780 }
 0x19e   : > { %v775_v58 = vpop.permute.xlu0 %774 }
 0x1a2   : > { %v783_v59 = vpop.permute.xlu0 %782  ;;  %v769_v60 = vpop.permute.xlu1 %768 }
 0x1a3   : > { %v795_v61 = vsel %vm516_vm0, %v781_v57, %v783_v59 }
 0x1a4   : > { %v811_v62 = vsel %vm14139_vm12, %v795_v61, 0 }
 0x1a6   : > { %v777_v63 = vpop.permute.xlu0 %776  ;;  %v785_v0 = vpop.permute.xlu1 %784 }
 0x1a7   : > { %v796_v2 = vsel %vm516_vm0, %v783_v59, %v785_v0  ;;  %v793_v8 = vsel %vm516_vm0, %v775_v58, %v777_v63 }
 0x1a8   : > { %8821 = vmatprep.subr.msk.bf16.mxu0 %vm14139_vm12, %v796_v2 }
 0x1a9   : > { %823 = vmatpush1.bf16.msra.mxu0 %v811_v62 }
 0x1aa   : > { %v773_v5 = vpop.permute.xlu0 %772  ;;  %v779_v6 = vpop.permute.xlu1 %778 }
 0x1ab   : > { %v794_v7 = vsel %vm516_vm0, %v777_v63, %v779_v6 }
 0x1ac   : > { %824 = vmatprep.subr.bf16.mxu0 %v794_v7 }
 0x1ad   : > { %825 = vmatpush1.bf16.msra.mxu0 %v793_v8 }
 0x1ae   : > { %v765_v9 = vpop.permute.xlu0 %764  ;;  %v771_v10 = vpop.permute.xlu1 %770 }
 0x1af   : > { %v792_v11 = vsel %vm516_vm0, %v771_v10, %v773_v5  ;;  %v791_v14 = vsel %vm516_vm0, %v769_v60, %v771_v10 }
 0x1b0   : > { %826 = vmatprep.subr.bf16.mxu0 %v792_v11 }
 0x1b1   : > { %827 = vmatpush1.bf16.msra.mxu0 %v791_v14 }
 0x1b2   : > { %v763_v15 = vpop.permute.xlu0 %762  ;;  %v767_v16 = vpop.permute.xlu1 %766 }
 0x1b3   : > { %v790_v17 = vsel %vm516_vm0, %v765_v9, %v767_v16  ;;  %v789_v18 = vsel %vm516_vm0, %v763_v15, %v765_v9 }
 0x1b4   : > { %828 = vmatprep.subr.bf16.mxu0 %v790_v17 }
 0x1b5   : > { %829 = vmatpush1.bf16.msra.mxu0 %v789_v18 }
 0x1b6   : > { %v761_v19 = vpop.permute.xlu0 %760  ;;  %v759_v20 = vpop.permute.xlu1 %758 }
 0x1b7   : > { %v788_v21 = vsel %vm516_vm0, %v759_v20, %v761_v19 }
 0x1b8   : > { %830 = vmatprep.subr.bf16.mxu0 %v788_v21 }
 0x1ba   : > { %v757_v22 = vpop.permute.xlu1 %756 }
 0x1bb   : > { %v787_v23 = vsel %vm516_vm0, %v757_v22, %v759_v20 }
 0x1bc   : > { %831 = vmatpush1.bf16.msra.mxu0 %v787_v23 }
 0x1bf   : > { %8822 = vmatmul.mubr.msk.bf16.vlgmr.msra.gmra.mxu0 %vm14137_vm13, %v515_v24 }
 0x27f   : > { %v850_v25 = vpop.f32.mrf.mxu0 }
 0x280   : > { %v860_v28 = vmul.f32 %v850_v25, %v850_v25 }
 0x281   : > { %v852_v26 = vpop.f32.mrf.mxu0 }
 0x282   : > { %v857_v27 = vadd.f32 %v852_v26, %v850_v25  ;;  %v861_v29 = vmul.f32 %v852_v26, %v852_v26 }
 0x283   : > { %v854_v30 = vpop.f32.mrf.mxu0 }
 0x284   : > { %858 = vadd.xlane.f32.xlu0 %v857_v27  ;;  %v862_v31 = vadd.f32 %v861_v29, %v860_v28 }
 0x285   : > { %v855_v32 = vpop.f32.mrf.mxu0 }
 0x286   : > { %863 = vadd.xlane.f32.xlu1 %v862_v31 }
 0x297   : > { %964 = vrot.lane.b32.xlu1 %v916_v34, %s14133_s26 }
 0x29a   : > { %962 = vrot.lane.b32.xlu0 %v912_v36, %s14133_s26 }
 0x29b   : > { %953 = vrot.lane.b32.xlu1 %v11342_v37, %s14127_s27 }
 0x29e   : > { %951 = vrot.lane.b32.xlu0 %v891_v39, %s14127_s27  ;;  %s14146_s27 = smov 118  }
 0x29f   : > { %942 = vrot.lane.b32.xlu1 %v916_v34, %s14140_s29 }
 0x2a2   : > { %940 = vrot.lane.b32.xlu0 %v912_v36, %s14140_s29 }
 0x2a3   : > { %919 = vrot.lane.b32.xlu1 %v916_v34, %s14125_s20 }
 0x2a6   : > { %917 = vrot.lane.b32.xlu0 %v912_v36, %s14125_s20  ;;  %s14153_s20 = smov 119  }
 0x2a7   : > { %930 = vrot.lane.b32.xlu1 %v11342_v37, %s14148_s21 }
 0x2aa   : > { %928 = vrot.lane.b32.xlu0 %v891_v39, %s14148_s21 }
 0x30d   : > { %v859_v40 = vpop.xlane.xlu0 %858 }
 0x30e   : > { %v865_v41 = vmul.f32 0.00390625, %v859_v40 }
 0x30f   : > { %v864_v42 = vpop.xlane.xlu1 %863 }
 0x310   : > { %v866_v43 = vmul.f32 0.00390625, %v864_v42  ;;  %v867_v44 = vmul.f32 %v865_v41, %v865_v41  ;;  %v870_v58 = vsub.f32 %v850_v25, %v865_v41  ;;  %v871_v59 = vsub.f32 %v852_v26, %v865_v41 }
 0x311   : > { %v963_v45 = vpop.permute.xlu0 %962 }
 0x312   : > { %v868_v46 = vsub.f32 %v866_v43, %v867_v44 }
 0x313   : > { %v965_v47 = vpop.permute.xlu1 %964 }
 0x314   : > { %v869_v49 = vmax.f32 %v868_v46, 0.0  ;;  %v972_v50 = vmul.f32 %v965_v47, %v939_v38  ;;  %v966_v15 = vsel %vm516_vm0, %v963_v45, %v965_v47 }
 0x315   : > { %v952_v51 = vpop.permute.xlu0 %951 }
 0x316   : > { %v872_v52 = vadd.f32 1e-05, %v869_v49  ;;  %1070 = vrot.lane.b32.xlu1 %v972_v50, %s14119_s24 }
 0x317   : > { %v954_v13 = vpop.permute.xlu1 %953 }
 0x318   : > { %10919 = vrsqrt.f32 %v872_v52  ;;  %v961_v53 = vmul.f32 %v954_v13, %v939_v38  ;;  %v955_v19 = vsel %vm597_vm1, %v952_v51, %v954_v13 }
 0x319   : > { %v941_v54 = vpop.permute.xlu0 %940 }
 0x31a   : > { %1044 = vrot.lane.b32.xlu1 %v961_v53, %s14121_s25 }
 0x31b   : > { %v943_v55 = vpop.permute.xlu1 %942 }
 0x31c   : > { %v950_v56 = vmul.f32 %v943_v55, %v939_v38  ;;  %v944_v5 = vsel %vm585_vm2, %v941_v54, %v943_v55 }
 0x31d   : > { %v918_v12 = vpop.permute.xlu0 %917 }
 0x31e   : > { %1056 = vrot.lane.b32.xlu1 %v939_v38, %s14123_s22  ;;  %v925_v57 = vmul.f32 0.0, %v918_v12  ;;  %1030 = vrot.lane.b32.xlu0 %v950_v56, %s14129_s28 }
 0x31f   : > { %v920_v62 = vpop.permute.xlu1 %919 }
 0x320   : > { %v921_v6 = vsel %vm560_vm4, %v918_v12, %v920_v62 }
 0x321   : > { %v929_v24 = vpop.permute.xlu0 %928 }
 0x322   : > { %990 = vrot.lane.b32.xlu1 %v925_v57, %s14131_s30  ;;  %v936_v27 = vmul.f32 0.0, %v929_v24 }
 0x323   : > { %v931_v23 = vpop.permute.xlu1 %930 }
 0x324   : > { %v932_v26 = vsel %vm572_vm3, %v929_v24, %v931_v23 }
 0x325   : > { %v10920_v60 = vpop.eup %10919 }
 0x326   : > { %v874_v61 = vmul.f32 %v10920_v60, %v870_v58  ;;  %v875_v63 = vmul.f32 %v10920_v60, %v871_v59  ;;  %896 = vrot.lane.b32.xlu1 %v891_v39, %s14135_s23 }
 0x328   : > { %v11364_v0 = vmax.f32 %v874_v61, 0.0  ;;  %v11366_v2 = vmax.f32 %v875_v63, 0.0 }
 0x32a   : > { %881 = vst [vmem:[#allocation2 + $0x8] sm:$0xff] %v11364_v0  ;;  %v948_v7 = vmul.f32 %v941_v54, %v11364_v0  ;;  %v949_v8 = vmul.f32 %v944_v5, %v11366_v2  ;;  %v9567_v9 = vpack.i.bf16 %v11366_v2, %v11364_v0  ;;  %v926_v10 = vmul.f32 %v921_v6, %v11364_v0 }
 0x32b   : > { %v927_v11 = vmul.f32 %v920_v62, %v11366_v2  ;;  %v970_v16 = vmul.f32 %v963_v45, %v11364_v0  ;;  %v971_v17 = vmul.f32 %v966_v15, %v11366_v2  ;;  %v959_v20 = vmul.f32 %v952_v51, %v11364_v0 }
 0x32c   : > { %v9587_v14 = vpack.i.bf16 %v949_v8, %v948_v7  ;;  %9568 = vrot.lane.b32.xlu0 %v9567_v9, %s14123_s22  ;;  %v960_v21 = vmul.f32 %v955_v19, %v11366_v2  ;;  %v938_v28 = vmul.f32 %v931_v23, %v11366_v2  ;;  %v937_v29 = vmul.f32 %v932_v26, %v11364_v0  ;;  %s14209_s22 = smov 127  }
 0x32d   : > { %v9592_v18 = vpack.i.bf16 %v927_v11, %v926_v10  ;;  %v9577_v22 = vpack.i.bf16 %v971_v17, %v970_v16 }
 0x32e   : > { %9588 = vrot.lane.b32.xlu1 %v9587_v14, %s14129_s28  ;;  %v9582_v25 = vpack.i.bf16 %v960_v21, %v959_v20  ;;  %v9597_v30 = vpack.i.bf16 %v938_v28, %v937_v29  ;;  %s14144_s28 = smov 9  }
 0x330   : > { %9573 = vrot.lane.b32.xlu0 %v9567_v9, %s14135_s23 }
 0x332   : > { %9593 = vrot.lane.b32.xlu1 %v9592_v18, %s14131_s30  ;;  %s14203_s30 = smov 111  }
 0x334   : > { %9578 = vrot.lane.b32.xlu0 %v9577_v22, %s14119_s24  ;;  %s14205_s24 = smov 110  }
 0x336   : > { %9603 = vrot.lane.b32.xlu1 %v9567_v9, %s14148_s21 }
 0x338   : > { %9583 = vrot.lane.b32.xlu0 %v9582_v25, %s14121_s25  ;;  %s14150_s25 = smov 120  }
 0x33c   : > { %1004 = vrot.lane.b32.xlu0 %v936_v27, %s14200_s16 }
 0x340   : > { %9598 = vrot.lane.b32.xlu0 %v9597_v30, %s14200_s16  ;;  %v10810_v30 = vld [vmem:[%s14201_s10 + $0x78] sm:$0xff]  }
 0x341   : > { %9075 = vmatprep.subr.bf16.mxu0 %v10810_v30 }
 0x344   : > { %898 = vrot.lane.b32.xlu0 %v11342_v37, %s14135_s23  ;;  %s14142_s23 = smov 121  }
 0x348   : > { %976 = vrot.lane.b32.xlu0 %v11056_v1, %s14148_s21 }
 0x388   : > { %v1071_v31 = vpop.permute.xlu1 %1070 }
 0x38c   : > { %v1045_v32 = vpop.permute.xlu1 %1044 }
 0x390   : > { %v1057_v33 = vpop.permute.xlu1 %1056  ;;  %v1031_v34 = vpop.permute.xlu0 %1030 }
 0x394   : > { %v11399_v35 = vpop.permute.xlu1 %990 }
 0x398   : > { %v11401_v38 = vpop.permute.xlu1 %896 }
 0x39e   : > { %v9569_v36 = vpop.permute.xlu0 %9568 }
 0x39f   : > { %v9570_v46 = vunpack.i.l.bf16 %v9569_v36  ;;  %v9571_v54 = vunpack.i.h.bf16 %v9569_v36 }
 0x3a0   : > { %v9589_v42 = vpop.permute.xlu1 %9588 }
 0x3a1   : > { %v9590_v47 = vunpack.i.l.bf16 %v9589_v42  ;;  %v9591_v12 = vunpack.i.h.bf16 %v9589_v42  ;;  %v1059_v63 = vsel %vm705_vm8, %v9571_v54, %v1057_v33  ;;  %v1058_v62 = vsel %vm705_vm8, %v9570_v46, %v9571_v54  ;;  %v10812_v33 = vld [vmem:[%s14201_s10 + $0x70] sm:$0xff]   ;;  %v11446_v42 = vld [vmem:[#allocation2] sm:$0xff] }
 0x3a2   : > { %v9574_v39 = vpop.permute.xlu0 %9573  ;;  %1423 = vst.msk [vmem:[#allocation2 + $0x8] sm:$0xff] %vm1422_vm15, %v11446_v42  ;;  %1424 = vst.msk [vmem:[#allocation2 + $0x28] sm:$0xff] %vm1422_vm15, %v11446_v42 }
 0x3a3   : > { %v9575_v43 = vunpack.i.l.bf16 %v9574_v39  ;;  %v9576_v57 = vunpack.i.h.bf16 %v9574_v39  ;;  %v1033_v10 = vsel %vm14152_vm7, %v9591_v12, %v1031_v34  ;;  %v1032_v16 = vsel %vm14152_vm7, %v9590_v47, %v9591_v12 }
 0x3a4   : > { %v9594_v61 = vpop.permute.xlu1 %9593  ;;  %vm1875_vm7 = vcmask 171136  }
 0x3a5   : > { %v1083_v49 = vpack.c.bf16 %v9590_v47, %v9575_v43  ;;  %v1019_v9 = vsel %vm14173_vm11, %v9575_v43, %v9576_v57  ;;  %v9596_v14 = vunpack.i.h.bf16 %v9594_v61  ;;  %v9595_v15 = vunpack.i.l.bf16 %v9594_v61  ;;  %v10819_v47 = vld [vmem:[%s14201_s10 + $0x18] sm:$0xff]   ;;  %1878 = vst.msk [vmem:[#allocation2 + $0x48] sm:$0xff] %vm1875_vm7, %v11446_v42  ;;  %1879 = vst.msk [vmem:[#allocation2 + $0x68] sm:$0xff] %vm1875_vm7, %v11446_v42 }
 0x3a6   : > { %v9579_v40 = vpop.permute.xlu0 %9578  ;;  %v1084_v18 = vpack.c.bf16 %v1032_v16, %v1019_v9  ;;  %v1085_v19 = vpack.c.bf16 %v1033_v10, %v9576_v57 }
 0x3a7   : > { %v9580_v41 = vunpack.i.l.bf16 %v9579_v40  ;;  %v9581_v45 = vunpack.i.h.bf16 %v9579_v40  ;;  %v997_v24 = vsel %vm639_vm9, %v9595_v15, %v9596_v14 }
 0x3a8   : > { %v9604_v17 = vpop.permute.xlu1 %9603 }
 0x3a9   : > { %v1089_v44 = vpack.c.bf16 %v9580_v41, %v9580_v41  ;;  %v1073_v13 = vsel %vm14143_vm5, %v9581_v45, %v1071_v31  ;;  %v1072_v53 = vsel %vm14143_vm5, %v9580_v41, %v9581_v45  ;;  %v9606_v22 = vunpack.i.h.bf16 %v9604_v17  ;;  %v10811_v31 = vld [vmem:[%s14201_s10 + $0x38] sm:$0xff]   ;;  %v10813_v41 = vld [vmem:[%s14201_s10 + $0x30] sm:$0xff]   ;;  %v10815_v45 = vld [vmem:[%s14201_s10 + $0x28] sm:$0xff]  }
 0x3aa   : > { %v9584_v37 = vpop.permute.xlu0 %9583  ;;  %v1091_v55 = vpack.c.bf16 %v1073_v13, %v1073_v13  ;;  %v1090_v56 = vpack.c.bf16 %v1072_v53, %v1072_v53  ;;  %v9605_v23 = vunpack.i.l.bf16 %v9604_v17  ;;  %9076 = vmatpush3.bf16.msra.mxu0 %v10811_v31  ;;  %v10809_v17 = vld [vmem:[%s14202_s2] sm:$0xff]   ;;  %vm1640_vm5 = vcmask 72704   ;;  %s14212_s2 = smov 63  }
 0x3ab   : > { %v9585_v1 = vunpack.i.l.bf16 %v9584_v37  ;;  %1136 = vrot.lane.b32.xlu1 %v1089_v44, %s14133_s26  ;;  %v9586_v51 = vunpack.i.h.bf16 %v9584_v37  ;;  %9077 = vmatprep.subr.bf16.mxu0 %v10812_v33  ;;  %v10817_v37 = vld [vmem:[%s14201_s10 + $0x20] sm:$0xff]  }
 0x3ad   : > { %v1086_v50 = vpack.c.bf16 %v9570_v46, %v9585_v1  ;;  %v1047_v59 = vsel %vm14163_vm6, %v9586_v51, %v1045_v32  ;;  %v1046_v60 = vsel %vm14163_vm6, %v9585_v1, %v9586_v51  ;;  %v983_v32 = vsel %vm572_vm3, %v9605_v23, %v9606_v22  ;;  %v10818_v46 = vld [vmem:[%s14201_s10 + $0x58] sm:$0xff]   ;;  %v10820_v1 = vld [vmem:[%s14201_s10 + $0x50] sm:$0xff]  }
 0x3ae   : > { %v1005_v52 = vpop.permute.xlu0 %1004  ;;  %v1088_v5 = vpack.c.bf16 %v1059_v63, %v1047_v59  ;;  %v1087_v6 = vpack.c.bf16 %v1058_v62, %v1046_v60  ;;  %9078 = vmatpush3.bf16.msra.mxu0 %v10813_v41  ;;  %vm2054_vm6 = vcmask 1014784  }
 0x3af   : > { %1124 = vrot.lane.b32.xlu1 %v1083_v49, %s14133_s26  ;;  %1130 = vrot.lane.b32.xlu0 %v1086_v50, %s14133_s26  ;;  %v10821_v49 = vld [vmem:[%s14201_s10 + $0x10] sm:$0xff]  }
 0x3b2   : > { %v9599_v58 = vpop.permute.xlu0 %9598 }
 0x3b3   : > { %1140 = vrot.lane.b32.xlu1 %v1091_v55, %s14133_s26  ;;  %1138 = vrot.lane.b32.xlu0 %v1090_v56, %s14133_s26  ;;  %v9601_v7 = vunpack.i.h.bf16 %v9599_v58  ;;  %v9600_v8 = vunpack.i.l.bf16 %v9599_v58 }
 0x3b5   : > { %v1011_v21 = vsel %vm14172_vm10, %v9600_v8, %v9601_v7  ;;  %v1082_v26 = vpack.c.bf16 %v9601_v7, %v9596_v14  ;;  %v1010_v28 = vsel %vm14172_vm10, %v1005_v52, %v9600_v8  ;;  %vm2300_vm10 = vcmask 261120  }
 0x3b6   : > { %v899_v11 = vpop.permute.xlu0 %898  ;;  %v1081_v27 = vpack.c.bf16 %v1011_v21, %v997_v24  ;;  %v10825_v21 = vld [vmem:[%s14201_s10] sm:$0xff]  }
 0x3b7   : > { %1134 = vrot.lane.b32.xlu1 %v1088_v5, %s14133_s26  ;;  %1132 = vrot.lane.b32.xlu0 %v1087_v6, %s14133_s26  ;;  %v900_v20 = vsel %vm14173_vm11, %v11401_v38, %v899_v11  ;;  %v906_v34 = vmul.f32 %v899_v11, %v11366_v2  ;;  %v10814_v2 = vld [vmem:[%s14201_s10 + $0x68] sm:$0xff]   ;;  %vm2273_vm11 = vcmask 39936  }
 0x3b8   : > { %v905_v25 = vmul.f32 %v900_v20, %v11364_v0  ;;  %v996_v0 = vsel %vm639_vm9, %v11399_v35, %v9595_v15  ;;  %v904_v35 = vmul.f32 %v11446_v42, %v11401_v38  ;;  %v10816_v38 = vld [vmem:[%s14201_s10 + $0x60] sm:$0xff]   ;;  %9079 = vmatprep.subr.bf16.mxu0 %v10814_v2 }
 0x3b9   : > { %v1080_v39 = vpack.c.bf16 %v1010_v28, %v996_v0  ;;  %v1079_v44 = vpack.c.bf16 %v9606_v22, %v906_v34  ;;  %9080 = vmatpush3.bf16.msra.mxu0 %v10815_v45  ;;  %v10824_v20 = vld [vmem:[%s14201_s10 + $0x40] sm:$0xff]  }
 0x3ba   : > { %v977_v29 = vpop.permute.xlu0 %976  ;;  %v1078_v36 = vpack.c.bf16 %v983_v32, %v905_v25  ;;  %9081 = vmatprep.subr.bf16.mxu0 %v10816_v38  ;;  %v11521_v2 = vld [vmem:[#allocation3 + $0x5] ss:$0 sm:$0xff] }
 0x3bb   : > { %1126 = vrot.lane.b32.xlu1 %v1084_v18, %s14133_s26  ;;  %1128 = vrot.lane.b32.xlu0 %v1085_v19, %s14133_s26  ;;  %v982_v40 = vsel %vm572_vm3, %v977_v29, %v9605_v23  ;;  %v10822_v18 = vld [vmem:[%s14201_s10 + $0x48] sm:$0xff]  }
 0x3bc   : > { %v1077_v43 = vpack.c.bf16 %v982_v40, %v904_v35  ;;  %v10823_v19 = vld [vmem:[%s14201_s10 + $0x8] sm:$0xff]   ;;  %v11515_v35 = vld [vmem:[#allocation3 + $0x4] ss:$0 sm:$0xff]  ;;  %s14221_s10 = smov 5  }
 0x3bd   : > { %9082 = vmatpush3.bf16.msra.mxu0 %v10817_v37 }
 0x3be   : > { %9083 = vmatprep.subr.bf16.mxu0 %v10818_v46 }
 0x3bf   : > { %1122 = vrot.lane.b32.xlu1 %v1082_v26, %s14133_s26  ;;  %1120 = vrot.lane.b32.xlu0 %v1081_v27, %s14133_s26 }
 0x3c1   : > { %9084 = vmatpush3.bf16.msra.mxu0 %v10819_v47 }
 0x3c2   : > { %9085 = vmatprep.subr.bf16.mxu0 %v10820_v1 }
 0x3c3   : > { %1114 = vrot.lane.b32.xlu1 %v1078_v36, %s14133_s26  ;;  %1118 = vrot.lane.b32.xlu0 %v1080_v39, %s14133_s26 }
 0x3c5   : > { %9086 = vmatpush3.bf16.msra.mxu0 %v10821_v49 }
 0x3c6   : > { %9087 = vmatprep.subr.bf16.mxu0 %v10822_v18 }
 0x3c7   : > { %1112 = vrot.lane.b32.xlu1 %v1077_v43, %s14133_s26  ;;  %1116 = vrot.lane.b32.xlu0 %v1079_v44, %s14133_s26  ;;  %s14138_s26 = smov 7  }
 0x3c9   : > { %9088 = vmatpush3.bf16.msra.mxu0 %v10823_v19 }
 0x3ca   : > { %9089 = vmatprep.subr.bf16.mxu0 %v10824_v20 }
 0x3cd   : > { %9090 = vmatpush3.bf16.msra.mxu0 %v10825_v21 }
 0x41d   : > { %v1137_v50 = vpop.permute.xlu1 %1136 }
 0x421   : > { %v1125_v51 = vpop.permute.xlu1 %1124  ;;  %v1131_v52 = vpop.permute.xlu0 %1130 }
 0x425   : > { %v1141_v13 = vpop.permute.xlu1 %1140  ;;  %v1139_v53 = vpop.permute.xlu0 %1138 }
 0x426   : > { %v1151_v54 = vsel %vm516_vm0, %v1139_v53, %v1141_v13  ;;  %v1150_v55 = vsel %vm516_vm0, %v1137_v50, %v1139_v53 }
 0x427   : > { %8824 = vmatprep.subr.msk.bf16.mxu1 %vm14139_vm12, %v1151_v54  ;;  %v1164_v56 = vsel %vm14139_vm12, %v1150_v55, 0  ;;  %vm1654_vm12 = vcmask 130048  }
 0x428   : > { %1176 = vmatpush1.bf16.msra.mxu1 %v1164_v56 }
 0x429   : > { %v1135_v12 = vpop.permute.xlu1 %1134  ;;  %v1133_v57 = vpop.permute.xlu0 %1132 }
 0x42a   : > { %v1149_v58 = vsel %vm516_vm0, %v1133_v57, %v1135_v12  ;;  %v1148_v59 = vsel %vm516_vm0, %v1131_v52, %v1133_v57 }
 0x42b   : > { %1177 = vmatprep.subr.bf16.mxu1 %v1149_v58 }
 0x42c   : > { %1178 = vmatpush1.bf16.msra.mxu1 %v1148_v59 }
 0x42d   : > { %v1127_v60 = vpop.permute.xlu1 %1126  ;;  %v1129_v61 = vpop.permute.xlu0 %1128 }
 0x42e   : > { %v1147_v63 = vsel %vm516_vm0, %v1127_v60, %v1129_v61  ;;  %v1146_v62 = vsel %vm516_vm0, %v1125_v51, %v1127_v60 }
 0x42f   : > { %1179 = vmatprep.subr.bf16.mxu1 %v1147_v63 }
 0x430   : > { %1180 = vmatpush1.bf16.msra.mxu1 %v1146_v62 }
 0x431   : > { %v1123_v5 = vpop.permute.xlu1 %1122  ;;  %v1121_v6 = vpop.permute.xlu0 %1120 }
 0x432   : > { %v1145_v7 = vsel %vm516_vm0, %v1121_v6, %v1123_v5 }
 0x433   : > { %1181 = vmatprep.subr.bf16.mxu1 %v1145_v7 }
 0x435   : > { %v1115_v8 = vpop.permute.xlu1 %1114  ;;  %v1119_v9 = vpop.permute.xlu0 %1118 }
 0x436   : > { %v1144_v10 = vsel %vm516_vm0, %v1119_v9, %v1121_v6 }
 0x437   : > { %1182 = vmatpush1.bf16.msra.mxu1 %v1144_v10 }
 0x439   : > { %v1113_v11 = vpop.permute.xlu1 %1112  ;;  %v1117_v14 = vpop.permute.xlu0 %1116 }
 0x43a   : > { %v1143_v15 = vsel %vm516_vm0, %v1115_v8, %v1117_v14  ;;  %v1142_v16 = vsel %vm516_vm0, %v1113_v11, %v1115_v8 }
 0x43b   : > { %1183 = vmatprep.subr.bf16.mxu1 %v1143_v15 }
 0x43c   : > { %1184 = vmatpush1.bf16.msra.mxu1 %v1142_v16 }
 0x43d   : > { %1661 = vmatprep.subr.bf16.mxu1 %v11069_v48 }
 0x43f   : > { %8825 = vmatmul.mubr.msk.bf16.vlgmr.msra.gmra.mxu1 %vm14137_vm13, %v10809_v17  ;;  %vm1527_vm13 = vcmask 982016  }
 0x4ff   : > { %v1203_v22 = vpop.f32.mrf.mxu1 }
 0x501   : > { %v1205_v23 = vpop.f32.mrf.mxu1 }
 0x503   : > { %v1207_v24 = vpop.f32.mrf.mxu1 }
 0x504   : > { %v1212_v27 = vpack.c.bf16 %v1207_v24, %v1203_v22 }
 0x505   : > { %v1209_v25 = vpop.f32.mrf.mxu1 }
 0x506   : > { %v1213_v26 = vpack.c.bf16 %v1209_v25, %v1205_v23 }
 0x508   : > { %1374 = vmatprep.mubr.bf16.mxu0 %v1213_v26 }
 0x509   : > { %1375 = vmatmul.mubr.bf16.vlgmr.msra.gmra.mxu0 %v1212_v27 }
 0x5c9   : > { %v9091_v28 = vpop.f32.mrf.mxu0 }
 0x5cb   : > { %v9092_v29 = vpop.f32.mrf.mxu0 }
 0x5cc   : > { %v9093_v30 = vadd.f32 %v9092_v29, %v9091_v28 }
 0x5cd   : > { %v9094_v31 = vpop.f32.mrf.mxu0 }
 0x5ce   : > { %v1384_v32 = vsel %vm1383_vm14, %v9093_v30, 0.0  ;;  %v1390_v0 = vmul.f32 %v9093_v30, %v9093_v30 }
 0x5cf   : > { %v9095_v33 = vpop.f32.mrf.mxu0  ;;  %1385 = vadd.xlane.f32.xlu0 %v1384_v32 }
 0x5d0   : > { %v9096_v34 = vadd.f32 %v9095_v33, %v9094_v31  ;;  %v1392_v39 = vsel %vm1383_vm14, %v1390_v0, 0.0 }
 0x5d2   : > { %v1387_v36 = vsel %vm1383_vm14, %v9096_v34, 0.0  ;;  %v1391_v40 = vmul.f32 %v9096_v34, %v9096_v34 }
 0x5d3   : > { %1388 = vadd.xlane.f32.xlu1 %v1387_v36  ;;  %1393 = vadd.xlane.f32.xlu0 %v1392_v39 }
 0x5d4   : > { %v1395_v41 = vsel %vm1383_vm14, %v1391_v40, 0.0 }
 0x5d7   : > { %1396 = vadd.xlane.f32.xlu0 %v1395_v41 }
 0x5e4   : > { %1469 = vrot.lane.b32.xlu1 %v11515_v35, %s14138_s26  ;;  %s14155_s26 = smov 124  }
 0x5e8   : > { %1457 = vrot.lane.b32.xlu1 %v11515_v35, %s14148_s21 }
 0x5ec   : > { %1450 = vrot.lane.b32.xlu1 %v11521_v2, %s14142_s23  ;;  %s14208_s23 = smov 120  }
 0x5ed   : > { %1464 = vrot.lane.b32.xlu0 %v11521_v2, %s14140_s29  ;;  %s14168_s29 = smov 69  }
 0x5f1   : > { %1474 = vrot.lane.b32.xlu0 %v11521_v2, %s14144_s28 }
 0x658   : > { %v1386_v43 = vpop.xlane.xlu0 %1385 }
 0x659   : > { %v1398_v44 = vmul.f32 0.015625, %v1386_v43 }
 0x65b   : > { %v1402_v37 = vmul.f32 %v1398_v44, %v1398_v44  ;;  %v1408_v56 = vsub.f32 %v9093_v30, %v1398_v44 }
 0x65c   : > { %v1389_v45 = vpop.xlane.xlu1 %1388  ;;  %v1394_v38 = vpop.xlane.xlu0 %1393 }
 0x65d   : > { %v1399_v46 = vmul.f32 0.015625, %v1389_v45  ;;  %v1400_v47 = vmul.f32 0.015625, %v1394_v38 }
 0x65f   : > { %v1404_v1 = vsub.f32 %v1400_v47, %v1402_v37  ;;  %v1403_v50 = vmul.f32 %v1399_v46, %v1399_v46  ;;  %v1409_v58 = vsub.f32 %v9096_v34, %v1399_v46 }
 0x660   : > { %v1397_v49 = vpop.xlane.xlu0 %1396  ;;  %v1470_v62 = vpop.permute.xlu1 %1469 }
 0x661   : > { %v1406_v51 = vmax.f32 %v1404_v1, 0.0  ;;  %v1401_v52 = vmul.f32 0.015625, %v1397_v49 }
 0x663   : > { %v1410_v13 = vadd.f32 1e-05, %v1406_v51  ;;  %v1405_v53 = vsub.f32 %v1401_v52, %v1403_v50 }
 0x664   : > { %v1458_v9 = vpop.permute.xlu1 %1457  ;;  %v1465_v10 = vpop.permute.xlu0 %1464 }
 0x665   : > { %10921 = vrsqrt.f32 %v1410_v13  ;;  %v1407_v54 = vmax.f32 %v1405_v53, 0.0  ;;  %v1460_v17 = vmul.f32 %v11446_v42, %v1458_v9 }
 0x667   : > { %v1411_v55 = vadd.f32 1e-05, %v1407_v54 }
 0x668   : > { %v1451_v21 = vpop.permute.xlu1 %1450  ;;  %v1475_v29 = vpop.permute.xlu0 %1474 }
 0x669   : > { %10923 = vrsqrt.f32 %v1411_v55  ;;  %v1453_v22 = vmul.f32 %v11446_v42, %v1451_v21 }
 0x672   : > { %v10922_v12 = vpop.eup %10921 }
 0x673   : > { %v1414_v57 = vmul.f32 %v10922_v12, %v1408_v56 }
 0x675   : > { %v1416_v59 = vmax.f32 %v1414_v57, 0.0 }
 0x676   : > { %v10924_v60 = vpop.eup %10923 }
 0x677   : > { %1425 = vst.msk [vmem:[#allocation2 + $0x8] sm:$0xff] %vm1383_vm14, %v1416_v59  ;;  %v1415_v61 = vmul.f32 %v10924_v60, %v1409_v58 }
 0x679   : > { %v1417_v63 = vmax.f32 %v1415_v61, 0.0 }
 0x67b   : > { %1426 = vst.msk [vmem:[#allocation2 + $0x28] sm:$0xff] %vm1383_vm14, %v1417_v63 }
 0x67e   : > { %v11531_v5 = vld [vmem:[#allocation2 + $0x8] sm:$0xff] }
 0x67f   : > { %v1472_v7 = vmul.f32 %v1470_v62, %v11531_v5  ;;  %v1467_v16 = vmul.f32 %v1465_v10, %v11531_v5  ;;  %v1461_v18 = vmul.f32 %v1458_v9, %v11531_v5  ;;  %v1454_v23 = vmul.f32 %v1451_v21, %v11531_v5  ;;  %1876 = vst.msk [vmem:[#allocation2 + $0x8] sm:$0xff] %vm1875_vm7, %v11446_v42 }
 0x680   : > { %v9637_v30 = vpack.i.bf16 %v11531_v5, %v11446_v42  ;;  %v1477_v0 = vmul.f32 %v1475_v29, %v11531_v5 }
 0x681   : > { %v9627_v24 = vpack.i.bf16 %v1461_v18, %v1460_v17  ;;  %v9632_v27 = vpack.i.bf16 %v1454_v23, %v1453_v22 }
 0x682   : > { %v11533_v6 = vld [vmem:[#allocation2 + $0x28] sm:$0xff] }
 0x683   : > { %v1473_v8 = vmul.f32 %v1470_v62, %v11533_v6  ;;  %v1468_v11 = vmul.f32 %v1465_v10, %v11533_v6  ;;  %v9607_v14 = vpack.i.bf16 %v11533_v6, %v11531_v5  ;;  %v1463_v20 = vmul.f32 %v1458_v9, %v11533_v6  ;;  %1877 = vst.msk [vmem:[#allocation2 + $0x28] sm:$0xff] %vm1875_vm7, %v11446_v42 }
 0x684   : > { %v1456_v25 = vmul.f32 %v1451_v21, %v11533_v6  ;;  %v1478_v31 = vmul.f32 %v1475_v29, %v11533_v6  ;;  %v9652_v32 = vpack.i.bf16 %v11533_v6, %v11446_v42 }
 0x685   : > { %v9612_v15 = vpack.i.bf16 %v1473_v8, %v1472_v7  ;;  %9608 = vrot.lane.b32.xlu1 %v9607_v14, %s14203_s30  ;;  %v9617_v19 = vpack.i.bf16 %v1468_v11, %v1467_v16  ;;  %v9642_v26 = vpack.i.bf16 %v1463_v20, %v1460_v17 }
 0x686   : > { %v9647_v28 = vpack.i.bf16 %v1456_v25, %v1453_v22  ;;  %v9657_v33 = vpack.i.bf16 %v1478_v31, %v1477_v0 }
 0x687   : > { %9613 = vrot.lane.b32.xlu0 %v9612_v15, %s14200_s16 }
 0x689   : > { %9618 = vrot.lane.b32.xlu1 %v9617_v19, %s14146_s27  ;;  %s14157_s27 = smov 65  }
 0x68b   : > { %9623 = vrot.lane.b32.xlu0 %v9607_v14, %s14153_s20 }
 0x68d   : > { %9628 = vrot.lane.b32.xlu1 %v9627_v24, %s14150_s25 }
 0x68f   : > { %9643 = vrot.lane.b32.xlu0 %v9642_v26, %s14150_s25  ;;  %s14159_s25 = smov 61  }
 0x691   : > { %9633 = vrot.lane.b32.xlu1 %v9632_v27, %s14204_s17 }
 0x693   : > { %9648 = vrot.lane.b32.xlu0 %v9647_v28, %s14204_s17 }
 0x695   : > { %9638 = vrot.lane.b32.xlu1 %v9637_v30, %s14148_s21 }
 0x697   : > { %9653 = vrot.lane.b32.xlu0 %v9652_v32, %s14148_s21  ;;  %v10826_v32 = vld [vmem:[%s14206_s3 + $0x4] ss:$8 sps:$4 sm:$0xff]   ;;  %s14170_s21 = smov 63  }
 0x698   : > { %8848 = vmatprep.mubr.msk.bf16.mxu1 %vm1654_vm12, %v10826_v32 }
 0x699   : > { %1437 = vrot.lane.b32.xlu1 %v11515_v35, %s14153_s20 }
 0x69b   : > { %9658 = vrot.lane.b32.xlu0 %v9657_v33, %s14205_s24  ;;  %s14230_s24 = smov 113  }
 0x6f7   : > { %v9609_v34 = vpop.permute.xlu1 %9608 }
 0x6f8   : > { %v9611_v36 = vunpack.i.h.bf16 %v9609_v34  ;;  %v9610_v39 = vunpack.i.l.bf16 %v9609_v34 }
 0x6f9   : > { %v9614_v40 = vpop.permute.xlu0 %9613 }
 0x6fa   : > { %v9616_v41 = vunpack.i.h.bf16 %v9614_v40  ;;  %v9615_v43 = vunpack.i.l.bf16 %v9614_v40  ;;  %v1581_v44 = vpack.c.bf16 %v9611_v36, %v9610_v39 }
 0x6fb   : > { %v9619_v38 = vpop.permute.xlu1 %9618 }
 0x6fc   : > { %v1580_v45 = vpack.c.bf16 %v9616_v41, %v9615_v43  ;;  %v9621_v37 = vunpack.i.h.bf16 %v9619_v38  ;;  %v9620_v46 = vunpack.i.l.bf16 %v9619_v38  ;;  %1636 = vrot.lane.b32.xlu1 %v1581_v44, %s14144_s28 }
 0x6fd   : > { %v9624_v47 = vpop.permute.xlu0 %9623 }
 0x6fe   : > { %v9626_v1 = vunpack.i.h.bf16 %v9624_v47  ;;  %v9625_v49 = vunpack.i.l.bf16 %v9624_v47  ;;  %1634 = vrot.lane.b32.xlu0 %v1580_v45, %s14144_s28  ;;  %v1579_v50 = vpack.c.bf16 %v9621_v37, %v9620_v46 }
 0x6ff   : > { %v9629_v52 = vpop.permute.xlu1 %9628 }
 0x700   : > { %v1578_v51 = vpack.c.bf16 %v9626_v1, %v9625_v49  ;;  %v9631_v13 = vunpack.i.h.bf16 %v9629_v52  ;;  %v9630_v53 = vunpack.i.l.bf16 %v9629_v52  ;;  %1632 = vrot.lane.b32.xlu1 %v1579_v50, %s14144_s28 }
 0x701   : > { %v9644_v54 = vpop.permute.xlu0 %9643 }
 0x702   : > { %v9646_v55 = vunpack.i.h.bf16 %v9644_v54  ;;  %v9645_v56 = vunpack.i.l.bf16 %v9644_v54  ;;  %1630 = vrot.lane.b32.xlu0 %v1578_v51, %s14144_s28  ;;  %v1528_v12 = vsel %vm1527_vm13, %v9630_v53, %v9631_v13  ;;  %v10829_v53 = vld [vmem:[%s14206_s3 + $0x14] ss:$8 sps:$4 sm:$0xff]   ;;  %v10831_v54 = vld [vmem:[%s14206_s3 + $0x10] ss:$8 sps:$4 sm:$0xff]  }
 0x703   : > { %v9634_v59 = vpop.permute.xlu1 %9633 }
 0x704   : > { %v1577_v57 = vpack.c.bf16 %v9646_v55, %v9631_v13  ;;  %v1529_v58 = vsel %vm1527_vm13, %v9645_v56, %v9646_v55  ;;  %v9636_v60 = vunpack.i.h.bf16 %v9634_v59  ;;  %v9635_v61 = vunpack.i.l.bf16 %v9634_v59  ;;  %v10828_v13 = vld [vmem:[%s14206_s3] ss:$8 sps:$4 sm:$0xff]   ;;  %v10833_v55 = vld [vmem:[%s14207_s11 + $0x10] sm:$0xff]   ;;  %s14213_s3 = smov 69  }
 0x705   : > { %v9649_v63 = vpop.permute.xlu0 %9648  ;;  %v1576_v62 = vpack.c.bf16 %v1529_v58, %v1528_v12  ;;  %v10834_v56 = vld [vmem:[%s14207_s11 + $0x8] sm:$0xff]   ;;  %v10835_v12 = vld [vmem:[%s14207_s11] sm:$0xff]  }
 0x706   : > { %v9651_v7 = vunpack.i.h.bf16 %v9649_v63  ;;  %v9650_v8 = vunpack.i.l.bf16 %v9649_v63  ;;  %1628 = vrot.lane.b32.xlu0 %v1577_v57, %s14144_s28  ;;  %v1509_v9 = vsel %vm639_vm9, %v9635_v61, %v9636_v60 }
 0x707   : > { %1626 = vrot.lane.b32.xlu1 %v1576_v62, %s14144_s28  ;;  %v9639_v14 = vpop.permute.xlu1 %9638 }
 0x708   : > { %v1575_v10 = vpack.c.bf16 %v9651_v7, %v9636_v60  ;;  %v1510_v11 = vsel %vm639_vm9, %v9650_v8, %v9651_v7  ;;  %v9641_v15 = vunpack.i.h.bf16 %v9639_v14  ;;  %v9640_v16 = vunpack.i.l.bf16 %v9639_v14 }
 0x709   : > { %v9654_v17 = vpop.permute.xlu0 %9653  ;;  %v1574_v18 = vpack.c.bf16 %v1510_v11, %v1509_v9 }
 0x70a   : > { %v9656_v19 = vunpack.i.h.bf16 %v9654_v17  ;;  %v9655_v20 = vunpack.i.l.bf16 %v9654_v17  ;;  %1624 = vrot.lane.b32.xlu0 %v1575_v10, %s14144_s28  ;;  %v1491_v21 = vsel %vm572_vm3, %v9640_v16, %v9641_v15 }
 0x70b   : > { %1622 = vrot.lane.b32.xlu1 %v1574_v18, %s14144_s28  ;;  %v1438_v24 = vpop.permute.xlu1 %1437 }
 0x70c   : > { %v1573_v22 = vpack.c.bf16 %v9656_v19, %v9641_v15  ;;  %v1492_v23 = vsel %vm572_vm3, %v9655_v20, %v9656_v19  ;;  %v1440_v25 = vmul.f32 %v11446_v42, %v1438_v24  ;;  %v1441_v26 = vmul.f32 %v1438_v24, %v11531_v5 }
 0x70d   : > { %v1443_v27 = vmul.f32 %v1438_v24, %v11533_v6  ;;  %v1572_v28 = vpack.c.bf16 %v1492_v23, %v1491_v21  ;;  %v9659_v29 = vpop.permute.xlu0 %9658  ;;  %v10832_v6 = vld [vmem:[%s14207_s11 + $0x18] sm:$0xff]   ;;  %s14227_s11 = sld [smem:[#allocation12_spill]] }
 0x70e   : > { %1620 = vrot.lane.b32.xlu0 %v1573_v22, %s14144_s28  ;;  %v1570_v30 = vpack.c.bf16 %v1440_v25, %v1440_v25  ;;  %v9661_v0 = vunpack.i.h.bf16 %v9659_v29  ;;  %v9660_v33 = vunpack.i.l.bf16 %v9659_v29  ;;  %9387 = vmatprep.subr.bf16.mxu0 %v10832_v6 }
 0x70f   : > { %1618 = vrot.lane.b32.xlu1 %v1572_v28, %s14144_s28  ;;  %v1571_v31 = vpack.c.bf16 %v1443_v27, %v1441_v26  ;;  %9388 = vmatpush3.bf16.msra.mxu0 %v10832_v6 }
 0x710   : > { %v1582_v5 = vpack.c.bf16 %v9661_v0, %v9660_v33  ;;  %9389 = vmatprep.subr.bf16.mxu0 %v10833_v55 }
 0x712   : > { %1616 = vrot.lane.b32.xlu0 %v1571_v31, %s14144_s28 }
 0x713   : > { %1614 = vrot.lane.b32.xlu1 %v1570_v30, %s14144_s28  ;;  %9390 = vmatpush3.bf16.msra.mxu0 %v10833_v55 }
 0x714   : > { %9391 = vmatprep.subr.bf16.mxu0 %v10834_v56 }
 0x717   : > { %1638 = vrot.lane.b32.xlu1 %v1582_v5, %s14144_s28  ;;  %9392 = vmatpush3.bf16.msra.mxu0 %v10834_v56  ;;  %s14176_s28 = smov 67  }
 0x718   : > { %9393 = vmatprep.subr.bf16.mxu0 %v10835_v12 }
 0x71b   : > { %9394 = vmatpush3.bf16.msra.mxu0 %v10835_v12 }
 0x76e   : > { %v1637_v34 = vpop.permute.xlu1 %1636 }
 0x76f   : > { %1662 = vmatpush1.bf16.msra.mxu1 %v1637_v34 }
 0x770   : > { %v1635_v36 = vpop.permute.xlu0 %1634  ;;  %1663 = vmatprep.subr.bf16.mxu1 %v11069_v48 }
 0x772   : > { %v1633_v40 = vpop.permute.xlu1 %1632 }
 0x773   : > { %1664 = vmatpush1.bf16.msra.mxu1 %v1635_v36 }
 0x774   : > { %v1631_v39 = vpop.permute.xlu0 %1630  ;;  %1665 = vmatprep.subr.bf16.mxu1 %v11069_v48 }
 0x777   : > { %1666 = vmatpush1.bf16.msra.mxu1 %v1633_v40 }
 0x778   : > { %v1629_v41 = vpop.permute.xlu0 %1628  ;;  %1667 = vmatprep.subr.bf16.mxu1 %v11069_v48 }
 0x779   : > { %v1627_v43 = vpop.permute.xlu1 %1626 }
 0x77a   : > { %v1644_v38 = vsel %vm1640_vm5, %v1627_v43, %v1629_v41 }
 0x77b   : > { %1668 = vmatpush1.bf16.msra.mxu1 %v1631_v39 }
 0x77c   : > { %v1625_v44 = vpop.permute.xlu0 %1624  ;;  %1669 = vmatprep.subr.bf16.mxu1 %v11069_v48 }
 0x77d   : > { %v1623_v45 = vpop.permute.xlu1 %1622 }
 0x77e   : > { %v1643_v47 = vsel %vm1640_vm5, %v1623_v45, %v1625_v44 }
 0x77f   : > { %1670 = vmatpush1.bf16.msra.mxu1 %v1644_v38 }
 0x780   : > { %1671 = vmatprep.subr.bf16.mxu1 %v11069_v48  ;;  %v1621_v37 = vpop.permute.xlu0 %1620 }
 0x781   : > { %v1619_v46 = vpop.permute.xlu1 %1618 }
 0x782   : > { %v1642_v1 = vsel %vm1640_vm5, %v1619_v46, %v1621_v37 }
 0x783   : > { %1672 = vmatpush1.bf16.msra.mxu1 %v1643_v47 }
 0x784   : > { %1673 = vmatprep.subr.bf16.mxu1 %v11069_v48  ;;  %v1617_v49 = vpop.permute.xlu0 %1616 }
 0x785   : > { %v1615_v50 = vpop.permute.xlu1 %1614 }
 0x786   : > { %v1641_v51 = vsel %vm1640_vm5, %v1615_v50, %v1617_v49 }
 0x787   : > { %1674 = vmatpush1.bf16.msra.mxu1 %v1642_v1 }
 0x788   : > { %1675 = vmatprep.subr.bf16.mxu1 %v11069_v48 }
 0x789   : > { %v1639_v52 = vpop.permute.xlu1 %1638 }
 0x78b   : > { %1676 = vmatpush1.bf16.msra.mxu1 %v1641_v51 }
 0x78c   : > { %1691 = vmatprep.subr.bf16.mxu1 %v11069_v48 }
 0x78f   : > { %1692 = vmatpush2.bf16.msra.mxu1 %v1639_v52 }
 0x792   : > { %1694 = vmatmul.mubr.bf16.vlgmr.msra.gmra.mxu1 %v10828_v13 }
 0x793   : > { %8849 = vmatprep.mubr.msk.bf16.mxu1 %vm1654_vm12, %v10829_v53 }
 0x79a   : > { %1702 = vmatmul.mubr.bf16.gmra.mxu1 %v10831_v54 }
 0x852   : > { %v1695_v57 = vpop.f32.mrf.mxu1 }
 0x854   : > { %v1697_v58 = vpop.f32.mrf.mxu1 }
 0x856   : > { %v1698_v59 = vpop.f32.mrf.mxu1 }
 0x857   : > { %v1710_v60 = vpack.c.bf16 %v1698_v59, %v1695_v57 }
 0x858   : > { %v1700_v61 = vpop.f32.mrf.mxu1 }
 0x859   : > { %9395 = vmatprep.mubr.msk.bf16.mxu0 %vm1383_vm14, %v1710_v60 }
 0x85a   : > { %v1703_v63 = vpop.f32.mrf.mxu1 }
 0x85c   : > { %v1705_v62 = vpop.f32.mrf.mxu1 }
 0x85e   : > { %v1706_v7 = vpop.f32.mrf.mxu1 }
 0x85f   : > { %v1711_v8 = vpack.c.bf16 %v1706_v7, %v1703_v63 }
 0x860   : > { %v1708_v9 = vpop.f32.mrf.mxu1 }
 0x861   : > { %9396 = vmatmul.mubr.msk.bf16.vlgmr.msra.gmra.mxu0 %vm1383_vm14, %v1711_v8 }
 0x921   : > { %v11628_v10 = vpop.f32.mrf.mxu0 }
 0x922   : > { %v1813_v11 = vmul.f32 %v11628_v10, %v11628_v10  ;;  %v1805_v14 = vsel %vm1654_vm12, %v11628_v10, 0.0 }
 0x923   : > { %1806 = vadd.xlane.f32.xlu0 %v1805_v14  ;;  %v11634_v15 = vpop.f32.mrf.mxu0 }
 0x924   : > { %v1821_v18 = vsel %vm1654_vm12, %v1813_v11, 0.0  ;;  %v1811_v20 = vmul.f32 %v11634_v15, %v11634_v15  ;;  %v1799_v22 = vsel %vm1654_vm12, %v11634_v15, 0.0 }
 0x925   : > { %v11636_v16 = vpop.f32.mrf.mxu0 }
 0x926   : > { %v1814_v17 = vmul.f32 %v11636_v16, %v11636_v16  ;;  %v1808_v19 = vsel %vm1654_vm12, %v11636_v16, 0.0  ;;  %v1815_v25 = vsel %vm1654_vm12, %v1811_v20, 0.0 }
 0x927   : > { %1822 = vadd.xlane.f32.xlu0 %v1821_v18  ;;  %1809 = vadd.xlane.f32.xlu1 %v1808_v19  ;;  %v11648_v23 = vpop.f32.mrf.mxu0 }
 0x928   : > { %v1824_v21 = vsel %vm1654_vm12, %v1814_v17, 0.0  ;;  %v1812_v24 = vmul.f32 %v11648_v23, %v11648_v23  ;;  %v1802_v26 = vsel %vm1654_vm12, %v11648_v23, 0.0 }
 0x92a   : > { %v1818_v27 = vsel %vm1654_vm12, %v1812_v24, 0.0 }
 0x92b   : > { %1825 = vadd.xlane.f32.xlu0 %v1824_v21  ;;  %1800 = vadd.xlane.f32.xlu1 %v1799_v22 }
 0x92f   : > { %1816 = vadd.xlane.f32.xlu1 %v1815_v25  ;;  %1803 = vadd.xlane.f32.xlu0 %v1802_v26 }
 0x933   : > { %1819 = vadd.xlane.f32.xlu0 %v1818_v27 }
 0x940   : > { %1926 = vrot.lane.b32.xlu1 %v11515_v35, %s14170_s21  ;;  %s14216_s21 = smov 124  }
 0x944   : > { %1944 = vrot.lane.b32.xlu1 %v11515_v35, %s14176_s28  ;;  %s14219_s28 = smov 59  }
 0x948   : > { %1937 = vrot.lane.b32.xlu1 %v11521_v2, %s14157_s27  ;;  %s14164_s27 = smov 123  }
 0x949   : > { %1915 = vrot.lane.b32.xlu0 %v11521_v2, %s14159_s25  ;;  %s14210_s25 = smov 118  }
 0x94d   : > { %1951 = vrot.lane.b32.xlu0 %v11521_v2, %s14168_s29  ;;  %s14214_s29 = smov 61  }
 0x9ac   : > { %v1807_v28 = vpop.xlane.xlu0 %1806 }
 0x9ad   : > { %v1829_v29 = vmul.f32 0.0625, %v1807_v28 }
 0x9af   : > { %v1837_v32 = vmul.f32 %v1829_v29, %v1829_v29  ;;  %v1849_v12 = vsub.f32 %v11628_v10, %v1829_v29 }
 0x9b0   : > { %v1823_v30 = vpop.xlane.xlu0 %1822  ;;  %v1810_v31 = vpop.xlane.xlu1 %1809 }
 0x9b1   : > { %v1833_v0 = vmul.f32 0.0625, %v1823_v30  ;;  %v1830_v33 = vmul.f32 0.0625, %v1810_v31 }
 0x9b3   : > { %v1841_v5 = vsub.f32 %v1833_v0, %v1837_v32  ;;  %v1838_v39 = vmul.f32 %v1830_v33, %v1830_v33  ;;  %v1850_v60 = vsub.f32 %v11636_v16, %v1830_v33 }
 0x9b4   : > { %v1826_v6 = vpop.xlane.xlu0 %1825  ;;  %v1801_v34 = vpop.xlane.xlu1 %1800 }
 0x9b5   : > { %v1845_v36 = vmax.f32 %v1841_v5, 0.0  ;;  %v1834_v40 = vmul.f32 0.0625, %v1826_v6  ;;  %v1827_v41 = vmul.f32 0.0625, %v1801_v34 }
 0x9b7   : > { %v1853_v43 = vadd.f32 1e-05, %v1845_v36  ;;  %v1842_v44 = vsub.f32 %v1834_v40, %v1838_v39  ;;  %v1835_v45 = vmul.f32 %v1827_v41, %v1827_v41  ;;  %v1847_v7 = vsub.f32 %v11634_v15, %v1827_v41 }
 0x9b8   : > { %v1817_v38 = vpop.xlane.xlu1 %1816  ;;  %v1804_v37 = vpop.xlane.xlu0 %1803 }
 0x9b9   : > { %10925 = vrsqrt.f32 %v1853_v43  ;;  %v1846_v2 = vmax.f32 %v1842_v44, 0.0  ;;  %v1831_v46 = vmul.f32 0.0625, %v1817_v38  ;;  %v1828_v47 = vmul.f32 0.0625, %v1804_v37 }
 0x9bb   : > { %v1854_v1 = vadd.f32 1e-05, %v1846_v2  ;;  %v1839_v49 = vsub.f32 %v1831_v46, %v1835_v45  ;;  %v1836_v52 = vmul.f32 %v1828_v47, %v1828_v47  ;;  %v1848_v11 = vsub.f32 %v11648_v23, %v1828_v47 }
 0x9bc   : > { %v1820_v50 = vpop.xlane.xlu0 %1819  ;;  %v1927_v14 = vpop.permute.xlu1 %1926 }
 0x9bd   : > { %10927 = vrsqrt.f32 %v1854_v1  ;;  %v1843_v51 = vmax.f32 %v1839_v49, 0.0  ;;  %v1832_v13 = vmul.f32 0.0625, %v1820_v50  ;;  %v1933_v18 = vmul.f32 %v11446_v42, %v1927_v14 }
 0x9bf   : > { %v1851_v53 = vadd.f32 1e-05, %v1843_v51  ;;  %v1840_v54 = vsub.f32 %v1832_v13, %v1836_v52 }
 0x9c0   : > { %v1916_v21 = vpop.permute.xlu0 %1915  ;;  %v1945_v29 = vpop.permute.xlu1 %1944 }
 0x9c1   : > { %10929 = vrsqrt.f32 %v1851_v53  ;;  %v1844_v55 = vmax.f32 %v1840_v54, 0.0  ;;  %v1922_v24 = vmul.f32 %v11446_v42, %v1916_v21 }
 0x9c3   : > { %v1852_v56 = vadd.f32 1e-05, %v1844_v55 }
 0x9c4   : > { %v1938_v37 = vpop.permute.xlu1 %1937 }
 0x9c5   : > { %10931 = vrsqrt.f32 %v1852_v56 }
 0x9c6   : > { %v10926_v57 = vpop.eup %10925 }
 0x9c7   : > { %v11675_v58 = vmul.f32 %v10926_v57, %v1849_v12  ;;  %v1952_v12 = vpop.permute.xlu0 %1951 }
 0x9c9   : > { %v1865_v59 = vmax.f32 %v11675_v58, 0.0 }
 0x9ca   : > { %v10928_v61 = vpop.eup %10927 }
 0x9cb   : > { %1882 = vst.msk [vmem:[#allocation2 + $0x48] sm:$0xff] %vm1654_vm12, %v1865_v59  ;;  %v11682_v63 = vmul.f32 %v10928_v61, %v1850_v60 }
 0x9cd   : > { %v1866_v62 = vmax.f32 %v11682_v63, 0.0 }
 0x9ce   : > { %v10930_v8 = vpop.eup %10929 }
 0x9cf   : > { %1883 = vst.msk [vmem:[#allocation2 + $0x68] sm:$0xff] %vm1654_vm12, %v1866_v62  ;;  %v11689_v9 = vmul.f32 %v10930_v8, %v1847_v7 }
 0x9d1   : > { %v1863_v10 = vmax.f32 %v11689_v9, 0.0 }
 0x9d2   : > { %v10932_v16 = vpop.eup %10931  ;;  %v11693_v17 = vld [vmem:[#allocation2 + $0x48] sm:$0xff] }
 0x9d3   : > { %1880 = vst.msk [vmem:[#allocation2 + $0x8] sm:$0xff] %vm1654_vm12, %v1863_v10  ;;  %v11699_v15 = vmul.f32 %v10932_v16, %v1848_v11  ;;  %v1934_v19 = vmul.f32 %v1927_v14, %v11693_v17  ;;  %v1923_v25 = vmul.f32 %v1916_v21, %v11693_v17  ;;  %v1949_v5 = vmul.f32 %v1945_v29, %v11693_v17 }
 0x9d4   : > { %2540 = vst.msk [vmem:[#allocation2 + $0x48] sm:$0xff] %vm1875_vm7, %v11446_v42  ;;  %v9712_v45 = vpack.i.bf16 %v11693_v17, %v11446_v42  ;;  %v1942_v1 = vmul.f32 %v1938_v37, %v11693_v17  ;;  %v1956_v8 = vmul.f32 %v1952_v12, %v11693_v17 }
 0x9d5   : > { %v1864_v20 = vmax.f32 %v11699_v15, 0.0  ;;  %v9662_v23 = vpack.i.bf16 %v1934_v19, %v1933_v18  ;;  %v9667_v27 = vpack.i.bf16 %v1923_v25, %v1922_v24 }
 0x9d6   : > { %v11705_v22 = vld [vmem:[#allocation2 + $0x68] sm:$0xff] }
 0x9d7   : > { %1881 = vst.msk [vmem:[#allocation2 + $0x28] sm:$0xff] %vm1654_vm12, %v1864_v20  ;;  %9663 = vrot.lane.b32.xlu1 %v9662_v23, %s14155_s26  ;;  %v1950_v0 = vmul.f32 %v1945_v29, %v11705_v22  ;;  %v9672_v33 = vpack.i.bf16 %v11705_v22, %v11693_v17  ;;  %v1936_v34 = vmul.f32 %v1927_v14, %v11705_v22 }
 0x9d8   : > { %2541 = vst.msk [vmem:[#allocation2 + $0x68] sm:$0xff] %vm1875_vm7, %v11446_v42  ;;  %v1925_v44 = vmul.f32 %v1916_v21, %v11705_v22  ;;  %v1943_v46 = vmul.f32 %v1938_v37, %v11705_v22  ;;  %v9717_v50 = vpack.i.bf16 %v11705_v22, %v11446_v42 }
 0x9d9   : > { %v9702_v36 = vpack.i.bf16 %v1950_v0, %v1949_v5  ;;  %v9687_v40 = vpack.i.bf16 %v1936_v34, %v1933_v18 }
 0x9da   : > { %v11715_v26 = vld [vmem:[#allocation2 + $0x8] sm:$0xff]  ;;  %v9697_v2 = vpack.i.bf16 %v1925_v44, %v1922_v24  ;;  %v9727_v51 = vpack.i.bf16 %v1943_v46, %v1942_v1 }
 0x9db   : > { %2538 = vst.msk [vmem:[#allocation2 + $0x8] sm:$0xff] %vm1875_vm7, %v11446_v42  ;;  %v1930_v28 = vmul.f32 %v1927_v14, %v11715_v26  ;;  %9668 = vrot.lane.b32.xlu1 %v9667_v27, %s14204_s17  ;;  %v1919_v31 = vmul.f32 %v1916_v21, %v11715_v26  ;;  %v1947_v52 = vmul.f32 %v1945_v29, %v11715_v26 }
 0x9dc   : > { %v9737_v55 = vpack.i.bf16 %v11715_v26, %v11446_v42  ;;  %v1940_v56 = vmul.f32 %v1938_v37, %v11715_v26  ;;  %v1954_v61 = vmul.f32 %v1952_v12, %v11715_v26 }
 0x9dd   : > { %v9677_v30 = vpack.i.bf16 %v1930_v28, %v1933_v18  ;;  %v9682_v6 = vpack.i.bf16 %v1919_v31, %v1922_v24 }
 0x9de   : > { %v11722_v32 = vld [vmem:[#allocation2 + $0x28] sm:$0xff] }
 0x9df   : > { %2539 = vst.msk [vmem:[#allocation2 + $0x28] sm:$0xff] %vm1875_vm7, %v11446_v42  ;;  %9678 = vrot.lane.b32.xlu0 %v9677_v30, %s14155_s26  ;;  %9673 = vrot.lane.b32.xlu1 %v9672_v33, %s14153_s20  ;;  %v1932_v39 = vmul.f32 %v1927_v14, %v11722_v32  ;;  %v9692_v43 = vpack.i.bf16 %v11722_v32, %v11715_v26 }
 0x9e0   : > { %v1921_v38 = vmul.f32 %v1916_v21, %v11722_v32  ;;  %v1948_v49 = vmul.f32 %v1945_v29, %v11722_v32  ;;  %v9742_v53 = vpack.i.bf16 %v11722_v32, %v11446_v42  ;;  %v1941_v54 = vmul.f32 %v1938_v37, %v11722_v32 }
 0x9e1   : > { %v9707_v41 = vpack.i.bf16 %v1932_v39, %v1933_v18  ;;  %v1955_v60 = vmul.f32 %v1952_v12, %v11722_v32  ;;  %v1957_v42 = vmul.f32 %v1952_v12, %v11705_v22 }
 0x9e2   : > { %v9722_v47 = vpack.i.bf16 %v1921_v38, %v1922_v24  ;;  %v9732_v13 = vpack.i.bf16 %v1948_v49, %v1947_v52  ;;  %v9747_v57 = vpack.i.bf16 %v1941_v54, %v1940_v56 }
 0x9e3   : > { %9683 = vrot.lane.b32.xlu0 %v9682_v6, %s14204_s17  ;;  %9703 = vrot.lane.b32.xlu1 %v9702_v36, %s14208_s23  ;;  %v9767_v7 = vpack.i.bf16 %v1955_v60, %v1954_v61 }
 0x9e7   : > { %9688 = vrot.lane.b32.xlu0 %v9687_v40, %s14155_s26  ;;  %9708 = vrot.lane.b32.xlu1 %v9707_v41, %s14155_s26  ;;  %s14161_s26 = smov 59  }
 0x9eb   : > { %9693 = vrot.lane.b32.xlu0 %v9692_v43, %s14153_s20  ;;  %9713 = vrot.lane.b32.xlu1 %v9712_v45, %s14209_s22  ;;  %s14166_s20 = smov 122  }
 0x9ef   : > { %9698 = vrot.lane.b32.xlu0 %v9697_v2, %s14204_s17  ;;  %9723 = vrot.lane.b32.xlu1 %v9722_v47, %s14204_s17 }
 0x9f3   : > { %9718 = vrot.lane.b32.xlu0 %v9717_v50, %s14209_s22  ;;  %9728 = vrot.lane.b32.xlu1 %v9727_v51, %s14166_s20 }
 0x9f7   : > { %9733 = vrot.lane.b32.xlu0 %v9732_v13, %s14208_s23  ;;  %9743 = vrot.lane.b32.xlu1 %v9742_v53, %s14209_s22 }
 0x9fb   : > { %9738 = vrot.lane.b32.xlu0 %v9737_v55, %s14209_s22  ;;  %1898 = vrot.lane.b32.xlu1 %v11515_v35, %s14161_s26  ;;  %v9762_v35 = vpack.i.bf16 %v1957_v42, %v1956_v8  ;;  %s14174_s26 = smov 5  }
 0x9ff   : > { %9748 = vrot.lane.b32.xlu0 %v9747_v57, %s14166_s20  ;;  %9758 = vrot.lane.b32.xlu1 %v9692_v43, %s14164_s27  ;;  %s14215_s20 = smov 65  }
 0xa03   : > { %9753 = vrot.lane.b32.xlu0 %v9672_v33, %s14164_s27  ;;  %9768 = vrot.lane.b32.xlu1 %v9767_v7, %s14210_s25  ;;  %s14211_s27 = smov 67  }
 0xa07   : > { %9763 = vrot.lane.b32.xlu0 %v9762_v35, %s14210_s25 }
 0xa49   : > { %v9664_v11 = vpop.permute.xlu1 %9663 }
 0xa4a   : > { %v9666_v38 = vunpack.i.h.bf16 %v9664_v11  ;;  %v9665_v2 = vunpack.i.l.bf16 %v9664_v11 }
 0xa4c   : > { %v2057_v55 = vsel %vm2054_vm6, %v9665_v2, %v9666_v38 }
 0xa4d   : > { %v9669_v14 = vpop.permute.xlu1 %9668 }
 0xa4e   : > { %v9671_v53 = vunpack.i.h.bf16 %v9669_v14  ;;  %v9670_v54 = vunpack.i.l.bf16 %v9669_v14 }
 0xa50   : > { %v2020_v42 = vsel %vm639_vm9, %v9670_v54, %v9671_v53 }
 0xa51   : > { %v11776_v16 = vpop.permute.xlu0 %9678  ;;  %v9674_v18 = vpop.permute.xlu1 %9673 }
 0xa52   : > { %v9676_v19 = vunpack.i.h.bf16 %v9674_v18  ;;  %v9675_v21 = vunpack.i.l.bf16 %v9674_v18 }
 0xa54   : > { %v2162_v23 = vpack.c.bf16 %v9676_v19, %v9675_v21  ;;  %v9681_v19 = vunpack.i.h.bf16 %v11776_v16 }
 0xa55   : > { %v11778_v24 = vpop.permute.xlu0 %9683  ;;  %v9704_v25 = vpop.permute.xlu1 %9703 }
 0xa56   : > { %2267 = vrot.lane.b32.xlu0 %v2162_v23, %s14174_s26  ;;  %v9706_v43 = vunpack.i.h.bf16 %v9704_v25  ;;  %v9705_v44 = vunpack.i.l.bf16 %v9704_v25  ;;  %v9680_v23 = vunpack.i.l.bf16 %v11776_v16 }
 0xa58   : > { %v2160_v50 = vpack.c.bf16 %v9706_v43, %v9705_v44  ;;  %v9686_v43 = vunpack.i.h.bf16 %v11778_v24  ;;  %v9685_v44 = vunpack.i.l.bf16 %v11778_v24 }
 0xa59   : > { %v9689_v27 = vpop.permute.xlu0 %9688  ;;  %v9709_v28 = vpop.permute.xlu1 %9708 }
 0xa5a   : > { %v9691_v36 = vunpack.i.h.bf16 %v9689_v27  ;;  %v9690_v37 = vunpack.i.l.bf16 %v9689_v27  ;;  %v9711_v7 = vunpack.i.h.bf16 %v9709_v28  ;;  %v9710_v8 = vunpack.i.l.bf16 %v9709_v28 }
 0xa5c   : > { %v2154_v46 = vpack.c.bf16 %v9691_v36, %v9666_v38  ;;  %v2058_v51 = vsel %vm2054_vm6, %v9690_v37, %v9691_v36  ;;  %v2056_v25 = vsel %vm2054_vm6, %v9710_v8, %v9711_v7  ;;  %v2152_v27 = vpack.c.bf16 %v9711_v7, %v9681_v19 }
 0xa5d   : > { %v9694_v29 = vpop.permute.xlu0 %9693  ;;  %v9714_v30 = vpop.permute.xlu1 %9713  ;;  %v2153_v57 = vpack.c.bf16 %v2058_v51, %v2057_v55 }
 0xa5e   : > { %v9716_v0 = vunpack.i.h.bf16 %v9714_v30  ;;  %v9715_v33 = vunpack.i.l.bf16 %v9714_v30  ;;  %v9696_v47 = vunpack.i.h.bf16 %v9694_v29  ;;  %v9695_v1 = vunpack.i.l.bf16 %v9694_v29 }
 0xa60   : > { %v1984_v39 = vsel %vm572_vm3, %v9715_v33, %v9716_v0  ;;  %v2161_v56 = vpack.c.bf16 %v9696_v47, %v9695_v1  ;;  %v2018_v1 = vsel %vm639_vm9, %v9685_v44, %v9686_v43 }
 0xa61   : > { %v9699_v31 = vpop.permute.xlu0 %9698  ;;  %v9724_v49 = vpop.permute.xlu1 %9723 }
 0xa62   : > { %v9701_v52 = vunpack.i.h.bf16 %v9699_v31  ;;  %v9700_v13 = vunpack.i.l.bf16 %v9699_v31  ;;  %v9726_v36 = vunpack.i.h.bf16 %v9724_v49 }
 0xa64   : > { %v2021_v60 = vsel %vm639_vm9, %v9700_v13, %v9701_v52  ;;  %v2150_v35 = vpack.c.bf16 %v9701_v52, %v9671_v53 }
 0xa65   : > { %v9719_v5 = vpop.permute.xlu0 %9718  ;;  %v9729_v61 = vpop.permute.xlu1 %9728  ;;  %v2149_v18 = vpack.c.bf16 %v2021_v60, %v2020_v42  ;;  %v10838_v42 = vld [vmem:[%s14105_s4 + $0x4] ss:$12 sps:$4 sm:$0xff]  }
 0xa66   : > { %v9721_v6 = vunpack.i.h.bf16 %v9719_v5  ;;  %v9720_v34 = vunpack.i.l.bf16 %v9719_v5  ;;  %v9731_v31 = vunpack.i.h.bf16 %v9729_v61  ;;  %v9730_v28 = vunpack.i.l.bf16 %v9729_v61  ;;  %2339 = vmatprep.mubr.bf16.mxu1 %v10838_v42  ;;  %v10836_v42 = vld [vmem:[%s14105_s4] ss:$12 sps:$4 sm:$0xff]  }
 0xa67   : > { %v2055_v5 = vsel %vm2054_vm6, %v9680_v23, %v9681_v19 }
 0xa68   : > { %v2146_v40 = vpack.c.bf16 %v9721_v6, %v9716_v0  ;;  %v1985_v41 = vsel %vm572_vm3, %v9720_v34, %v9721_v6  ;;  %v2151_v16 = vpack.c.bf16 %v2056_v25, %v2055_v5 }
 0xa69   : > { %v2145_v45 = vpack.c.bf16 %v1985_v41, %v1984_v39  ;;  %v9734_v12 = vpop.permute.xlu0 %9733  ;;  %v9744_v29 = vpop.permute.xlu1 %9743  ;;  %v9725_v39 = vunpack.i.l.bf16 %v9724_v49  ;;  %v11811_v49 = vld [vmem:[#allocation2] sm:$0xff] }
 0xa6a   : > { %2235 = vrot.lane.b32.xlu1 %v2146_v40, %s14174_s26  ;;  %v9736_v11 = vunpack.i.h.bf16 %v9734_v12  ;;  %v9735_v14 = vunpack.i.l.bf16 %v9734_v12  ;;  %v9746_v6 = vunpack.i.h.bf16 %v9744_v29  ;;  %v9745_v34 = vunpack.i.l.bf16 %v9744_v29 }
 0xa6b   : > { %2233 = vrot.lane.b32.xlu0 %v2145_v45, %s14174_s26  ;;  %v2158_v40 = vpack.c.bf16 %v9731_v31, %v9730_v28  ;;  %v2019_v2 = vsel %vm639_vm9, %v9725_v39, %v9726_v36  ;;  %v2471_v31 = vld [vmem:[%s14106_s5 + $0x10] sm:$0xff] }
 0xa6c   : > { %v2159_v30 = vpack.c.bf16 %v9736_v11, %v9735_v14  ;;  %v1983_v45 = vsel %vm572_vm3, %v9745_v34, %v9746_v6  ;;  %v2147_v52 = vpack.c.bf16 %v2019_v2, %v2018_v1 }
 0xa6d   : > { %v9739_v21 = vpop.permute.xlu0 %9738  ;;  %v1899_v47 = vpop.permute.xlu1 %1898 }
 0xa6e   : > { %2251 = vrot.lane.b32.xlu1 %v2154_v46, %s14174_s26  ;;  %v9741_v0 = vunpack.i.h.bf16 %v9739_v21  ;;  %v9740_v33 = vunpack.i.l.bf16 %v9739_v21  ;;  %v2148_v46 = vpack.c.bf16 %v9726_v36, %v9686_v43  ;;  %v1905_v24 = vmul.f32 %v11811_v49, %v1899_v47 }
 0xa6f   : > { %2263 = vrot.lane.b32.xlu0 %v2160_v50, %s14174_s26  ;;  %v1908_v12 = vmul.f32 %v1899_v47, %v11705_v22  ;;  %v1904_v11 = vmul.f32 %v1899_v47, %v11722_v32  ;;  %v10839_v22 = vld [vmem:[%s14105_s4 + $0x8] ss:$12 sps:$4 sm:$0xff]  }
 0xa70   : > { %v1982_v41 = vsel %vm572_vm3, %v9740_v33, %v9741_v0  ;;  %v2144_v13 = vpack.c.bf16 %v9746_v6, %v9741_v0  ;;  %v2141_v54 = vpack.c.bf16 %v1905_v24, %v1905_v24  ;;  %9403 = vmatprep.mubr.msk.bf16.mxu0 %vm2300_vm10, %v10839_v22 }
 0xa71   : > { %v9749_v38 = vpop.permute.xlu0 %9748  ;;  %v2143_v37 = vpack.c.bf16 %v1983_v45, %v1982_v41  ;;  %v9759_v61 = vpop.permute.xlu1 %9758 }
 0xa72   : > { %2265 = vrot.lane.b32.xlu1 %v2161_v56, %s14174_s26  ;;  %v9751_v50 = vunpack.i.h.bf16 %v9749_v38  ;;  %v9750_v51 = vunpack.i.l.bf16 %v9749_v38  ;;  %v1906_v56 = vmul.f32 %v1899_v47, %v11693_v17  ;;  %v9761_v14 = vunpack.i.h.bf16 %v9759_v61 }
 0xa73   : > { %2249 = vrot.lane.b32.xlu0 %v2153_v57, %s14174_s26 }
 0xa74   : > { %v2157_v55 = vpack.c.bf16 %v9751_v50, %v9750_v51  ;;  %v2142_v7 = vpack.c.bf16 %v1908_v12, %v1906_v56 }
 0xa75   : > { %v9754_v53 = vpop.permute.xlu0 %9753  ;;  %v9769_v19 = vpop.permute.xlu1 %9768 }
 0xa76   : > { %2243 = vrot.lane.b32.xlu1 %v2150_v35, %s14174_s26  ;;  %v9756_v57 = vunpack.i.h.bf16 %v9754_v53  ;;  %v9755_v60 = vunpack.i.l.bf16 %v9754_v53  ;;  %v1902_v35 = vmul.f32 %v1899_v47, %v11715_v26  ;;  %v9771_v32 = vunpack.i.h.bf16 %v9769_v19 }
 0xa77   : > { %2241 = vrot.lane.b32.xlu0 %v2149_v18, %s14174_s26  ;;  %v9760_v18 = vunpack.i.l.bf16 %v9759_v61 }
 0xa78   : > { %v2156_v8 = vpack.c.bf16 %v9756_v57, %v9755_v60  ;;  %v2140_v25 = vpack.c.bf16 %v1904_v11, %v1902_v35  ;;  %v10840_v35 = vld [vmem:[%s14105_s4 + $0x20] ss:$12 sps:$4 sm:$0xff]   ;;  %v10843_v11 = vld [vmem:[%s14105_s4 + $0x18] ss:$12 sps:$4 sm:$0xff]  }
 0xa79   : > { %v9764_v17 = vpop.permute.xlu0 %9763  ;;  %v2155_v26 = vpack.c.bf16 %v9761_v14, %v9760_v18 }
 0xa7a   : > { %2261 = vrot.lane.b32.xlu1 %v2159_v30, %s14174_s26  ;;  %v9766_v21 = vunpack.i.h.bf16 %v9764_v17  ;;  %v9765_v23 = vunpack.i.l.bf16 %v9764_v17 }
 0xa7b   : > { %2247 = vrot.lane.b32.xlu0 %v2152_v27, %s14174_s26  ;;  %v9770_v27 = vunpack.i.l.bf16 %v9769_v19 }
 0xa7c   : > { %v2164_v29 = vpack.c.bf16 %v9766_v21, %v9765_v23 }
 0xa7d   : > { %v2163_v30 = vpack.c.bf16 %v9771_v32, %v9770_v27 }
 0xa7e   : > { %2245 = vrot.lane.b32.xlu1 %v2151_v16, %s14174_s26 }
 0xa7f   : > { %2259 = vrot.lane.b32.xlu0 %v2158_v40, %s14174_s26 }
 0xa82   : > { %2229 = vrot.lane.b32.xlu1 %v2143_v37, %s14174_s26 }
 0xa83   : > { %2239 = vrot.lane.b32.xlu0 %v2148_v46, %s14174_s26 }
 0xa86   : > { %2237 = vrot.lane.b32.xlu1 %v2147_v52, %s14174_s26 }
 0xa87   : > { %2231 = vrot.lane.b32.xlu0 %v2144_v13, %s14174_s26 }
 0xa8a   : > { %2257 = vrot.lane.b32.xlu1 %v2157_v55, %s14174_s26 }
 0xa8b   : > { %2225 = vrot.lane.b32.xlu0 %v2141_v54, %s14174_s26 }
 0xa8e   : > { %2227 = vrot.lane.b32.xlu1 %v2142_v7, %s14174_s26  ;;  %v10841_v7 = vld [vmem:[%s14105_s4 + $0x1c] ss:$12 sps:$4 sm:$0xff]  }
 0xa8f   : > { %2255 = vrot.lane.b32.xlu0 %v2156_v8, %s14174_s26 }
 0xa92   : > { %2221 = vrot.lane.b32.xlu1 %v2141_v54, %s14174_s26 }
 0xa93   : > { %2223 = vrot.lane.b32.xlu0 %v2140_v25, %s14174_s26 }
 0xa96   : > { %2253 = vrot.lane.b32.xlu1 %v2155_v26, %s14174_s26 }
 0xa97   : > { %2271 = vrot.lane.b32.xlu0 %v2164_v29, %s14174_s26 }
 0xa9a   : > { %2269 = vrot.lane.b32.xlu1 %v2163_v30, %s14174_s26  ;;  %s14220_s26 = smov 123  }
 0xa9e   : > { %2485 = vperm.xlu1 %9772, %v2471_v31  }
 0xac8   : > { %v2268_v28 = vpop.permute.xlu0 %2267 }
 0xac9   : > { %9103 = vmatprep.subr.bf16.mxu1 %v2268_v28 }
 0xadc   : > { %v2236_v0 = vpop.permute.xlu1 %2235 }
 0xadd   : > { %v2234_v33 = vpop.permute.xlu0 %2233 }
 0xade   : > { %v2277_v51 = vsel %vm2273_vm11, %v2234_v33, %v2236_v0 }
 0xae0   : > { %v2252_v5 = vpop.permute.xlu1 %2251 }
 0xae1   : > { %v2264_v6 = vpop.permute.xlu0 %2263 }
 0xae4   : > { %v2266_v34 = vpop.permute.xlu1 %2265 }
 0xae5   : > { %v2250_v16 = vpop.permute.xlu0 %2249 }
 0xae6   : > { %v2281_v36 = vsel %vm2273_vm11, %v2250_v16, %v2252_v5 }
 0xae7   : > { %9104 = vmatpush3.bf16.msra.mxu1 %v2281_v36 }
 0xae8   : > { %v2244_v39 = vpop.permute.xlu1 %2243  ;;  %9105 = vmatprep.subr.bf16.mxu1 %v2266_v34 }
 0xae9   : > { %v2242_v40 = vpop.permute.xlu0 %2241 }
 0xaea   : > { %v2279_v2 = vsel %vm2273_vm11, %v2242_v40, %v2244_v39 }
 0xaec   : > { %v2262_v41 = vpop.permute.xlu1 %2261 }
 0xaed   : > { %v2248_v43 = vpop.permute.xlu0 %2247 }
 0xaf0   : > { %v2246_v44 = vpop.permute.xlu1 %2245 }
 0xaf1   : > { %v2280_v45 = vsel %vm2273_vm11, %v2246_v44, %v2248_v43  ;;  %v2260_v38 = vpop.permute.xlu0 %2259 }
 0xaf2   : > { %9106 = vmatpush3.bf16.msra.mxu1 %v2280_v45 }
 0xaf3   : > { %9107 = vmatprep.subr.bf16.mxu1 %v2264_v6 }
 0xaf4   : > { %v2230_v37 = vpop.permute.xlu1 %2229 }
 0xaf5   : > { %v2240_v46 = vpop.permute.xlu0 %2239 }
 0xaf6   : > { %9108 = vmatpush3.bf16.msra.mxu1 %v2279_v2 }
 0xaf7   : > { %9109 = vmatprep.subr.bf16.mxu1 %v2262_v41 }
 0xaf8   : > { %v2238_v47 = vpop.permute.xlu1 %2237 }
 0xaf9   : > { %v2278_v1 = vsel %vm2273_vm11, %v2238_v47, %v2240_v46  ;;  %v2232_v24 = vpop.permute.xlu0 %2231  ;;  %v2499_v47 = vld [vmem:[%s14107_s6 + $0x10] sm:$0xff] }
 0xafa   : > { %9110 = vmatpush3.bf16.msra.mxu1 %v2278_v1  ;;  %v2276_v53 = vsel %vm2273_vm11, %v2230_v37, %v2232_v24  ;;  %v2500_v1 = vld [vmem:[%s14107_s6 + $0x18] sm:$0xff]  ;;  %v2469_v24 = vld [vmem:[%s14106_s5] sm:$0xff] }
 0xafb   : > { %9111 = vmatprep.subr.bf16.mxu1 %v2260_v38 }
 0xafc   : > { %v2258_v50 = vpop.permute.xlu1 %2257 }
 0xafd   : > { %v2226_v52 = vpop.permute.xlu0 %2225 }
 0xafe   : > { %9112 = vmatpush3.bf16.msra.mxu1 %v2277_v51  ;;  %v2497_v51 = vld [vmem:[%s14107_s6] sm:$0xff] }
 0xaff   : > { %9113 = vmatprep.subr.bf16.mxu1 %v2258_v50  ;;  %v2470_v50 = vld [vmem:[%s14106_s5 + $0x8] sm:$0xff] }
 0xb00   : > { %v2228_v13 = vpop.permute.xlu1 %2227 }
 0xb01   : > { %v2256_v54 = vpop.permute.xlu0 %2255  ;;  %v2275_v56 = vsel %vm2273_vm11, %v2226_v52, %v2228_v13  ;;  %v2472_v52 = vld [vmem:[%s14106_s5 + $0x18] sm:$0xff]  ;;  %v2498_v13 = vld [vmem:[%s14107_s6 + $0x8] sm:$0xff] }
 0xb02   : > { %9114 = vmatpush3.bf16.msra.mxu1 %v2276_v53  ;;  %v11909_v53 = vld [vmem:[#allocation3 + $0x4] ss:$0 sm:$0xff] }
 0xb03   : > { %9115 = vmatprep.subr.bf16.mxu1 %v2256_v54  ;;  %v11913_v54 = vld [vmem:[#allocation3 + $0x5] ss:$0 sm:$0xff] }
 0xb04   : > { %v2222_v55 = vpop.permute.xlu1 %2221 }
 0xb05   : > { %v2224_v12 = vpop.permute.xlu0 %2223 }
 0xb06   : > { %9116 = vmatpush3.bf16.msra.mxu1 %v2275_v56  ;;  %v2274_v60 = vsel %vm2273_vm11, %v2222_v55, %v2224_v12 }
 0xb08   : > { %v2254_v57 = vpop.permute.xlu1 %2253 }
 0xb09   : > { %v2272_v61 = vpop.permute.xlu0 %2271  ;;  %9117 = vmatprep.subr.bf16.mxu1 %v2254_v57 }
 0xb0a   : > { %9118 = vmatpush3.bf16.msra.mxu1 %v2274_v60  ;;  %9399 = vmatprep.subr.bf16.mxu0 %v2272_v61 }
 0xb0b   : > { %9400 = vmatpush3.bf16.msra.mxu0 %v2272_v61 }
 0xb0c   : > { %v2270_v8 = vpop.permute.xlu1 %2269 }
 0xb0d   : > { %2340 = vmatmul.mubr.bf16.vlgmr.msra.gmra.mxu1 %v10836_v42  ;;  %9401 = vmatprep.subr.bf16.mxu0 %v2270_v8 }
 0xb0e   : > { %2347 = vmatprep.mubr.bf16.mxu1 %v10841_v7 }
 0xb0f   : > { %9402 = vmatpush3.bf16.msra.mxu0 %v2270_v8 }
 0xb12   : > { %9404 = vmatmul.mubr.msk.bf16.vlgmr.msra.gmra.mxu0 %vm2300_vm10, %v10840_v35 }
 0xb15   : > { %2348 = vmatmul.mubr.bf16.gmra.mxu1 %v10843_v11 }
 0xb19   : > { %v2486_v55 = vpop.permute.xlu1 %2485 }
 0xbcd   : > { %v9119_v17 = vpop.f32.mrf.mxu1 }
 0xbcf   : > { %v9120_v22 = vpop.f32.mrf.mxu1 }
 0xbd0   : > { %v9121_v19 = vadd.f32 %v9120_v22, %v9119_v17 }
 0xbd1   : > { %v9122_v14 = vpop.f32.mrf.mxu1 }
 0xbd2   : > { %v9405_v18 = vpop.f32.mrf.mxu0 }
 0xbd3   : > { %v9123_v21 = vpop.f32.mrf.mxu1 }
 0xbd4   : > { %v2390_v23 = vpop.f32.mrf.mxu0  ;;  %v9124_v27 = vadd.f32 %v9123_v21, %v9122_v14 }
 0xbd5   : > { %v11860_v25 = vadd.f32 %v9121_v19, %v2390_v23  ;;  %v9125_v26 = vpop.f32.mrf.mxu1 }
 0xbd6   : > { %v9406_v32 = vpop.f32.mrf.mxu0 }
 0xbd7   : > { %v9126_v29 = vpop.f32.mrf.mxu1  ;;  %v2405_v30 = vsel %vm1654_vm12, %v11860_v25, 0.0  ;;  %v2417_v31 = vmul.f32 %v11860_v25, %v11860_v25 }
 0xbd8   : > { %v2393_v28 = vpop.f32.mrf.mxu0  ;;  %2406 = vadd.xlane.f32.xlu1 %v2405_v30  ;;  %v9127_v5 = vadd.f32 %v9126_v29, %v9125_v26 }
 0xbd9   : > { %v11866_v0 = vadd.f32 %v9124_v27, %v2393_v28  ;;  %v9128_v33 = vpop.f32.mrf.mxu1  ;;  %v2421_v16 = vsel %vm1654_vm12, %v2417_v31, 0.0 }
 0xbda   : > { %v11875_v41 = vadd.f32 %v9405_v18, %v9127_v5 }
 0xbdb   : > { %v9129_v6 = vpop.f32.mrf.mxu1  ;;  %v2408_v34 = vsel %vm1654_vm12, %v11866_v0, 0.0  ;;  %v2418_v36 = vmul.f32 %v11866_v0, %v11866_v0 }
 0xbdc   : > { %v9130_v39 = vadd.f32 %v9129_v6, %v9128_v33  ;;  %2409 = vadd.xlane.f32.xlu0 %v2408_v34  ;;  %2422 = vadd.xlane.f32.xlu1 %v2421_v16  ;;  %v2411_v45 = vsel %vm1654_vm12, %v11875_v41, 0.0  ;;  %v2419_v38 = vmul.f32 %v11875_v41, %v11875_v41 }
 0xbdd   : > { %v2424_v43 = vsel %vm1654_vm12, %v2418_v36, 0.0 }
 0xbde   : > { %v11873_v40 = vadd.f32 %v9406_v32, %v9130_v39  ;;  %v2427_v37 = vsel %vm1654_vm12, %v2419_v38, 0.0 }
 0xbe0   : > { %2425 = vadd.xlane.f32.xlu0 %v2424_v43  ;;  %v2414_v44 = vsel %vm1654_vm12, %v11873_v40, 0.0  ;;  %v2420_v2 = vmul.f32 %v11873_v40, %v11873_v40 }
 0xbe1   : > { %2415 = vadd.xlane.f32.xlu1 %v2414_v44 }
 0xbe2   : > { %v2430_v46 = vsel %vm1654_vm12, %v2420_v2, 0.0 }
 0xbe4   : > { %2412 = vadd.xlane.f32.xlu0 %v2411_v45 }
 0xbe8   : > { %2428 = vadd.xlane.f32.xlu0 %v2427_v37 }
 0xbec   : > { %2431 = vadd.xlane.f32.xlu0 %v2430_v46 }
 0xbf2   : > { %2513 = vperm.xlu1 %9772, %v2499_v47  }
 0xbf6   : > { %2518 = vperm.xlu1 %9772, %v2500_v1  }
 0xbfa   : > { %2475 = vperm.xlu1 %9772, %v2469_v24  }
 0xbfe   : > { %2480 = vperm.xlu1 %9772, %v2470_v50  }
 0xc02   : > { %2503 = vperm.xlu1 %9772, %v2497_v51   ;;  %2490 = vperm.xlu0 %9773, %v2472_v52  }
 0xc06   : > { %2508 = vperm.xlu1 %9772, %v2498_v13   ;;  %2606 = vrot.lane.b32.xlu0 %v11909_v53, %s14211_s27 }
 0xc0a   : > { %2588 = vrot.lane.b32.xlu1 %v11909_v53, %s14212_s2  ;;  %2613 = vrot.lane.b32.xlu0 %v11913_v54, %s14213_s3 }
 0xc0e   : > { %2577 = vrot.lane.b32.xlu1 %v11913_v54, %s14214_s29 }
 0xc12   : > { %2599 = vrot.lane.b32.xlu1 %v11913_v54, %s14215_s20 }
 0xc61   : > { %v2407_v56 = vpop.xlane.xlu1 %2406 }
 0xc62   : > { %v2433_v12 = vmul.f32 0.0625, %v2407_v56 }
 0xc64   : > { %v2441_v61 = vmul.f32 %v2433_v12, %v2433_v12  ;;  %v2453_v45 = vsub.f32 %v11860_v25, %v2433_v12 }
 0xc65   : > { %v2410_v57 = vpop.xlane.xlu0 %2409  ;;  %v2423_v60 = vpop.xlane.xlu1 %2422 }
 0xc66   : > { %v2434_v42 = vmul.f32 0.0625, %v2410_v57  ;;  %v2437_v7 = vmul.f32 0.0625, %v2423_v60 }
 0xc68   : > { %v2445_v8 = vsub.f32 %v2437_v7, %v2441_v61  ;;  %v2442_v11 = vmul.f32 %v2434_v42, %v2434_v42  ;;  %v2454_v1 = vsub.f32 %v11866_v0, %v2434_v42 }
 0xc69   : > { %v2426_v35 = vpop.xlane.xlu0 %2425 }
 0xc6a   : > { %v2449_v17 = vmax.f32 %v2445_v8, 0.0  ;;  %v2438_v22 = vmul.f32 0.0625, %v2426_v35  ;;  %v2416_v14 = vpop.xlane.xlu1 %2415 }
 0xc6b   : > { %v2436_v30 = vmul.f32 0.0625, %v2416_v14 }
 0xc6c   : > { %v2457_v18 = vadd.f32 1e-05, %v2449_v17  ;;  %v2446_v19 = vsub.f32 %v2438_v22, %v2442_v11 }
 0xc6d   : > { %v2413_v21 = vpop.xlane.xlu0 %2412  ;;  %v2444_v34 = vmul.f32 %v2436_v30, %v2436_v30  ;;  %v2456_v0 = vsub.f32 %v11873_v40, %v2436_v30 }
 0xc6e   : > { %10933 = vrsqrt.f32 %v2457_v18  ;;  %v2450_v23 = vmax.f32 %v2446_v19, 0.0  ;;  %v2435_v26 = vmul.f32 0.0625, %v2413_v21  ;;  %v2514_v32 = vpop.permute.xlu1 %2513 }
 0xc70   : > { %v2458_v27 = vadd.f32 1e-05, %v2450_v23  ;;  %v2443_v31 = vmul.f32 %v2435_v26, %v2435_v26  ;;  %v2455_v12 = vsub.f32 %v11875_v41, %v2435_v26 }
 0xc71   : > { %v2429_v29 = vpop.xlane.xlu0 %2428 }
 0xc72   : > { %10935 = vrsqrt.f32 %v2458_v27  ;;  %v2439_v28 = vmul.f32 0.0625, %v2429_v29  ;;  %v2519_v33 = vpop.permute.xlu1 %2518 }
 0xc74   : > { %v2447_v5 = vsub.f32 %v2439_v28, %v2443_v31 }
 0xc75   : > { %v2432_v6 = vpop.xlane.xlu0 %2431 }
 0xc76   : > { %v2451_v16 = vmax.f32 %v2447_v5, 0.0  ;;  %v2440_v36 = vmul.f32 0.0625, %v2432_v6  ;;  %v2476_v39 = vpop.permute.xlu1 %2475 }
 0xc78   : > { %v2459_v43 = vadd.f32 1e-05, %v2451_v16  ;;  %v2448_v44 = vsub.f32 %v2440_v36, %v2444_v34 }
 0xc7a   : > { %10937 = vrsqrt.f32 %v2459_v43  ;;  %v2452_v38 = vmax.f32 %v2448_v44, 0.0  ;;  %v2481_v37 = vpop.permute.xlu1 %2480 }
 0xc7b   : > { %v10934_v2 = vpop.eup %10933 }
 0xc7c   : > { %v2460_v46 = vadd.f32 1e-05, %v2452_v38  ;;  %v2465_v47 = vmul.f32 %v10934_v2, %v2453_v45 }
 0xc7d   : > { %v2491_v41 = vpop.permute.xlu0 %2490 }
 0xc7e   : > { %10939 = vrsqrt.f32 %v2460_v46  ;;  %v2493_v24 = vmul.f32 %v2476_v39, %v2465_v47  ;;  %v2504_v50 = vpop.permute.xlu1 %2503 }
 0xc7f   : > { %v10936_v51 = vpop.eup %10935 }
 0xc80   : > { %v2466_v52 = vmul.f32 %v10936_v51, %v2454_v1  ;;  %v2521_v13 = vadd.f32 %v2504_v50, %v2493_v24 }
 0xc81   : > { %v2607_v46 = vpop.permute.xlu0 %2606 }
 0xc82   : > { %v2494_v56 = vmul.f32 %v2481_v37, %v2466_v52  ;;  %v2525_v57 = vmax.f32 %v2521_v13, 0.0  ;;  %v2509_v60 = vpop.permute.xlu1 %2508 }
 0xc84   : > { %2542 = vst.msk [vmem:[#allocation2 + $0x8] sm:$0xff] %vm1654_vm12, %v2525_v57  ;;  %v2522_v25 = vadd.f32 %v2509_v60, %v2494_v56 }
 0xc86   : > { %v2526_v61 = vmax.f32 %v2522_v25, 0.0  ;;  %v2589_v35 = vpop.permute.xlu1 %2588 }
 0xc87   : > { %v10938_v7 = vpop.eup %10937  ;;  %v2591_v22 = vmul.f32 %v11811_v49, %v2589_v35 }
 0xc88   : > { %v2467_v8 = vmul.f32 %v10938_v7, %v2455_v12  ;;  %2543 = vst.msk [vmem:[#allocation2 + $0x28] sm:$0xff] %vm1654_vm12, %v2526_v61 }
 0xc8a   : > { %v2495_v42 = vmul.f32 %v2486_v55, %v2467_v8 }
 0xc8b   : > { %v10940_v11 = vpop.eup %10939  ;;  %v11929_v17 = vld [vmem:[#allocation2 + $0x8] sm:$0xff] }
 0xc8c   : > { %v2523_v14 = vadd.f32 %v2514_v32, %v2495_v42  ;;  %v2468_v18 = vmul.f32 %v10940_v11, %v2456_v0  ;;  %3199 = vst.msk [vmem:[#allocation2 + $0x8] sm:$0xff] %vm1875_vm7, %v11811_v49  ;;  %v2592_v19 = vmul.f32 %v2589_v35, %v11929_v17  ;;  %v2609_v51 = vmul.f32 %v2607_v46, %v11929_v17 }
 0xc8d   : > { %v9844_v0 = vpack.i.bf16 %v11929_v17, %v11811_v49 }
 0xc8e   : > { %v2527_v21 = vmax.f32 %v2523_v14, 0.0  ;;  %v2496_v23 = vmul.f32 %v2491_v41, %v2468_v18  ;;  %v9774_v40 = vpack.i.bf16 %v2592_v19, %v2591_v22 }
 0xc8f   : > { %v11935_v26 = vld [vmem:[#allocation2 + $0x28] sm:$0xff] }
 0xc90   : > { %2544 = vst.msk [vmem:[#allocation2 + $0x48] sm:$0xff] %vm1654_vm12, %v2527_v21  ;;  %v2524_v55 = vadd.f32 %v2519_v33, %v2496_v23  ;;  %9775 = vrot.lane.b32.xlu0 %v9774_v40, %s14216_s21  ;;  %v2594_v32 = vmul.f32 %v2589_v35, %v11935_v26  ;;  %v11944_v30 = vpack.i.bf16 %v11935_v26, %v11929_v17  ;;  %v2578_v33 = vpop.permute.xlu1 %2577 }
 0xc91   : > { %3200 = vst.msk [vmem:[#allocation2 + $0x28] sm:$0xff] %vm1875_vm7, %v11811_v49  ;;  %v2584_v36 = vmul.f32 %v11811_v49, %v2578_v33  ;;  %v2581_v44 = vmul.f32 %v2578_v33, %v11929_v17  ;;  %v2583_v37 = vmul.f32 %v2578_v33, %v11935_v26  ;;  %v2610_v47 = vmul.f32 %v2607_v46, %v11935_v26 }
 0xc92   : > { %v2528_v27 = vmax.f32 %v2524_v55, 0.0  ;;  %v9784_v29 = vpack.i.bf16 %v2594_v32, %v2591_v22 }
 0xc93   : > { %v9809_v38 = vpack.i.bf16 %v2581_v44, %v2584_v36  ;;  %v9814_v24 = vpack.i.bf16 %v2583_v37, %v2584_v36  ;;  %v9824_v56 = vpack.i.bf16 %v2610_v47, %v2609_v51 }
 0xc94   : > { %2545 = vst.msk [vmem:[#allocation2 + $0x68] sm:$0xff] %vm1654_vm12, %v2528_v27  ;;  %9785 = vrot.lane.b32.xlu1 %v9784_v29, %s14216_s21  ;;  %9780 = vrot.lane.b32.xlu0 %v11944_v30, %s14217_s0  ;;  %v2600_v57 = vpop.permute.xlu1 %2599 }
 0xc95   : > { %v2602_v7 = vmul.f32 %v2600_v57, %v11929_v17  ;;  %v2603_v8 = vmul.f32 %v2600_v57, %v11935_v26 }
 0xc97   : > { %v11950_v31 = vld [vmem:[#allocation2 + $0x48] sm:$0xff]  ;;  %v9859_v11 = vpack.i.bf16 %v2603_v8, %v2602_v7 }
 0xc98   : > { %3201 = vst.msk [vmem:[#allocation2 + $0x48] sm:$0xff] %vm1875_vm7, %v11811_v49  ;;  %v2596_v28 = vmul.f32 %v2589_v35, %v11950_v31  ;;  %v2585_v6 = vmul.f32 %v2578_v33, %v11950_v31  ;;  %v2611_v52 = vmul.f32 %v2607_v46, %v11950_v31  ;;  %v9834_v25 = vpack.i.bf16 %v11950_v31, %v11811_v49 }
 0xc99   : > { %v2604_v61 = vmul.f32 %v2600_v57, %v11950_v31 }
 0xc9a   : > { %v9789_v5 = vpack.i.bf16 %v2596_v28, %v2591_v22  ;;  %v9794_v43 = vpack.i.bf16 %v2585_v6, %v2584_v36 }
 0xc9b   : > { %v11956_v34 = vld [vmem:[#allocation2 + $0x68] sm:$0xff] }
 0xc9c   : > { %3202 = vst.msk [vmem:[#allocation2 + $0x68] sm:$0xff] %vm1875_vm7, %v11811_v49  ;;  %9790 = vrot.lane.b32.xlu1 %v9789_v5, %s14216_s21  ;;  %v2598_v16 = vmul.f32 %v2589_v35, %v11956_v34  ;;  %v9799_v45 = vpack.i.bf16 %v11956_v34, %v11950_v31  ;;  %v2587_v2 = vmul.f32 %v2578_v33, %v11956_v34 }
 0xc9d   : > { %v2612_v1 = vmul.f32 %v2607_v46, %v11956_v34  ;;  %v2605_v60 = vmul.f32 %v2600_v57, %v11956_v34  ;;  %v9839_v12 = vpack.i.bf16 %v11956_v34, %v11811_v49  ;;  %v9854_v35 = vpack.i.bf16 %v11935_v26, %v11811_v49 }
 0xc9e   : > { %v9804_v39 = vpack.i.bf16 %v2598_v16, %v2591_v22  ;;  %v9819_v50 = vpack.i.bf16 %v2587_v2, %v2584_v36  ;;  %v2614_v22 = vpop.permute.xlu0 %2613 }
 0xc9f   : > { %v9829_v13 = vpack.i.bf16 %v2612_v1, %v2611_v52  ;;  %v9849_v42 = vpack.i.bf16 %v2605_v60, %v2604_v61  ;;  %v2619_v14 = vmul.f32 %v2614_v22, %v11956_v34  ;;  %v2618_v18 = vmul.f32 %v2614_v22, %v11950_v31 }
 0xca0   : > { %9805 = vrot.lane.b32.xlu0 %v9804_v39, %s14216_s21  ;;  %9795 = vrot.lane.b32.xlu1 %v9794_v43, %s14204_s17  ;;  %v2617_v41 = vmul.f32 %v2614_v22, %v11935_v26  ;;  %v2616_v21 = vmul.f32 %v2614_v22, %v11929_v17 }
 0xca1   : > { %v9879_v19 = vpack.i.bf16 %v2619_v14, %v2618_v18 }
 0xca2   : > { %v9874_v23 = vpack.i.bf16 %v2617_v41, %v2616_v21 }
 0xca4   : > { %9800 = vrot.lane.b32.xlu1 %v9799_v45, %s14217_s0  ;;  %9810 = vrot.lane.b32.xlu0 %v9809_v38, %s14204_s17 }
 0xca8   : > { %9815 = vrot.lane.b32.xlu1 %v9814_v24, %s14204_s17  ;;  %9820 = vrot.lane.b32.xlu0 %v9819_v50, %s14204_s17 }
 0xcac   : > { %9830 = vrot.lane.b32.xlu1 %v9829_v13, %s14208_s23  ;;  %9825 = vrot.lane.b32.xlu0 %v9824_v56, %s14208_s23 }
 0xcb0   : > { %9835 = vrot.lane.b32.xlu1 %v9834_v25, %s14209_s22  ;;  %9840 = vrot.lane.b32.xlu0 %v9839_v12, %s14209_s22 }
 0xcb4   : > { %9845 = vrot.lane.b32.xlu0 %v9844_v0, %s14209_s22  ;;  %9850 = vrot.lane.b32.xlu1 %v9849_v42, %s14218_s1 }
 0xcb8   : > { %9855 = vrot.lane.b32.xlu1 %v9854_v35, %s14209_s22  ;;  %9860 = vrot.lane.b32.xlu0 %v9859_v11, %s14218_s1 }
 0xcbc   : > { %2560 = vrot.lane.b32.xlu1 %v11909_v53, %s14219_s28  ;;  %9865 = vrot.lane.b32.xlu0 %v9799_v45, %s14220_s26 }
 0xcc0   : > { %9870 = vrot.lane.b32.xlu1 %v11944_v30, %s14220_s26  ;;  %9880 = vrot.lane.b32.xlu0 %v9879_v19, %s14210_s25 }
 0xcc4   : > { %9875 = vrot.lane.b32.xlu1 %v9874_v23, %s14210_s25 }
 0xd02   : > { %v9776_v40 = vpop.permute.xlu0 %9775 }
 0xd03   : > { %v9778_v27 = vunpack.i.h.bf16 %v9776_v40  ;;  %v9777_v13 = vunpack.i.l.bf16 %v9776_v40 }
 0xd05   : > { %v2716_v35 = vsel %vm2054_vm6, %v9777_v13, %v9778_v27 }
 0xd06   : > { %v9781_v55 = vpop.permute.xlu0 %9780  ;;  %v9786_v32 = vpop.permute.xlu1 %9785 }
 0xd07   : > { %v9783_v29 = vunpack.i.h.bf16 %v9781_v55  ;;  %v9782_v28 = vunpack.i.l.bf16 %v9781_v55  ;;  %v9788_v33 = vunpack.i.h.bf16 %v9786_v32  ;;  %v9787_v1 = vunpack.i.l.bf16 %v9786_v32 }
 0xd09   : > { %v2822_v5 = vpack.c.bf16 %v9783_v29, %v9782_v28  ;;  %v2813_v6 = vpack.c.bf16 %v9788_v33, %v9778_v27  ;;  %v2717_v8 = vsel %vm2054_vm6, %v9787_v1, %v9788_v33 }
 0xd0a   : > { %v2812_v21 = vpack.c.bf16 %v2717_v8, %v2716_v35 }
 0xd0b   : > { %2926 = vrot.lane.b32.xlu1 %v2822_v5, %s14221_s10  ;;  %2908 = vrot.lane.b32.xlu0 %v2813_v6, %s14221_s10 }
 0xd0e   : > { %v9791_v16 = vpop.permute.xlu1 %9790 }
 0xd0f   : > { %v9793_v11 = vunpack.i.h.bf16 %v9791_v16  ;;  %v9792_v22 = vunpack.i.l.bf16 %v9791_v16 }
 0xd11   : > { %v2718_v29 = vsel %vm2054_vm6, %v9792_v22, %v9793_v11 }
 0xd12   : > { %v9806_v30 = vpop.permute.xlu0 %9805  ;;  %v12011_v36 = vpop.permute.xlu1 %9795 }
 0xd13   : > { %v9808_v56 = vunpack.i.h.bf16 %v9806_v30  ;;  %v9807_v57 = vunpack.i.l.bf16 %v9806_v30 }
 0xd15   : > { %v2719_v18 = vsel %vm2054_vm6, %v9807_v57, %v9808_v56 }
 0xd16   : > { %v9811_v39 = vpop.permute.xlu0 %9810  ;;  %v9801_v43 = vpop.permute.xlu1 %9800  ;;  %v2814_v33 = vpack.c.bf16 %v2719_v18, %v2718_v29 }
 0xd17   : > { %v9813_v38 = vunpack.i.h.bf16 %v9811_v39  ;;  %v9803_v2 = vunpack.i.h.bf16 %v9801_v43  ;;  %v9802_v46 = vunpack.i.l.bf16 %v9801_v43  ;;  %v9812_v14 = vunpack.i.l.bf16 %v9811_v39 }
 0xd18   : > { %v9798_v43 = vunpack.i.h.bf16 %v12011_v36 }
 0xd19   : > { %v2823_v60 = vpack.c.bf16 %v9803_v2, %v9802_v46  ;;  %v2680_v27 = vsel %vm639_vm9, %v9812_v14, %v9813_v38 }
 0xd1a   : > { %v9821_v44 = vpop.permute.xlu0 %9820  ;;  %v9816_v45 = vpop.permute.xlu1 %9815 }
 0xd1b   : > { %v9818_v37 = vunpack.i.h.bf16 %v9816_v45  ;;  %v9817_v25 = vunpack.i.l.bf16 %v9816_v45  ;;  %v9823_v6 = vunpack.i.h.bf16 %v9821_v44  ;;  %v9822_v16 = vunpack.i.l.bf16 %v9821_v44 }
 0xd1c   : > { %v9797_v45 = vunpack.i.l.bf16 %v12011_v36 }
 0xd1d   : > { %v2809_v47 = vpack.c.bf16 %v9818_v37, %v9813_v38  ;;  %v2681_v41 = vsel %vm639_vm9, %v9817_v25, %v9818_v37  ;;  %v2815_v37 = vpack.c.bf16 %v9808_v56, %v9793_v11  ;;  %v2683_v38 = vsel %vm639_vm9, %v9822_v16, %v9823_v6 }
 0xd1e   : > { %v9826_v24 = vpop.permute.xlu0 %9825  ;;  %v9831_v50 = vpop.permute.xlu1 %9830  ;;  %v2808_v5 = vpack.c.bf16 %v2681_v41, %v2680_v27  ;;  %v2682_v44 = vsel %vm639_vm9, %v9797_v45, %v9798_v43  ;;  %v2811_v1 = vpack.c.bf16 %v9823_v6, %v9798_v43  ;;  %v8887_v43 = vld [vmem:[%s14106_s5 + $0x38] sm:$0xff] }
 0xd1f   : > { %v9828_v51 = vunpack.i.h.bf16 %v9826_v24  ;;  %v9827_v52 = vunpack.i.l.bf16 %v9826_v24  ;;  %2900 = vrot.lane.b32.xlu0 %v2809_v47, %s14221_s10  ;;  %v9833_v61 = vunpack.i.h.bf16 %v9831_v50  ;;  %v9832_v7 = vunpack.i.l.bf16 %v9831_v50 }
 0xd21   : > { %v2820_v12 = vpack.c.bf16 %v9828_v51, %v9827_v52  ;;  %v2821_v19 = vpack.c.bf16 %v9833_v61, %v9832_v7  ;;  %v2810_v51 = vpack.c.bf16 %v2683_v38, %v2682_v44  ;;  %v8891_v38 = vld [vmem:[%s14107_s6 + $0x38] sm:$0xff] }
 0xd22   : > { %v9841_v0 = vpop.permute.xlu0 %9840  ;;  %v9836_v42 = vpop.permute.xlu1 %9835 }
 0xd23   : > { %2922 = vrot.lane.b32.xlu1 %v2820_v12, %s14221_s10  ;;  %2928 = vrot.lane.b32.xlu0 %v2823_v60, %s14221_s10  ;;  %v9843_v23 = vunpack.i.h.bf16 %v9841_v0  ;;  %v9842_v40 = vunpack.i.l.bf16 %v9841_v0  ;;  %v9838_v55 = vunpack.i.h.bf16 %v9836_v42  ;;  %v9837_v32 = vunpack.i.l.bf16 %v9836_v42 }
 0xd25   : > { %v2647_v30 = vsel %vm572_vm3, %v9842_v40, %v9843_v23  ;;  %v2646_v39 = vsel %vm572_vm3, %v9837_v32, %v9838_v55  ;;  %v2807_v60 = vpack.c.bf16 %v9843_v23, %v9838_v55  ;;  %v10846_v32 = vld [vmem:[%s14105_s4 + $0x34] ss:$12 sps:$4 sm:$0xff]  }
 0xd26   : > { %v9851_v28 = vpop.permute.xlu1 %9850  ;;  %v2806_v2 = vpack.c.bf16 %v2647_v30, %v2646_v39  ;;  %v9846_v46 = vpop.permute.xlu0 %9845  ;;  %2998 = vmatprep.mubr.bf16.mxu0 %v10846_v32  ;;  %v10844_v32 = vld [vmem:[%s14105_s4 + $0x30] ss:$12 sps:$4 sm:$0xff]  }
 0xd27   : > { %2924 = vrot.lane.b32.xlu0 %v2821_v19, %s14221_s10  ;;  %2906 = vrot.lane.b32.xlu1 %v2812_v21, %s14221_s10  ;;  %v9853_v24 = vunpack.i.h.bf16 %v9851_v28  ;;  %v9852_v50 = vunpack.i.l.bf16 %v9851_v28  ;;  %v9848_v36 = vunpack.i.h.bf16 %v9846_v46  ;;  %v9847_v56 = vunpack.i.l.bf16 %v9846_v46 }
 0xd29   : > { %v2819_v25 = vpack.c.bf16 %v9853_v24, %v9852_v50  ;;  %v2644_v8 = vsel %vm572_vm3, %v9847_v56, %v9848_v36 }
 0xd2a   : > { %v9856_v47 = vpop.permute.xlu1 %9855  ;;  %v9861_v57 = vpop.permute.xlu0 %9860 }
 0xd2b   : > { %2910 = vrot.lane.b32.xlu0 %v2814_v33, %s14221_s10  ;;  %2898 = vrot.lane.b32.xlu1 %v2808_v5, %s14221_s10  ;;  %v9858_v52 = vunpack.i.h.bf16 %v9856_v47  ;;  %v9857_v13 = vunpack.i.l.bf16 %v9856_v47  ;;  %v9863_v0 = vunpack.i.h.bf16 %v9861_v57  ;;  %v9862_v42 = vunpack.i.l.bf16 %v9861_v57 }
 0xd2d   : > { %v2645_v12 = vsel %vm572_vm3, %v9857_v13, %v9858_v52  ;;  %v2805_v35 = vpack.c.bf16 %v9858_v52, %v9848_v36  ;;  %v2818_v18 = vpack.c.bf16 %v9863_v0, %v9862_v42 }
 0xd2e   : > { %v2561_v61 = vpop.permute.xlu1 %2560  ;;  %v2804_v11 = vpack.c.bf16 %v2645_v12, %v2644_v8  ;;  %v9866_v22 = vpop.permute.xlu0 %9865 }
 0xd2f   : > { %2894 = vrot.lane.b32.xlu0 %v2806_v2, %s14221_s10  ;;  %2912 = vrot.lane.b32.xlu1 %v2815_v37, %s14221_s10  ;;  %v2567_v7 = vmul.f32 %v11811_v49, %v2561_v61  ;;  %v9868_v41 = vunpack.i.h.bf16 %v9866_v22  ;;  %v9867_v19 = vunpack.i.l.bf16 %v9866_v22  ;;  %v2568_v21 = vmul.f32 %v2561_v61, %v11950_v31  ;;  %v8886_v37 = vld [vmem:[%s14106_s5 + $0x30] sm:$0xff] }
 0xd30   : > { %v2570_v23 = vmul.f32 %v2561_v61, %v11956_v34  ;;  %v2564_v40 = vmul.f32 %v2561_v61, %v11929_v17  ;;  %v2566_v55 = vmul.f32 %v2561_v61, %v11935_v26  ;;  %v8890_v2 = vld [vmem:[%s14107_s6 + $0x30] sm:$0xff] }
 0xd31   : > { %v2802_v14 = vpack.c.bf16 %v2567_v7, %v2567_v7  ;;  %v2817_v29 = vpack.c.bf16 %v9868_v41, %v9867_v19 }
 0xd32   : > { %v9871_v49 = vpop.permute.xlu1 %9870  ;;  %v2803_v27 = vpack.c.bf16 %v2570_v23, %v2568_v21  ;;  %v9881_v28 = vpop.permute.xlu0 %9880  ;;  %v2801_v31 = vpack.c.bf16 %v2566_v55, %v2564_v40 }
 0xd33   : > { %2902 = vrot.lane.b32.xlu0 %v2810_v51, %s14221_s10  ;;  %2904 = vrot.lane.b32.xlu1 %v2811_v1, %s14221_s10  ;;  %v9883_v34 = vunpack.i.h.bf16 %v9881_v28  ;;  %v9882_v33 = vunpack.i.l.bf16 %v9881_v28  ;;  %v9873_v5 = vunpack.i.h.bf16 %v9871_v49  ;;  %v9872_v6 = vunpack.i.l.bf16 %v9871_v49 }
 0xd35   : > { %v2825_v26 = vpack.c.bf16 %v9883_v34, %v9882_v33  ;;  %v2816_v16 = vpack.c.bf16 %v9873_v5, %v9872_v6  ;;  %v10850_v34 = vld [vmem:[%s14105_s4 + $0x38] ss:$12 sps:$4 sm:$0xff]   ;;  %v10851_v33 = vld [vmem:[%s14105_s4 + $0x50] ss:$12 sps:$4 sm:$0xff]  }
 0xd36   : > { %v9876_v17 = vpop.permute.xlu1 %9875 }
 0xd37   : > { %2920 = vrot.lane.b32.xlu0 %v2819_v25, %s14221_s10  ;;  %2896 = vrot.lane.b32.xlu1 %v2807_v60, %s14221_s10  ;;  %v9878_v30 = vunpack.i.h.bf16 %v9876_v17  ;;  %v9877_v39 = vunpack.i.l.bf16 %v9876_v17 }
 0xd39   : > { %v2824_v45 = vpack.c.bf16 %v9878_v30, %v9877_v39 }
 0xd3b   : > { %2892 = vrot.lane.b32.xlu0 %v2805_v35, %s14221_s10  ;;  %2890 = vrot.lane.b32.xlu1 %v2804_v11, %s14221_s10 }
 0xd3f   : > { %2886 = vrot.lane.b32.xlu0 %v2802_v14, %s14221_s10  ;;  %2918 = vrot.lane.b32.xlu1 %v2818_v18, %s14221_s10 }
 0xd43   : > { %2916 = vrot.lane.b32.xlu0 %v2817_v29, %s14221_s10  ;;  %2888 = vrot.lane.b32.xlu1 %v2803_v27, %s14221_s10  ;;  %v10847_v27 = vld [vmem:[%s14105_s4 + $0x4c] ss:$12 sps:$4 sm:$0xff]  }
 0xd47   : > { %2884 = vrot.lane.b32.xlu0 %v2801_v31, %s14221_s10  ;;  %2882 = vrot.lane.b32.xlu1 %v2802_v14, %s14221_s10  ;;  %v10849_v31 = vld [vmem:[%s14105_s4 + $0x48] ss:$12 sps:$4 sm:$0xff]  }
 0xd4b   : > { %2932 = vrot.lane.b32.xlu0 %v2825_v26, %s14221_s10  ;;  %2914 = vrot.lane.b32.xlu1 %v2816_v16, %s14221_s10 }
 0xd4f   : > { %3150 = vperm.xlu0 %9773, %v8887_v43   ;;  %2930 = vrot.lane.b32.xlu1 %v2824_v45, %s14221_s10 }
 0xd53   : > { %3145 = vperm.xlu1 %9772, %v8886_v37  }
 0xd57   : > { %3174 = vperm.xlu1 %9772, %v8890_v2  }
 0xd5b   : > { %3179 = vperm.xlu1 %9772, %v8891_v38  }
 0xd7d   : > { %v2909_v46 = vpop.permute.xlu0 %2908  ;;  %v2927_v47 = vpop.permute.xlu1 %2926 }
 0xd91   : > { %v2901_v44 = vpop.permute.xlu0 %2900 }
 0xd95   : > { %v2923_v1 = vpop.permute.xlu1 %2922  ;;  %v2929_v24 = vpop.permute.xlu0 %2928 }
 0xd96   : > { %9135 = vmatprep.subr.bf16.mxu0 %v2929_v24 }
 0xd99   : > { %v2925_v50 = vpop.permute.xlu0 %2924  ;;  %v2907_v51 = vpop.permute.xlu1 %2906 }
 0xd9a   : > { %v2940_v12 = vsel %vm2273_vm11, %v2907_v51, %v2909_v46 }
 0xd9d   : > { %v2911_v52 = vpop.permute.xlu0 %2910  ;;  %v2899_v13 = vpop.permute.xlu1 %2898 }
 0xd9e   : > { %v2938_v35 = vsel %vm2273_vm11, %v2899_v13, %v2901_v44 }
 0xda1   : > { %v2895_v36 = vpop.permute.xlu0 %2894  ;;  %v2913_v56 = vpop.permute.xlu1 %2912 }
 0xda2   : > { %v2941_v57 = vsel %vm2273_vm11, %v2911_v52, %v2913_v56 }
 0xda3   : > { %9136 = vmatpush3.bf16.msra.mxu0 %v2941_v57 }
 0xda4   : > { %9137 = vmatprep.subr.bf16.mxu0 %v2927_v47 }
 0xda5   : > { %v2903_v60 = vpop.permute.xlu0 %2902  ;;  %v2905_v25 = vpop.permute.xlu1 %2904 }
 0xda6   : > { %v2939_v8 = vsel %vm2273_vm11, %v2903_v60, %v2905_v25 }
 0xda7   : > { %9138 = vmatpush3.bf16.msra.mxu0 %v2940_v12 }
 0xda8   : > { %9139 = vmatprep.subr.bf16.mxu0 %v2925_v50 }
 0xda9   : > { %v2921_v61 = vpop.permute.xlu0 %2920  ;;  %v2897_v7 = vpop.permute.xlu1 %2896 }
 0xdaa   : > { %v2937_v14 = vsel %vm2273_vm11, %v2895_v36, %v2897_v7 }
 0xdab   : > { %9140 = vmatpush3.bf16.msra.mxu0 %v2939_v8 }
 0xdac   : > { %9141 = vmatprep.subr.bf16.mxu0 %v2923_v1 }
 0xdad   : > { %v2893_v0 = vpop.permute.xlu0 %2892  ;;  %v2891_v42 = vpop.permute.xlu1 %2890 }
 0xdae   : > { %v2936_v19 = vsel %vm2273_vm11, %v2891_v42, %v2893_v0 }
 0xdaf   : > { %9142 = vmatpush3.bf16.msra.mxu0 %v2938_v35  ;;  %v8885_v35 = vld [vmem:[%s14106_s5 + $0x28] sm:$0xff] }
 0xdb0   : > { %9143 = vmatprep.subr.bf16.mxu0 %v2921_v61 }
 0xdb1   : > { %v2887_v11 = vpop.permute.xlu0 %2886  ;;  %v2919_v22 = vpop.permute.xlu1 %2918 }
 0xdb3   : > { %9144 = vmatpush3.bf16.msra.mxu0 %v2937_v14  ;;  %v8888_v14 = vld [vmem:[%s14107_s6 + $0x20] sm:$0xff] }
 0xdb4   : > { %9145 = vmatprep.subr.bf16.mxu0 %v2919_v22  ;;  %v8884_v22 = vld [vmem:[%s14106_s5 + $0x20] sm:$0xff] }
 0xdb5   : > { %v2917_v18 = vpop.permute.xlu0 %2916  ;;  %v2889_v41 = vpop.permute.xlu1 %2888 }
 0xdb6   : > { %v2935_v49 = vsel %vm2273_vm11, %v2887_v11, %v2889_v41  ;;  %v8889_v11 = vld [vmem:[%s14107_s6 + $0x28] sm:$0xff] }
 0xdb7   : > { %9146 = vmatpush3.bf16.msra.mxu0 %v2936_v19 }
 0xdb8   : > { %9147 = vmatprep.subr.bf16.mxu0 %v2917_v18 }
 0xdb9   : > { %v2885_v21 = vpop.permute.xlu0 %2884  ;;  %v2883_v23 = vpop.permute.xlu1 %2882 }
 0xdba   : > { %v2934_v55 = vsel %vm2273_vm11, %v2883_v23, %v2885_v21 }
 0xdbb   : > { %9148 = vmatpush3.bf16.msra.mxu0 %v2935_v49 }
 0xdbd   : > { %v2915_v40 = vpop.permute.xlu1 %2914  ;;  %v2933_v29 = vpop.permute.xlu0 %2932 }
 0xdbe   : > { %9149 = vmatprep.subr.bf16.mxu0 %v2915_v40 }
 0xdbf   : > { %9150 = vmatpush3.bf16.msra.mxu0 %v2934_v55 }
 0xdc0   : > { %9407 = vmatprep.subr.bf16.mxu0 %v2933_v29 }
 0xdc1   : > { %v2931_v28 = vpop.permute.xlu1 %2930 }
 0xdc2   : > { %2999 = vmatmul.mubr.bf16.vlgmr.msra.gmra.mxu0 %v10844_v32 }
 0xdc3   : > { %9408 = vmatpush3.bf16.msra.mxu0 %v2933_v29  ;;  %3006 = vmatprep.mubr.bf16.mxu0 %v10847_v27 }
 0xdc4   : > { %9409 = vmatprep.subr.bf16.mxu0 %v2931_v28 }
 0xdc7   : > { %9410 = vmatpush3.bf16.msra.mxu0 %v2931_v28 }
 0xdca   : > { %3007 = vmatmul.mubr.bf16.gmra.mxu0 %v10849_v31  ;;  %v3151_v19 = vpop.permute.xlu0 %3150 }
 0xdcb   : > { %9411 = vmatprep.mubr.msk.bf16.mxu0 %vm2300_vm10, %v10850_v34 }
 0xdce   : > { %v3146_v18 = vpop.permute.xlu1 %3145 }
 0xdd2   : > { %9412 = vmatmul.mubr.msk.bf16.vlgmr.msra.gmra.mxu0 %vm2300_vm10, %v10851_v33  ;;  %v3175_v41 = vpop.permute.xlu1 %3174 }
 0xdd6   : > { %v3180_v21 = vpop.permute.xlu1 %3179 }
 0xe82   : > { %v9151_v5 = vpop.f32.mrf.mxu0 }
 0xe84   : > { %v9152_v6 = vpop.f32.mrf.mxu0 }
 0xe85   : > { %v9153_v2 = vadd.f32 %v9152_v6, %v9151_v5 }
 0xe86   : > { %v9154_v17 = vpop.f32.mrf.mxu0 }
 0xe88   : > { %v9155_v26 = vpop.f32.mrf.mxu0 }
 0xe89   : > { %v9156_v57 = vadd.f32 %v9155_v26, %v9154_v17 }
 0xe8a   : > { %v9157_v16 = vpop.f32.mrf.mxu0 }
 0xe8c   : > { %v9158_v30 = vpop.f32.mrf.mxu0 }
 0xe8d   : > { %v9159_v45 = vadd.f32 %v9158_v30, %v9157_v16 }
 0xe8e   : > { %v9160_v39 = vpop.f32.mrf.mxu0 }
 0xe90   : > { %v9161_v43 = vpop.f32.mrf.mxu0 }
 0xe91   : > { %v9162_v47 = vadd.f32 %v9161_v43, %v9160_v39 }
 0xe92   : > { %v9413_v37 = vpop.f32.mrf.mxu0 }
 0xe93   : > { %v12096_v38 = vadd.f32 %v9413_v37, %v9159_v45 }
 0xe94   : > { %v3049_v46 = vpop.f32.mrf.mxu0 }
 0xe95   : > { %v12098_v44 = vadd.f32 %v9153_v2, %v3049_v46  ;;  %v3070_v1 = vsel %vm1654_vm12, %v12096_v38, 0.0  ;;  %v3078_v24 = vmul.f32 %v12096_v38, %v12096_v38 }
 0xe96   : > { %3071 = vadd.xlane.f32.xlu0 %v3070_v1  ;;  %v9414_v50 = vpop.f32.mrf.mxu0 }
 0xe97   : > { %v12104_v51 = vadd.f32 %v9414_v50, %v9162_v47  ;;  %v3064_v52 = vsel %vm1654_vm12, %v12098_v44, 0.0  ;;  %v3086_v13 = vsel %vm1654_vm12, %v3078_v24, 0.0  ;;  %v3076_v25 = vmul.f32 %v12098_v44, %v12098_v44 }
 0xe98   : > { %3065 = vadd.xlane.f32.xlu1 %v3064_v52  ;;  %v3052_v56 = vpop.f32.mrf.mxu0 }
 0xe99   : > { %v3079_v36 = vmul.f32 %v12104_v51, %v12104_v51  ;;  %v3073_v60 = vsel %vm1654_vm12, %v12104_v51, 0.0  ;;  %v12115_v12 = vadd.f32 %v9156_v57, %v3052_v56  ;;  %v3080_v7 = vsel %vm1654_vm12, %v3076_v25, 0.0 }
 0xe9a   : > { %3087 = vadd.xlane.f32.xlu0 %v3086_v13 }
 0xe9b   : > { %v3089_v61 = vsel %vm1654_vm12, %v3079_v36, 0.0  ;;  %v3067_v8 = vsel %vm1654_vm12, %v12115_v12, 0.0  ;;  %v3077_v0 = vmul.f32 %v12115_v12, %v12115_v12 }
 0xe9c   : > { %3074 = vadd.xlane.f32.xlu1 %v3073_v60 }
 0xe9d   : > { %v3083_v42 = vsel %vm1654_vm12, %v3077_v0, 0.0 }
 0xe9e   : > { %3090 = vadd.xlane.f32.xlu0 %v3089_v61 }
 0xea0   : > { %3081 = vadd.xlane.f32.xlu1 %v3080_v7 }
 0xea2   : > { %3068 = vadd.xlane.f32.xlu0 %v3067_v8 }
 0xea6   : > { %3084 = vadd.xlane.f32.xlu0 %v3083_v42 }
 0xeb1   : > { %3140 = vperm.xlu1 %9772, %v8885_v35  }
 0xeb5   : > { %3169 = vperm.xlu1 %9772, %v8889_v11  }
 0xeb9   : > { %3238 = vrot.lane.b32.xlu1 %v11913_v54, %s14214_s29 }
 0xebc   : > { %3135 = vperm.xlu0 %9773, %v8884_v22  }
 0xebd   : > { %3260 = vrot.lane.b32.xlu1 %v11913_v54, %s14215_s20 }
 0xec0   : > { %3164 = vperm.xlu0 %9773, %v8888_v14  }
 0xec4   : > { %3249 = vrot.lane.b32.xlu0 %v11909_v53, %s14212_s2 }
 0xec8   : > { %3267 = vrot.lane.b32.xlu0 %v11909_v53, %s14211_s27 }
 0xecc   : > { %3274 = vrot.lane.b32.xlu0 %v11913_v54, %s14213_s3 }
 0xf1f   : > { %v3072_v23 = vpop.xlane.xlu0 %3071 }
 0xf20   : > { %v3094_v49 = vmul.f32 0.0625, %v3072_v23 }
 0xf21   : > { %v3066_v40 = vpop.xlane.xlu1 %3065 }
 0xf22   : > { %v3102_v32 = vmul.f32 %v3094_v49, %v3094_v49  ;;  %v3092_v28 = vmul.f32 0.0625, %v3066_v40  ;;  %v3114_v56 = vsub.f32 %v12096_v38, %v3094_v49 }
 0xf23   : > { %v3088_v55 = vpop.xlane.xlu0 %3087 }
 0xf24   : > { %v3098_v29 = vmul.f32 0.0625, %v3088_v55  ;;  %v3100_v54 = vmul.f32 %v3092_v28, %v3092_v28  ;;  %v3112_v0 = vsub.f32 %v12098_v44, %v3092_v28 }
 0xf25   : > { %v3075_v27 = vpop.xlane.xlu1 %3074 }
 0xf26   : > { %v3106_v31 = vsub.f32 %v3098_v29, %v3102_v32  ;;  %v3095_v34 = vmul.f32 0.0625, %v3075_v27  ;;  %v12170_v32 = vld [vmem:[#allocation2] sm:$0xff] }
 0xf27   : > { %v3091_v33 = vpop.xlane.xlu0 %3090 }
 0xf28   : > { %v3110_v5 = vmax.f32 %v3106_v31, 0.0  ;;  %v3103_v53 = vmul.f32 %v3095_v34, %v3095_v34  ;;  %v3099_v6 = vmul.f32 0.0625, %v3091_v33  ;;  %v3115_v61 = vsub.f32 %v12104_v51, %v3095_v34 }
 0xf29   : > { %v3082_v17 = vpop.xlane.xlu1 %3081 }
 0xf2a   : > { %v3118_v26 = vadd.f32 1e-05, %v3110_v5  ;;  %v3107_v16 = vsub.f32 %v3099_v6, %v3103_v53  ;;  %v3096_v30 = vmul.f32 0.0625, %v3082_v17 }
 0xf2b   : > { %v3069_v39 = vpop.xlane.xlu0 %3068 }
 0xf2c   : > { %10941 = vrsqrt.f32 %v3118_v26  ;;  %v3111_v43 = vmax.f32 %v3107_v16, 0.0  ;;  %v3104_v45 = vsub.f32 %v3096_v30, %v3100_v54  ;;  %v3093_v37 = vmul.f32 0.0625, %v3069_v39 }
 0xf2e   : > { %v3119_v2 = vadd.f32 1e-05, %v3111_v43  ;;  %v3108_v46 = vmax.f32 %v3104_v45, 0.0  ;;  %v3101_v24 = vmul.f32 %v3093_v37, %v3093_v37  ;;  %v3113_v44 = vsub.f32 %v12115_v12, %v3093_v37 }
 0xf2f   : > { %v3085_v47 = vpop.xlane.xlu0 %3084 }
 0xf30   : > { %10943 = vrsqrt.f32 %v3119_v2  ;;  %v3116_v1 = vadd.f32 1e-05, %v3108_v46  ;;  %v3097_v50 = vmul.f32 0.0625, %v3085_v47 }
 0xf32   : > { %10945 = vrsqrt.f32 %v3116_v1  ;;  %v3105_v52 = vsub.f32 %v3097_v50, %v3101_v24 }
 0xf34   : > { %v3109_v13 = vmax.f32 %v3105_v52, 0.0 }
 0xf36   : > { %v3117_v36 = vadd.f32 1e-05, %v3109_v13 }
 0xf37   : > { %v3136_v8 = vpop.permute.xlu0 %3135 }
 0xf38   : > { %10947 = vrsqrt.f32 %v3117_v36 }
 0xf39   : > { %v10942_v57 = vpop.eup %10941 }
 0xf3a   : > { %v3126_v60 = vmul.f32 %v10942_v57, %v3114_v56 }
 0xf3b   : > { %v3165_v51 = vpop.permute.xlu0 %3164 }
 0xf3c   : > { %v3155_v25 = vmul.f32 %v3146_v18, %v3126_v60  ;;  %v3141_v18 = vpop.permute.xlu1 %3140 }
 0xf3d   : > { %v10944_v7 = vpop.eup %10943 }
 0xf3e   : > { %v3184_v42 = vadd.f32 %v3175_v41, %v3155_v25  ;;  %v3127_v35 = vmul.f32 %v10944_v7, %v3115_v61 }
 0xf3f   : > { %v10946_v11 = vpop.eup %10945  ;;  %v3250_v63 = vpop.permute.xlu0 %3249 }
 0xf40   : > { %v12151_v22 = vadd.f32 %v3184_v42, %v1865_v59  ;;  %v3156_v14 = vmul.f32 %v3151_v19, %v3127_v35  ;;  %v3124_v23 = vmul.f32 %v10946_v11, %v3112_v0  ;;  %v3256_v12 = vmul.f32 %v12170_v32, %v3250_v63 }
 0xf42   : > { %3205 = vst.msk [vmem:[#allocation2 + $0x48] sm:$0xff] %vm1654_vm12, %v12151_v22  ;;  %v3185_v38 = vadd.f32 %v3180_v21, %v3156_v14  ;;  %v3153_v49 = vmul.f32 %v3136_v8, %v3124_v23  ;;  %v3170_v21 = vpop.permute.xlu1 %3169  ;;  %v11008_v23 = vld [vmem:[#allocation3 + $0x4] ss:$0 sm:$0xff] }
 0xf43   : > { %v3268_v17 = vpop.permute.xlu0 %3267 }
 0xf44   : > { %v12157_v40 = vadd.f32 %v3185_v38, %v1866_v62  ;;  %v3182_v41 = vadd.f32 %v3165_v51, %v3153_v49 }
 0xf45   : > { %v10948_v55 = vpop.eup %10947 }
 0xf46   : > { %3206 = vst.msk [vmem:[#allocation2 + $0x68] sm:$0xff] %vm1654_vm12, %v12157_v40  ;;  %v3125_v58 = vmul.f32 %v10948_v55, %v3113_v44  ;;  %v12164_v59 = vadd.f32 %v3182_v41, %v1863_v10  ;;  %v3239_v27 = vpop.permute.xlu1 %3238 }
 0xf47   : > { %v3245_v34 = vmul.f32 %v12170_v32, %v3239_v27  ;;  %v3275_v38 = vpop.permute.xlu0 %3274 }
 0xf48   : > { %v3154_v19 = vmul.f32 %v3141_v18, %v3125_v58  ;;  %3203 = vst.msk [vmem:[#allocation2 + $0x8] sm:$0xff] %vm1654_vm12, %v12164_v59 }
 0xf49   : > { %v12168_v62 = vld [vmem:[#allocation2 + $0x48] sm:$0xff] }
 0xf4a   : > { %v3183_v29 = vadd.f32 %v3170_v21, %v3154_v19  ;;  %3862 = vst.msk [vmem:[#allocation2 + $0x48] sm:$0xff] %vm1875_vm7, %v12170_v32  ;;  %v3257_v9 = vmul.f32 %v3250_v63, %v12168_v62  ;;  %v3246_v33 = vmul.f32 %v3239_v27, %v12168_v62  ;;  %v3272_v43 = vmul.f32 %v3268_v17, %v12168_v62  ;;  %v3261_v13 = vpop.permute.xlu1 %3260 }
 0xf4b   : > { %v9934_v24 = vpack.i.bf16 %v12168_v62, %v12170_v32  ;;  %v3265_v25 = vmul.f32 %v3261_v13, %v12168_v62  ;;  %v3279_v44 = vmul.f32 %v3275_v38, %v12168_v62 }
 0xf4c   : > { %v12178_v10 = vadd.f32 %v3183_v29, %v1864_v20  ;;  %v9884_v31 = vpack.i.bf16 %v3257_v9, %v3256_v12  ;;  %v9889_v20 = vpack.i.bf16 %v3246_v33, %v3245_v34 }
 0xf4d   : > { %v12180_v28 = vld [vmem:[#allocation2 + $0x68] sm:$0xff] }
 0xf4e   : > { %3204 = vst.msk [vmem:[#allocation2 + $0x28] sm:$0xff] %vm1654_vm12, %v12178_v10  ;;  %9885 = vrot.lane.b32.xlu1 %v9884_v31, %s14216_s21  ;;  %v3273_v26 = vmul.f32 %v3268_v17, %v12180_v28  ;;  %v9894_v16 = vpack.i.bf16 %v12180_v28, %v12168_v62  ;;  %v3259_v39 = vmul.f32 %v3250_v63, %v12180_v28 }
 0xf4f   : > { %3863 = vst.msk [vmem:[#allocation2 + $0x68] sm:$0xff] %vm1875_vm7, %v12170_v32  ;;  %v12188_v5 = vld [vmem:[#allocation2 + $0x8] sm:$0xff]  ;;  %v3248_v1 = vmul.f32 %v3239_v27, %v12180_v28  ;;  %v3266_v36 = vmul.f32 %v3261_v13, %v12180_v28  ;;  %v9939_v60 = vpack.i.bf16 %v12180_v28, %v12170_v32  ;;  %v3280_v49 = vmul.f32 %v3275_v38, %v12180_v28 }
 0xf50   : > { %3860 = vst.msk [vmem:[#allocation2 + $0x8] sm:$0xff] %vm1875_vm7, %v12170_v32  ;;  %v3253_v15 = vmul.f32 %v3250_v63, %v12188_v5  ;;  %v3242_v6 = vmul.f32 %v3239_v27, %v12188_v5  ;;  %v9924_v45 = vpack.i.bf16 %v3273_v26, %v3272_v43  ;;  %v9909_v2 = vpack.i.bf16 %v3259_v39, %v3256_v12 }
 0xf51   : > { %v9919_v52 = vpack.i.bf16 %v3248_v1, %v3245_v34  ;;  %v3270_v61 = vmul.f32 %v3268_v17, %v12188_v5  ;;  %v9949_v7 = vpack.i.bf16 %v3266_v36, %v3265_v25  ;;  %v9959_v35 = vpack.i.bf16 %v12188_v5, %v12170_v32 }
 0xf52   : > { %v9899_v53 = vpack.i.bf16 %v3253_v15, %v3256_v12  ;;  %9890 = vrot.lane.b32.xlu1 %v9889_v20, %s14204_s17  ;;  %v9904_v30 = vpack.i.bf16 %v3242_v6, %v3245_v34  ;;  %v3263_v11 = vmul.f32 %v3261_v13, %v12188_v5  ;;  %v3277_v51 = vmul.f32 %v3275_v38, %v12188_v5 }
 0xf53   : > { %v9984_v55 = vpack.i.bf16 %v3280_v49, %v3279_v44 }
 0xf54   : > { %9900 = vrot.lane.b32.xlu0 %v9899_v53, %s14216_s21 }
 0xf55   : > { %v12197_v54 = vld [vmem:[#allocation2 + $0x28] sm:$0xff] }
 0xf56   : > { %3861 = vst.msk [vmem:[#allocation2 + $0x28] sm:$0xff] %vm1875_vm7, %v12170_v32  ;;  %9895 = vrot.lane.b32.xlu1 %v9894_v16, %s14217_s0  ;;  %v3255_v37 = vmul.f32 %v3250_v63, %v12197_v54  ;;  %v9914_v47 = vpack.i.bf16 %v12197_v54, %v12188_v5  ;;  %v3244_v50 = vmul.f32 %v3239_v27, %v12197_v54 }
 0xf57   : > { %v3271_v57 = vmul.f32 %v3268_v17, %v12197_v54  ;;  %v9964_v0 = vpack.i.bf16 %v12197_v54, %v12170_v32  ;;  %v3264_v42 = vmul.f32 %v3261_v13, %v12197_v54  ;;  %v3278_v18 = vmul.f32 %v3275_v38, %v12197_v54 }
 0xf58   : > { %9905 = vrot.lane.b32.xlu0 %v9904_v30, %s14204_s17  ;;  %v9929_v46 = vpack.i.bf16 %v3255_v37, %v3256_v12  ;;  %v9944_v56 = vpack.i.bf16 %v3244_v50, %v3245_v34 }
 0xf59   : > { %v9954_v8 = vpack.i.bf16 %v3271_v57, %v3270_v61  ;;  %v9969_v14 = vpack.i.bf16 %v3264_v42, %v3263_v11  ;;  %v9989_v41 = vpack.i.bf16 %v3278_v18, %v3277_v51 }
 0xf5a   : > { %9925 = vrot.lane.b32.xlu1 %v9924_v45, %s14208_s23 }
 0xf5c   : > { %9910 = vrot.lane.b32.xlu0 %v9909_v2, %s14216_s21 }
 0xf5e   : > { %9930 = vrot.lane.b32.xlu1 %v9929_v46, %s14216_s21 }
 0xf60   : > { %9915 = vrot.lane.b32.xlu0 %v9914_v47, %s14217_s0 }
 0xf62   : > { %9935 = vrot.lane.b32.xlu1 %v9934_v24, %s14209_s22 }
 0xf64   : > { %9920 = vrot.lane.b32.xlu0 %v9919_v52, %s14204_s17 }
 0xf66   : > { %9945 = vrot.lane.b32.xlu1 %v9944_v56, %s14204_s17 }
 0xf68   : > { %9940 = vrot.lane.b32.xlu0 %v9939_v60, %s14209_s22 }
 0xf6a   : > { %9950 = vrot.lane.b32.xlu1 %v9949_v7, %s14218_s1 }
 0xf6c   : > { %9955 = vrot.lane.b32.xlu0 %v9954_v8, %s14208_s23 }
 0xf6e   : > { %9965 = vrot.lane.b32.xlu1 %v9964_v0, %s14209_s22 }
 0xf70   : > { %9960 = vrot.lane.b32.xlu0 %v9959_v35, %s14209_s22 }
 0xf72   : > { %3221 = vrot.lane.b32.xlu1 %v11008_v23, %s14219_s28 }
 0xf74   : > { %9970 = vrot.lane.b32.xlu0 %v9969_v14, %s14218_s1 }
 0xf76   : > { %9980 = vrot.lane.b32.xlu1 %v9914_v47, %s14220_s26 }
 0xf78   : > { %9975 = vrot.lane.b32.xlu0 %v9894_v16, %s14220_s26 }
 0xf7a   : > { %9990 = vrot.lane.b32.xlu1 %v9989_v41, %s14210_s25 }
 0xf7c   : > { %9985 = vrot.lane.b32.xlu0 %v9984_v55, %s14210_s25 }
 0xfc0   : > { %v9886_v58 = vpop.permute.xlu1 %9885 }
 0xfc1   : > { %v9888_v1 = vunpack.i.h.bf16 %v9886_v58  ;;  %v9887_v50 = vunpack.i.l.bf16 %v9886_v58 }
 0xfc3   : > { %v3379_v0 = vsel %vm2054_vm6, %v9887_v50, %v9888_v1 }
 0xfc4   : > { %v9891_v19 = vpop.permute.xlu1 %9890 }
 0xfc5   : > { %v9893_v7 = vunpack.i.h.bf16 %v9891_v19  ;;  %v9892_v8 = vunpack.i.l.bf16 %v9891_v19 }
 0xfc6   : > { %v12249_v21 = vpop.permute.xlu0 %9900 }
 0xfc7   : > { %v3343_v38 = vsel %vm639_vm9, %v9892_v8, %v9893_v7  ;;  %v9903_v58 = vunpack.i.h.bf16 %v12249_v21 }
 0xfc8   : > { %v9896_v63 = vpop.permute.xlu1 %9895 }
 0xfc9   : > { %v9898_v12 = vunpack.i.h.bf16 %v9896_v63  ;;  %v9897_v29 = vunpack.i.l.bf16 %v9896_v63  ;;  %v9902_v63 = vunpack.i.l.bf16 %v12249_v21 }
 0xfca   : > { %v12251_v9 = vpop.permute.xlu0 %9905 }
 0xfcb   : > { %v3484_v27 = vpack.c.bf16 %v9898_v12, %v9897_v29 }
 0xfcc   : > { %v9926_v31 = vpop.permute.xlu1 %9925 }
 0xfcd   : > { %3589 = vrot.lane.b32.xlu0 %v3484_v27, %s14221_s10  ;;  %v9928_v2 = vunpack.i.h.bf16 %v9926_v31  ;;  %v9927_v46 = vunpack.i.l.bf16 %v9926_v31 }
 0xfce   : > { %v9911_v34 = vpop.permute.xlu0 %9910 }
 0xfcf   : > { %v9913_v39 = vunpack.i.h.bf16 %v9911_v34  ;;  %v9912_v24 = vunpack.i.l.bf16 %v9911_v34  ;;  %v3482_v57 = vpack.c.bf16 %v9928_v2, %v9927_v46 }
 0xfd0   : > { %v9931_v33 = vpop.permute.xlu1 %9930 }
 0xfd1   : > { %v3476_v52 = vpack.c.bf16 %v9913_v39, %v9888_v1  ;;  %v3380_v60 = vsel %vm2054_vm6, %v9912_v24, %v9913_v39  ;;  %v9933_v18 = vunpack.i.h.bf16 %v9931_v33  ;;  %v9932_v49 = vunpack.i.l.bf16 %v9931_v33 }
 0xfd2   : > { %v9916_v15 = vpop.permute.xlu0 %9915  ;;  %v3475_v11 = vpack.c.bf16 %v3380_v60, %v3379_v0 }
 0xfd3   : > { %v9918_v13 = vunpack.i.h.bf16 %v9916_v15  ;;  %v9917_v36 = vunpack.i.l.bf16 %v9916_v15  ;;  %v3474_v12 = vpack.c.bf16 %v9933_v18, %v9903_v58  ;;  %v3378_v29 = vsel %vm2054_vm6, %v9932_v49, %v9933_v18 }
 0xfd4   : > { %v9936_v20 = vpop.permute.xlu1 %9935 }
 0xfd5   : > { %v9938_v6 = vunpack.i.h.bf16 %v9936_v20  ;;  %v9937_v17 = vunpack.i.l.bf16 %v9936_v20  ;;  %v3483_v42 = vpack.c.bf16 %v9918_v13, %v9917_v36 }
 0xfd6   : > { %v9921_v53 = vpop.permute.xlu0 %9920 }
 0xfd7   : > { %v3307_v43 = vsel %vm572_vm3, %v9937_v17, %v9938_v6  ;;  %v9923_v25 = vunpack.i.h.bf16 %v9921_v53  ;;  %v9922_v61 = vunpack.i.l.bf16 %v9921_v53  ;;  %v3377_v53 = vsel %vm2054_vm6, %v9902_v63, %v9903_v58  ;;  %v8913_v63 = vld [vmem:[%s14106_s5 + $0x58] sm:$0xff] }
 0xfd8   : > { %v9946_v56 = vpop.permute.xlu1 %9945  ;;  %v3473_v21 = vpack.c.bf16 %v3378_v29, %v3377_v53  ;;  %v8916_v29 = vld [vmem:[%s14107_s6 + $0x50] sm:$0xff] }
 0xfd9   : > { %v3344_v14 = vsel %vm639_vm9, %v9922_v61, %v9923_v25  ;;  %v3472_v51 = vpack.c.bf16 %v9923_v25, %v9893_v7 }
 0xfda   : > { %v9941_v26 = vpop.permute.xlu0 %9940  ;;  %v3471_v55 = vpack.c.bf16 %v3344_v14, %v3343_v38 }
 0xfdb   : > { %v9943_v16 = vunpack.i.h.bf16 %v9941_v26  ;;  %v9942_v30 = vunpack.i.l.bf16 %v9941_v26  ;;  %v9948_v26 = vunpack.i.h.bf16 %v9946_v56 }
 0xfdc   : > { %v9951_v23 = vpop.permute.xlu1 %9950 }
 0xfdd   : > { %v3308_v45 = vsel %vm572_vm3, %v9942_v30, %v9943_v16  ;;  %v3468_v37 = vpack.c.bf16 %v9943_v16, %v9938_v6  ;;  %v9953_v34 = vunpack.i.h.bf16 %v9951_v23  ;;  %v9952_v33 = vunpack.i.l.bf16 %v9951_v23 }
 0xfde   : > { %v3467_v47 = vpack.c.bf16 %v3308_v45, %v3307_v43  ;;  %v9956_v35 = vpop.permute.xlu0 %9955  ;;  %v9947_v16 = vunpack.i.l.bf16 %v9946_v56  ;;  %v9908_v43 = vunpack.i.h.bf16 %v12251_v9  ;;  %v9907_v45 = vunpack.i.l.bf16 %v12251_v9 }
 0xfdf   : > { %3557 = vrot.lane.b32.xlu1 %v3468_v37, %s14221_s10  ;;  %v9958_v44 = vunpack.i.h.bf16 %v9956_v35  ;;  %v9957_v41 = vunpack.i.l.bf16 %v9956_v35  ;;  %v3480_v30 = vpack.c.bf16 %v9953_v34, %v9952_v33  ;;  %v10854_v35 = vld [vmem:[%s14105_s4 + $0x64] ss:$12 sps:$4 sm:$0xff]  }
 0xfe0   : > { %3555 = vrot.lane.b32.xlu0 %v3467_v47, %s14221_s10  ;;  %v9966_v31 = vpop.permute.xlu1 %9965  ;;  %v3470_v47 = vpack.c.bf16 %v9948_v26, %v9908_v43  ;;  %v3342_v1 = vsel %vm639_vm9, %v9947_v16, %v9948_v26  ;;  %v3341_v50 = vsel %vm639_vm9, %v9907_v45, %v9908_v43  ;;  %3659 = vmatprep.mubr.bf16.mxu1 %v10854_v35 }
 0xfe1   : > { %v3481_v27 = vpack.c.bf16 %v9958_v44, %v9957_v41  ;;  %v9968_v6 = vunpack.i.h.bf16 %v9966_v31  ;;  %v9967_v17 = vunpack.i.l.bf16 %v9966_v31  ;;  %v3469_v36 = vpack.c.bf16 %v3342_v1, %v3341_v50 }
 0xfe2   : > { %v9961_v19 = vpop.permute.xlu0 %9960 }
 0xfe3   : > { %3573 = vrot.lane.b32.xlu1 %v3476_v52, %s14221_s10  ;;  %v9963_v15 = vunpack.i.h.bf16 %v9961_v19  ;;  %v9962_v20 = vunpack.i.l.bf16 %v9961_v19  ;;  %v3306_v37 = vsel %vm572_vm3, %v9967_v17, %v9968_v6 }
 0xfe4   : > { %3585 = vrot.lane.b32.xlu0 %v3482_v57, %s14221_s10  ;;  %v3222_v24 = vpop.permute.xlu1 %3221 }
 0xfe5   : > { %v3305_v39 = vsel %vm572_vm3, %v9962_v20, %v9963_v15  ;;  %v3228_v52 = vmul.f32 %v12170_v32, %v3222_v24  ;;  %v3466_v56 = vpack.c.bf16 %v9968_v6, %v9963_v15  ;;  %v3229_v61 = vmul.f32 %v3222_v24, %v12168_v62 }
 0xfe6   : > { %v9971_v2 = vpop.permute.xlu0 %9970  ;;  %v3465_v46 = vpack.c.bf16 %v3306_v37, %v3305_v39  ;;  %v3231_v7 = vmul.f32 %v3222_v24, %v12180_v28  ;;  %v3225_v23 = vmul.f32 %v3222_v24, %v12188_v5  ;;  %v3227_v38 = vmul.f32 %v3222_v24, %v12197_v54 }
 0xfe7   : > { %3587 = vrot.lane.b32.xlu1 %v3483_v42, %s14221_s10  ;;  %v9973_v13 = vunpack.i.h.bf16 %v9971_v2  ;;  %v9972_v9 = vunpack.i.l.bf16 %v9971_v2  ;;  %v3463_v60 = vpack.c.bf16 %v3228_v52, %v3228_v52 }
 0xfe8   : > { %3571 = vrot.lane.b32.xlu0 %v3475_v11, %s14221_s10  ;;  %v9981_v42 = vpop.permute.xlu1 %9980  ;;  %v3464_v11 = vpack.c.bf16 %v3231_v7, %v3229_v61  ;;  %v3462_v41 = vpack.c.bf16 %v3227_v38, %v3225_v23  ;;  %v10859_v23 = vld [vmem:[%s14105_s4 + $0x80] ss:$12 sps:$4 sm:$0xff]  }
 0xfe9   : > { %v3479_v25 = vpack.c.bf16 %v9973_v13, %v9972_v9  ;;  %v9983_v28 = vunpack.i.h.bf16 %v9981_v42  ;;  %v9982_v18 = vunpack.i.l.bf16 %v9981_v42  ;;  %v10855_v42 = vld [vmem:[%s14105_s4 + $0x7c] ss:$12 sps:$4 sm:$0xff]  }
 0xfea   : > { %v9976_v57 = vpop.permute.xlu0 %9975 }
 0xfeb   : > { %3565 = vrot.lane.b32.xlu1 %v3472_v51, %s14221_s10  ;;  %v9978_v8 = vunpack.i.h.bf16 %v9976_v57  ;;  %v9977_v0 = vunpack.i.l.bf16 %v9976_v57 }
 0xfec   : > { %3563 = vrot.lane.b32.xlu0 %v3471_v55, %s14221_s10  ;;  %v9991_v49 = vpop.permute.xlu1 %9990  ;;  %v3477_v55 = vpack.c.bf16 %v9983_v28, %v9982_v18 }
 0xfed   : > { %v3478_v14 = vpack.c.bf16 %v9978_v8, %v9977_v0  ;;  %v9993_v5 = vunpack.i.h.bf16 %v9991_v49  ;;  %v9992_v58 = vunpack.i.l.bf16 %v9991_v49  ;;  %v10852_v0 = vld [vmem:[%s14105_s4 + $0x60] ss:$12 sps:$4 sm:$0xff]  }
 0xfee   : > { %v9986_v62 = vpop.permute.xlu0 %9985 }
 0xfef   : > { %3583 = vrot.lane.b32.xlu1 %v3481_v27, %s14221_s10  ;;  %v9988_v51 = vunpack.i.h.bf16 %v9986_v62  ;;  %v9987_v44 = vunpack.i.l.bf16 %v9986_v62  ;;  %v3485_v19 = vpack.c.bf16 %v9993_v5, %v9992_v58  ;;  %v8917_v27 = vld [vmem:[%s14107_s6 + $0x58] sm:$0xff] }
 0xff0   : > { %3569 = vrot.lane.b32.xlu0 %v3474_v12, %s14221_s10  ;;  %v8912_v12 = vld [vmem:[%s14106_s5 + $0x50] sm:$0xff] }
 0xff1   : > { %v3486_v54 = vpack.c.bf16 %v9988_v51, %v9987_v44 }
 0xff3   : > { %3567 = vrot.lane.b32.xlu1 %v3473_v21, %s14221_s10 }
 0xff4   : > { %3581 = vrot.lane.b32.xlu0 %v3480_v30, %s14221_s10 }
 0xff7   : > { %3551 = vrot.lane.b32.xlu1 %v3465_v46, %s14221_s10 }
 0xff8   : > { %3561 = vrot.lane.b32.xlu0 %v3470_v47, %s14221_s10 }
 0xffb   : > { %3559 = vrot.lane.b32.xlu1 %v3469_v36, %s14221_s10 }
 0xffc   : > { %3553 = vrot.lane.b32.xlu0 %v3466_v56, %s14221_s10 }
 0xfff   : > { %3579 = vrot.lane.b32.xlu1 %v3479_v25, %s14221_s10 }
0x1000   : > { %3547 = vrot.lane.b32.xlu0 %v3463_v60, %s14221_s10 }
0x1003   : > { %3549 = vrot.lane.b32.xlu1 %v3464_v11, %s14221_s10  ;;  %v10857_v11 = vld [vmem:[%s14105_s4 + $0x78] ss:$12 sps:$4 sm:$0xff]  }
0x1004   : > { %3577 = vrot.lane.b32.xlu0 %v3478_v14, %s14221_s10  ;;  %v10858_v14 = vld [vmem:[%s14105_s4 + $0x68] ss:$12 sps:$4 sm:$0xff]  }
0x1007   : > { %3543 = vrot.lane.b32.xlu1 %v3463_v60, %s14221_s10 }
0x1008   : > { %3545 = vrot.lane.b32.xlu0 %v3462_v41, %s14221_s10 }
0x100b   : > { %3575 = vrot.lane.b32.xlu1 %v3477_v55, %s14221_s10 }
0x100c   : > { %3593 = vrot.lane.b32.xlu0 %v3486_v54, %s14221_s10 }
0x100f   : > { %3591 = vrot.lane.b32.xlu1 %v3485_v19, %s14221_s10 }
0x1010   : > { %3811 = vperm.xlu0 %9773, %v8913_v63  }
0x1013   : > { %3806 = vperm.xlu1 %9772, %v8912_v12  }
0x1017   : > { %3835 = vperm.xlu1 %9772, %v8916_v29  }
0x101b   : > { %3840 = vperm.xlu1 %9772, %v8917_v27  }
0x103f   : > { %v3590_v31 = vpop.permute.xlu0 %3589 }
0x1040   : > { %9167 = vmatprep.subr.bf16.mxu1 %v3590_v31 }
0x1051   : > { %v3558_v34 = vpop.permute.xlu1 %3557 }
0x1052   : > { %v3556_v33 = vpop.permute.xlu0 %3555 }
0x1053   : > { %v3598_v52 = vsel %vm2273_vm11, %v3556_v33, %v3558_v34 }
0x1055   : > { %v3574_v15 = vpop.permute.xlu1 %3573 }
0x1056   : > { %v3586_v20 = vpop.permute.xlu0 %3585 }
0x1059   : > { %v3588_v53 = vpop.permute.xlu1 %3587 }
0x105a   : > { %v3572_v6 = vpop.permute.xlu0 %3571 }
0x105b   : > { %v3602_v17 = vsel %vm2273_vm11, %v3572_v6, %v3574_v15 }
0x105c   : > { %9168 = vmatpush3.bf16.msra.mxu1 %v3602_v17 }
0x105d   : > { %v3566_v21 = vpop.permute.xlu1 %3565  ;;  %9169 = vmatprep.subr.bf16.mxu1 %v3588_v53 }
0x105e   : > { %v3564_v26 = vpop.permute.xlu0 %3563 }
0x105f   : > { %v3600_v2 = vsel %vm2273_vm11, %v3564_v26, %v3566_v21 }
0x1061   : > { %v3584_v16 = vpop.permute.xlu1 %3583 }
0x1062   : > { %v3570_v30 = vpop.permute.xlu0 %3569 }
0x1065   : > { %v3568_v39 = vpop.permute.xlu1 %3567 }
0x1066   : > { %v3601_v43 = vsel %vm2273_vm11, %v3568_v39, %v3570_v30  ;;  %v3582_v45 = vpop.permute.xlu0 %3581 }
0x1067   : > { %9170 = vmatpush3.bf16.msra.mxu1 %v3601_v43 }
0x1068   : > { %9171 = vmatprep.subr.bf16.mxu1 %v3586_v20 }
0x1069   : > { %v3552_v37 = vpop.permute.xlu1 %3551 }
0x106a   : > { %v3562_v46 = vpop.permute.xlu0 %3561 }
0x106b   : > { %9172 = vmatpush3.bf16.msra.mxu1 %v3600_v2  ;;  %v8915_v2 = vld [vmem:[%s14107_s6 + $0x48] sm:$0xff] }
0x106c   : > { %9173 = vmatprep.subr.bf16.mxu1 %v3584_v16 }
0x106d   : > { %v3560_v47 = vpop.permute.xlu1 %3559 }
0x106e   : > { %v3599_v1 = vsel %vm2273_vm11, %v3560_v47, %v3562_v46  ;;  %v3554_v24 = vpop.permute.xlu0 %3553  ;;  %v12374_v46 = vld [vmem:[#allocation3 + $0x5] ss:$0 sm:$0xff] }
0x106f   : > { %9174 = vmatpush3.bf16.msra.mxu1 %v3599_v1  ;;  %v3597_v36 = vsel %vm2273_vm11, %v3552_v37, %v3554_v24  ;;  %v8911_v37 = vld [vmem:[%s14106_s5 + $0x48] sm:$0xff]  ;;  %v8910_v47 = vld [vmem:[%s14106_s5 + $0x40] sm:$0xff] }
0x1070   : > { %9175 = vmatprep.subr.bf16.mxu1 %v3582_v45  ;;  %v8914_v1 = vld [vmem:[%s14107_s6 + $0x40] sm:$0xff] }
0x1071   : > { %v3580_v50 = vpop.permute.xlu1 %3579  ;;  %v12386_v24 = vld [vmem:[#allocation3 + $0x4] ss:$0 sm:$0xff] }
0x1072   : > { %v3548_v13 = vpop.permute.xlu0 %3547 }
0x1073   : > { %9176 = vmatpush3.bf16.msra.mxu1 %v3598_v52 }
0x1074   : > { %9177 = vmatprep.subr.bf16.mxu1 %v3580_v50 }
0x1075   : > { %v3550_v9 = vpop.permute.xlu1 %3549 }
0x1076   : > { %v3578_v56 = vpop.permute.xlu0 %3577  ;;  %v3596_v60 = vsel %vm2273_vm11, %v3548_v13, %v3550_v9 }
0x1077   : > { %9178 = vmatpush3.bf16.msra.mxu1 %v3597_v36 }
0x1078   : > { %9179 = vmatprep.subr.bf16.mxu1 %v3578_v56 }
0x1079   : > { %v3544_v57 = vpop.permute.xlu1 %3543 }
0x107a   : > { %v3546_v25 = vpop.permute.xlu0 %3545 }
0x107b   : > { %9180 = vmatpush3.bf16.msra.mxu1 %v3596_v60  ;;  %v3595_v7 = vsel %vm2273_vm11, %v3544_v57, %v3546_v25 }
0x107d   : > { %v3576_v61 = vpop.permute.xlu1 %3575 }
0x107e   : > { %9181 = vmatprep.subr.bf16.mxu1 %v3576_v61  ;;  %v3594_v8 = vpop.permute.xlu0 %3593 }
0x107f   : > { %9182 = vmatpush3.bf16.msra.mxu1 %v3595_v7 }
0x1080   : > { %9415 = vmatprep.subr.bf16.mxu1 %v3594_v8 }
0x1081   : > { %v3592_v35 = vpop.permute.xlu1 %3591 }
0x1082   : > { %3660 = vmatmul.mubr.bf16.vlgmr.msra.gmra.mxu1 %v10852_v0 }
0x1083   : > { %9416 = vmatpush3.bf16.msra.mxu1 %v3594_v8  ;;  %3667 = vmatprep.mubr.bf16.mxu1 %v10855_v42 }
0x1084   : > { %9417 = vmatprep.subr.bf16.mxu1 %v3592_v35 }
0x1087   : > { %9418 = vmatpush3.bf16.msra.mxu1 %v3592_v35 }
0x108a   : > { %3668 = vmatmul.mubr.bf16.gmra.mxu1 %v10857_v11 }
0x108b   : > { %9419 = vmatprep.mubr.msk.bf16.mxu1 %vm2300_vm10, %v10858_v14  ;;  %v3812_v13 = vpop.permute.xlu0 %3811 }
0x108e   : > { %v3807_v50 = vpop.permute.xlu1 %3806 }
0x1092   : > { %9420 = vmatmul.mubr.msk.bf16.vlgmr.msra.gmra.mxu1 %vm2300_vm10, %v10859_v23  ;;  %v3836_v52 = vpop.permute.xlu1 %3835 }
0x1096   : > { %v3841_v9 = vpop.permute.xlu1 %3840 }
0x1142   : > { %v9183_v38 = vpop.f32.mrf.mxu1 }
0x1144   : > { %v9184_v62 = vpop.f32.mrf.mxu1 }
0x1145   : > { %v9185_v58 = vadd.f32 %v9184_v62, %v9183_v38 }
0x1146   : > { %v9186_v28 = vpop.f32.mrf.mxu1 }
0x1148   : > { %v9187_v18 = vpop.f32.mrf.mxu1 }
0x1149   : > { %v9188_v6 = vadd.f32 %v9187_v18, %v9186_v28 }
0x114a   : > { %v9189_v49 = vpop.f32.mrf.mxu1 }
0x114c   : > { %v9190_v51 = vpop.f32.mrf.mxu1 }
0x114d   : > { %v9191_v55 = vadd.f32 %v9190_v51, %v9189_v49 }
0x114e   : > { %v9192_v44 = vpop.f32.mrf.mxu1 }
0x1150   : > { %v9193_v41 = vpop.f32.mrf.mxu1 }
0x1151   : > { %v9194_v63 = vadd.f32 %v9193_v41, %v9192_v44 }
0x1152   : > { %v9421_v5 = vpop.f32.mrf.mxu1 }
0x1153   : > { %v12340_v54 = vadd.f32 %v9421_v5, %v9191_v55 }
0x1154   : > { %v3710_v19 = vpop.f32.mrf.mxu1 }
0x1155   : > { %v12342_v12 = vadd.f32 %v9185_v58, %v3710_v19  ;;  %v3731_v29 = vsel %vm1654_vm12, %v12340_v54, 0.0  ;;  %v3739_v27 = vmul.f32 %v12340_v54, %v12340_v54 }
0x1156   : > { %3732 = vadd.xlane.f32.xlu0 %v3731_v29  ;;  %v9422_v31 = vpop.f32.mrf.mxu1 }
0x1157   : > { %v12348_v34 = vadd.f32 %v9422_v31, %v9194_v63  ;;  %v3725_v33 = vsel %vm1654_vm12, %v12342_v12, 0.0  ;;  %v3747_v15 = vsel %vm1654_vm12, %v3739_v27, 0.0  ;;  %v3737_v21 = vmul.f32 %v12342_v12, %v12342_v12 }
0x1158   : > { %3726 = vadd.xlane.f32.xlu1 %v3725_v33  ;;  %v3713_v53 = vpop.f32.mrf.mxu1 }
0x1159   : > { %v3740_v20 = vmul.f32 %v12348_v34, %v12348_v34  ;;  %v3734_v17 = vsel %vm1654_vm12, %v12348_v34, 0.0  ;;  %v12359_v26 = vadd.f32 %v9188_v6, %v3713_v53  ;;  %v3741_v30 = vsel %vm1654_vm12, %v3737_v21, 0.0 }
0x115a   : > { %3748 = vadd.xlane.f32.xlu0 %v3747_v15 }
0x115b   : > { %v3750_v16 = vsel %vm1654_vm12, %v3740_v20, 0.0  ;;  %v3728_v39 = vsel %vm1654_vm12, %v12359_v26, 0.0  ;;  %v3738_v43 = vmul.f32 %v12359_v26, %v12359_v26 }
0x115c   : > { %3735 = vadd.xlane.f32.xlu1 %v3734_v17 }
0x115d   : > { %v3744_v45 = vsel %vm1654_vm12, %v3738_v43, 0.0 }
0x115e   : > { %3751 = vadd.xlane.f32.xlu0 %v3750_v16 }
0x1160   : > { %3742 = vadd.xlane.f32.xlu1 %v3741_v30 }
0x1162   : > { %3729 = vadd.xlane.f32.xlu0 %v3728_v39 }
0x1166   : > { %3745 = vadd.xlane.f32.xlu0 %v3744_v45 }
0x1171   : > { %3801 = vperm.xlu1 %9772, %v8911_v37  }
0x1175   : > { %3830 = vperm.xlu1 %9772, %v8915_v2  }
0x1179   : > { %3899 = vrot.lane.b32.xlu1 %v12374_v46, %s14214_s29 }
0x117c   : > { %3796 = vperm.xlu0 %9773, %v8910_v47  }
0x117d   : > { %3921 = vrot.lane.b32.xlu1 %v12374_v46, %s14215_s20 }
0x1180   : > { %3825 = vperm.xlu0 %9773, %v8914_v1  }
0x1184   : > { %3910 = vrot.lane.b32.xlu0 %v12386_v24, %s14212_s2 }
0x1188   : > { %3928 = vrot.lane.b32.xlu0 %v12386_v24, %s14211_s27 }
0x118c   : > { %3935 = vrot.lane.b32.xlu0 %v12374_v46, %s14213_s3 }
0x11df   : > { %v3733_v36 = vpop.xlane.xlu0 %3732 }
0x11e0   : > { %v3755_v56 = vmul.f32 0.0625, %v3733_v36 }
0x11e1   : > { %v3727_v57 = vpop.xlane.xlu1 %3726 }
0x11e2   : > { %v3763_v25 = vmul.f32 %v3755_v56, %v3755_v56  ;;  %v3753_v8 = vmul.f32 0.0625, %v3727_v57  ;;  %v3775_v20 = vsub.f32 %v12340_v54, %v3755_v56 }
0x11e3   : > { %v3749_v60 = vpop.xlane.xlu0 %3748 }
0x11e4   : > { %v3759_v61 = vmul.f32 0.0625, %v3749_v60  ;;  %v3761_v62 = vmul.f32 %v3753_v8, %v3753_v8  ;;  %v3773_v39 = vsub.f32 %v12342_v12, %v3753_v8 }
0x11e5   : > { %v3736_v7 = vpop.xlane.xlu1 %3735 }
0x11e6   : > { %v3767_v0 = vsub.f32 %v3759_v61, %v3763_v25  ;;  %v3756_v42 = vmul.f32 0.0625, %v3736_v7 }
0x11e7   : > { %v3752_v35 = vpop.xlane.xlu0 %3751 }
0x11e8   : > { %v3771_v11 = vmax.f32 %v3767_v0, 0.0  ;;  %v3764_v14 = vmul.f32 %v3756_v42, %v3756_v42  ;;  %v3760_v23 = vmul.f32 0.0625, %v3752_v35  ;;  %v3776_v21 = vsub.f32 %v12348_v34, %v3756_v42 }
0x11e9   : > { %v3743_v38 = vpop.xlane.xlu1 %3742 }
0x11ea   : > { %v3779_v28 = vadd.f32 1e-05, %v3771_v11  ;;  %v3768_v18 = vsub.f32 %v3760_v23, %v3764_v14  ;;  %v3757_v49 = vmul.f32 0.0625, %v3743_v38 }
0x11eb   : > { %v3730_v51 = vpop.xlane.xlu0 %3729 }
0x11ec   : > { %10949 = vrsqrt.f32 %v3779_v28  ;;  %v3772_v44 = vmax.f32 %v3768_v18, 0.0  ;;  %v3765_v41 = vsub.f32 %v3757_v49, %v3761_v62  ;;  %v3754_v55 = vmul.f32 0.0625, %v3730_v51 }
0x11ed   : > { %v3802_v54 = vpop.permute.xlu1 %3801 }
0x11ee   : > { %v3780_v5 = vadd.f32 1e-05, %v3772_v44  ;;  %v3769_v58 = vmax.f32 %v3765_v41, 0.0  ;;  %v3762_v29 = vmul.f32 %v3754_v55, %v3754_v55 }
0x11ef   : > { %v3746_v19 = vpop.xlane.xlu0 %3745 }
0x11f0   : > { %10951 = vrsqrt.f32 %v3780_v5  ;;  %v3777_v63 = vadd.f32 1e-05, %v3769_v58  ;;  %v3758_v27 = vmul.f32 0.0625, %v3746_v19 }
0x11f1   : > { %v3831_v61 = vpop.permute.xlu1 %3830 }
0x11f2   : > { %10953 = vrsqrt.f32 %v3777_v63  ;;  %v3766_v31 = vsub.f32 %v3758_v27, %v3762_v29 }
0x11f4   : > { %v3770_v33 = vmax.f32 %v3766_v31, 0.0 }
0x11f5   : > { %v3900_v35 = vpop.permute.xlu1 %3899 }
0x11f6   : > { %v3778_v15 = vadd.f32 1e-05, %v3770_v33  ;;  %v3906_v23 = vmul.f32 %v12170_v32, %v3900_v35 }
0x11f7   : > { %v3797_v30 = vpop.permute.xlu0 %3796 }
0x11f8   : > { %10955 = vrsqrt.f32 %v3778_v15 }
0x11f9   : > { %v10950_v53 = vpop.eup %10949 }
0x11fa   : > { %v3787_v6 = vmul.f32 %v10950_v53, %v3775_v20 }
0x11fb   : > { %v3826_v57 = vpop.permute.xlu0 %3825 }
0x11fc   : > { %v3816_v17 = vmul.f32 %v3807_v50, %v3787_v6  ;;  %v3774_v50 = vsub.f32 %v12359_v26, %v3754_v55 }
0x11fd   : > { %v10952_v16 = vpop.eup %10951 }
0x11fe   : > { %v3845_v43 = vadd.f32 %v3836_v52, %v3816_v17  ;;  %v3788_v45 = vmul.f32 %v10952_v16, %v3776_v21  ;;  %v3922_v21 = vpop.permute.xlu1 %3921 }
0x11ff   : > { %v10954_v37 = vpop.eup %10953 }
0x1200   : > { %v3849_v2 = vmax.f32 %v3845_v43, 0.0  ;;  %v3817_v47 = vmul.f32 %v3812_v13, %v3788_v45  ;;  %v3785_v1 = vmul.f32 %v10954_v37, %v3773_v39  ;;  %v3911_v13 = vpop.permute.xlu0 %3910 }
0x1202   : > { %3866 = vst.msk [vmem:[#allocation2 + $0x48] sm:$0xff] %vm1654_vm12, %v3849_v2  ;;  %v3846_v36 = vadd.f32 %v3841_v9, %v3817_v47  ;;  %v3814_v56 = vmul.f32 %v3797_v30, %v3785_v1  ;;  %v3917_v9 = vmul.f32 %v12170_v32, %v3911_v13 }
0x1204   : > { %v3850_v60 = vmax.f32 %v3846_v36, 0.0  ;;  %v3843_v34 = vadd.f32 %v3826_v57, %v3814_v56  ;;  %v3929_v44 = vpop.permute.xlu0 %3928 }
0x1205   : > { %v10956_v25 = vpop.eup %10955 }
0x1206   : > { %3867 = vst.msk [vmem:[#allocation2 + $0x68] sm:$0xff] %vm1654_vm12, %v3850_v60  ;;  %v3786_v12 = vmul.f32 %v10956_v25, %v3774_v50  ;;  %v3847_v52 = vmax.f32 %v3843_v34, 0.0 }
0x1208   : > { %v3815_v7 = vmul.f32 %v3802_v54, %v3786_v12  ;;  %3864 = vst.msk [vmem:[#allocation2 + $0x8] sm:$0xff] %vm1654_vm12, %v3847_v52  ;;  %v3936_v60 = vpop.permute.xlu0 %3935 }
0x1209   : > { %v12401_v8 = vld [vmem:[#allocation2 + $0x48] sm:$0xff] }
0x120a   : > { %v3844_v0 = vadd.f32 %v3831_v61, %v3815_v7  ;;  %4523 = vst.msk [vmem:[#allocation2 + $0x48] sm:$0xff] %vm1875_vm7, %v12170_v32  ;;  %v3918_v26 = vmul.f32 %v3911_v13, %v12401_v8  ;;  %v3907_v38 = vmul.f32 %v3900_v35, %v12401_v8  ;;  %v3933_v63 = vmul.f32 %v3929_v44, %v12401_v8 }
0x120b   : > { %v10044_v53 = vpack.i.bf16 %v12401_v8, %v12170_v32  ;;  %v3926_v45 = vmul.f32 %v3922_v21, %v12401_v8 }
0x120c   : > { %v3848_v42 = vmax.f32 %v3844_v0, 0.0  ;;  %v9994_v14 = vpack.i.bf16 %v3918_v26, %v3917_v9  ;;  %v9999_v18 = vpack.i.bf16 %v3907_v38, %v3906_v23 }
0x120d   : > { %v12407_v11 = vld [vmem:[#allocation2 + $0x68] sm:$0xff] }
0x120e   : > { %3865 = vst.msk [vmem:[#allocation2 + $0x28] sm:$0xff] %vm1654_vm12, %v3848_v42  ;;  %9995 = vrot.lane.b32.xlu1 %v9994_v14, %s14216_s21  ;;  %v3934_v55 = vmul.f32 %v3929_v44, %v12407_v11  ;;  %v10004_v5 = vpack.i.bf16 %v12407_v11, %v12401_v8  ;;  %v3920_v19 = vmul.f32 %v3911_v13, %v12407_v11 }
0x120f   : > { %4524 = vst.msk [vmem:[#allocation2 + $0x68] sm:$0xff] %vm1875_vm7, %v12170_v32  ;;  %v12414_v62 = vld [vmem:[#allocation2 + $0x8] sm:$0xff]  ;;  %v3909_v20 = vmul.f32 %v3900_v35, %v12407_v11  ;;  %v3927_v16 = vmul.f32 %v3922_v21, %v12407_v11  ;;  %v10049_v43 = vpack.i.bf16 %v12407_v11, %v12170_v32  ;;  %v3941_v34 = vmul.f32 %v3936_v60, %v12407_v11 }
0x1210   : > { %4521 = vst.msk [vmem:[#allocation2 + $0x8] sm:$0xff] %vm1875_vm7, %v12170_v32  ;;  %v3914_v28 = vmul.f32 %v3911_v13, %v12414_v62  ;;  %v3903_v51 = vmul.f32 %v3900_v35, %v12414_v62  ;;  %v10034_v29 = vpack.i.bf16 %v3934_v55, %v3933_v63  ;;  %v10019_v31 = vpack.i.bf16 %v3920_v19, %v3917_v9 }
0x1211   : > { %v10029_v17 = vpack.i.bf16 %v3909_v20, %v3906_v23  ;;  %v3931_v37 = vmul.f32 %v3929_v44, %v12414_v62  ;;  %v10059_v2 = vpack.i.bf16 %v3927_v16, %v3926_v45  ;;  %v10069_v54 = vpack.i.bf16 %v12414_v62, %v12170_v32 }
0x1212   : > { %v10009_v49 = vpack.i.bf16 %v3914_v28, %v3917_v9  ;;  %10000 = vrot.lane.b32.xlu1 %v9999_v18, %s14204_s17  ;;  %v10014_v58 = vpack.i.bf16 %v3903_v51, %v3906_v23  ;;  %v3924_v56 = vmul.f32 %v3922_v21, %v12414_v62  ;;  %v3938_v25 = vmul.f32 %v3936_v60, %v12414_v62 }
0x1214   : > { %10010 = vrot.lane.b32.xlu0 %v10009_v49, %s14216_s21 }
0x1215   : > { %v12423_v41 = vld [vmem:[#allocation2 + $0x28] sm:$0xff] }
0x1216   : > { %4522 = vst.msk [vmem:[#allocation2 + $0x28] sm:$0xff] %vm1875_vm7, %v12170_v32  ;;  %10005 = vrot.lane.b32.xlu1 %v10004_v5, %s14217_s0  ;;  %v3916_v27 = vmul.f32 %v3911_v13, %v12423_v41  ;;  %v10024_v15 = vpack.i.bf16 %v12423_v41, %v12414_v62  ;;  %v3905_v6 = vmul.f32 %v3900_v35, %v12423_v41 }
0x1217   : > { %v3932_v39 = vmul.f32 %v3929_v44, %v12423_v41  ;;  %v10074_v1 = vpack.i.bf16 %v12423_v41, %v12170_v32  ;;  %v3925_v36 = vmul.f32 %v3922_v21, %v12423_v41  ;;  %v3939_v50 = vmul.f32 %v3936_v60, %v12423_v41 }
0x1218   : > { %10015 = vrot.lane.b32.xlu0 %v10014_v58, %s14204_s17  ;;  %v10039_v33 = vpack.i.bf16 %v3916_v27, %v3917_v9  ;;  %v10054_v30 = vpack.i.bf16 %v3905_v6, %v3906_v23  ;;  %v3940_v32 = vmul.f32 %v3936_v60, %v12401_v8 }
0x1219   : > { %v10064_v47 = vpack.i.bf16 %v3932_v39, %v3931_v37  ;;  %v10079_v57 = vpack.i.bf16 %v3925_v36, %v3924_v56  ;;  %v10099_v12 = vpack.i.bf16 %v3939_v50, %v3938_v25 }
0x121a   : > { %10035 = vrot.lane.b32.xlu1 %v10034_v29, %s14208_s23  ;;  %v10094_v52 = vpack.i.bf16 %v3941_v34, %v3940_v32 }
0x121c   : > { %10020 = vrot.lane.b32.xlu0 %v10019_v31, %s14216_s21 }
0x121e   : > { %10040 = vrot.lane.b32.xlu1 %v10039_v33, %s14216_s21 }
0x1220   : > { %10025 = vrot.lane.b32.xlu0 %v10024_v15, %s14217_s0 }
0x1222   : > { %10045 = vrot.lane.b32.xlu1 %v10044_v53, %s14209_s22 }
0x1224   : > { %10030 = vrot.lane.b32.xlu0 %v10029_v17, %s14204_s17 }
0x1226   : > { %10055 = vrot.lane.b32.xlu1 %v10054_v30, %s14204_s17 }
0x1228   : > { %10050 = vrot.lane.b32.xlu0 %v10049_v43, %s14209_s22 }
0x122a   : > { %10060 = vrot.lane.b32.xlu1 %v10059_v2, %s14218_s1 }
0x122c   : > { %10065 = vrot.lane.b32.xlu0 %v10064_v47, %s14208_s23 }
0x122e   : > { %10075 = vrot.lane.b32.xlu1 %v10074_v1, %s14209_s22 }
0x1230   : > { %10070 = vrot.lane.b32.xlu0 %v10069_v54, %s14209_s22 }
0x1232   : > { %3882 = vrot.lane.b32.xlu1 %v12386_v24, %s14219_s28 }
0x1234   : > { %10080 = vrot.lane.b32.xlu0 %v10079_v57, %s14218_s1 }
0x1236   : > { %10090 = vrot.lane.b32.xlu1 %v10024_v15, %s14220_s26 }
0x1238   : > { %10085 = vrot.lane.b32.xlu0 %v10004_v5, %s14220_s26 }
0x123a   : > { %10100 = vrot.lane.b32.xlu1 %v10099_v12, %s14210_s25 }
0x123c   : > { %10095 = vrot.lane.b32.xlu0 %v10094_v52, %s14210_s25 }
0x1280   : > { %v9996_v61 = vpop.permute.xlu1 %9995 }
0x1281   : > { %v9998_v20 = vunpack.i.h.bf16 %v9996_v61  ;;  %v9997_v6 = vunpack.i.l.bf16 %v9996_v61 }
0x1283   : > { %v4040_v1 = vsel %vm2054_vm6, %v9997_v6, %v9998_v20 }
0x1284   : > { %v10001_v7 = vpop.permute.xlu1 %10000 }
0x1285   : > { %v10003_v2 = vunpack.i.h.bf16 %v10001_v7  ;;  %v10002_v47 = vunpack.i.l.bf16 %v10001_v7 }
0x1286   : > { %v12476_v13 = vpop.permute.xlu0 %10010 }
0x1287   : > { %v4004_v50 = vsel %vm639_vm9, %v10002_v47, %v10003_v2  ;;  %v10013_v7 = vunpack.i.h.bf16 %v12476_v13 }
0x1288   : > { %v10006_v9 = vpop.permute.xlu1 %10005 }
0x1289   : > { %v10008_v0 = vunpack.i.h.bf16 %v10006_v9  ;;  %v10007_v26 = vunpack.i.l.bf16 %v10006_v9 }
0x128a   : > { %v12478_v42 = vpop.permute.xlu0 %10015 }
0x128b   : > { %v4145_v35 = vpack.c.bf16 %v10008_v0, %v10007_v26  ;;  %v10012_v0 = vunpack.i.l.bf16 %v12476_v13 }
0x128c   : > { %v10036_v14 = vpop.permute.xlu1 %10035 }
0x128d   : > { %4250 = vrot.lane.b32.xlu0 %v4145_v35, %s14221_s10  ;;  %v10038_v31 = vunpack.i.h.bf16 %v10036_v14  ;;  %v10037_v33 = vunpack.i.l.bf16 %v10036_v14 }
0x128e   : > { %v10021_v23 = vpop.permute.xlu0 %10020 }
0x128f   : > { %v10023_v19 = vunpack.i.h.bf16 %v10021_v23  ;;  %v10022_v53 = vunpack.i.l.bf16 %v10021_v23  ;;  %v4143_v39 = vpack.c.bf16 %v10038_v31, %v10037_v33 }
0x1290   : > { %v10041_v38 = vpop.permute.xlu1 %10040 }
0x1291   : > { %v4137_v17 = vpack.c.bf16 %v10023_v19, %v9998_v20  ;;  %v4041_v43 = vsel %vm2054_vm6, %v10022_v53, %v10023_v19  ;;  %v10043_v34 = vunpack.i.h.bf16 %v10041_v38  ;;  %v10042_v25 = vunpack.i.l.bf16 %v10041_v38 }
0x1292   : > { %v10026_v28 = vpop.permute.xlu0 %10025  ;;  %v4136_v56 = vpack.c.bf16 %v4041_v43, %v4040_v1 }
0x1293   : > { %v10028_v21 = vunpack.i.h.bf16 %v10026_v28  ;;  %v10027_v16 = vunpack.i.l.bf16 %v10026_v28  ;;  %v4039_v26 = vsel %vm2054_vm6, %v10042_v25, %v10043_v34  ;;  %v4135_v35 = vpack.c.bf16 %v10043_v34, %v10013_v7 }
0x1294   : > { %v10046_v18 = vpop.permute.xlu1 %10045 }
0x1295   : > { %v10048_v51 = vunpack.i.h.bf16 %v10046_v18  ;;  %v10047_v44 = vunpack.i.l.bf16 %v10046_v18  ;;  %v4144_v36 = vpack.c.bf16 %v10028_v21, %v10027_v16  ;;  %v12511_v21 = vld [vmem:[#allocation2] sm:$0xff] }
0x1296   : > { %v10031_v49 = vpop.permute.xlu0 %10030 }
0x1297   : > { %v3968_v63 = vsel %vm572_vm3, %v10047_v44, %v10048_v51  ;;  %v10033_v45 = vunpack.i.h.bf16 %v10031_v49  ;;  %v10032_v37 = vunpack.i.l.bf16 %v10031_v49 }
0x1298   : > { %v10056_v30 = vpop.permute.xlu1 %10055 }
0x1299   : > { %v4005_v57 = vsel %vm639_vm9, %v10032_v37, %v10033_v45  ;;  %v4133_v32 = vpack.c.bf16 %v10033_v45, %v10003_v2 }
0x129a   : > { %v10051_v55 = vpop.permute.xlu0 %10050  ;;  %v4132_v61 = vpack.c.bf16 %v4005_v57, %v4004_v50  ;;  %v10862_v57 = vld [vmem:[%s14105_s4 + $0x94] ss:$12 sps:$4 sm:$0xff]  }
0x129b   : > { %v10053_v5 = vunpack.i.h.bf16 %v10051_v55  ;;  %v10052_v58 = vunpack.i.l.bf16 %v10051_v55  ;;  %4320 = vmatprep.mubr.bf16.mxu0 %v10862_v57 }
0x129c   : > { %v10061_v60 = vpop.permute.xlu1 %10060 }
0x129d   : > { %v4129_v29 = vpack.c.bf16 %v10053_v5, %v10048_v51  ;;  %v3969_v27 = vsel %vm572_vm3, %v10052_v58, %v10053_v5  ;;  %v10063_v28 = vunpack.i.h.bf16 %v10061_v60  ;;  %v10062_v38 = vunpack.i.l.bf16 %v10061_v60 }
0x129e   : > { %v4128_v15 = vpack.c.bf16 %v3969_v27, %v3968_v63  ;;  %v10066_v54 = vpop.permute.xlu0 %10065  ;;  %v4038_v51 = vsel %vm2054_vm6, %v10012_v0, %v10013_v7  ;;  %v10058_v5 = vunpack.i.h.bf16 %v10056_v30  ;;  %v10057_v58 = vunpack.i.l.bf16 %v10056_v30 }
0x129f   : > { %4218 = vrot.lane.b32.xlu1 %v4129_v29, %s14221_s10  ;;  %v10068_v12 = vunpack.i.h.bf16 %v10066_v54  ;;  %v10067_v52 = vunpack.i.l.bf16 %v10066_v54  ;;  %v4134_v13 = vpack.c.bf16 %v4039_v26, %v4038_v51  ;;  %v4141_v19 = vpack.c.bf16 %v10063_v28, %v10062_v38 }
0x12a0   : > { %4216 = vrot.lane.b32.xlu0 %v4128_v15, %s14221_s10  ;;  %v10076_v23 = vpop.permute.xlu1 %10075  ;;  %v10018_v29 = vunpack.i.h.bf16 %v12478_v42  ;;  %v10017_v27 = vunpack.i.l.bf16 %v12478_v42  ;;  %v4003_v20 = vsel %vm639_vm9, %v10057_v58, %v10058_v5 }
0x12a1   : > { %v4142_v14 = vpack.c.bf16 %v10068_v12, %v10067_v52  ;;  %v10078_v44 = vunpack.i.h.bf16 %v10076_v23  ;;  %v10077_v55 = vunpack.i.l.bf16 %v10076_v23 }
0x12a2   : > { %v10071_v9 = vpop.permute.xlu0 %10070  ;;  %v4131_v53 = vpack.c.bf16 %v10058_v5, %v10018_v29 }
0x12a3   : > { %4234 = vrot.lane.b32.xlu1 %v4137_v17, %s14221_s10  ;;  %v10073_v18 = vunpack.i.h.bf16 %v10071_v9  ;;  %v10072_v49 = vunpack.i.l.bf16 %v10071_v9  ;;  %v3967_v31 = vsel %vm572_vm3, %v10077_v55, %v10078_v44  ;;  %v4002_v17 = vsel %vm639_vm9, %v10017_v27, %v10018_v29 }
0x12a4   : > { %4246 = vrot.lane.b32.xlu0 %v4143_v39, %s14221_s10  ;;  %v3883_v6 = vpop.permute.xlu1 %3882  ;;  %v4130_v39 = vpack.c.bf16 %v4003_v20, %v4002_v17 }
0x12a5   : > { %v3966_v63 = vsel %vm572_vm3, %v10072_v49, %v10073_v18  ;;  %v3889_v42 = vmul.f32 %v12511_v21, %v3883_v6  ;;  %v4127_v43 = vpack.c.bf16 %v10078_v44, %v10073_v18  ;;  %v3890_v47 = vmul.f32 %v3883_v6, %v12401_v8 }
0x12a6   : > { %v10081_v33 = vpop.permute.xlu0 %10080  ;;  %v4126_v15 = vpack.c.bf16 %v3967_v31, %v3966_v63  ;;  %v3892_v1 = vmul.f32 %v3883_v6, %v12407_v11  ;;  %v3886_v34 = vmul.f32 %v3883_v6, %v12414_v62  ;;  %v3888_v25 = vmul.f32 %v3883_v6, %v12423_v41  ;;  %v10863_v11 = vld [vmem:[%s14105_s4 + $0x98] ss:$12 sps:$4 sm:$0xff]  }
0x12a7   : > { %4248 = vrot.lane.b32.xlu1 %v4144_v36, %s14221_s10  ;;  %v10083_v16 = vunpack.i.h.bf16 %v10081_v33  ;;  %v10082_v30 = vunpack.i.l.bf16 %v10081_v33  ;;  %v4124_v37 = vpack.c.bf16 %v3889_v42, %v3889_v42  ;;  %9427 = vmatprep.mubr.msk.bf16.mxu1 %vm2300_vm10, %v10863_v11 }
0x12a8   : > { %4232 = vrot.lane.b32.xlu0 %v4136_v56, %s14221_s10  ;;  %v10091_v56 = vpop.permute.xlu1 %10090  ;;  %v4125_v60 = vpack.c.bf16 %v3892_v1, %v3890_v47  ;;  %v4123_v9 = vpack.c.bf16 %v3888_v25, %v3886_v34 }
0x12a9   : > { %v4140_v2 = vpack.c.bf16 %v10083_v16, %v10082_v30  ;;  %v10092_v12 = vunpack.i.l.bf16 %v10091_v56 }
0x12aa   : > { %v10086_v45 = vpop.permute.xlu0 %10085 }
0x12ab   : > { %4226 = vrot.lane.b32.xlu1 %v4133_v32, %s14221_s10  ;;  %v10088_v36 = vunpack.i.h.bf16 %v10086_v45  ;;  %v10087_v54 = vunpack.i.l.bf16 %v10086_v45  ;;  %v10093_v32 = vunpack.i.h.bf16 %v10091_v56  ;;  %v10865_v56 = vld [vmem:[%s14105_s4 + $0xac] ss:$12 sps:$4 sm:$0xff]  }
0x12ac   : > { %4224 = vrot.lane.b32.xlu0 %v4132_v61, %s14221_s10  ;;  %v10101_v52 = vpop.permute.xlu1 %10100 }
0x12ad   : > { %v4139_v50 = vpack.c.bf16 %v10088_v36, %v10087_v54  ;;  %v4138_v62 = vpack.c.bf16 %v10093_v32, %v10092_v12  ;;  %v10103_v41 = vunpack.i.h.bf16 %v10101_v52  ;;  %v10102_v0 = vunpack.i.l.bf16 %v10101_v52  ;;  %v10860_v54 = vld [vmem:[%s14105_s4 + $0x90] ss:$12 sps:$4 sm:$0xff]  }
0x12ae   : > { %v10096_v8 = vpop.permute.xlu0 %10095 }
0x12af   : > { %4244 = vrot.lane.b32.xlu1 %v4142_v14, %s14221_s10  ;;  %v10098_v61 = vunpack.i.h.bf16 %v10096_v8  ;;  %v10097_v7 = vunpack.i.l.bf16 %v10096_v8  ;;  %v8938_v14 = vld [vmem:[%s14106_s5 + $0x70] sm:$0xff] }
0x12b0   : > { %4230 = vrot.lane.b32.xlu0 %v4135_v35, %s14221_s10  ;;  %v4146_v35 = vpack.c.bf16 %v10103_v41, %v10102_v0 }
0x12b1   : > { %v4147_v26 = vpack.c.bf16 %v10098_v61, %v10097_v7 }
0x12b3   : > { %4228 = vrot.lane.b32.xlu1 %v4134_v13, %s14221_s10 }
0x12b4   : > { %4242 = vrot.lane.b32.xlu0 %v4141_v19, %s14221_s10 }
0x12b7   : > { %4212 = vrot.lane.b32.xlu1 %v4126_v15, %s14221_s10 }
0x12b8   : > { %4222 = vrot.lane.b32.xlu0 %v4131_v53, %s14221_s10 }
0x12bb   : > { %4220 = vrot.lane.b32.xlu1 %v4130_v39, %s14221_s10 }
0x12bc   : > { %4214 = vrot.lane.b32.xlu0 %v4127_v43, %s14221_s10 }
0x12bf   : > { %4240 = vrot.lane.b32.xlu1 %v4140_v2, %s14221_s10 }
0x12c0   : > { %4208 = vrot.lane.b32.xlu0 %v4124_v37, %s14221_s10 }
0x12c3   : > { %4210 = vrot.lane.b32.xlu1 %v4125_v60, %s14221_s10  ;;  %v10864_v60 = vld [vmem:[%s14105_s4 + $0xb0] ss:$12 sps:$4 sm:$0xff]  }
0x12c4   : > { %4238 = vrot.lane.b32.xlu0 %v4139_v50, %s14221_s10  ;;  %v10867_v50 = vld [vmem:[%s14105_s4 + $0xa8] ss:$12 sps:$4 sm:$0xff]  }
0x12c7   : > { %4204 = vrot.lane.b32.xlu1 %v4124_v37, %s14221_s10 }
0x12c8   : > { %4206 = vrot.lane.b32.xlu0 %v4123_v9, %s14221_s10 }
0x12cb   : > { %4236 = vrot.lane.b32.xlu1 %v4138_v62, %s14221_s10 }
0x12cc   : > { %4254 = vrot.lane.b32.xlu0 %v4147_v26, %s14221_s10 }
0x12cf   : > { %4252 = vrot.lane.b32.xlu1 %v4146_v35, %s14221_s10 }
0x12d3   : > { %4467 = vperm.xlu1 %9772, %v8938_v14  }
0x12ff   : > { %v4251_v23 = vpop.permute.xlu0 %4250 }
0x1300   : > { %9199 = vmatprep.subr.bf16.mxu0 %v4251_v23 }
0x1311   : > { %v4219_v28 = vpop.permute.xlu1 %4218 }
0x1312   : > { %v4217_v38 = vpop.permute.xlu0 %4216 }
0x1313   : > { %v4259_v42 = vsel %vm2273_vm11, %v4217_v38, %v4219_v28 }
0x1315   : > { %v4235_v18 = vpop.permute.xlu1 %4234 }
0x1316   : > { %v4247_v49 = vpop.permute.xlu0 %4246 }
0x1319   : > { %v4249_v51 = vpop.permute.xlu1 %4248 }
0x131a   : > { %v4233_v44 = vpop.permute.xlu0 %4232 }
0x131b   : > { %v4263_v55 = vsel %vm2273_vm11, %v4233_v44, %v4235_v18 }
0x131c   : > { %9200 = vmatpush3.bf16.msra.mxu0 %v4263_v55 }
0x131d   : > { %v4227_v13 = vpop.permute.xlu1 %4226  ;;  %9201 = vmatprep.subr.bf16.mxu0 %v4249_v51 }
0x131e   : > { %v4225_v5 = vpop.permute.xlu0 %4224 }
0x131f   : > { %v4261_v33 = vsel %vm2273_vm11, %v4225_v5, %v4227_v13 }
0x1321   : > { %v4245_v58 = vpop.permute.xlu1 %4244 }
0x1322   : > { %v4231_v19 = vpop.permute.xlu0 %4230 }
0x1325   : > { %v4229_v63 = vpop.permute.xlu1 %4228 }
0x1326   : > { %v4262_v29 = vsel %vm2273_vm11, %v4229_v63, %v4231_v19  ;;  %v4243_v27 = vpop.permute.xlu0 %4242 }
0x1327   : > { %9202 = vmatpush3.bf16.msra.mxu0 %v4262_v29 }
0x1328   : > { %9203 = vmatprep.subr.bf16.mxu0 %v4247_v49 }
0x1329   : > { %v4213_v31 = vpop.permute.xlu1 %4212 }
0x132a   : > { %v4223_v15 = vpop.permute.xlu0 %4222 }
0x132b   : > { %9204 = vmatpush3.bf16.msra.mxu0 %v4261_v33  ;;  %v8942_v33 = vld [vmem:[%s14107_s6 + $0x70] sm:$0xff] }
0x132c   : > { %9205 = vmatprep.subr.bf16.mxu0 %v4245_v58 }
0x132d   : > { %v4221_v20 = vpop.permute.xlu1 %4220 }
0x132e   : > { %v4260_v53 = vsel %vm2273_vm11, %v4221_v20, %v4223_v15  ;;  %v4215_v6 = vpop.permute.xlu0 %4214  ;;  %v8943_v15 = vld [vmem:[%s14107_s6 + $0x78] sm:$0xff]  ;;  %v8937_v20 = vld [vmem:[%s14106_s5 + $0x68] sm:$0xff] }
0x132f   : > { %9206 = vmatpush3.bf16.msra.mxu0 %v4260_v53  ;;  %v4258_v39 = vsel %vm2273_vm11, %v4213_v31, %v4215_v6  ;;  %v8941_v53 = vld [vmem:[%s14107_s6 + $0x68] sm:$0xff]  ;;  %v8939_v6 = vld [vmem:[%s14106_s5 + $0x78] sm:$0xff] }
0x1330   : > { %9207 = vmatprep.subr.bf16.mxu0 %v4243_v27 }
0x1331   : > { %v4241_v17 = vpop.permute.xlu1 %4240 }
0x1332   : > { %v4209_v16 = vpop.permute.xlu0 %4208 }
0x1333   : > { %9208 = vmatpush3.bf16.msra.mxu0 %v4259_v42  ;;  %v8940_v42 = vld [vmem:[%s14107_s6 + $0x60] sm:$0xff] }
0x1334   : > { %9209 = vmatprep.subr.bf16.mxu0 %v4241_v17  ;;  %v8936_v17 = vld [vmem:[%s14106_s5 + $0x60] sm:$0xff] }
0x1335   : > { %v4211_v30 = vpop.permute.xlu1 %4210 }
0x1336   : > { %v4239_v43 = vpop.permute.xlu0 %4238  ;;  %v4257_v37 = vsel %vm2273_vm11, %v4209_v16, %v4211_v30 }
0x1337   : > { %9210 = vmatpush3.bf16.msra.mxu0 %v4258_v39 }
0x1338   : > { %9211 = vmatprep.subr.bf16.mxu0 %v4239_v43 }
0x1339   : > { %v4205_v45 = vpop.permute.xlu1 %4204 }
0x133a   : > { %v4207_v2 = vpop.permute.xlu0 %4206 }
0x133b   : > { %9212 = vmatpush3.bf16.msra.mxu0 %v4257_v37  ;;  %v4256_v1 = vsel %vm2273_vm11, %v4205_v45, %v4207_v2 }
0x133d   : > { %v4237_v47 = vpop.permute.xlu1 %4236 }
0x133e   : > { %v4255_v36 = vpop.permute.xlu0 %4254  ;;  %9213 = vmatprep.subr.bf16.mxu0 %v4237_v47 }
0x133f   : > { %9214 = vmatpush3.bf16.msra.mxu0 %v4256_v1  ;;  %9423 = vmatprep.subr.bf16.mxu1 %v4255_v36 }
0x1340   : > { %9424 = vmatpush3.bf16.msra.mxu1 %v4255_v36 }
0x1341   : > { %v4253_v57 = vpop.permute.xlu1 %4252 }
0x1342   : > { %4321 = vmatmul.mubr.bf16.vlgmr.msra.gmra.mxu0 %v10860_v54  ;;  %9425 = vmatprep.subr.bf16.mxu1 %v4253_v57 }
0x1343   : > { %4328 = vmatprep.mubr.bf16.mxu0 %v10865_v56 }
0x1344   : > { %9426 = vmatpush3.bf16.msra.mxu1 %v4253_v57 }
0x1347   : > { %9428 = vmatmul.mubr.msk.bf16.vlgmr.msra.gmra.mxu1 %vm2300_vm10, %v10864_v60 }
0x134a   : > { %4329 = vmatmul.mubr.bf16.gmra.mxu0 %v10867_v50 }
0x134e   : > { %v4468_v16 = vpop.permute.xlu1 %4467 }
0x1402   : > { %v9215_v34 = vpop.f32.mrf.mxu0 }
0x1404   : > { %v9216_v25 = vpop.f32.mrf.mxu0 }
0x1405   : > { %v9217_v32 = vadd.f32 %v9216_v25, %v9215_v34 }
0x1406   : > { %v9218_v8 = vpop.f32.mrf.mxu0 }
0x1407   : > { %v9429_v11 = vpop.f32.mrf.mxu1 }
0x1408   : > { %v9219_v12 = vpop.f32.mrf.mxu0 }
0x1409   : > { %v4371_v52 = vpop.f32.mrf.mxu1  ;;  %v9220_v62 = vadd.f32 %v9219_v12, %v9218_v8 }
0x140a   : > { %v12560_v61 = vadd.f32 %v9217_v32, %v4371_v52  ;;  %v9221_v7 = vpop.f32.mrf.mxu0 }
0x140b   : > { %v9430_v9 = vpop.f32.mrf.mxu1 }
0x140c   : > { %v9222_v41 = vpop.f32.mrf.mxu0  ;;  %v4386_v0 = vsel %vm1654_vm12, %v12560_v61, 0.0  ;;  %v4398_v26 = vmul.f32 %v12560_v61, %v12560_v61 }
0x140d   : > { %v4374_v35 = vpop.f32.mrf.mxu1  ;;  %4387 = vadd.xlane.f32.xlu1 %v4386_v0  ;;  %v9223_v28 = vadd.f32 %v9222_v41, %v9221_v7 }
0x140e   : > { %v12566_v14 = vadd.f32 %v9220_v62, %v4374_v35  ;;  %v9224_v23 = vpop.f32.mrf.mxu0  ;;  %v4402_v49 = vsel %vm1654_vm12, %v4398_v26, 0.0 }
0x140f   : > { %v12575_v13 = vadd.f32 %v9429_v11, %v9223_v28 }
0x1410   : > { %v9225_v38 = vpop.f32.mrf.mxu0  ;;  %v4389_v18 = vsel %vm1654_vm12, %v12566_v14, 0.0  ;;  %v4399_v51 = vmul.f32 %v12566_v14, %v12566_v14 }
0x1411   : > { %v9226_v44 = vadd.f32 %v9225_v38, %v9224_v23  ;;  %4390 = vadd.xlane.f32.xlu0 %v4389_v18  ;;  %4403 = vadd.xlane.f32.xlu1 %v4402_v49  ;;  %v4392_v19 = vsel %vm1654_vm12, %v12575_v13, 0.0  ;;  %v4400_v63 = vmul.f32 %v12575_v13, %v12575_v13 }
0x1412   : > { %v4405_v5 = vsel %vm1654_vm12, %v4399_v51, 0.0 }
0x1413   : > { %v12573_v55 = vadd.f32 %v9430_v9, %v9226_v44  ;;  %v4408_v29 = vsel %vm1654_vm12, %v4400_v63, 0.0 }
0x1415   : > { %4406 = vadd.xlane.f32.xlu0 %v4405_v5  ;;  %v4395_v58 = vsel %vm1654_vm12, %v12573_v55, 0.0  ;;  %v4401_v27 = vmul.f32 %v12573_v55, %v12573_v55 }
0x1416   : > { %4396 = vadd.xlane.f32.xlu1 %v4395_v58 }
0x1417   : > { %v4411_v31 = vsel %vm1654_vm12, %v4401_v27, 0.0 }
0x1419   : > { %4393 = vadd.xlane.f32.xlu0 %v4392_v19 }
0x141d   : > { %4409 = vadd.xlane.f32.xlu0 %v4408_v29 }
0x1421   : > { %4412 = vadd.xlane.f32.xlu0 %v4411_v31 }
0x1427   : > { %4496 = vperm.xlu1 %9772, %v8942_v33  }
0x142b   : > { %4501 = vperm.xlu1 %9772, %v8943_v15  }
0x142f   : > { %4462 = vperm.xlu1 %9772, %v8937_v20  }
0x1433   : > { %4491 = vperm.xlu1 %9772, %v8941_v53  }
0x1437   : > { %4472 = vperm.xlu0 %9773, %v8939_v6   ;;  %4560 = vrot.lane.b32.xlu1 %v12374_v46, %s14214_s29 }
0x143b   : > { %4457 = vperm.xlu0 %9773, %v8936_v17   ;;  %4582 = vrot.lane.b32.xlu1 %v12374_v46, %s14215_s20 }
0x143f   : > { %4486 = vperm.xlu0 %9773, %v8940_v42  }
0x1443   : > { %4571 = vrot.lane.b32.xlu0 %v12386_v24, %s14212_s2 }
0x1447   : > { %4589 = vrot.lane.b32.xlu0 %v12386_v24, %s14211_s27 }
0x144b   : > { %4596 = vrot.lane.b32.xlu0 %v12374_v46, %s14213_s3 }
0x1496   : > { %v4388_v30 = vpop.xlane.xlu1 %4387 }
0x1497   : > { %v4414_v39 = vmul.f32 0.0625, %v4388_v30 }
0x1499   : > { %v4422_v37 = vmul.f32 %v4414_v39, %v4414_v39  ;;  %v4434_v19 = vsub.f32 %v12560_v61, %v4414_v39 }
0x149a   : > { %v4391_v43 = vpop.xlane.xlu0 %4390  ;;  %v4404_v45 = vpop.xlane.xlu1 %4403 }
0x149b   : > { %v4415_v2 = vmul.f32 0.0625, %v4391_v43  ;;  %v4418_v47 = vmul.f32 0.0625, %v4404_v45 }
0x149d   : > { %v4426_v1 = vsub.f32 %v4418_v47, %v4422_v37  ;;  %v4423_v54 = vmul.f32 %v4415_v2, %v4415_v2  ;;  %v4435_v5 = vsub.f32 %v12566_v14, %v4415_v2 }
0x149e   : > { %v4407_v36 = vpop.xlane.xlu0 %4406 }
0x149f   : > { %v4430_v56 = vmax.f32 %v4426_v1, 0.0  ;;  %v4419_v57 = vmul.f32 0.0625, %v4407_v36  ;;  %v4397_v60 = vpop.xlane.xlu1 %4396 }
0x14a0   : > { %v4417_v12 = vmul.f32 0.0625, %v4397_v60 }
0x14a1   : > { %v4427_v50 = vsub.f32 %v4419_v57, %v4423_v54  ;;  %v4438_v34 = vadd.f32 1e-05, %v4430_v56 }
0x14a2   : > { %v4394_v24 = vpop.xlane.xlu0 %4393  ;;  %v4425_v41 = vmul.f32 %v4417_v12, %v4417_v12  ;;  %v4437_v39 = vsub.f32 %v12573_v55, %v4417_v12 }
0x14a3   : > { %v4431_v25 = vmax.f32 %v4427_v50, 0.0  ;;  %v4416_v8 = vmul.f32 0.0625, %v4394_v24  ;;  %10957 = vrsqrt.f32 %v4438_v34  ;;  %v4497_v11 = vpop.permute.xlu1 %4496 }
0x14a5   : > { %v4439_v46 = vadd.f32 1e-05, %v4431_v25  ;;  %v4424_v52 = vmul.f32 %v4416_v8, %v4416_v8  ;;  %v4436_v6 = vsub.f32 %v12575_v13, %v4416_v8 }
0x14a6   : > { %v4410_v32 = vpop.xlane.xlu0 %4409 }
0x14a7   : > { %10959 = vrsqrt.f32 %v4439_v46  ;;  %v4420_v7 = vmul.f32 0.0625, %v4410_v32  ;;  %v4502_v35 = vpop.permute.xlu1 %4501 }
0x14a9   : > { %v4428_v9 = vsub.f32 %v4420_v7, %v4424_v52 }
0x14aa   : > { %v4413_v62 = vpop.xlane.xlu0 %4412 }
0x14ab   : > { %v4432_v0 = vmax.f32 %v4428_v9, 0.0  ;;  %v4421_v26 = vmul.f32 0.0625, %v4413_v62  ;;  %v4463_v49 = vpop.permute.xlu1 %4462 }
0x14ad   : > { %v4440_v23 = vadd.f32 1e-05, %v4432_v0  ;;  %v4429_v28 = vsub.f32 %v4421_v26, %v4425_v41 }
0x14af   : > { %10961 = vrsqrt.f32 %v4440_v23  ;;  %v4433_v38 = vmax.f32 %v4429_v28, 0.0  ;;  %v4492_v33 = vpop.permute.xlu1 %4491 }
0x14b0   : > { %v10958_v44 = vpop.eup %10957 }
0x14b1   : > { %v4441_v18 = vadd.f32 1e-05, %v4433_v38  ;;  %v4446_v31 = vmul.f32 %v10958_v44, %v4434_v19 }
0x14b2   : > { %v4473_v51 = vpop.permute.xlu0 %4472 }
0x14b3   : > { %10963 = vrsqrt.f32 %v4441_v18  ;;  %v4561_v50 = vpop.permute.xlu1 %4560 }
0x14b4   : > { %v10960_v58 = vpop.eup %10959 }
0x14b5   : > { %v4447_v63 = vmul.f32 %v10960_v58, %v4435_v5 }
0x14b6   : > { %v4458_v29 = vpop.permute.xlu0 %4457 }
0x14b7   : > { %v4476_v27 = vmul.f32 %v4463_v49, %v4447_v63  ;;  %v4475_v20 = vmul.f32 %v4458_v29, %v4446_v31  ;;  %v4583_v44 = vpop.permute.xlu1 %4582 }
0x14b9   : > { %v4505_v15 = vadd.f32 %v4492_v33, %v4476_v27 }
0x14ba   : > { %v4487_v53 = vpop.permute.xlu0 %4486 }
0x14bb   : > { %v12623_v17 = vadd.f32 %v4505_v15, %v12178_v10  ;;  %v4504_v42 = vadd.f32 %v4487_v53, %v4475_v20 }
0x14bc   : > { %v10962_v30 = vpop.eup %10961 }
0x14bd   : > { %v4448_v14 = vmul.f32 %v10962_v30, %v4436_v6  ;;  %4526 = vst.msk [vmem:[#allocation2 + $0x28] sm:$0xff] %vm1654_vm12, %v12623_v17  ;;  %v12628_v61 = vadd.f32 %v4504_v42, %v12164_v59  ;;  %v11010_v30 = vld [vmem:[#allocation3 + $0x4] ss:$0 sm:$0xff] }
0x14be   : > { %v4572_v47 = vpop.permute.xlu0 %4571 }
0x14bf   : > { %v4477_v43 = vmul.f32 %v4468_v16, %v4448_v14  ;;  %4525 = vst.msk [vmem:[#allocation2 + $0x8] sm:$0xff] %vm1654_vm12, %v12628_v61  ;;  %v4576_v36 = vmul.f32 %v12511_v21, %v4572_v47 }
0x14c0   : > { %v10964_v45 = vpop.eup %10963 }
0x14c1   : > { %v4506_v13 = vadd.f32 %v4497_v11, %v4477_v43  ;;  %v4449_v37 = vmul.f32 %v10964_v45, %v4437_v39  ;;  %v4567_v11 = vmul.f32 %v12511_v21, %v4561_v50 }
0x14c2   : > { %v4590_v0 = vpop.permute.xlu0 %4589 }
0x14c3   : > { %v12634_v10 = vadd.f32 %v4506_v13, %v12151_v22  ;;  %v4478_v2 = vmul.f32 %v4473_v51, %v4449_v37 }
0x14c4   : > { %v12636_v1 = vld [vmem:[#allocation2 + $0x28] sm:$0xff] }
0x14c5   : > { %4527 = vst.msk [vmem:[#allocation2 + $0x48] sm:$0xff] %vm1654_vm12, %v12634_v10  ;;  %v4507_v59 = vadd.f32 %v4502_v35, %v4478_v2  ;;  %v4577_v55 = vmul.f32 %v4572_v47, %v12636_v1  ;;  %v4566_v62 = vmul.f32 %v4561_v50, %v12636_v1  ;;  %v4593_v38 = vmul.f32 %v4590_v0, %v12636_v1 }
0x14c6   : > { %5183 = vst.msk [vmem:[#allocation2 + $0x28] sm:$0xff] %vm1875_vm7, %v12511_v21  ;;  %v12644_v16 = vld [vmem:[#allocation2 + $0x8] sm:$0xff]  ;;  %v4586_v33 = vmul.f32 %v4583_v44, %v12636_v1  ;;  %v10184_v15 = vpack.i.bf16 %v12636_v1, %v12511_v21  ;;  %v4597_v53 = vpop.permute.xlu0 %4596 }
0x14c7   : > { %v12647_v22 = vadd.f32 %v4507_v59, %v12157_v40  ;;  %5182 = vst.msk [vmem:[#allocation2 + $0x8] sm:$0xff] %vm1875_vm7, %v12511_v21  ;;  %v10114_v54 = vpack.i.bf16 %v4577_v55, %v4576_v36  ;;  %v4575_v56 = vmul.f32 %v4572_v47, %v12644_v16  ;;  %v10109_v34 = vpack.i.bf16 %v12636_v1, %v12644_v16 }
0x14c8   : > { %v4564_v52 = vmul.f32 %v4561_v50, %v12644_v16  ;;  %v4592_v26 = vmul.f32 %v4590_v0, %v12644_v16  ;;  %v10144_v23 = vpack.i.bf16 %v4566_v62, %v4567_v11  ;;  %v4585_v29 = vmul.f32 %v4583_v44, %v12644_v16 }
0x14c9   : > { %4528 = vst.msk [vmem:[#allocation2 + $0x68] sm:$0xff] %vm1654_vm12, %v12647_v22  ;;  %10115 = vrot.lane.b32.xlu1 %v10114_v54, %s14216_s21  ;;  %v10104_v57 = vpack.i.bf16 %v4575_v56, %v4576_v36  ;;  %v10174_v27 = vpack.i.bf16 %v12644_v16, %v12511_v21  ;;  %v4599_v14 = vmul.f32 %v4597_v53, %v12644_v16 }
0x14ca   : > { %v10139_v9 = vpack.i.bf16 %v4564_v52, %v4567_v11  ;;  %v10154_v51 = vpack.i.bf16 %v4593_v38, %v4592_v26  ;;  %v10189_v20 = vpack.i.bf16 %v4586_v33, %v4585_v29  ;;  %v4600_v39 = vmul.f32 %v4597_v53, %v12636_v1 }
0x14cb   : > { %10105 = vrot.lane.b32.xlu0 %v10104_v57, %s14216_s21 }
0x14cc   : > { %v12655_v60 = vld [vmem:[#allocation2 + $0x48] sm:$0xff]  ;;  %v10209_v45 = vpack.i.bf16 %v4600_v39, %v4599_v14 }
0x14cd   : > { %5184 = vst.msk [vmem:[#allocation2 + $0x48] sm:$0xff] %vm1875_vm7, %v12511_v21  ;;  %v4579_v40 = vmul.f32 %v4572_v47, %v12655_v60  ;;  %v4568_v25 = vmul.f32 %v4561_v50, %v12655_v60  ;;  %v4594_v18 = vmul.f32 %v4590_v0, %v12655_v60  ;;  %v10164_v58 = vpack.i.bf16 %v12655_v60, %v12511_v21 }
0x14ce   : > { %v4587_v63 = vmul.f32 %v4583_v44, %v12655_v60  ;;  %v4601_v42 = vmul.f32 %v4597_v53, %v12655_v60 }
0x14cf   : > { %v10119_v24 = vpack.i.bf16 %v4579_v40, %v4576_v36  ;;  %10110 = vrot.lane.b32.xlu0 %v10109_v34, %s14217_s0  ;;  %v10124_v12 = vpack.i.bf16 %v4568_v25, %v4567_v11 }
0x14d0   : > { %v12664_v8 = vld [vmem:[#allocation2 + $0x68] sm:$0xff] }
0x14d1   : > { %5185 = vst.msk [vmem:[#allocation2 + $0x68] sm:$0xff] %vm1875_vm7, %v12511_v21  ;;  %10120 = vrot.lane.b32.xlu1 %v10119_v24, %s14216_s21  ;;  %v4581_v46 = vmul.f32 %v4572_v47, %v12664_v8  ;;  %v10129_v7 = vpack.i.bf16 %v12664_v8, %v12655_v60  ;;  %v4570_v41 = vmul.f32 %v4561_v50, %v12664_v8 }
0x14d2   : > { %v4595_v35 = vmul.f32 %v4590_v0, %v12664_v8  ;;  %v4588_v5 = vmul.f32 %v4583_v44, %v12664_v8  ;;  %v10169_v19 = vpack.i.bf16 %v12664_v8, %v12511_v21  ;;  %v4602_v6 = vmul.f32 %v4597_v53, %v12664_v8 }
0x14d3   : > { %v10134_v32 = vpack.i.bf16 %v4581_v46, %v4576_v36  ;;  %v10149_v28 = vpack.i.bf16 %v4570_v41, %v4567_v11 }
0x14d4   : > { %v10159_v49 = vpack.i.bf16 %v4595_v35, %v4594_v18  ;;  %v10179_v31 = vpack.i.bf16 %v4588_v5, %v4587_v63  ;;  %v10204_v43 = vpack.i.bf16 %v4602_v6, %v4601_v42 }
0x14d5   : > { %10135 = vrot.lane.b32.xlu0 %v10134_v32, %s14216_s21  ;;  %10125 = vrot.lane.b32.xlu1 %v10124_v12, %s14204_s17 }
0x14d9   : > { %10130 = vrot.lane.b32.xlu1 %v10129_v7, %s14217_s0  ;;  %10140 = vrot.lane.b32.xlu0 %v10139_v9, %s14204_s17 }
0x14dd   : > { %10145 = vrot.lane.b32.xlu1 %v10144_v23, %s14204_s17  ;;  %10150 = vrot.lane.b32.xlu0 %v10149_v28, %s14204_s17 }
0x14e1   : > { %10160 = vrot.lane.b32.xlu1 %v10159_v49, %s14208_s23  ;;  %10155 = vrot.lane.b32.xlu0 %v10154_v51, %s14208_s23 }
0x14e5   : > { %10165 = vrot.lane.b32.xlu1 %v10164_v58, %s14209_s22  ;;  %10170 = vrot.lane.b32.xlu0 %v10169_v19, %s14209_s22 }
0x14e9   : > { %10175 = vrot.lane.b32.xlu0 %v10174_v27, %s14209_s22  ;;  %10180 = vrot.lane.b32.xlu1 %v10179_v31, %s14218_s1 }
0x14ed   : > { %10185 = vrot.lane.b32.xlu1 %v10184_v15, %s14209_s22  ;;  %10190 = vrot.lane.b32.xlu0 %v10189_v20, %s14218_s1 }
0x14f1   : > { %4543 = vrot.lane.b32.xlu1 %v11010_v30, %s14219_s28  ;;  %10195 = vrot.lane.b32.xlu0 %v10129_v7, %s14220_s26 }
0x14f5   : > { %10200 = vrot.lane.b32.xlu1 %v10109_v34, %s14220_s26  ;;  %10205 = vrot.lane.b32.xlu0 %v10204_v43, %s14210_s25 }
0x14f9   : > { %10210 = vrot.lane.b32.xlu1 %v10209_v45, %s14210_s25 }
0x153b   : > { %v10116_v13 = vpop.permute.xlu1 %10115 }
0x153c   : > { %v10118_v2 = vunpack.i.h.bf16 %v10116_v13  ;;  %v10117_v35 = vunpack.i.l.bf16 %v10116_v13 }
0x153d   : > { %v10106_v37 = vpop.permute.xlu0 %10105 }
0x153e   : > { %v10108_v47 = vunpack.i.h.bf16 %v10106_v37  ;;  %v10107_v9 = vunpack.i.l.bf16 %v10106_v37  ;;  %v4700_v63 = vsel %vm2054_vm6, %v10117_v35, %v10118_v2 }
0x1540   : > { %v4796_v36 = vpack.c.bf16 %v10118_v2, %v10108_v47  ;;  %v4699_v5 = vsel %vm2054_vm6, %v10107_v9, %v10108_v47 }
0x1541   : > { %v10111_v59 = vpop.permute.xlu0 %10110  ;;  %v4795_v53 = vpack.c.bf16 %v4700_v63, %v4699_v5 }
0x1542   : > { %v10113_v55 = vunpack.i.h.bf16 %v10111_v59  ;;  %v10112_v54 = vunpack.i.l.bf16 %v10111_v59  ;;  %4891 = vrot.lane.b32.xlu0 %v4796_v36, %s14221_s10 }
0x1543   : > { %v10121_v56 = vpop.permute.xlu1 %10120 }
0x1544   : > { %v4805_v57 = vpack.c.bf16 %v10113_v55, %v10112_v54  ;;  %v10123_v29 = vunpack.i.h.bf16 %v10121_v56  ;;  %v10122_v27 = vunpack.i.l.bf16 %v10121_v56 }
0x1546   : > { %4909 = vrot.lane.b32.xlu1 %v4805_v57, %s14221_s10  ;;  %v4701_v39 = vsel %vm2054_vm6, %v10122_v27, %v10123_v29 }
0x1547   : > { %v10136_v40 = vpop.permute.xlu0 %10135  ;;  %v12718_v50 = vpop.permute.xlu1 %10125 }
0x1548   : > { %v10138_v23 = vunpack.i.h.bf16 %v10136_v40  ;;  %v10137_v28 = vunpack.i.l.bf16 %v10136_v40  ;;  %v10128_v55 = vunpack.i.h.bf16 %v12718_v50  ;;  %v10127_v54 = vunpack.i.l.bf16 %v12718_v50 }
0x154a   : > { %v4702_v33 = vsel %vm2054_vm6, %v10137_v28, %v10138_v23  ;;  %v4798_v56 = vpack.c.bf16 %v10138_v23, %v10123_v29 }
0x154b   : > { %v10141_v34 = vpop.permute.xlu0 %10140  ;;  %v10131_v24 = vpop.permute.xlu1 %10130  ;;  %v4797_v13 = vpack.c.bf16 %v4702_v33, %v4701_v39 }
0x154c   : > { %v10143_v11 = vunpack.i.h.bf16 %v10141_v34  ;;  %v10133_v12 = vunpack.i.h.bf16 %v10131_v24  ;;  %v10132_v52 = vunpack.i.l.bf16 %v10131_v24  ;;  %v10142_v31 = vunpack.i.l.bf16 %v10141_v34 }
0x154e   : > { %v4806_v38 = vpack.c.bf16 %v10133_v12, %v10132_v52  ;;  %v4663_v43 = vsel %vm639_vm9, %v10142_v31, %v10143_v11 }
0x154f   : > { %v10151_v25 = vpop.permute.xlu0 %10150  ;;  %v10146_v46 = vpop.permute.xlu1 %10145 }
0x1550   : > { %v10148_v32 = vunpack.i.h.bf16 %v10146_v46  ;;  %v10147_v18 = vunpack.i.l.bf16 %v10146_v46  ;;  %v10153_v2 = vunpack.i.h.bf16 %v10151_v25  ;;  %v10152_v47 = vunpack.i.l.bf16 %v10151_v25 }
0x1551   : > { %v4665_v25 = vsel %vm639_vm9, %v10127_v54, %v10128_v55 }
0x1552   : > { %v4792_v7 = vpack.c.bf16 %v10148_v32, %v10143_v11  ;;  %v4664_v15 = vsel %vm639_vm9, %v10147_v18, %v10148_v32  ;;  %v4666_v40 = vsel %vm639_vm9, %v10152_v47, %v10153_v2  ;;  %v4794_v46 = vpack.c.bf16 %v10153_v2, %v10128_v55  ;;  %v8964_v2 = vld [vmem:[%s14106_s5 + $0x90] sm:$0xff] }
0x1553   : > { %v10156_v62 = vpop.permute.xlu0 %10155  ;;  %v10161_v41 = vpop.permute.xlu1 %10160  ;;  %v4791_v37 = vpack.c.bf16 %v4664_v15, %v4663_v43  ;;  %v4793_v12 = vpack.c.bf16 %v4666_v40, %v4665_v25 }
0x1554   : > { %v10158_v0 = vunpack.i.h.bf16 %v10156_v62  ;;  %v10157_v26 = vunpack.i.l.bf16 %v10156_v62  ;;  %4883 = vrot.lane.b32.xlu0 %v4792_v7, %s14221_s10  ;;  %v10163_v51 = vunpack.i.h.bf16 %v10161_v41  ;;  %v10162_v44 = vunpack.i.l.bf16 %v10161_v41 }
0x1556   : > { %v4803_v49 = vpack.c.bf16 %v10158_v0, %v10157_v26  ;;  %v4804_v20 = vpack.c.bf16 %v10163_v51, %v10162_v44 }
0x1557   : > { %v10171_v58 = vpop.permute.xlu0 %10170  ;;  %v10166_v19 = vpop.permute.xlu1 %10165 }
0x1558   : > { %4905 = vrot.lane.b32.xlu1 %v4803_v49, %s14221_s10  ;;  %4911 = vrot.lane.b32.xlu0 %v4806_v38, %s14221_s10  ;;  %v10173_v6 = vunpack.i.h.bf16 %v10171_v58  ;;  %v10172_v42 = vunpack.i.l.bf16 %v10171_v58  ;;  %v10168_v30 = vunpack.i.h.bf16 %v10166_v19  ;;  %v10167_v14 = vunpack.i.l.bf16 %v10166_v19 }
0x155a   : > { %v4630_v36 = vsel %vm572_vm3, %v10172_v42, %v10173_v6  ;;  %v4629_v59 = vsel %vm572_vm3, %v10167_v14, %v10168_v30  ;;  %v4790_v41 = vpack.c.bf16 %v10173_v6, %v10168_v30 }
0x155b   : > { %v10181_v45 = vpop.permute.xlu1 %10180  ;;  %v4789_v57 = vpack.c.bf16 %v4630_v36, %v4629_v59  ;;  %v10176_v34 = vpop.permute.xlu0 %10175 }
0x155c   : > { %4907 = vrot.lane.b32.xlu0 %v4804_v20, %s14221_s10  ;;  %4889 = vrot.lane.b32.xlu1 %v4795_v53, %s14221_s10  ;;  %v10183_v11 = vunpack.i.h.bf16 %v10181_v45  ;;  %v10182_v32 = vunpack.i.l.bf16 %v10181_v45  ;;  %v10178_v50 = vunpack.i.h.bf16 %v10176_v34  ;;  %v10177_v9 = vunpack.i.l.bf16 %v10176_v34 }
0x155e   : > { %v4802_v0 = vpack.c.bf16 %v10183_v11, %v10182_v32  ;;  %v4627_v28 = vsel %vm572_vm3, %v10177_v9, %v10178_v50 }
0x155f   : > { %v10186_v24 = vpop.permute.xlu1 %10185  ;;  %v10191_v62 = vpop.permute.xlu0 %10190 }
0x1560   : > { %4893 = vrot.lane.b32.xlu0 %v4797_v13, %s14221_s10  ;;  %4881 = vrot.lane.b32.xlu1 %v4791_v37, %s14221_s10  ;;  %v10188_v52 = vunpack.i.h.bf16 %v10186_v24  ;;  %v10187_v7 = vunpack.i.l.bf16 %v10186_v24  ;;  %v10193_v38 = vunpack.i.h.bf16 %v10191_v62  ;;  %v10192_v18 = vunpack.i.l.bf16 %v10191_v62 }
0x1562   : > { %v4628_v26 = vsel %vm572_vm3, %v10187_v7, %v10188_v52  ;;  %v4788_v49 = vpack.c.bf16 %v10188_v52, %v10178_v50  ;;  %v4801_v58 = vpack.c.bf16 %v10193_v38, %v10192_v18 }
0x1563   : > { %v4544_v35 = vpop.permute.xlu1 %4543  ;;  %v4787_v51 = vpack.c.bf16 %v4628_v26, %v4627_v28  ;;  %v10196_v44 = vpop.permute.xlu0 %10195 }
0x1564   : > { %4877 = vrot.lane.b32.xlu0 %v4789_v57, %s14221_s10  ;;  %4895 = vrot.lane.b32.xlu1 %v4798_v56, %s14221_s10  ;;  %v4550_v23 = vmul.f32 %v12511_v21, %v4544_v35  ;;  %v10198_v19 = vunpack.i.h.bf16 %v10196_v44  ;;  %v10197_v63 = vunpack.i.l.bf16 %v10196_v44  ;;  %v4551_v29 = vmul.f32 %v4544_v35, %v12655_v60  ;;  %v10870_v21 = vld [vmem:[%s14105_s4 + $0xc4] ss:$12 sps:$4 sm:$0xff]   ;;  %v10871_v60 = vld [vmem:[%s14105_s4 + $0xc8] ss:$12 sps:$4 sm:$0xff]  }
0x1565   : > { %v4553_v27 = vmul.f32 %v4544_v35, %v12664_v8  ;;  %v4547_v33 = vmul.f32 %v4544_v35, %v12644_v16  ;;  %v4549_v15 = vmul.f32 %v4544_v35, %v12636_v1  ;;  %4981 = vmatprep.mubr.bf16.mxu1 %v10870_v21  ;;  %9435 = vmatprep.mubr.msk.bf16.mxu0 %vm2300_vm10, %v10871_v60  ;;  %v10875_v21 = vld [vmem:[%s14105_s4 + $0xd8] ss:$12 sps:$4 sm:$0xff]  }
0x1566   : > { %v4785_v5 = vpack.c.bf16 %v4550_v23, %v4550_v23  ;;  %v4800_v20 = vpack.c.bf16 %v10198_v19, %v10197_v63  ;;  %v10868_v19 = vld [vmem:[%s14105_s4 + $0xc0] ss:$12 sps:$4 sm:$0xff]   ;;  %v10873_v63 = vld [vmem:[%s14105_s4 + $0xdc] ss:$12 sps:$4 sm:$0xff]  }
0x1567   : > { %v10201_v31 = vpop.permute.xlu1 %10200  ;;  %v4786_v53 = vpack.c.bf16 %v4553_v27, %v4551_v29  ;;  %v10206_v6 = vpop.permute.xlu0 %10205  ;;  %v4784_v8 = vpack.c.bf16 %v4549_v15, %v4547_v33  ;;  %v10872_v27 = vld [vmem:[%s14105_s4 + $0xe0] ss:$12 sps:$4 sm:$0xff]  }
0x1568   : > { %4885 = vrot.lane.b32.xlu0 %v4793_v12, %s14221_s10  ;;  %4887 = vrot.lane.b32.xlu1 %v4794_v46, %s14221_s10  ;;  %v10208_v42 = vunpack.i.h.bf16 %v10206_v6  ;;  %v10207_v30 = vunpack.i.l.bf16 %v10206_v6  ;;  %v10203_v14 = vunpack.i.h.bf16 %v10201_v31  ;;  %v10202_v39 = vunpack.i.l.bf16 %v10201_v31 }
0x156a   : > { %v4808_v16 = vpack.c.bf16 %v10208_v42, %v10207_v30  ;;  %v4799_v43 = vpack.c.bf16 %v10203_v14, %v10202_v39 }
0x156b   : > { %v10211_v1 = vpop.permute.xlu1 %10210 }
0x156c   : > { %4903 = vrot.lane.b32.xlu0 %v4802_v0, %s14221_s10  ;;  %4879 = vrot.lane.b32.xlu1 %v4790_v41, %s14221_s10  ;;  %v10213_v45 = vunpack.i.h.bf16 %v10211_v1  ;;  %v10212_v13 = vunpack.i.l.bf16 %v10211_v1 }
0x156e   : > { %v4807_v37 = vpack.c.bf16 %v10213_v45, %v10212_v13 }
0x1570   : > { %4875 = vrot.lane.b32.xlu0 %v4788_v49, %s14221_s10  ;;  %4873 = vrot.lane.b32.xlu1 %v4787_v51, %s14221_s10 }
0x1574   : > { %4869 = vrot.lane.b32.xlu0 %v4785_v5, %s14221_s10  ;;  %4901 = vrot.lane.b32.xlu1 %v4801_v58, %s14221_s10 }
0x1578   : > { %4899 = vrot.lane.b32.xlu0 %v4800_v20, %s14221_s10  ;;  %4871 = vrot.lane.b32.xlu1 %v4786_v53, %s14221_s10 }
0x157c   : > { %4867 = vrot.lane.b32.xlu0 %v4784_v8, %s14221_s10  ;;  %4865 = vrot.lane.b32.xlu1 %v4785_v5, %s14221_s10 }
0x1580   : > { %4915 = vrot.lane.b32.xlu0 %v4808_v16, %s14221_s10  ;;  %4897 = vrot.lane.b32.xlu1 %v4799_v43, %s14221_s10 }
0x1584   : > { %4913 = vrot.lane.b32.xlu1 %v4807_v37, %s14221_s10 }
0x1588   : > { %5128 = vperm.xlu1 %9772, %v8964_v2  }
0x15b4   : > { %v4892_v47 = vpop.permute.xlu0 %4891 }
0x15b8   : > { %v4910_v36 = vpop.permute.xlu1 %4909 }
0x15c6   : > { %v4884_v59 = vpop.permute.xlu0 %4883 }
0x15ca   : > { %v4906_v55 = vpop.permute.xlu1 %4905  ;;  %v4912_v54 = vpop.permute.xlu0 %4911 }
0x15cb   : > { %9231 = vmatprep.subr.bf16.mxu1 %v4912_v54 }
0x15ce   : > { %v4908_v56 = vpop.permute.xlu0 %4907  ;;  %v4890_v57 = vpop.permute.xlu1 %4889 }
0x15cf   : > { %v4923_v12 = vsel %vm2273_vm11, %v4890_v57, %v4892_v47 }
0x15d2   : > { %v4894_v40 = vpop.permute.xlu0 %4893  ;;  %v4882_v34 = vpop.permute.xlu1 %4881 }
0x15d3   : > { %v4921_v41 = vsel %vm2273_vm11, %v4882_v34, %v4884_v59 }
0x15d6   : > { %v4878_v24 = vpop.permute.xlu0 %4877  ;;  %v4896_v25 = vpop.permute.xlu1 %4895 }
0x15d7   : > { %v4924_v46 = vsel %vm2273_vm11, %v4894_v40, %v4896_v25 }
0x15d8   : > { %9232 = vmatpush3.bf16.msra.mxu1 %v4924_v46 }
0x15d9   : > { %9233 = vmatprep.subr.bf16.mxu1 %v4910_v36 }
0x15da   : > { %v4886_v11 = vpop.permute.xlu0 %4885  ;;  %v4888_v32 = vpop.permute.xlu1 %4887 }
0x15db   : > { %v4922_v50 = vsel %vm2273_vm11, %v4886_v11, %v4888_v32  ;;  %v8968_v32 = vld [vmem:[%s14107_s6 + $0x90] sm:$0xff] }
0x15dc   : > { %9234 = vmatpush3.bf16.msra.mxu1 %v4923_v12  ;;  %v8969_v12 = vld [vmem:[%s14107_s6 + $0x98] sm:$0xff] }
0x15dd   : > { %9235 = vmatprep.subr.bf16.mxu1 %v4908_v56 }
0x15de   : > { %v4904_v52 = vpop.permute.xlu0 %4903  ;;  %v4880_v7 = vpop.permute.xlu1 %4879 }
0x15df   : > { %v4920_v35 = vsel %vm2273_vm11, %v4878_v24, %v4880_v7  ;;  %v8967_v7 = vld [vmem:[%s14107_s6 + $0x88] sm:$0xff] }
0x15e0   : > { %9236 = vmatpush3.bf16.msra.mxu1 %v4922_v50  ;;  %v8965_v50 = vld [vmem:[%s14106_s5 + $0x98] sm:$0xff] }
0x15e1   : > { %9237 = vmatprep.subr.bf16.mxu1 %v4906_v55 }
0x15e2   : > { %v4876_v9 = vpop.permute.xlu0 %4875  ;;  %v4874_v62 = vpop.permute.xlu1 %4873 }
0x15e3   : > { %v4919_v38 = vsel %vm2273_vm11, %v4874_v62, %v4876_v9  ;;  %v12837_v9 = vld [vmem:[#allocation3 + $0x5] ss:$0 sm:$0xff] }
0x15e4   : > { %9238 = vmatpush3.bf16.msra.mxu1 %v4921_v41  ;;  %v8962_v62 = vld [vmem:[%s14106_s5 + $0x80] sm:$0xff] }
0x15e5   : > { %9239 = vmatprep.subr.bf16.mxu1 %v4904_v52  ;;  %v8963_v52 = vld [vmem:[%s14106_s5 + $0x88] sm:$0xff]  ;;  %v8966_v41 = vld [vmem:[%s14107_s6 + $0x80] sm:$0xff] }
0x15e6   : > { %v4870_v0 = vpop.permute.xlu0 %4869  ;;  %v4902_v26 = vpop.permute.xlu1 %4901 }
0x15e8   : > { %9240 = vmatpush3.bf16.msra.mxu1 %v4920_v35 }
0x15e9   : > { %9241 = vmatprep.subr.bf16.mxu1 %v4902_v26 }
0x15ea   : > { %v4900_v23 = vpop.permute.xlu0 %4899  ;;  %v4872_v28 = vpop.permute.xlu1 %4871 }
0x15eb   : > { %v4918_v51 = vsel %vm2273_vm11, %v4870_v0, %v4872_v28  ;;  %v12849_v0 = vld [vmem:[#allocation3 + $0x4] ss:$0 sm:$0xff] }
0x15ec   : > { %9242 = vmatpush3.bf16.msra.mxu1 %v4919_v38 }
0x15ed   : > { %9243 = vmatprep.subr.bf16.mxu1 %v4900_v23 }
0x15ee   : > { %v4868_v18 = vpop.permute.xlu0 %4867  ;;  %v4866_v49 = vpop.permute.xlu1 %4865 }
0x15ef   : > { %v4917_v58 = vsel %vm2273_vm11, %v4866_v49, %v4868_v18 }
0x15f0   : > { %9244 = vmatpush3.bf16.msra.mxu1 %v4918_v51 }
0x15f2   : > { %v4916_v44 = vpop.permute.xlu0 %4915  ;;  %v4898_v5 = vpop.permute.xlu1 %4897 }
0x15f3   : > { %9245 = vmatprep.subr.bf16.mxu1 %v4898_v5  ;;  %9431 = vmatprep.subr.bf16.mxu0 %v4916_v44 }
0x15f4   : > { %9246 = vmatpush3.bf16.msra.mxu1 %v4917_v58  ;;  %9432 = vmatpush3.bf16.msra.mxu0 %v4916_v44 }
0x15f6   : > { %v4914_v29 = vpop.permute.xlu1 %4913 }
0x15f7   : > { %4982 = vmatmul.mubr.bf16.vlgmr.msra.gmra.mxu1 %v10868_v19  ;;  %9433 = vmatprep.subr.bf16.mxu0 %v4914_v29 }
0x15f8   : > { %9434 = vmatpush3.bf16.msra.mxu0 %v4914_v29  ;;  %4989 = vmatprep.mubr.bf16.mxu1 %v10873_v63 }
0x15fb   : > { %9436 = vmatmul.mubr.msk.bf16.vlgmr.msra.gmra.mxu0 %vm2300_vm10, %v10872_v27 }
0x15ff   : > { %4990 = vmatmul.mubr.bf16.gmra.mxu1 %v10875_v21 }
0x1603   : > { %v5129_v26 = vpop.permute.xlu1 %5128 }
0x16b7   : > { %v9247_v31 = vpop.f32.mrf.mxu1 }
0x16b9   : > { %v9248_v33 = vpop.f32.mrf.mxu1 }
0x16ba   : > { %v9249_v53 = vadd.f32 %v9248_v33, %v9247_v31 }
0x16bb   : > { %v9250_v15 = vpop.f32.mrf.mxu1  ;;  %v9437_v20 = vpop.f32.mrf.mxu0 }
0x16bd   : > { %v9251_v6 = vpop.f32.mrf.mxu1  ;;  %v5032_v60 = vpop.f32.mrf.mxu0 }
0x16be   : > { %v12794_v8 = vadd.f32 %v9249_v53, %v5032_v60  ;;  %v9252_v14 = vadd.f32 %v9251_v6, %v9250_v15 }
0x16bf   : > { %v9253_v42 = vpop.f32.mrf.mxu1  ;;  %v9438_v30 = vpop.f32.mrf.mxu0 }
0x16c0   : > { %v5047_v39 = vsel %vm1654_vm12, %v12794_v8, 0.0  ;;  %v5059_v1 = vmul.f32 %v12794_v8, %v12794_v8 }
0x16c1   : > { %v9254_v16 = vpop.f32.mrf.mxu1  ;;  %v5035_v43 = vpop.f32.mrf.mxu0  ;;  %5048 = vadd.xlane.f32.xlu1 %v5047_v39 }
0x16c2   : > { %v12800_v45 = vadd.f32 %v9252_v14, %v5035_v43  ;;  %v9255_v37 = vadd.f32 %v9254_v16, %v9253_v42  ;;  %v5063_v47 = vsel %vm1654_vm12, %v5059_v1, 0.0 }
0x16c3   : > { %v9256_v13 = vpop.f32.mrf.mxu1 }
0x16c4   : > { %v5050_v2 = vsel %vm1654_vm12, %v12800_v45, 0.0  ;;  %v5060_v36 = vmul.f32 %v12800_v45, %v12800_v45  ;;  %v12807_v54 = vadd.f32 %v9437_v20, %v9255_v37 }
0x16c5   : > { %v9257_v59 = vpop.f32.mrf.mxu1  ;;  %5051 = vadd.xlane.f32.xlu0 %v5050_v2  ;;  %5064 = vadd.xlane.f32.xlu1 %v5063_v47 }
0x16c6   : > { %v9258_v55 = vadd.f32 %v9257_v59, %v9256_v13  ;;  %v5066_v57 = vsel %vm1654_vm12, %v5060_v36, 0.0  ;;  %v5053_v34 = vsel %vm1654_vm12, %v12807_v54, 0.0  ;;  %v5061_v24 = vmul.f32 %v12807_v54, %v12807_v54 }
0x16c8   : > { %v12809_v56 = vadd.f32 %v9438_v30, %v9258_v55  ;;  %v5069_v25 = vsel %vm1654_vm12, %v5061_v24, 0.0 }
0x16c9   : > { %5067 = vadd.xlane.f32.xlu0 %v5066_v57 }
0x16ca   : > { %v5056_v40 = vsel %vm1654_vm12, %v12809_v56, 0.0  ;;  %v5062_v46 = vmul.f32 %v12809_v56, %v12809_v56 }
0x16cb   : > { %5057 = vadd.xlane.f32.xlu1 %v5056_v40 }
0x16cc   : > { %v5072_v11 = vsel %vm1654_vm12, %v5062_v46, 0.0 }
0x16cd   : > { %5054 = vadd.xlane.f32.xlu0 %v5053_v34 }
0x16d1   : > { %5070 = vadd.xlane.f32.xlu0 %v5069_v25 }
0x16d5   : > { %5073 = vadd.xlane.f32.xlu0 %v5072_v11 }
0x16dc   : > { %5157 = vperm.xlu1 %9772, %v8968_v32  }
0x16e0   : > { %5162 = vperm.xlu1 %9772, %v8969_v12  }
0x16e4   : > { %5123 = vperm.xlu1 %9772, %v8963_v52  }
0x16e8   : > { %5152 = vperm.xlu1 %9772, %v8967_v7  }
0x16eb   : > { %5133 = vperm.xlu0 %9773, %v8965_v50  }
0x16ec   : > { %5221 = vrot.lane.b32.xlu1 %v12837_v9, %s14214_s29 }
0x16ef   : > { %5118 = vperm.xlu0 %9773, %v8962_v62  }
0x16f0   : > { %5243 = vrot.lane.b32.xlu1 %v12837_v9, %s14215_s20 }
0x16f3   : > { %5147 = vperm.xlu0 %9773, %v8966_v41  }
0x16f7   : > { %5232 = vrot.lane.b32.xlu0 %v12849_v0, %s14212_s2 }
0x16fb   : > { %5250 = vrot.lane.b32.xlu0 %v12849_v0, %s14211_s27 }
0x16ff   : > { %5257 = vrot.lane.b32.xlu0 %v12837_v9, %s14213_s3 }
0x174a   : > { %v5049_v35 = vpop.xlane.xlu1 %5048 }
0x174b   : > { %v5075_v23 = vmul.f32 0.0625, %v5049_v35 }
0x174d   : > { %v5083_v18 = vmul.f32 %v5075_v23, %v5075_v23  ;;  %v5095_v24 = vsub.f32 %v12794_v8, %v5075_v23 }
0x174e   : > { %v5052_v28 = vpop.xlane.xlu0 %5051  ;;  %v5065_v38 = vpop.xlane.xlu1 %5064 }
0x174f   : > { %v5076_v49 = vmul.f32 0.0625, %v5052_v28  ;;  %v5079_v51 = vmul.f32 0.0625, %v5065_v38 }
0x1751   : > { %v5087_v44 = vsub.f32 %v5079_v51, %v5083_v18  ;;  %v5084_v58 = vmul.f32 %v5076_v49, %v5076_v49  ;;  %v5096_v40 = vsub.f32 %v12800_v45, %v5076_v49 }
0x1752   : > { %v5068_v5 = vpop.xlane.xlu0 %5067 }
0x1753   : > { %v5091_v19 = vmax.f32 %v5087_v44, 0.0  ;;  %v5080_v63 = vmul.f32 0.0625, %v5068_v5 }
0x1754   : > { %v5058_v29 = vpop.xlane.xlu1 %5057 }
0x1755   : > { %v5088_v27 = vsub.f32 %v5080_v63, %v5084_v58  ;;  %v5099_v21 = vadd.f32 1e-05, %v5091_v19  ;;  %v5078_v60 = vmul.f32 0.0625, %v5058_v29 }
0x1756   : > { %v5055_v31 = vpop.xlane.xlu0 %5054 }
0x1757   : > { %v5092_v33 = vmax.f32 %v5088_v27, 0.0  ;;  %v5077_v15 = vmul.f32 0.0625, %v5055_v31  ;;  %10965 = vrsqrt.f32 %v5099_v21  ;;  %v5086_v1 = vmul.f32 %v5078_v60, %v5078_v60 }
0x1758   : > { %v5158_v53 = vpop.permute.xlu1 %5157  ;;  %v5098_v18 = vsub.f32 %v12809_v56, %v5078_v60 }
0x1759   : > { %v5100_v20 = vadd.f32 1e-05, %v5092_v33  ;;  %v5085_v42 = vmul.f32 %v5077_v15, %v5077_v15  ;;  %v5097_v62 = vsub.f32 %v12807_v54, %v5077_v15  ;;  %v12865_v54 = vld [vmem:[#allocation2] sm:$0xff] }
0x175a   : > { %v5071_v6 = vpop.xlane.xlu0 %5070 }
0x175b   : > { %10967 = vrsqrt.f32 %v5100_v20  ;;  %v5081_v30 = vmul.f32 0.0625, %v5071_v6 }
0x175c   : > { %v5163_v13 = vpop.permute.xlu1 %5162 }
0x175d   : > { %v5089_v14 = vsub.f32 %v5081_v30, %v5085_v42 }
0x175e   : > { %v5074_v39 = vpop.xlane.xlu0 %5073 }
0x175f   : > { %v5093_v16 = vmax.f32 %v5089_v14, 0.0  ;;  %v5082_v43 = vmul.f32 0.0625, %v5074_v39 }
0x1760   : > { %v5124_v59 = vpop.permute.xlu1 %5123 }
0x1761   : > { %v5101_v37 = vadd.f32 1e-05, %v5093_v16  ;;  %v5090_v2 = vsub.f32 %v5082_v43, %v5086_v1 }
0x1763   : > { %10969 = vrsqrt.f32 %v5101_v37  ;;  %v5094_v47 = vmax.f32 %v5090_v2, 0.0 }
0x1764   : > { %v10966_v57 = vpop.eup %10965  ;;  %v5153_v12 = vpop.permute.xlu1 %5152 }
0x1765   : > { %v5102_v36 = vadd.f32 1e-05, %v5094_v47  ;;  %v5107_v32 = vmul.f32 %v10966_v57, %v5095_v24 }
0x1766   : > { %v5134_v55 = vpop.permute.xlu0 %5133 }
0x1767   : > { %10971 = vrsqrt.f32 %v5102_v36 }
0x1768   : > { %v10968_v34 = vpop.eup %10967 }
0x1769   : > { %v5108_v25 = vmul.f32 %v10968_v34, %v5096_v40 }
0x176a   : > { %v5119_v46 = vpop.permute.xlu0 %5118 }
0x176b   : > { %v5137_v11 = vmul.f32 %v5124_v59, %v5108_v25  ;;  %v5136_v7 = vmul.f32 %v5119_v46, %v5107_v32 }
0x176d   : > { %v5166_v52 = vadd.f32 %v5153_v12, %v5137_v11 }
0x176e   : > { %v5148_v50 = vpop.permute.xlu0 %5147 }
0x176f   : > { %v5170_v41 = vmax.f32 %v5166_v52, 0.0  ;;  %v5165_v35 = vadd.f32 %v5148_v50, %v5136_v7 }
0x1770   : > { %v10970_v28 = vpop.eup %10969 }
0x1771   : > { %v5109_v38 = vmul.f32 %v10970_v28, %v5097_v62  ;;  %5187 = vst.msk [vmem:[#allocation2 + $0x28] sm:$0xff] %vm1654_vm12, %v5170_v41  ;;  %v5169_v45 = vmax.f32 %v5165_v35, 0.0 }
0x1772   : > { %v5233_v58 = vpop.permute.xlu0 %5232 }
0x1773   : > { %v5138_v8 = vmul.f32 %v5129_v26, %v5109_v38  ;;  %5186 = vst.msk [vmem:[#allocation2 + $0x8] sm:$0xff] %vm1654_vm12, %v5169_v45  ;;  %v5237_v63 = vmul.f32 %v12865_v54, %v5233_v58 }
0x1774   : > { %v10972_v23 = vpop.eup %10971 }
0x1775   : > { %v5167_v49 = vadd.f32 %v5158_v53, %v5138_v8  ;;  %v5110_v51 = vmul.f32 %v10972_v23, %v5098_v18  ;;  %v5222_v53 = vpop.permute.xlu1 %5221 }
0x1776   : > { %v5228_v39 = vmul.f32 %v12865_v54, %v5222_v53  ;;  %v5251_v36 = vpop.permute.xlu0 %5250 }
0x1777   : > { %v5171_v44 = vmax.f32 %v5167_v49, 0.0  ;;  %v5139_v5 = vmul.f32 %v5134_v55, %v5110_v51 }
0x1778   : > { %v12863_v19 = vld [vmem:[#allocation2 + $0x28] sm:$0xff] }
0x1779   : > { %5188 = vst.msk [vmem:[#allocation2 + $0x48] sm:$0xff] %vm1654_vm12, %v5171_v44  ;;  %v5168_v29 = vadd.f32 %v5163_v13, %v5139_v5  ;;  %v5238_v56 = vmul.f32 %v5233_v58, %v12863_v19  ;;  %v5227_v2 = vmul.f32 %v5222_v53, %v12863_v19  ;;  %v5254_v34 = vmul.f32 %v5251_v36, %v12863_v19  ;;  %v5244_v11 = vpop.permute.xlu1 %5243 }
0x177a   : > { %5844 = vst.msk [vmem:[#allocation2 + $0x28] sm:$0xff] %vm1875_vm7, %v12865_v54  ;;  %v12872_v26 = vld [vmem:[#allocation2 + $0x8] sm:$0xff]  ;;  %v5247_v35 = vmul.f32 %v5244_v11, %v12863_v19  ;;  %v10294_v28 = vpack.i.bf16 %v12863_v19, %v12865_v54  ;;  %v5258_v45 = vpop.permute.xlu0 %5257 }
0x177b   : > { %v5172_v27 = vmax.f32 %v5168_v29, 0.0  ;;  %5843 = vst.msk [vmem:[#allocation2 + $0x8] sm:$0xff] %vm1875_vm7, %v12865_v54  ;;  %v10224_v21 = vpack.i.bf16 %v5238_v56, %v5237_v63  ;;  %v5236_v31 = vmul.f32 %v5233_v58, %v12872_v26  ;;  %v10219_v6 = vpack.i.bf16 %v12863_v19, %v12872_v26 }
0x177c   : > { %v5225_v43 = vmul.f32 %v5222_v53, %v12872_v26  ;;  %v5253_v59 = vmul.f32 %v5251_v36, %v12872_v26  ;;  %v10254_v57 = vpack.i.bf16 %v5227_v2, %v5228_v39  ;;  %v5246_v50 = vmul.f32 %v5244_v11, %v12872_v26 }
0x177d   : > { %5189 = vst.msk [vmem:[#allocation2 + $0x68] sm:$0xff] %vm1654_vm12, %v5172_v27  ;;  %10225 = vrot.lane.b32.xlu1 %v10224_v21, %s14216_s21  ;;  %v10214_v33 = vpack.i.bf16 %v5236_v31, %v5237_v63  ;;  %v10284_v62 = vpack.i.bf16 %v12872_v26, %v12865_v54  ;;  %v5260_v23 = vmul.f32 %v5258_v45, %v12872_v26 }
0x177e   : > { %v10249_v37 = vpack.i.bf16 %v5225_v43, %v5228_v39  ;;  %v10264_v46 = vpack.i.bf16 %v5254_v34, %v5253_v59  ;;  %v10299_v38 = vpack.i.bf16 %v5247_v35, %v5246_v50  ;;  %v5261_v49 = vmul.f32 %v5258_v45, %v12863_v19 }
0x177f   : > { %10215 = vrot.lane.b32.xlu0 %v10214_v33, %s14216_s21 }
0x1780   : > { %v12879_v15 = vld [vmem:[#allocation2 + $0x48] sm:$0xff]  ;;  %v10319_v44 = vpack.i.bf16 %v5261_v49, %v5260_v23 }
0x1781   : > { %5845 = vst.msk [vmem:[#allocation2 + $0x48] sm:$0xff] %vm1875_vm7, %v12865_v54  ;;  %v5240_v20 = vmul.f32 %v5233_v58, %v12879_v15  ;;  %v5229_v42 = vmul.f32 %v5222_v53, %v12879_v15  ;;  %v5255_v24 = vmul.f32 %v5251_v36, %v12879_v15  ;;  %v10274_v12 = vpack.i.bf16 %v12879_v15, %v12865_v54 }
0x1782   : > { %v5248_v7 = vmul.f32 %v5244_v11, %v12879_v15  ;;  %v5262_v8 = vmul.f32 %v5258_v45, %v12879_v15 }
0x1783   : > { %v10229_v60 = vpack.i.bf16 %v5240_v20, %v5237_v63  ;;  %10220 = vrot.lane.b32.xlu0 %v10219_v6, %s14217_s0  ;;  %v10234_v16 = vpack.i.bf16 %v5229_v42, %v5228_v39 }
0x1784   : > { %v12888_v30 = vld [vmem:[#allocation2 + $0x68] sm:$0xff] }
0x1785   : > { %5846 = vst.msk [vmem:[#allocation2 + $0x68] sm:$0xff] %vm1875_vm7, %v12865_v54  ;;  %10230 = vrot.lane.b32.xlu1 %v10229_v60, %s14216_s21  ;;  %v5242_v14 = vmul.f32 %v5233_v58, %v12888_v30  ;;  %v10239_v13 = vpack.i.bf16 %v12888_v30, %v12879_v15  ;;  %v5231_v47 = vmul.f32 %v5222_v53, %v12888_v30 }
0x1786   : > { %v5256_v55 = vmul.f32 %v5251_v36, %v12888_v30  ;;  %v5249_v32 = vmul.f32 %v5244_v11, %v12888_v30  ;;  %v10279_v52 = vpack.i.bf16 %v12888_v30, %v12865_v54  ;;  %v5263_v18 = vmul.f32 %v5258_v45, %v12888_v30 }
0x1787   : > { %v10244_v1 = vpack.i.bf16 %v5242_v14, %v5237_v63  ;;  %v10259_v40 = vpack.i.bf16 %v5231_v47, %v5228_v39 }
0x1788   : > { %v10269_v25 = vpack.i.bf16 %v5256_v55, %v5255_v24  ;;  %v10289_v41 = vpack.i.bf16 %v5249_v32, %v5248_v7  ;;  %v10314_v51 = vpack.i.bf16 %v5263_v18, %v5262_v8 }
0x1789   : > { %10245 = vrot.lane.b32.xlu0 %v10244_v1, %s14216_s21  ;;  %10235 = vrot.lane.b32.xlu1 %v10234_v16, %s14204_s17 }
0x178d   : > { %10240 = vrot.lane.b32.xlu1 %v10239_v13, %s14217_s0  ;;  %10250 = vrot.lane.b32.xlu0 %v10249_v37, %s14204_s17 }
0x1791   : > { %10255 = vrot.lane.b32.xlu1 %v10254_v57, %s14204_s17  ;;  %10260 = vrot.lane.b32.xlu0 %v10259_v40, %s14204_s17 }
0x1795   : > { %10270 = vrot.lane.b32.xlu1 %v10269_v25, %s14208_s23  ;;  %10265 = vrot.lane.b32.xlu0 %v10264_v46, %s14208_s23 }
0x1799   : > { %10275 = vrot.lane.b32.xlu1 %v10274_v12, %s14209_s22  ;;  %10280 = vrot.lane.b32.xlu0 %v10279_v52, %s14209_s22 }
0x179d   : > { %10285 = vrot.lane.b32.xlu0 %v10284_v62, %s14209_s22  ;;  %10290 = vrot.lane.b32.xlu1 %v10289_v41, %s14218_s1 }
0x17a1   : > { %10295 = vrot.lane.b32.xlu1 %v10294_v28, %s14209_s22  ;;  %10300 = vrot.lane.b32.xlu0 %v10299_v38, %s14218_s1 }
0x17a5   : > { %5204 = vrot.lane.b32.xlu1 %v12849_v0, %s14219_s28  ;;  %10305 = vrot.lane.b32.xlu0 %v10239_v13, %s14220_s26 }
0x17a9   : > { %10310 = vrot.lane.b32.xlu1 %v10219_v6, %s14220_s26  ;;  %10315 = vrot.lane.b32.xlu0 %v10314_v51, %s14210_s25 }
0x17ad   : > { %10320 = vrot.lane.b32.xlu1 %v10319_v44, %s14210_s25 }
0x17ef   : > { %v10226_v5 = vpop.permute.xlu1 %10225 }
0x17f0   : > { %v10228_v63 = vunpack.i.h.bf16 %v10226_v5  ;;  %v10227_v57 = vunpack.i.l.bf16 %v10226_v5 }
0x17f1   : > { %v10216_v58 = vpop.permute.xlu0 %10215 }
0x17f2   : > { %v10218_v29 = vunpack.i.h.bf16 %v10216_v58  ;;  %v10217_v2 = vunpack.i.l.bf16 %v10216_v58  ;;  %v5361_v50 = vsel %vm2054_vm6, %v10227_v57, %v10228_v63 }
0x17f4   : > { %v5457_v56 = vpack.c.bf16 %v10228_v63, %v10218_v29  ;;  %v5360_v12 = vsel %vm2054_vm6, %v10217_v2, %v10218_v29 }
0x17f5   : > { %v10221_v27 = vpop.permute.xlu0 %10220  ;;  %v5456_v18 = vpack.c.bf16 %v5361_v50, %v5360_v12 }
0x17f6   : > { %v10223_v21 = vunpack.i.h.bf16 %v10221_v27  ;;  %v10222_v31 = vunpack.i.l.bf16 %v10221_v27  ;;  %5552 = vrot.lane.b32.xlu0 %v5457_v56, %s14221_s10 }
0x17f7   : > { %v10231_v33 = vpop.permute.xlu1 %10230 }
0x17f8   : > { %v5466_v20 = vpack.c.bf16 %v10223_v21, %v10222_v31  ;;  %v10233_v62 = vunpack.i.h.bf16 %v10231_v33  ;;  %v10232_v41 = vunpack.i.l.bf16 %v10231_v33 }
0x17fa   : > { %5570 = vrot.lane.b32.xlu1 %v5466_v20, %s14221_s10  ;;  %v5362_v44 = vsel %vm2054_vm6, %v10232_v41, %v10233_v62 }
0x17fb   : > { %v10246_v53 = vpop.permute.xlu0 %10245  ;;  %v12943_v6 = vpop.permute.xlu1 %10235 }
0x17fc   : > { %v10248_v40 = vunpack.i.h.bf16 %v10246_v53  ;;  %v10247_v34 = vunpack.i.l.bf16 %v10246_v53  ;;  %v10238_v33 = vunpack.i.h.bf16 %v12943_v6  ;;  %v10237_v20 = vunpack.i.l.bf16 %v12943_v6 }
0x17fe   : > { %v5363_v28 = vsel %vm2054_vm6, %v10247_v34, %v10248_v40  ;;  %v5459_v53 = vpack.c.bf16 %v10248_v40, %v10233_v62 }
0x17ff   : > { %v10251_v60 = vpop.permute.xlu0 %10250  ;;  %v10241_v42 = vpop.permute.xlu1 %10240  ;;  %v5458_v63 = vpack.c.bf16 %v5363_v28, %v5362_v44 }
0x1800   : > { %v10253_v1 = vunpack.i.h.bf16 %v10251_v60  ;;  %v10243_v43 = vunpack.i.h.bf16 %v10241_v42  ;;  %v10242_v13 = vunpack.i.l.bf16 %v10241_v42  ;;  %v10252_v35 = vunpack.i.l.bf16 %v10251_v60 }
0x1802   : > { %v5467_v24 = vpack.c.bf16 %v10243_v43, %v10242_v13  ;;  %v5324_v5 = vsel %vm639_vm9, %v10252_v35, %v10253_v1 }
0x1803   : > { %v10261_v14 = vpop.permute.xlu0 %10260  ;;  %v10256_v39 = vpop.permute.xlu1 %10255 }
0x1804   : > { %v10258_v16 = vunpack.i.h.bf16 %v10256_v39  ;;  %v10257_v25 = vunpack.i.l.bf16 %v10256_v39  ;;  %v10263_v56 = vunpack.i.h.bf16 %v10261_v14  ;;  %v10262_v27 = vunpack.i.l.bf16 %v10261_v14 }
0x1805   : > { %v5326_v14 = vsel %vm639_vm9, %v10237_v20, %v10238_v33 }
0x1806   : > { %v5453_v37 = vpack.c.bf16 %v10258_v16, %v10253_v1  ;;  %v5325_v38 = vsel %vm639_vm9, %v10257_v25, %v10258_v16  ;;  %v5327_v42 = vsel %vm639_vm9, %v10262_v27, %v10263_v56  ;;  %v5455_v16 = vpack.c.bf16 %v10263_v56, %v10238_v33 }
0x1807   : > { %v10266_v47 = vpop.permute.xlu0 %10265  ;;  %v10271_v36 = vpop.permute.xlu1 %10270  ;;  %v5452_v29 = vpack.c.bf16 %v5325_v38, %v5324_v5  ;;  %v10878_v38 = vld [vmem:[%s14105_s4 + $0xf4] ss:$12 sps:$4 sm:$0xff]  }
0x1808   : > { %v10268_v59 = vunpack.i.h.bf16 %v10266_v47  ;;  %v10267_v55 = vunpack.i.l.bf16 %v10266_v47  ;;  %5544 = vrot.lane.b32.xlu0 %v5453_v37, %s14221_s10  ;;  %v10273_v11 = vunpack.i.h.bf16 %v10271_v36  ;;  %v10272_v32 = vunpack.i.l.bf16 %v10271_v36  ;;  %5642 = vmatprep.mubr.bf16.mxu0 %v10878_v38  ;;  %v10881_v38 = vld [vmem:[%s14105_s4 + $0x10c] ss:$12 sps:$4 sm:$0xff]  }
0x1809   : > { %v5454_v37 = vpack.c.bf16 %v5327_v42, %v5326_v14 }
0x180a   : > { %v5464_v46 = vpack.c.bf16 %v10268_v59, %v10267_v55  ;;  %v5465_v45 = vpack.c.bf16 %v10273_v11, %v10272_v32 }
0x180b   : > { %v10281_v52 = vpop.permute.xlu0 %10280  ;;  %v10276_v7 = vpop.permute.xlu1 %10275 }
0x180c   : > { %5566 = vrot.lane.b32.xlu1 %v5464_v46, %s14221_s10  ;;  %5572 = vrot.lane.b32.xlu0 %v5467_v24, %s14221_s10  ;;  %v10283_v8 = vunpack.i.h.bf16 %v10281_v52  ;;  %v10282_v23 = vunpack.i.l.bf16 %v10281_v52  ;;  %v10278_v49 = vunpack.i.h.bf16 %v10276_v7  ;;  %v10277_v51 = vunpack.i.l.bf16 %v10276_v7 }
0x180e   : > { %v5291_v21 = vsel %vm572_vm3, %v10282_v23, %v10283_v8  ;;  %v5290_v31 = vsel %vm572_vm3, %v10277_v51, %v10278_v49  ;;  %v5451_v55 = vpack.c.bf16 %v10283_v8, %v10278_v49 }
0x180f   : > { %v10291_v58 = vpop.permute.xlu1 %10290  ;;  %v5450_v60 = vpack.c.bf16 %v5291_v21, %v5290_v31  ;;  %v10286_v39 = vpop.permute.xlu0 %10285  ;;  %v8990_v31 = vld [vmem:[%s14106_s5 + $0xb0] sm:$0xff] }
0x1810   : > { %5568 = vrot.lane.b32.xlu0 %v5465_v45, %s14221_s10  ;;  %5550 = vrot.lane.b32.xlu1 %v5456_v18, %s14221_s10  ;;  %v10293_v43 = vunpack.i.h.bf16 %v10291_v58  ;;  %v10292_v13 = vunpack.i.l.bf16 %v10291_v58  ;;  %v10288_v6 = vunpack.i.h.bf16 %v10286_v39  ;;  %v10287_v36 = vunpack.i.l.bf16 %v10286_v39 }
0x1812   : > { %v5463_v57 = vpack.c.bf16 %v10293_v43, %v10292_v13  ;;  %v5288_v25 = vsel %vm572_vm3, %v10287_v36, %v10288_v6 }
0x1813   : > { %v10296_v1 = vpop.permute.xlu1 %10295  ;;  %v10301_v59 = vpop.permute.xlu0 %10300 }
0x1814   : > { %5554 = vrot.lane.b32.xlu0 %v5458_v63, %s14221_s10  ;;  %5542 = vrot.lane.b32.xlu1 %v5452_v29, %s14221_s10  ;;  %v10298_v2 = vunpack.i.h.bf16 %v10296_v1  ;;  %v10297_v47 = vunpack.i.l.bf16 %v10296_v1  ;;  %v10303_v46 = vunpack.i.h.bf16 %v10301_v59  ;;  %v10302_v11 = vunpack.i.l.bf16 %v10301_v59 }
0x1816   : > { %v5289_v40 = vsel %vm572_vm3, %v10297_v47, %v10298_v2  ;;  %v5449_v32 = vpack.c.bf16 %v10298_v2, %v10288_v6  ;;  %v5462_v50 = vpack.c.bf16 %v10303_v46, %v10302_v11 }
0x1817   : > { %v5205_v34 = vpop.permute.xlu1 %5204  ;;  %v5448_v12 = vpack.c.bf16 %v5289_v40, %v5288_v25  ;;  %v10306_v52 = vpop.permute.xlu0 %10305 }
0x1818   : > { %5538 = vrot.lane.b32.xlu0 %v5450_v60, %s14221_s10  ;;  %5556 = vrot.lane.b32.xlu1 %v5459_v53, %s14221_s10  ;;  %v5211_v24 = vmul.f32 %v12865_v54, %v5205_v34  ;;  %v10308_v62 = vunpack.i.h.bf16 %v10306_v52  ;;  %v10307_v41 = vunpack.i.l.bf16 %v10306_v52  ;;  %v5212_v35 = vmul.f32 %v5205_v34, %v12879_v15  ;;  %v10879_v15 = vld [vmem:[%s14105_s4 + $0xf8] ss:$12 sps:$4 sm:$0xff]  }
0x1819   : > { %v5214_v28 = vmul.f32 %v5205_v34, %v12888_v30  ;;  %v5208_v18 = vmul.f32 %v5205_v34, %v12872_v26  ;;  %v5210_v8 = vmul.f32 %v5205_v34, %v12863_v19  ;;  %9443 = vmatprep.mubr.msk.bf16.mxu1 %vm2300_vm10, %v10879_v15 }
0x181a   : > { %v5446_v7 = vpack.c.bf16 %v5211_v24, %v5211_v24  ;;  %v5461_v23 = vpack.c.bf16 %v10308_v62, %v10307_v41 }
0x181b   : > { %v10311_v45 = vpop.permute.xlu1 %10310  ;;  %v5447_v49 = vpack.c.bf16 %v5214_v28, %v5212_v35  ;;  %v10316_v51 = vpop.permute.xlu0 %10315  ;;  %v5445_v30 = vpack.c.bf16 %v5210_v8, %v5208_v18  ;;  %v10876_v28 = vld [vmem:[%s14105_s4 + $0xf0] ss:$12 sps:$4 sm:$0xff]   ;;  %v10883_v8 = vld [vmem:[%s14105_s4 + $0x108] ss:$12 sps:$4 sm:$0xff]  }
0x181c   : > { %5546 = vrot.lane.b32.xlu0 %v5454_v37, %s14221_s10  ;;  %5548 = vrot.lane.b32.xlu1 %v5455_v16, %s14221_s10  ;;  %v10318_v44 = vunpack.i.h.bf16 %v10316_v51  ;;  %v10317_v5 = vunpack.i.l.bf16 %v10316_v51  ;;  %v10313_v58 = vunpack.i.h.bf16 %v10311_v45  ;;  %v10312_v63 = vunpack.i.l.bf16 %v10311_v45  ;;  %v10880_v18 = vld [vmem:[%s14105_s4 + $0x110] ss:$12 sps:$4 sm:$0xff]  }
0x181e   : > { %v5469_v26 = vpack.c.bf16 %v10318_v44, %v10317_v5  ;;  %v5460_v29 = vpack.c.bf16 %v10313_v58, %v10312_v63 }
0x181f   : > { %v10321_v19 = vpop.permute.xlu1 %10320 }
0x1820   : > { %5564 = vrot.lane.b32.xlu0 %v5463_v57, %s14221_s10  ;;  %5540 = vrot.lane.b32.xlu1 %v5451_v55, %s14221_s10  ;;  %v10323_v56 = vunpack.i.h.bf16 %v10321_v19  ;;  %v10322_v27 = vunpack.i.l.bf16 %v10321_v19 }
0x1822   : > { %v5468_v21 = vpack.c.bf16 %v10323_v56, %v10322_v27 }
0x1824   : > { %5536 = vrot.lane.b32.xlu0 %v5449_v32, %s14221_s10  ;;  %5534 = vrot.lane.b32.xlu1 %v5448_v12, %s14221_s10 }
0x1828   : > { %5530 = vrot.lane.b32.xlu0 %v5446_v7, %s14221_s10  ;;  %5562 = vrot.lane.b32.xlu1 %v5462_v50, %s14221_s10 }
0x182c   : > { %5560 = vrot.lane.b32.xlu0 %v5461_v23, %s14221_s10  ;;  %5532 = vrot.lane.b32.xlu1 %v5447_v49, %s14221_s10 }
0x1830   : > { %5528 = vrot.lane.b32.xlu0 %v5445_v30, %s14221_s10  ;;  %5526 = vrot.lane.b32.xlu1 %v5446_v7, %s14221_s10 }
0x1834   : > { %5576 = vrot.lane.b32.xlu0 %v5469_v26, %s14221_s10  ;;  %5558 = vrot.lane.b32.xlu1 %v5460_v29, %s14221_s10 }
0x1838   : > { %5574 = vrot.lane.b32.xlu1 %v5468_v21, %s14221_s10 }
0x183c   : > { %5789 = vperm.xlu1 %9772, %v8990_v31  }
0x1868   : > { %v5553_v33 = vpop.permute.xlu0 %5552 }
0x186c   : > { %v5571_v20 = vpop.permute.xlu1 %5570 }
0x187a   : > { %v5545_v53 = vpop.permute.xlu0 %5544 }
0x187e   : > { %v5567_v60 = vpop.permute.xlu1 %5566  ;;  %v5573_v42 = vpop.permute.xlu0 %5572 }
0x187f   : > { %9263 = vmatprep.subr.bf16.mxu0 %v5573_v42 }
0x1882   : > { %v5569_v39 = vpop.permute.xlu0 %5568  ;;  %v5551_v1 = vpop.permute.xlu1 %5550 }
0x1883   : > { %v5584_v6 = vsel %vm2273_vm11, %v5551_v1, %v5553_v33 }
0x1886   : > { %v5555_v14 = vpop.permute.xlu0 %5554  ;;  %v5543_v16 = vpop.permute.xlu1 %5542 }
0x1887   : > { %v5582_v34 = vsel %vm2273_vm11, %v5543_v16, %v5545_v53 }
0x188a   : > { %v5539_v43 = vpop.permute.xlu0 %5538  ;;  %v5557_v13 = vpop.permute.xlu1 %5556 }
0x188b   : > { %v5585_v37 = vsel %vm2273_vm11, %v5555_v14, %v5557_v13 }
0x188c   : > { %9264 = vmatpush3.bf16.msra.mxu0 %v5585_v37 }
0x188d   : > { %9265 = vmatprep.subr.bf16.mxu0 %v5571_v20 }
0x188e   : > { %v5547_v2 = vpop.permute.xlu0 %5546  ;;  %v5549_v47 = vpop.permute.xlu1 %5548 }
0x188f   : > { %v5583_v55 = vsel %vm2273_vm11, %v5547_v2, %v5549_v47 }
0x1890   : > { %9266 = vmatpush3.bf16.msra.mxu0 %v5584_v6 }
0x1891   : > { %9267 = vmatprep.subr.bf16.mxu0 %v5569_v39 }
0x1892   : > { %v5565_v36 = vpop.permute.xlu0 %5564  ;;  %v5541_v59 = vpop.permute.xlu1 %5540 }
0x1893   : > { %v5581_v46 = vsel %vm2273_vm11, %v5539_v43, %v5541_v59  ;;  %v8994_v59 = vld [vmem:[%s14107_s6 + $0xb0] sm:$0xff] }
0x1894   : > { %9268 = vmatpush3.bf16.msra.mxu0 %v5583_v55  ;;  %v8995_v55 = vld [vmem:[%s14107_s6 + $0xb8] sm:$0xff] }
0x1895   : > { %9269 = vmatprep.subr.bf16.mxu0 %v5567_v60 }
0x1896   : > { %v5537_v57 = vpop.permute.xlu0 %5536  ;;  %v5535_v40 = vpop.permute.xlu1 %5534 }
0x1897   : > { %v5580_v12 = vsel %vm2273_vm11, %v5535_v40, %v5537_v57  ;;  %v8989_v57 = vld [vmem:[%s14106_s5 + $0xa8] sm:$0xff] }
0x1898   : > { %9270 = vmatpush3.bf16.msra.mxu0 %v5582_v34  ;;  %v8993_v40 = vld [vmem:[%s14107_s6 + $0xa8] sm:$0xff]  ;;  %v8991_v34 = vld [vmem:[%s14106_s5 + $0xb8] sm:$0xff] }
0x1899   : > { %9271 = vmatprep.subr.bf16.mxu0 %v5565_v36 }
0x189a   : > { %v5531_v24 = vpop.permute.xlu0 %5530  ;;  %v5563_v25 = vpop.permute.xlu1 %5562 }
0x189c   : > { %9272 = vmatpush3.bf16.msra.mxu0 %v5581_v46 }
0x189d   : > { %9273 = vmatprep.subr.bf16.mxu0 %v5563_v25  ;;  %v8992_v25 = vld [vmem:[%s14107_s6 + $0xa0] sm:$0xff] }
0x189e   : > { %v5561_v11 = vpop.permute.xlu0 %5560  ;;  %v5533_v32 = vpop.permute.xlu1 %5532 }
0x189f   : > { %v5579_v50 = vsel %vm2273_vm11, %v5531_v24, %v5533_v32  ;;  %v8988_v24 = vld [vmem:[%s14106_s5 + $0xa0] sm:$0xff] }
0x18a0   : > { %9274 = vmatpush3.bf16.msra.mxu0 %v5580_v12 }
0x18a1   : > { %9275 = vmatprep.subr.bf16.mxu0 %v5561_v11 }
0x18a2   : > { %v5529_v52 = vpop.permute.xlu0 %5528  ;;  %v5527_v7 = vpop.permute.xlu1 %5526 }
0x18a3   : > { %v5578_v35 = vsel %vm2273_vm11, %v5527_v7, %v5529_v52 }
0x18a4   : > { %9276 = vmatpush3.bf16.msra.mxu0 %v5579_v50 }
0x18a6   : > { %v5577_v62 = vpop.permute.xlu0 %5576  ;;  %v5559_v41 = vpop.permute.xlu1 %5558 }
0x18a7   : > { %9277 = vmatprep.subr.bf16.mxu0 %v5559_v41  ;;  %9439 = vmatprep.subr.bf16.mxu1 %v5577_v62 }
0x18a8   : > { %9278 = vmatpush3.bf16.msra.mxu0 %v5578_v35  ;;  %9440 = vmatpush3.bf16.msra.mxu1 %v5577_v62 }
0x18aa   : > { %v5575_v45 = vpop.permute.xlu1 %5574 }
0x18ab   : > { %5643 = vmatmul.mubr.bf16.vlgmr.msra.gmra.mxu0 %v10876_v28  ;;  %9441 = vmatprep.subr.bf16.mxu1 %v5575_v45 }
0x18ac   : > { %9442 = vmatpush3.bf16.msra.mxu1 %v5575_v45  ;;  %5650 = vmatprep.mubr.bf16.mxu0 %v10881_v38 }
0x18af   : > { %9444 = vmatmul.mubr.msk.bf16.vlgmr.msra.gmra.mxu1 %vm2300_vm10, %v10880_v18 }
0x18b3   : > { %5651 = vmatmul.mubr.bf16.gmra.mxu0 %v10883_v8 }
0x18b7   : > { %v5790_v46 = vpop.permute.xlu1 %5789 }
0x196b   : > { %v9279_v23 = vpop.f32.mrf.mxu0 }
0x196d   : > { %v9280_v49 = vpop.f32.mrf.mxu0 }
0x196e   : > { %v9281_v30 = vadd.f32 %v9280_v49, %v9279_v23 }
0x196f   : > { %v9282_v51 = vpop.f32.mrf.mxu0  ;;  %v9445_v15 = vpop.f32.mrf.mxu1 }
0x1971   : > { %v9283_v44 = vpop.f32.mrf.mxu0  ;;  %v5693_v5 = vpop.f32.mrf.mxu1 }
0x1972   : > { %v13019_v58 = vadd.f32 %v9281_v30, %v5693_v5  ;;  %v9284_v26 = vadd.f32 %v9283_v44, %v9282_v51 }
0x1973   : > { %v9285_v63 = vpop.f32.mrf.mxu0  ;;  %v9446_v19 = vpop.f32.mrf.mxu1 }
0x1974   : > { %v5708_v29 = vsel %vm1654_vm12, %v13019_v58, 0.0  ;;  %v5720_v56 = vmul.f32 %v13019_v58, %v13019_v58 }
0x1975   : > { %v9286_v27 = vpop.f32.mrf.mxu0  ;;  %v5696_v21 = vpop.f32.mrf.mxu1  ;;  %5709 = vadd.xlane.f32.xlu1 %v5708_v29 }
0x1976   : > { %v13025_v31 = vadd.f32 %v9284_v26, %v5696_v21  ;;  %v9287_v20 = vadd.f32 %v9286_v27, %v9285_v63  ;;  %v5724_v60 = vsel %vm1654_vm12, %v5720_v56, 0.0 }
0x1977   : > { %v9288_v33 = vpop.f32.mrf.mxu0 }
0x1978   : > { %v5711_v53 = vsel %vm1654_vm12, %v13025_v31, 0.0  ;;  %v5721_v42 = vmul.f32 %v13025_v31, %v13025_v31  ;;  %v13032_v14 = vadd.f32 %v9445_v15, %v9287_v20 }
0x1979   : > { %v9289_v39 = vpop.f32.mrf.mxu0  ;;  %5712 = vadd.xlane.f32.xlu0 %v5711_v53  ;;  %5725 = vadd.xlane.f32.xlu1 %v5724_v60 }
0x197a   : > { %v9290_v1 = vadd.f32 %v9289_v39, %v9288_v33  ;;  %v5727_v43 = vsel %vm1654_vm12, %v5721_v42, 0.0  ;;  %v5714_v37 = vsel %vm1654_vm12, %v13032_v14, 0.0  ;;  %v5722_v2 = vmul.f32 %v13032_v14, %v13032_v14 }
0x197c   : > { %v13034_v16 = vadd.f32 %v9446_v19, %v9290_v1  ;;  %v5730_v47 = vsel %vm1654_vm12, %v5722_v2, 0.0 }
0x197d   : > { %5728 = vadd.xlane.f32.xlu0 %v5727_v43 }
0x197e   : > { %v5717_v13 = vsel %vm1654_vm12, %v13034_v16, 0.0  ;;  %v5723_v6 = vmul.f32 %v13034_v16, %v13034_v16 }
0x197f   : > { %5718 = vadd.xlane.f32.xlu1 %v5717_v13 }
0x1980   : > { %v5733_v36 = vsel %vm1654_vm12, %v5723_v6, 0.0 }
0x1981   : > { %5715 = vadd.xlane.f32.xlu0 %v5714_v37 }
0x1985   : > { %5731 = vadd.xlane.f32.xlu0 %v5730_v47 }
0x1989   : > { %5734 = vadd.xlane.f32.xlu0 %v5733_v36 }
0x1990   : > { %5818 = vperm.xlu1 %9772, %v8994_v59  }
0x1994   : > { %5823 = vperm.xlu1 %9772, %v8995_v55  }
0x1998   : > { %5784 = vperm.xlu1 %9772, %v8989_v57  }
0x199c   : > { %5813 = vperm.xlu1 %9772, %v8993_v40  }
0x199f   : > { %5794 = vperm.xlu0 %9773, %v8991_v34  }
0x19a0   : > { %5882 = vrot.lane.b32.xlu1 %v12837_v9, %s14214_s29 }
0x19a3   : > { %5779 = vperm.xlu0 %9773, %v8988_v24  }
0x19a4   : > { %5904 = vrot.lane.b32.xlu1 %v12837_v9, %s14215_s20 }
0x19a7   : > { %5808 = vperm.xlu0 %9773, %v8992_v25  }
0x19ab   : > { %5893 = vrot.lane.b32.xlu0 %v12849_v0, %s14212_s2 }
0x19af   : > { %5911 = vrot.lane.b32.xlu0 %v12849_v0, %s14211_s27 }
0x19b3   : > { %5918 = vrot.lane.b32.xlu0 %v12837_v9, %s14213_s3 }
0x19fe   : > { %v5710_v11 = vpop.xlane.xlu1 %5709 }
0x19ff   : > { %v5736_v32 = vmul.f32 0.0625, %v5710_v11 }
0x1a01   : > { %v5744_v7 = vmul.f32 %v5736_v32, %v5736_v32  ;;  %v5756_v37 = vsub.f32 %v13019_v58, %v5736_v32 }
0x1a02   : > { %v5713_v12 = vpop.xlane.xlu0 %5712  ;;  %v5726_v52 = vpop.xlane.xlu1 %5725 }
0x1a03   : > { %v5737_v50 = vmul.f32 0.0625, %v5713_v12  ;;  %v5740_v62 = vmul.f32 0.0625, %v5726_v52 }
0x1a05   : > { %v5748_v41 = vsub.f32 %v5740_v62, %v5744_v7  ;;  %v5745_v28 = vmul.f32 %v5737_v50, %v5737_v50  ;;  %v5757_v43 = vsub.f32 %v13025_v31, %v5737_v50 }
0x1a06   : > { %v5729_v35 = vpop.xlane.xlu0 %5728 }
0x1a07   : > { %v5752_v38 = vmax.f32 %v5748_v41, 0.0  ;;  %v5741_v45 = vmul.f32 0.0625, %v5729_v35 }
0x1a08   : > { %v5719_v18 = vpop.xlane.xlu1 %5718 }
0x1a09   : > { %v5749_v8 = vsub.f32 %v5741_v45, %v5745_v28  ;;  %v5760_v23 = vadd.f32 1e-05, %v5752_v38  ;;  %v5739_v44 = vmul.f32 0.0625, %v5719_v18 }
0x1a0a   : > { %v5716_v0 = vpop.xlane.xlu0 %5715 }
0x1a0b   : > { %v5753_v49 = vmax.f32 %v5749_v8, 0.0  ;;  %v5738_v51 = vmul.f32 0.0625, %v5716_v0  ;;  %10973 = vrsqrt.f32 %v5760_v23  ;;  %v5747_v29 = vmul.f32 %v5739_v44, %v5739_v44 }
0x1a0c   : > { %v5819_v15 = vpop.permute.xlu1 %5818  ;;  %v5759_v32 = vsub.f32 %v13034_v16, %v5739_v44 }
0x1a0d   : > { %v5761_v9 = vadd.f32 1e-05, %v5753_v49  ;;  %v5746_v5 = vmul.f32 %v5738_v51, %v5738_v51  ;;  %v5758_v34 = vsub.f32 %v13032_v14, %v5738_v51 }
0x1a0e   : > { %v5732_v30 = vpop.xlane.xlu0 %5731 }
0x1a0f   : > { %10975 = vrsqrt.f32 %v5761_v9  ;;  %v5742_v63 = vmul.f32 0.0625, %v5732_v30 }
0x1a10   : > { %v5824_v21 = vpop.permute.xlu1 %5823 }
0x1a11   : > { %v5750_v19 = vsub.f32 %v5742_v63, %v5746_v5 }
0x1a12   : > { %v5735_v26 = vpop.xlane.xlu0 %5734 }
0x1a13   : > { %v5754_v56 = vmax.f32 %v5750_v19, 0.0  ;;  %v5743_v27 = vmul.f32 0.0625, %v5735_v26 }
0x1a14   : > { %v5785_v42 = vpop.permute.xlu1 %5784 }
0x1a15   : > { %v5762_v33 = vadd.f32 1e-05, %v5754_v56  ;;  %v5751_v20 = vsub.f32 %v5743_v27, %v5747_v29 }
0x1a17   : > { %10977 = vrsqrt.f32 %v5762_v33  ;;  %v5755_v53 = vmax.f32 %v5751_v20, 0.0 }
0x1a18   : > { %v10974_v1 = vpop.eup %10973  ;;  %v5814_v59 = vpop.permute.xlu1 %5813 }
0x1a19   : > { %v5763_v60 = vadd.f32 1e-05, %v5755_v53  ;;  %v5768_v36 = vmul.f32 %v10974_v1, %v5756_v37 }
0x1a1a   : > { %v5795_v39 = vpop.permute.xlu0 %5794 }
0x1a1b   : > { %10979 = vrsqrt.f32 %v5763_v60 }
0x1a1c   : > { %v10976_v13 = vpop.eup %10975  ;;  %v5883_v8 = vpop.permute.xlu1 %5882 }
0x1a1d   : > { %v5769_v2 = vmul.f32 %v10976_v13, %v5757_v43 }
0x1a1e   : > { %v5780_v47 = vpop.permute.xlu0 %5779 }
0x1a1f   : > { %v5798_v6 = vmul.f32 %v5785_v42, %v5769_v2  ;;  %v5797_v57 = vmul.f32 %v5780_v47, %v5768_v36 }
0x1a20   : > { %v5905_v1 = vpop.permute.xlu1 %5904 }
0x1a21   : > { %v5827_v55 = vadd.f32 %v5814_v59, %v5798_v6 }
0x1a22   : > { %v5809_v40 = vpop.permute.xlu0 %5808 }
0x1a23   : > { %v13082_v24 = vadd.f32 %v5827_v55, %v12623_v17  ;;  %v5826_v25 = vadd.f32 %v5809_v40, %v5797_v57 }
0x1a24   : > { %v10978_v11 = vpop.eup %10977 }
0x1a25   : > { %v5770_v31 = vmul.f32 %v10978_v11, %v5758_v34  ;;  %5848 = vst.msk [vmem:[#allocation2 + $0x28] sm:$0xff] %vm1654_vm12, %v13082_v24  ;;  %v13087_v58 = vadd.f32 %v5826_v25, %v12628_v61  ;;  %v11012_v11 = vld [vmem:[#allocation3 + $0x4] ss:$0 sm:$0xff] }
0x1a26   : > { %v5894_v62 = vpop.permute.xlu0 %5893 }
0x1a27   : > { %v5799_v12 = vmul.f32 %v5790_v46, %v5770_v31  ;;  %5847 = vst.msk [vmem:[#allocation2 + $0x8] sm:$0xff] %vm1654_vm12, %v13087_v58  ;;  %v5898_v35 = vmul.f32 %v12865_v54, %v5894_v62 }
0x1a28   : > { %v10980_v52 = vpop.eup %10979 }
0x1a29   : > { %v5828_v14 = vadd.f32 %v5819_v15, %v5799_v12  ;;  %v5771_v7 = vmul.f32 %v10980_v52, %v5759_v32  ;;  %v5889_v15 = vmul.f32 %v12865_v54, %v5883_v8 }
0x1a2a   : > { %v5912_v56 = vpop.permute.xlu0 %5911 }
0x1a2b   : > { %v13093_v17 = vadd.f32 %v5828_v14, %v12634_v10  ;;  %v5800_v50 = vmul.f32 %v5795_v39, %v5771_v7 }
0x1a2c   : > { %v13095_v41 = vld [vmem:[#allocation2 + $0x28] sm:$0xff] }
0x1a2d   : > { %5849 = vst.msk [vmem:[#allocation2 + $0x48] sm:$0xff] %vm1654_vm12, %v13093_v17  ;;  %v5829_v61 = vadd.f32 %v5824_v21, %v5800_v50  ;;  %v5899_v16 = vmul.f32 %v5894_v62, %v13095_v41  ;;  %v5888_v26 = vmul.f32 %v5883_v8, %v13095_v41  ;;  %v5915_v53 = vmul.f32 %v5912_v56, %v13095_v41 }
0x1a2e   : > { %6505 = vst.msk [vmem:[#allocation2 + $0x28] sm:$0xff] %vm1875_vm7, %v12865_v54  ;;  %v13103_v46 = vld [vmem:[#allocation2 + $0x8] sm:$0xff]  ;;  %v5908_v59 = vmul.f32 %v5905_v1, %v13095_v41  ;;  %v10404_v55 = vpack.i.bf16 %v13095_v41, %v12865_v54  ;;  %v5919_v40 = vpop.permute.xlu0 %5918 }
0x1a2f   : > { %v13106_v10 = vadd.f32 %v5829_v61, %v12647_v22  ;;  %6504 = vst.msk [vmem:[#allocation2 + $0x8] sm:$0xff] %vm1875_vm7, %v12865_v54  ;;  %v10334_v28 = vpack.i.bf16 %v5899_v16, %v5898_v35  ;;  %v5897_v38 = vmul.f32 %v5894_v62, %v13103_v46  ;;  %v10329_v23 = vpack.i.bf16 %v13095_v41, %v13103_v46 }
0x1a30   : > { %v5886_v5 = vmul.f32 %v5883_v8, %v13103_v46  ;;  %v5914_v27 = vmul.f32 %v5912_v56, %v13103_v46  ;;  %v10364_v33 = vpack.i.bf16 %v5888_v26, %v5889_v15  ;;  %v5907_v47 = vmul.f32 %v5905_v1, %v13103_v46 }
0x1a31   : > { %5850 = vst.msk [vmem:[#allocation2 + $0x68] sm:$0xff] %vm1654_vm12, %v13106_v10  ;;  %10335 = vrot.lane.b32.xlu1 %v10334_v28, %s14216_s21  ;;  %v10324_v45 = vpack.i.bf16 %v5897_v38, %v5898_v35  ;;  %v10394_v6 = vpack.i.bf16 %v13103_v46, %v12865_v54  ;;  %v5921_v31 = vmul.f32 %v5919_v40, %v13103_v46 }
0x1a32   : > { %v10359_v19 = vpack.i.bf16 %v5886_v5, %v5889_v15  ;;  %v10374_v39 = vpack.i.bf16 %v5915_v53, %v5914_v27  ;;  %v10409_v57 = vpack.i.bf16 %v5908_v59, %v5907_v47  ;;  %v5922_v32 = vmul.f32 %v5919_v40, %v13095_v41 }
0x1a33   : > { %10325 = vrot.lane.b32.xlu0 %v10324_v45, %s14216_s21 }
0x1a34   : > { %v13114_v18 = vld [vmem:[#allocation2 + $0x48] sm:$0xff]  ;;  %v10429_v12 = vpack.i.bf16 %v5922_v32, %v5921_v31 }
0x1a35   : > { %6506 = vst.msk [vmem:[#allocation2 + $0x48] sm:$0xff] %vm1875_vm7, %v12865_v54  ;;  %v5901_v22 = vmul.f32 %v5894_v62, %v13114_v18  ;;  %v5890_v49 = vmul.f32 %v5883_v8, %v13114_v18  ;;  %v5916_v60 = vmul.f32 %v5912_v56, %v13114_v18  ;;  %v10384_v13 = vpack.i.bf16 %v13114_v18, %v12865_v54 }
0x1a36   : > { %v5909_v2 = vmul.f32 %v5905_v1, %v13114_v18  ;;  %v5923_v25 = vmul.f32 %v5919_v40, %v13114_v18 }
0x1a37   : > { %v10339_v0 = vpack.i.bf16 %v5901_v22, %v5898_v35  ;;  %10330 = vrot.lane.b32.xlu0 %v10329_v23, %s14217_s0  ;;  %v10344_v44 = vpack.i.bf16 %v5890_v49, %v5889_v15 }
0x1a38   : > { %v13123_v51 = vld [vmem:[#allocation2 + $0x68] sm:$0xff] }
0x1a39   : > { %6507 = vst.msk [vmem:[#allocation2 + $0x68] sm:$0xff] %vm1875_vm7, %v12865_v54  ;;  %10340 = vrot.lane.b32.xlu1 %v10339_v0, %s14216_s21  ;;  %v5903_v9 = vmul.f32 %v5894_v62, %v13123_v51  ;;  %v10349_v63 = vpack.i.bf16 %v13123_v51, %v13114_v18  ;;  %v5892_v29 = vmul.f32 %v5883_v8, %v13123_v51 }
0x1a3a   : > { %v5917_v21 = vmul.f32 %v5912_v56, %v13123_v51  ;;  %v5910_v43 = vmul.f32 %v5905_v1, %v13123_v51  ;;  %v10389_v37 = vpack.i.bf16 %v13123_v51, %v12865_v54  ;;  %v5924_v34 = vmul.f32 %v5919_v40, %v13123_v51 }
0x1a3b   : > { %v10354_v30 = vpack.i.bf16 %v5903_v9, %v5898_v35  ;;  %v10369_v20 = vpack.i.bf16 %v5892_v29, %v5889_v15 }
0x1a3c   : > { %v10379_v42 = vpack.i.bf16 %v5917_v21, %v5916_v60  ;;  %v10399_v36 = vpack.i.bf16 %v5910_v43, %v5909_v2  ;;  %v10424_v54 = vpack.i.bf16 %v5924_v34, %v5923_v25 }
0x1a3d   : > { %10355 = vrot.lane.b32.xlu0 %v10354_v30, %s14216_s21  ;;  %10345 = vrot.lane.b32.xlu1 %v10344_v44, %s14204_s17 }
0x1a41   : > { %10350 = vrot.lane.b32.xlu1 %v10349_v63, %s14217_s0  ;;  %10360 = vrot.lane.b32.xlu0 %v10359_v19, %s14204_s17 }
0x1a45   : > { %10365 = vrot.lane.b32.xlu1 %v10364_v33, %s14204_s17  ;;  %10370 = vrot.lane.b32.xlu0 %v10369_v20, %s14204_s17 }
0x1a49   : > { %10380 = vrot.lane.b32.xlu1 %v10379_v42, %s14208_s23  ;;  %10375 = vrot.lane.b32.xlu0 %v10374_v39, %s14208_s23 }
0x1a4d   : > { %10385 = vrot.lane.b32.xlu1 %v10384_v13, %s14209_s22  ;;  %10390 = vrot.lane.b32.xlu0 %v10389_v37, %s14209_s22 }
0x1a51   : > { %10395 = vrot.lane.b32.xlu0 %v10394_v6, %s14209_s22  ;;  %10400 = vrot.lane.b32.xlu1 %v10399_v36, %s14218_s1 }
0x1a55   : > { %10405 = vrot.lane.b32.xlu1 %v10404_v55, %s14209_s22  ;;  %10410 = vrot.lane.b32.xlu0 %v10409_v57, %s14218_s1 }
0x1a59   : > { %5865 = vrot.lane.b32.xlu1 %v11012_v11, %s14219_s28  ;;  %10415 = vrot.lane.b32.xlu0 %v10349_v63, %s14220_s26 }
0x1a5d   : > { %10420 = vrot.lane.b32.xlu1 %v10329_v23, %s14220_s26  ;;  %10425 = vrot.lane.b32.xlu0 %v10424_v54, %s14210_s25 }
0x1a61   : > { %10430 = vrot.lane.b32.xlu1 %v10429_v12, %s14210_s25 }
0x1aa3   : > { %v10336_v52 = vpop.permute.xlu1 %10335 }
0x1aa4   : > { %v10338_v7 = vunpack.i.h.bf16 %v10336_v52  ;;  %v10337_v27 = vunpack.i.l.bf16 %v10336_v52 }
0x1aa5   : > { %v10326_v14 = vpop.permute.xlu0 %10325 }
0x1aa6   : > { %v10328_v50 = vunpack.i.h.bf16 %v10326_v14  ;;  %v10327_v63 = vunpack.i.l.bf16 %v10326_v14  ;;  %v6022_v37 = vsel %vm2054_vm6, %v10337_v27, %v10338_v7  ;;  %v13205_v27 = vld [vmem:[#allocation2] sm:$0xff] }
0x1aa8   : > { %v6118_v62 = vpack.c.bf16 %v10338_v7, %v10328_v50  ;;  %v6021_v1 = vsel %vm2054_vm6, %v10327_v63, %v10328_v50 }
0x1aa9   : > { %v10331_v35 = vpop.permute.xlu0 %10330  ;;  %v6117_v57 = vpack.c.bf16 %v6022_v37, %v6021_v1 }
0x1aaa   : > { %v10333_v61 = vunpack.i.h.bf16 %v10331_v35  ;;  %v10332_v16 = vunpack.i.l.bf16 %v10331_v35  ;;  %6213 = vrot.lane.b32.xlu0 %v6118_v62, %s14221_s10 }
0x1aab   : > { %v10341_v28 = vpop.permute.xlu1 %10340 }
0x1aac   : > { %v6127_v38 = vpack.c.bf16 %v10333_v61, %v10332_v16  ;;  %v10343_v2 = vunpack.i.h.bf16 %v10341_v28  ;;  %v10342_v47 = vunpack.i.l.bf16 %v10341_v28 }
0x1aae   : > { %6231 = vrot.lane.b32.xlu1 %v6127_v38, %s14221_s10  ;;  %v6023_v31 = vsel %vm2054_vm6, %v10342_v47, %v10343_v2 }
0x1aaf   : > { %v10356_v45 = vpop.permute.xlu0 %10355  ;;  %v13177_v22 = vpop.permute.xlu1 %10345 }
0x1ab0   : > { %v10358_v21 = vunpack.i.h.bf16 %v10356_v45  ;;  %v10357_v33 = vunpack.i.l.bf16 %v10356_v45  ;;  %v10348_v35 = vunpack.i.h.bf16 %v13177_v22  ;;  %v10347_v61 = vunpack.i.l.bf16 %v13177_v22 }
0x1ab2   : > { %v6024_v36 = vsel %vm2054_vm6, %v10357_v33, %v10358_v21  ;;  %v6120_v16 = vpack.c.bf16 %v10358_v21, %v10343_v2 }
0x1ab3   : > { %v10361_v8 = vpop.permute.xlu0 %10360  ;;  %v10351_v23 = vpop.permute.xlu1 %10350  ;;  %v6119_v12 = vpack.c.bf16 %v6024_v36, %v6023_v31 }
0x1ab4   : > { %v10363_v9 = vunpack.i.h.bf16 %v10361_v8  ;;  %v10353_v30 = vunpack.i.h.bf16 %v10351_v23  ;;  %v10352_v44 = vunpack.i.l.bf16 %v10351_v23  ;;  %v10362_v6 = vunpack.i.l.bf16 %v10361_v8 }
0x1ab5   : > { %v5987_v23 = vsel %vm639_vm9, %v10347_v61, %v10348_v35 }
0x1ab6   : > { %v6128_v20 = vpack.c.bf16 %v10353_v30, %v10352_v44  ;;  %v5985_v32 = vsel %vm639_vm9, %v10362_v6, %v10363_v9  ;;  %v10886_v6 = vld [vmem:[%s14105_s4 + $0x124] ss:$12 sps:$4 sm:$0xff]  }
0x1ab7   : > { %v10371_v0 = vpop.permute.xlu0 %10370  ;;  %v10366_v49 = vpop.permute.xlu1 %10365  ;;  %6303 = vmatprep.mubr.bf16.mxu1 %v10886_v6  ;;  %v10888_v6 = vld [vmem:[%s14105_s4 + $0x140] ss:$12 sps:$4 sm:$0xff]  }
0x1ab8   : > { %v10368_v15 = vunpack.i.h.bf16 %v10366_v49  ;;  %v10367_v53 = vunpack.i.l.bf16 %v10366_v49  ;;  %v10373_v14 = vunpack.i.h.bf16 %v10371_v0  ;;  %v10372_v7 = vunpack.i.l.bf16 %v10371_v0 }
0x1aba   : > { %v6114_v5 = vpack.c.bf16 %v10368_v15, %v10363_v9  ;;  %v5986_v59 = vsel %vm639_vm9, %v10367_v53, %v10368_v15  ;;  %v5988_v38 = vsel %vm639_vm9, %v10372_v7, %v10373_v14  ;;  %v6116_v0 = vpack.c.bf16 %v10373_v14, %v10348_v35  ;;  %v9016_v7 = vld [vmem:[%s14106_s5 + $0xd0] sm:$0xff] }
0x1abb   : > { %v10376_v19 = vpop.permute.xlu0 %10375  ;;  %v10381_v26 = vpop.permute.xlu1 %10380  ;;  %v6113_v52 = vpack.c.bf16 %v5986_v59, %v5985_v32  ;;  %v6115_v15 = vpack.c.bf16 %v5988_v38, %v5987_v23 }
0x1abc   : > { %v10378_v29 = vunpack.i.h.bf16 %v10376_v19  ;;  %v10377_v56 = vunpack.i.l.bf16 %v10376_v19  ;;  %6205 = vrot.lane.b32.xlu0 %v6114_v5, %s14221_s10  ;;  %v10383_v42 = vunpack.i.h.bf16 %v10381_v26  ;;  %v10382_v39 = vunpack.i.l.bf16 %v10381_v26 }
0x1abe   : > { %v6125_v60 = vpack.c.bf16 %v10378_v29, %v10377_v56  ;;  %v6126_v55 = vpack.c.bf16 %v10383_v42, %v10382_v39 }
0x1abf   : > { %v10391_v43 = vpop.permute.xlu0 %10390  ;;  %v10386_v13 = vpop.permute.xlu1 %10385 }
0x1ac0   : > { %6227 = vrot.lane.b32.xlu1 %v6125_v60, %s14221_s10  ;;  %6233 = vrot.lane.b32.xlu0 %v6128_v20, %s14221_s10  ;;  %v10393_v40 = vunpack.i.h.bf16 %v10391_v43  ;;  %v10392_v34 = vunpack.i.l.bf16 %v10391_v43  ;;  %v10388_v25 = vunpack.i.h.bf16 %v10386_v13  ;;  %v10387_v11 = vunpack.i.l.bf16 %v10386_v13 }
0x1ac2   : > { %v5952_v50 = vsel %vm572_vm3, %v10392_v34, %v10393_v40  ;;  %v5951_v62 = vsel %vm572_vm3, %v10387_v11, %v10388_v25  ;;  %v6112_v19 = vpack.c.bf16 %v10393_v40, %v10388_v25 }
0x1ac3   : > { %v10401_v54 = vpop.permute.xlu1 %10400  ;;  %v6111_v28 = vpack.c.bf16 %v5952_v50, %v5951_v62  ;;  %v10396_v45 = vpop.permute.xlu0 %10395 }
0x1ac4   : > { %6229 = vrot.lane.b32.xlu0 %v6126_v55, %s14221_s10  ;;  %6211 = vrot.lane.b32.xlu1 %v6117_v57, %s14221_s10  ;;  %v10403_v49 = vunpack.i.h.bf16 %v10401_v54  ;;  %v10402_v9 = vunpack.i.l.bf16 %v10401_v54  ;;  %v10398_v22 = vunpack.i.h.bf16 %v10396_v45  ;;  %v10397_v5 = vunpack.i.l.bf16 %v10396_v45 }
0x1ac6   : > { %v6124_v26 = vpack.c.bf16 %v10403_v49, %v10402_v9  ;;  %v5949_v33 = vsel %vm572_vm3, %v10397_v5, %v10398_v22 }
0x1ac7   : > { %v10406_v8 = vpop.permute.xlu1 %10405  ;;  %v10411_v63 = vpop.permute.xlu0 %10410 }
0x1ac8   : > { %6215 = vrot.lane.b32.xlu0 %v6119_v12, %s14221_s10  ;;  %6203 = vrot.lane.b32.xlu1 %v6113_v52, %s14221_s10  ;;  %v10408_v30 = vunpack.i.h.bf16 %v10406_v8  ;;  %v10407_v44 = vunpack.i.l.bf16 %v10406_v8  ;;  %v10413_v20 = vunpack.i.h.bf16 %v10411_v63  ;;  %v10412_v53 = vunpack.i.l.bf16 %v10411_v63 }
0x1aca   : > { %v5950_v29 = vsel %vm572_vm3, %v10407_v44, %v10408_v30  ;;  %v6110_v60 = vpack.c.bf16 %v10408_v30, %v10398_v22  ;;  %v6123_v43 = vpack.c.bf16 %v10413_v20, %v10412_v53 }
0x1acb   : > { %v5866_v56 = vpop.permute.xlu1 %5865  ;;  %v6109_v42 = vpack.c.bf16 %v5950_v29, %v5949_v33  ;;  %v10416_v39 = vpop.permute.xlu0 %10415 }
0x1acc   : > { %6199 = vrot.lane.b32.xlu0 %v6111_v28, %s14221_s10  ;;  %6217 = vrot.lane.b32.xlu1 %v6120_v16, %s14221_s10  ;;  %v5872_v21 = vmul.f32 %v13205_v27, %v5866_v56  ;;  %v10418_v13 = vunpack.i.h.bf16 %v10416_v39  ;;  %v10417_v37 = vunpack.i.l.bf16 %v10416_v39  ;;  %v5873_v2 = vmul.f32 %v5866_v56, %v13114_v18  ;;  %v10887_v18 = vld [vmem:[%s14105_s4 + $0x128] ss:$12 sps:$4 sm:$0xff]  }
0x1acd   : > { %v5875_v47 = vmul.f32 %v5866_v56, %v13123_v51  ;;  %v5869_v59 = vmul.f32 %v5866_v56, %v13103_v46  ;;  %v5871_v55 = vmul.f32 %v5866_v56, %v13095_v41  ;;  %9451 = vmatprep.mubr.msk.bf16.mxu0 %vm2300_vm10, %v10887_v18 }
0x1ace   : > { %v6107_v1 = vpack.c.bf16 %v5872_v21, %v5872_v21  ;;  %v6122_v57 = vpack.c.bf16 %v10418_v13, %v10417_v37  ;;  %v10884_v37 = vld [vmem:[%s14105_s4 + $0x120] ss:$12 sps:$4 sm:$0xff]  }
0x1acf   : > { %v10421_v36 = vpop.permute.xlu1 %10420  ;;  %v6108_v40 = vpack.c.bf16 %v5875_v47, %v5873_v2  ;;  %v10426_v34 = vpop.permute.xlu0 %10425  ;;  %v6106_v51 = vpack.c.bf16 %v5871_v55, %v5869_v59  ;;  %v10889_v2 = vld [vmem:[%s14105_s4 + $0x13c] ss:$12 sps:$4 sm:$0xff]  }
0x1ad0   : > { %6207 = vrot.lane.b32.xlu0 %v6115_v15, %s14221_s10  ;;  %6209 = vrot.lane.b32.xlu1 %v6116_v0, %s14221_s10  ;;  %v10428_v25 = vunpack.i.h.bf16 %v10426_v34  ;;  %v10427_v11 = vunpack.i.l.bf16 %v10426_v34  ;;  %v10423_v31 = vunpack.i.h.bf16 %v10421_v36  ;;  %v10422_v32 = vunpack.i.l.bf16 %v10421_v36  ;;  %v10891_v36 = vld [vmem:[%s14105_s4 + $0x138] ss:$12 sps:$4 sm:$0xff]  }
0x1ad2   : > { %v6130_v46 = vpack.c.bf16 %v10428_v25, %v10427_v11  ;;  %v6121_v54 = vpack.c.bf16 %v10423_v31, %v10422_v32 }
0x1ad3   : > { %v10431_v41 = vpop.permute.xlu1 %10430 }
0x1ad4   : > { %6225 = vrot.lane.b32.xlu0 %v6124_v26, %s14221_s10  ;;  %6201 = vrot.lane.b32.xlu1 %v6112_v19, %s14221_s10  ;;  %v10433_v12 = vunpack.i.h.bf16 %v10431_v41  ;;  %v10432_v52 = vunpack.i.l.bf16 %v10431_v41 }
0x1ad6   : > { %v6129_v14 = vpack.c.bf16 %v10433_v12, %v10432_v52 }
0x1ad8   : > { %6197 = vrot.lane.b32.xlu0 %v6110_v60, %s14221_s10  ;;  %6195 = vrot.lane.b32.xlu1 %v6109_v42, %s14221_s10 }
0x1adc   : > { %6191 = vrot.lane.b32.xlu0 %v6107_v1, %s14221_s10  ;;  %6223 = vrot.lane.b32.xlu1 %v6123_v43, %s14221_s10 }
0x1ae0   : > { %6221 = vrot.lane.b32.xlu0 %v6122_v57, %s14221_s10  ;;  %6193 = vrot.lane.b32.xlu1 %v6108_v40, %s14221_s10 }
0x1ae4   : > { %6189 = vrot.lane.b32.xlu0 %v6106_v51, %s14221_s10  ;;  %6187 = vrot.lane.b32.xlu1 %v6107_v1, %s14221_s10 }
0x1ae8   : > { %6237 = vrot.lane.b32.xlu0 %v6130_v46, %s14221_s10  ;;  %6219 = vrot.lane.b32.xlu1 %v6121_v54, %s14221_s10 }
0x1aec   : > { %6235 = vrot.lane.b32.xlu1 %v6129_v14, %s14221_s10 }
0x1af0   : > { %6450 = vperm.xlu1 %9772, %v9016_v7  }
0x1b1c   : > { %v6214_v50 = vpop.permute.xlu0 %6213 }
0x1b20   : > { %v6232_v62 = vpop.permute.xlu1 %6231 }
0x1b2e   : > { %v6206_v35 = vpop.permute.xlu0 %6205 }
0x1b32   : > { %v6228_v61 = vpop.permute.xlu1 %6227  ;;  %v6234_v16 = vpop.permute.xlu0 %6233 }
0x1b33   : > { %9295 = vmatprep.subr.bf16.mxu1 %v6234_v16 }
0x1b36   : > { %v6230_v28 = vpop.permute.xlu0 %6229  ;;  %v6212_v38 = vpop.permute.xlu1 %6211 }
0x1b37   : > { %v6245_v30 = vsel %vm2273_vm11, %v6212_v38, %v6214_v50 }
0x1b3a   : > { %v6216_v45 = vpop.permute.xlu0 %6215  ;;  %v6204_v8 = vpop.permute.xlu1 %6203 }
0x1b3b   : > { %v6243_v26 = vsel %vm2273_vm11, %v6204_v8, %v6206_v35 }
0x1b3e   : > { %v6200_v23 = vpop.permute.xlu0 %6199  ;;  %v6218_v0 = vpop.permute.xlu1 %6217 }
0x1b3f   : > { %v6246_v49 = vsel %vm2273_vm11, %v6216_v45, %v6218_v0 }
0x1b40   : > { %9296 = vmatpush3.bf16.msra.mxu1 %v6246_v49 }
0x1b41   : > { %9297 = vmatprep.subr.bf16.mxu1 %v6232_v62 }
0x1b42   : > { %v6208_v9 = vpop.permute.xlu0 %6207  ;;  %v6210_v15 = vpop.permute.xlu1 %6209 }
0x1b43   : > { %v6244_v5 = vsel %vm2273_vm11, %v6208_v9, %v6210_v15 }
0x1b44   : > { %9298 = vmatpush3.bf16.msra.mxu1 %v6245_v30  ;;  %v9020_v30 = vld [vmem:[%s14107_s6 + $0xd0] sm:$0xff] }
0x1b45   : > { %9299 = vmatprep.subr.bf16.mxu1 %v6230_v28 }
0x1b46   : > { %v6226_v44 = vpop.permute.xlu0 %6225  ;;  %v6202_v22 = vpop.permute.xlu1 %6201 }
0x1b47   : > { %v6242_v21 = vsel %vm2273_vm11, %v6200_v23, %v6202_v22  ;;  %v9015_v22 = vld [vmem:[%s14106_s5 + $0xc8] sm:$0xff] }
0x1b48   : > { %9300 = vmatpush3.bf16.msra.mxu1 %v6244_v5  ;;  %v9019_v5 = vld [vmem:[%s14107_s6 + $0xc8] sm:$0xff] }
0x1b49   : > { %9301 = vmatprep.subr.bf16.mxu1 %v6228_v61 }
0x1b4a   : > { %v6198_v63 = vpop.permute.xlu0 %6197  ;;  %v6196_v19 = vpop.permute.xlu1 %6195 }
0x1b4b   : > { %v6241_v53 = vsel %vm2273_vm11, %v6196_v19, %v6198_v63  ;;  %v9017_v63 = vld [vmem:[%s14106_s5 + $0xd8] sm:$0xff]  ;;  %v13298_v19 = vld [vmem:[#allocation3 + $0x5] ss:$0 sm:$0xff] }
0x1b4c   : > { %9302 = vmatpush3.bf16.msra.mxu1 %v6243_v26  ;;  %v9014_v26 = vld [vmem:[%s14106_s5 + $0xc0] sm:$0xff] }
0x1b4d   : > { %9303 = vmatprep.subr.bf16.mxu1 %v6226_v44  ;;  %v9021_v44 = vld [vmem:[%s14107_s6 + $0xd8] sm:$0xff] }
0x1b4e   : > { %v6192_v29 = vpop.permute.xlu0 %6191  ;;  %v6224_v56 = vpop.permute.xlu1 %6223 }
0x1b50   : > { %9304 = vmatpush3.bf16.msra.mxu1 %v6242_v21 }
0x1b51   : > { %9305 = vmatprep.subr.bf16.mxu1 %v6224_v56  ;;  %v13310_v56 = vld [vmem:[#allocation3 + $0x4] ss:$0 sm:$0xff] }
0x1b52   : > { %v6222_v33 = vpop.permute.xlu0 %6221  ;;  %v6194_v20 = vpop.permute.xlu1 %6193 }
0x1b53   : > { %v6240_v39 = vsel %vm2273_vm11, %v6192_v29, %v6194_v20  ;;  %v9018_v29 = vld [vmem:[%s14107_s6 + $0xc0] sm:$0xff] }
0x1b54   : > { %9306 = vmatpush3.bf16.msra.mxu1 %v6241_v53 }
0x1b55   : > { %9307 = vmatprep.subr.bf16.mxu1 %v6222_v33 }
0x1b56   : > { %v6190_v60 = vpop.permute.xlu0 %6189  ;;  %v6188_v42 = vpop.permute.xlu1 %6187 }
0x1b57   : > { %v6239_v13 = vsel %vm2273_vm11, %v6188_v42, %v6190_v60 }
0x1b58   : > { %9308 = vmatpush3.bf16.msra.mxu1 %v6240_v39 }
0x1b5a   : > { %v6238_v1 = vpop.permute.xlu0 %6237  ;;  %v6220_v43 = vpop.permute.xlu1 %6219 }
0x1b5b   : > { %9309 = vmatprep.subr.bf16.mxu1 %v6220_v43  ;;  %9447 = vmatprep.subr.bf16.mxu0 %v6238_v1 }
0x1b5c   : > { %9310 = vmatpush3.bf16.msra.mxu1 %v6239_v13  ;;  %9448 = vmatpush3.bf16.msra.mxu0 %v6238_v1 }
0x1b5e   : > { %v6236_v47 = vpop.permute.xlu1 %6235 }
0x1b5f   : > { %6304 = vmatmul.mubr.bf16.vlgmr.msra.gmra.mxu1 %v10884_v37  ;;  %9449 = vmatprep.subr.bf16.mxu0 %v6236_v47 }
0x1b60   : > { %9450 = vmatpush3.bf16.msra.mxu0 %v6236_v47  ;;  %6311 = vmatprep.mubr.bf16.mxu1 %v10889_v2 }
0x1b63   : > { %9452 = vmatmul.mubr.msk.bf16.vlgmr.msra.gmra.mxu0 %vm2300_vm10, %v10888_v6 }
0x1b67   : > { %6312 = vmatmul.mubr.bf16.gmra.mxu1 %v10891_v36 }
0x1b6b   : > { %v6451_v21 = vpop.permute.xlu1 %6450 }
0x1c1f   : > { %v9311_v59 = vpop.f32.mrf.mxu1 }
0x1c21   : > { %v9312_v55 = vpop.f32.mrf.mxu1 }
0x1c22   : > { %v9313_v34 = vadd.f32 %v9312_v55, %v9311_v59 }
0x1c23   : > { %v9314_v57 = vpop.f32.mrf.mxu1  ;;  %v9453_v40 = vpop.f32.mrf.mxu0 }
0x1c25   : > { %v9315_v18 = vpop.f32.mrf.mxu1  ;;  %v6354_v51 = vpop.f32.mrf.mxu0 }
0x1c26   : > { %v13255_v25 = vadd.f32 %v9313_v34, %v6354_v51  ;;  %v9316_v32 = vadd.f32 %v9315_v18, %v9314_v57 }
0x1c27   : > { %v9317_v11 = vpop.f32.mrf.mxu1  ;;  %v9454_v31 = vpop.f32.mrf.mxu0 }
0x1c28   : > { %v6369_v41 = vsel %vm1654_vm12, %v13255_v25, 0.0  ;;  %v6381_v46 = vmul.f32 %v13255_v25, %v13255_v25 }
0x1c29   : > { %v9318_v54 = vpop.f32.mrf.mxu1  ;;  %v6357_v12 = vpop.f32.mrf.mxu0  ;;  %6370 = vadd.xlane.f32.xlu1 %v6369_v41 }
0x1c2a   : > { %v13261_v52 = vadd.f32 %v9316_v32, %v6357_v12  ;;  %v9319_v7 = vadd.f32 %v9318_v54, %v9317_v11  ;;  %v6385_v62 = vsel %vm1654_vm12, %v6381_v46, 0.0 }
0x1c2b   : > { %v9320_v14 = vpop.f32.mrf.mxu1 }
0x1c2c   : > { %v6372_v50 = vsel %vm1654_vm12, %v13261_v52, 0.0  ;;  %v6382_v35 = vmul.f32 %v13261_v52, %v13261_v52  ;;  %v13268_v28 = vadd.f32 %v9453_v40, %v9319_v7 }
0x1c2d   : > { %v9321_v61 = vpop.f32.mrf.mxu1  ;;  %6373 = vadd.xlane.f32.xlu0 %v6372_v50  ;;  %6386 = vadd.xlane.f32.xlu1 %v6385_v62 }
0x1c2e   : > { %v9322_v16 = vadd.f32 %v9321_v61, %v9320_v14  ;;  %v6388_v45 = vsel %vm1654_vm12, %v6382_v35, 0.0  ;;  %v6375_v23 = vsel %vm1654_vm12, %v13268_v28, 0.0  ;;  %v6383_v0 = vmul.f32 %v13268_v28, %v13268_v28 }
0x1c30   : > { %v13270_v38 = vadd.f32 %v9454_v31, %v9322_v16  ;;  %v6391_v49 = vsel %vm1654_vm12, %v6383_v0, 0.0 }
0x1c31   : > { %6389 = vadd.xlane.f32.xlu0 %v6388_v45 }
0x1c32   : > { %v6378_v8 = vsel %vm1654_vm12, %v13270_v38, 0.0  ;;  %v6384_v9 = vmul.f32 %v13270_v38, %v13270_v38 }
0x1c33   : > { %6379 = vadd.xlane.f32.xlu1 %v6378_v8 }
0x1c34   : > { %v6394_v15 = vsel %vm1654_vm12, %v6384_v9, 0.0 }
0x1c35   : > { %6376 = vadd.xlane.f32.xlu0 %v6375_v23 }
0x1c39   : > { %6392 = vadd.xlane.f32.xlu0 %v6391_v49 }
0x1c3d   : > { %6395 = vadd.xlane.f32.xlu0 %v6394_v15 }
0x1c44   : > { %6479 = vperm.xlu1 %9772, %v9020_v30  }
0x1c48   : > { %6484 = vperm.xlu1 %9772, %v9021_v44  }
0x1c4c   : > { %6445 = vperm.xlu1 %9772, %v9015_v22  }
0x1c50   : > { %6474 = vperm.xlu1 %9772, %v9019_v5  }
0x1c53   : > { %6455 = vperm.xlu0 %9773, %v9017_v63  }
0x1c54   : > { %6543 = vrot.lane.b32.xlu1 %v13298_v19, %s14214_s29 }
0x1c57   : > { %6440 = vperm.xlu0 %9773, %v9014_v26  }
0x1c58   : > { %6565 = vrot.lane.b32.xlu1 %v13298_v19, %s14215_s20  ;;  %s14222_s20 = smov 121  }
0x1c5b   : > { %6469 = vperm.xlu0 %9773, %v9018_v29  }
0x1c5f   : > { %6554 = vrot.lane.b32.xlu0 %v13310_v56, %s14212_s2  ;;  %s14228_s2 = sld [smem:[#allocation17_spill]] }
0x1c63   : > { %6572 = vrot.lane.b32.xlu0 %v13310_v56, %s14211_s27  ;;  %s14233_s27 = smov 96  }
0x1c67   : > { %6579 = vrot.lane.b32.xlu0 %v13298_v19, %s14213_s3  ;;  %s14234_s3 = smov 94  }
0x1cb2   : > { %v6371_v33 = vpop.xlane.xlu1 %6370 }
0x1cb3   : > { %v6397_v20 = vmul.f32 0.0625, %v6371_v33 }
0x1cb5   : > { %v6405_v42 = vmul.f32 %v6397_v20, %v6397_v20  ;;  %v6417_v49 = vsub.f32 %v13255_v25, %v6397_v20 }
0x1cb6   : > { %v6374_v53 = vpop.xlane.xlu0 %6373  ;;  %v6387_v60 = vpop.xlane.xlu1 %6386 }
0x1cb7   : > { %v6398_v39 = vmul.f32 0.0625, %v6374_v53  ;;  %v6401_v1 = vmul.f32 0.0625, %v6387_v60 }
0x1cb9   : > { %v6409_v43 = vsub.f32 %v6401_v1, %v6405_v42  ;;  %v6406_v37 = vmul.f32 %v6398_v39, %v6398_v39  ;;  %v6418_v23 = vsub.f32 %v13261_v52, %v6398_v39 }
0x1cba   : > { %v6390_v13 = vpop.xlane.xlu0 %6389 }
0x1cbb   : > { %v6413_v2 = vmax.f32 %v6409_v43, 0.0  ;;  %v6402_v47 = vmul.f32 0.0625, %v6390_v13 }
0x1cbc   : > { %v6380_v6 = vpop.xlane.xlu1 %6379 }
0x1cbd   : > { %v6410_v36 = vsub.f32 %v6402_v47, %v6406_v37  ;;  %v6421_v59 = vadd.f32 1e-05, %v6413_v2  ;;  %v6400_v11 = vmul.f32 0.0625, %v6380_v6 }
0x1cbe   : > { %v6377_v55 = vpop.xlane.xlu0 %6376 }
0x1cbf   : > { %v6414_v57 = vmax.f32 %v6410_v36, 0.0  ;;  %v6399_v40 = vmul.f32 0.0625, %v6377_v55  ;;  %10981 = vrsqrt.f32 %v6421_v59  ;;  %v6408_v54 = vmul.f32 %v6400_v11, %v6400_v11 }
0x1cc0   : > { %v6480_v18 = vpop.permute.xlu1 %6479  ;;  %v6420_v39 = vsub.f32 %v13270_v38, %v6400_v11 }
0x1cc1   : > { %v6422_v34 = vadd.f32 1e-05, %v6414_v57  ;;  %v6407_v31 = vmul.f32 %v6399_v40, %v6399_v40  ;;  %v6419_v29 = vsub.f32 %v13268_v28, %v6399_v40 }
0x1cc2   : > { %v6393_v51 = vpop.xlane.xlu0 %6392 }
0x1cc3   : > { %10983 = vrsqrt.f32 %v6422_v34  ;;  %v6403_v32 = vmul.f32 0.0625, %v6393_v51 }
0x1cc4   : > { %v6485_v7 = vpop.permute.xlu1 %6484 }
0x1cc5   : > { %v6411_v41 = vsub.f32 %v6403_v32, %v6407_v31 }
0x1cc6   : > { %v6396_v46 = vpop.xlane.xlu0 %6395 }
0x1cc7   : > { %v6415_v12 = vmax.f32 %v6411_v41, 0.0  ;;  %v6404_v14 = vmul.f32 0.0625, %v6396_v46 }
0x1cc8   : > { %v6446_v16 = vpop.permute.xlu1 %6445 }
0x1cc9   : > { %v6423_v50 = vadd.f32 1e-05, %v6415_v12  ;;  %v6412_v62 = vsub.f32 %v6404_v14, %v6408_v54 }
0x1ccb   : > { %10985 = vrsqrt.f32 %v6423_v50  ;;  %v6416_v35 = vmax.f32 %v6412_v62, 0.0 }
0x1ccc   : > { %v10982_v8 = vpop.eup %10981  ;;  %v6475_v22 = vpop.permute.xlu1 %6474 }
0x1ccd   : > { %v6424_v61 = vadd.f32 1e-05, %v6416_v35  ;;  %v6429_v44 = vmul.f32 %v10982_v8, %v6417_v49 }
0x1cce   : > { %v6456_v45 = vpop.permute.xlu0 %6455 }
0x1ccf   : > { %10987 = vrsqrt.f32 %v6424_v61 }
0x1cd0   : > { %v10984_v0 = vpop.eup %10983 }
0x1cd1   : > { %v6430_v9 = vmul.f32 %v10984_v0, %v6418_v23 }
0x1cd2   : > { %v6441_v15 = vpop.permute.xlu0 %6440 }
0x1cd3   : > { %v6459_v30 = vmul.f32 %v6446_v16, %v6430_v9  ;;  %v6458_v63 = vmul.f32 %v6441_v15, %v6429_v44 }
0x1cd5   : > { %v6488_v5 = vadd.f32 %v6475_v22, %v6459_v30 }
0x1cd6   : > { %v6470_v26 = vpop.permute.xlu0 %6469 }
0x1cd7   : > { %v6492_v33 = vmax.f32 %v6488_v5, 0.0  ;;  %v6487_v53 = vadd.f32 %v6470_v26, %v6458_v63 }
0x1cd8   : > { %v10986_v60 = vpop.eup %10985 }
0x1cd9   : > { %v6431_v42 = vmul.f32 %v10986_v60, %v6419_v29  ;;  %6509 = vst.msk [vmem:[#allocation2 + $0x28] sm:$0xff] %vm1654_vm12, %v6492_v33  ;;  %v6491_v52 = vmax.f32 %v6487_v53, 0.0 }
0x1cda   : > { %v6555_v2 = vpop.permute.xlu0 %6554 }
0x1cdb   : > { %v6460_v25 = vmul.f32 %v6451_v21, %v6431_v42  ;;  %6508 = vst.msk [vmem:[#allocation2 + $0x8] sm:$0xff] %vm1654_vm12, %v6491_v52  ;;  %v6559_v28 = vmul.f32 %v13205_v27, %v6555_v2 }
0x1cdc   : > { %v10988_v20 = vpop.eup %10987 }
0x1cdd   : > { %v6489_v1 = vadd.f32 %v6480_v18, %v6460_v25  ;;  %v6432_v43 = vmul.f32 %v10988_v20, %v6420_v39  ;;  %v6544_v18 = vpop.permute.xlu1 %6543 }
0x1cde   : > { %v6550_v46 = vmul.f32 %v13205_v27, %v6544_v18  ;;  %v6573_v61 = vpop.permute.xlu0 %6572 }
0x1cdf   : > { %v6493_v13 = vmax.f32 %v6489_v1, 0.0  ;;  %v6461_v37 = vmul.f32 %v6456_v45, %v6432_v43 }
0x1ce0   : > { %v13324_v47 = vld [vmem:[#allocation2 + $0x28] sm:$0xff] }
0x1ce1   : > { %6510 = vst.msk [vmem:[#allocation2 + $0x48] sm:$0xff] %vm1654_vm12, %v6493_v13  ;;  %v6490_v6 = vadd.f32 %v6485_v7, %v6461_v37  ;;  %v6560_v38 = vmul.f32 %v6555_v2, %v13324_v47  ;;  %v6549_v62 = vmul.f32 %v6544_v18, %v13324_v47  ;;  %v6576_v0 = vmul.f32 %v6573_v61, %v13324_v47  ;;  %v6566_v30 = vpop.permute.xlu1 %6565 }
0x1ce2   : > { %7226 = vst.msk [vmem:[#allocation2 + $0x28] sm:$0xff] %vm1422_vm15, %v13205_v27  ;;  %v13331_v21 = vld [vmem:[#allocation2 + $0x8] sm:$0xff]  ;;  %v6569_v53 = vmul.f32 %v6566_v30, %v13324_v47  ;;  %v10514_v60 = vpack.i.bf16 %v13324_v47, %v13205_v27  ;;  %v6580_v52 = vpop.permute.xlu0 %6579 }
0x1ce3   : > { %v6494_v36 = vmax.f32 %v6490_v6, 0.0  ;;  %7225 = vst.msk [vmem:[#allocation2 + $0x8] sm:$0xff] %vm1422_vm15, %v13205_v27  ;;  %v10444_v59 = vpack.i.bf16 %v6560_v38, %v6559_v28  ;;  %v6558_v55 = vmul.f32 %v6555_v2, %v13331_v21  ;;  %v10439_v51 = vpack.i.bf16 %v13324_v47, %v13331_v21 }
0x1ce4   : > { %v6547_v14 = vmul.f32 %v6544_v18, %v13331_v21  ;;  %v6575_v16 = vmul.f32 %v6573_v61, %v13331_v21  ;;  %v10474_v8 = vpack.i.bf16 %v6549_v62, %v6550_v46  ;;  %v6568_v26 = vmul.f32 %v6566_v30, %v13331_v21 }
0x1ce5   : > { %6511 = vst.msk [vmem:[#allocation2 + $0x68] sm:$0xff] %vm1654_vm12, %v6494_v36  ;;  %10445 = vrot.lane.b32.xlu1 %v10444_v59, %s14216_s21  ;;  %v10434_v57 = vpack.i.bf16 %v6558_v55, %v6559_v28  ;;  %v10504_v29 = vpack.i.bf16 %v13331_v21, %v13205_v27  ;;  %v6582_v20 = vmul.f32 %v6580_v52, %v13331_v21 }
0x1ce6   : > { %v10469_v50 = vpack.i.bf16 %v6547_v14, %v6550_v46  ;;  %v10484_v15 = vpack.i.bf16 %v6576_v0, %v6575_v16  ;;  %v10519_v42 = vpack.i.bf16 %v6569_v53, %v6568_v26  ;;  %v6583_v1 = vmul.f32 %v6580_v52, %v13324_v47 }
0x1ce7   : > { %10435 = vrot.lane.b32.xlu0 %v10434_v57, %s14216_s21 }
0x1ce8   : > { %v13338_v40 = vld [vmem:[#allocation2 + $0x48] sm:$0xff]  ;;  %v10539_v13 = vpack.i.bf16 %v6583_v1, %v6582_v20 }
0x1ce9   : > { %7227 = vst.msk [vmem:[#allocation2 + $0x48] sm:$0xff] %vm1422_vm15, %v13205_v27  ;;  %v6562_v34 = vmul.f32 %v6555_v2, %v13338_v40  ;;  %v6551_v31 = vmul.f32 %v6544_v18, %v13338_v40  ;;  %v6577_v49 = vmul.f32 %v6573_v61, %v13338_v40  ;;  %v10494_v22 = vpack.i.bf16 %v13338_v40, %v13205_v27 }
0x1cea   : > { %v6570_v63 = vmul.f32 %v6566_v30, %v13338_v40  ;;  %v6584_v25 = vmul.f32 %v6580_v52, %v13338_v40 }
0x1ceb   : > { %v10449_v11 = vpack.i.bf16 %v6562_v34, %v6559_v28  ;;  %10440 = vrot.lane.b32.xlu0 %v10439_v51, %s14217_s0  ;;  %v10454_v12 = vpack.i.bf16 %v6551_v31, %v6550_v46 }
0x1cec   : > { %v13347_v32 = vld [vmem:[#allocation2 + $0x68] sm:$0xff] }
0x1ced   : > { %7228 = vst.msk [vmem:[#allocation2 + $0x68] sm:$0xff] %vm1422_vm15, %v13205_v27  ;;  %10450 = vrot.lane.b32.xlu1 %v10449_v11, %s14216_s21  ;;  %v6564_v41 = vmul.f32 %v6555_v2, %v13347_v32  ;;  %v10459_v7 = vpack.i.bf16 %v13347_v32, %v13338_v40  ;;  %v6553_v35 = vmul.f32 %v6544_v18, %v13347_v32 }
0x1cee   : > { %v6578_v45 = vmul.f32 %v6573_v61, %v13347_v32  ;;  %v6571_v44 = vmul.f32 %v6566_v30, %v13347_v32  ;;  %v10499_v5 = vpack.i.bf16 %v13347_v32, %v13205_v27  ;;  %v6585_v39 = vmul.f32 %v6580_v52, %v13347_v32 }
0x1cef   : > { %v10464_v54 = vpack.i.bf16 %v6564_v41, %v6559_v28  ;;  %v10479_v23 = vpack.i.bf16 %v6553_v35, %v6550_v46 }
0x1cf0   : > { %v10489_v9 = vpack.i.bf16 %v6578_v45, %v6577_v49  ;;  %v10509_v33 = vpack.i.bf16 %v6571_v44, %v6570_v63  ;;  %v10534_v43 = vpack.i.bf16 %v6585_v39, %v6584_v25 }
0x1cf1   : > { %10465 = vrot.lane.b32.xlu0 %v10464_v54, %s14216_s21  ;;  %10455 = vrot.lane.b32.xlu1 %v10454_v12, %s14204_s17  ;;  %s14250_s21 = sld [smem:[#allocation13_spill]] }
0x1cf5   : > { %10460 = vrot.lane.b32.xlu1 %v10459_v7, %s14217_s0  ;;  %10470 = vrot.lane.b32.xlu0 %v10469_v50, %s14204_s17 }
0x1cf9   : > { %10475 = vrot.lane.b32.xlu1 %v10474_v8, %s14204_s17  ;;  %10480 = vrot.lane.b32.xlu0 %v10479_v23, %s14204_s17 }
0x1cfd   : > { %10490 = vrot.lane.b32.xlu1 %v10489_v9, %s14208_s23  ;;  %10485 = vrot.lane.b32.xlu0 %v10484_v15, %s14208_s23 }
0x1d01   : > { %10495 = vrot.lane.b32.xlu1 %v10494_v22, %s14209_s22  ;;  %10500 = vrot.lane.b32.xlu0 %v10499_v5, %s14209_s22 }
0x1d05   : > { %10505 = vrot.lane.b32.xlu0 %v10504_v29, %s14209_s22  ;;  %10510 = vrot.lane.b32.xlu1 %v10509_v33, %s14218_s1 }
0x1d09   : > { %10515 = vrot.lane.b32.xlu1 %v10514_v60, %s14209_s22  ;;  %10520 = vrot.lane.b32.xlu0 %v10519_v42, %s14218_s1 }
0x1d0d   : > { %6526 = vrot.lane.b32.xlu1 %v13310_v56, %s14219_s28  ;;  %10525 = vrot.lane.b32.xlu0 %v10459_v7, %s14220_s26  ;;  %s14223_s28 = smov 1  }
0x1d11   : > { %10530 = vrot.lane.b32.xlu1 %v10439_v51, %s14220_s26  ;;  %10535 = vrot.lane.b32.xlu0 %v10534_v43, %s14210_s25  ;;  %s14269_s26 = sld [smem:[#allocation19_spill]] }
0x1d15   : > { %10540 = vrot.lane.b32.xlu1 %v10539_v13, %s14210_s25 }
0x1d57   : > { %v10446_v37 = vpop.permute.xlu1 %10445 }
0x1d58   : > { %v10448_v28 = vunpack.i.h.bf16 %v10446_v37  ;;  %v10447_v8 = vunpack.i.l.bf16 %v10446_v37 }
0x1d59   : > { %v10436_v2 = vpop.permute.xlu0 %10435 }
0x1d5a   : > { %v10438_v6 = vunpack.i.h.bf16 %v10436_v2  ;;  %v10437_v62 = vunpack.i.l.bf16 %v10436_v2  ;;  %v6683_v26 = vsel %vm2054_vm6, %v10447_v8, %v10448_v28 }
0x1d5c   : > { %v6779_v38 = vpack.c.bf16 %v10448_v28, %v10438_v6  ;;  %v6682_v22 = vsel %vm2054_vm6, %v10437_v62, %v10438_v6 }
0x1d5d   : > { %v10441_v36 = vpop.permute.xlu0 %10440  ;;  %v6778_v39 = vpack.c.bf16 %v6683_v26, %v6682_v22 }
0x1d5e   : > { %v10443_v59 = vunpack.i.h.bf16 %v10441_v36  ;;  %v10442_v55 = vunpack.i.l.bf16 %v10441_v36  ;;  %6874 = vrot.lane.b32.xlu0 %v6779_v38, %s14221_s10 }
0x1d5f   : > { %v10451_v57 = vpop.permute.xlu1 %10450 }
0x1d60   : > { %v6788_v34 = vpack.c.bf16 %v10443_v59, %v10442_v55  ;;  %v10453_v29 = vunpack.i.h.bf16 %v10451_v57  ;;  %v10452_v33 = vunpack.i.l.bf16 %v10451_v57 }
0x1d62   : > { %6892 = vrot.lane.b32.xlu1 %v6788_v34, %s14221_s10  ;;  %v6684_v13 = vsel %vm2054_vm6, %v10452_v33, %v10453_v29 }
0x1d63   : > { %v10466_v18 = vpop.permute.xlu0 %10465  ;;  %v13402_v51 = vpop.permute.xlu1 %10455 }
0x1d64   : > { %v10468_v23 = vunpack.i.h.bf16 %v10466_v18  ;;  %v10467_v0 = vunpack.i.l.bf16 %v10466_v18  ;;  %v10458_v57 = vunpack.i.h.bf16 %v13402_v51  ;;  %v10457_v34 = vunpack.i.l.bf16 %v13402_v51 }
0x1d66   : > { %v6685_v60 = vsel %vm2054_vm6, %v10467_v0, %v10468_v23  ;;  %v6781_v18 = vpack.c.bf16 %v10468_v23, %v10453_v29  ;;  %vm11086_vm6 = vmmov 0  }
0x1d67   : > { %v10471_v11 = vpop.permute.xlu0 %10470  ;;  %v10461_v31 = vpop.permute.xlu1 %10460  ;;  %v6780_v28 = vpack.c.bf16 %v6685_v60, %v6684_v13 }
0x1d68   : > { %v10473_v54 = vunpack.i.h.bf16 %v10471_v11  ;;  %v10463_v14 = vunpack.i.h.bf16 %v10461_v31  ;;  %v10462_v7 = vunpack.i.l.bf16 %v10461_v31  ;;  %v10472_v53 = vunpack.i.l.bf16 %v10471_v11 }
0x1d6a   : > { %v6789_v49 = vpack.c.bf16 %v10463_v14, %v10462_v7  ;;  %v6646_v37 = vsel %vm639_vm9, %v10472_v53, %v10473_v54 }
0x1d6b   : > { %v10481_v41 = vpop.permute.xlu0 %10480  ;;  %v10476_v46 = vpop.permute.xlu1 %10475 }
0x1d6c   : > { %v10478_v12 = vunpack.i.h.bf16 %v10476_v46  ;;  %v10477_v9 = vunpack.i.l.bf16 %v10476_v46  ;;  %v10483_v38 = vunpack.i.h.bf16 %v10481_v41  ;;  %v10482_v36 = vunpack.i.l.bf16 %v10481_v41 }
0x1d6d   : > { %v6648_v41 = vsel %vm639_vm9, %v10457_v34, %v10458_v57  ;;  %v9043_v34 = vld [vmem:[%s14106_s5 + $0xf8] sm:$0xff] }
0x1d6e   : > { %v6775_v50 = vpack.c.bf16 %v10478_v12, %v10473_v54  ;;  %v6647_v42 = vsel %vm639_vm9, %v10477_v9, %v10478_v12  ;;  %v6649_v31 = vsel %vm639_vm9, %v10482_v36, %v10483_v38  ;;  %v6777_v12 = vpack.c.bf16 %v10483_v38, %v10458_v57  ;;  %v9041_v36 = vld [vmem:[%s14106_s5 + $0xe8] sm:$0xff]  ;;  %v9042_v57 = vld [vmem:[%s14106_s5 + $0xf0] sm:$0xff] }
0x1d6f   : > { %v10486_v35 = vpop.permute.xlu0 %10485  ;;  %v10491_v61 = vpop.permute.xlu1 %10490  ;;  %v6774_v6 = vpack.c.bf16 %v6647_v42, %v6646_v37 }
0x1d70   : > { %v10488_v16 = vunpack.i.h.bf16 %v10486_v35  ;;  %v10487_v45 = vunpack.i.l.bf16 %v10486_v35  ;;  %6866 = vrot.lane.b32.xlu0 %v6775_v50, %s14221_s10  ;;  %v10493_v30 = vunpack.i.h.bf16 %v10491_v61  ;;  %v10492_v44 = vunpack.i.l.bf16 %v10491_v61 }
0x1d71   : > { %v6776_v50 = vpack.c.bf16 %v6649_v31, %v6648_v41 }
0x1d72   : > { %v6786_v15 = vpack.c.bf16 %v10488_v16, %v10487_v45  ;;  %v6787_v52 = vpack.c.bf16 %v10493_v30, %v10492_v44 }
0x1d73   : > { %v10501_v5 = vpop.permute.xlu0 %10500  ;;  %v10496_v63 = vpop.permute.xlu1 %10495 }
0x1d74   : > { %6888 = vrot.lane.b32.xlu1 %v6786_v15, %s14221_s10  ;;  %6894 = vrot.lane.b32.xlu0 %v6789_v49, %s14221_s10  ;;  %v10503_v25 = vunpack.i.h.bf16 %v10501_v5  ;;  %v10502_v20 = vunpack.i.l.bf16 %v10501_v5  ;;  %v10498_v1 = vunpack.i.h.bf16 %v10496_v63  ;;  %v10497_v43 = vunpack.i.l.bf16 %v10496_v63 }
0x1d76   : > { %v6613_v59 = vsel %vm572_vm3, %v10502_v20, %v10503_v25  ;;  %v6612_v55 = vsel %vm572_vm3, %v10497_v43, %v10498_v1  ;;  %v6773_v45 = vpack.c.bf16 %v10503_v25, %v10498_v1 }
0x1d77   : > { %v10511_v2 = vpop.permute.xlu1 %10510  ;;  %v6772_v11 = vpack.c.bf16 %v6613_v59, %v6612_v55  ;;  %v10506_v46 = vpop.permute.xlu0 %10505  ;;  %v9040_v55 = vld [vmem:[%s14106_s5 + $0xe0] sm:$0xff] }
0x1d78   : > { %6890 = vrot.lane.b32.xlu0 %v6787_v52, %s14221_s10  ;;  %6872 = vrot.lane.b32.xlu1 %v6778_v39, %s14221_s10  ;;  %v10513_v14 = vunpack.i.h.bf16 %v10511_v2  ;;  %v10512_v7 = vunpack.i.l.bf16 %v10511_v2  ;;  %v10508_v51 = vunpack.i.h.bf16 %v10506_v46  ;;  %v10507_v61 = vunpack.i.l.bf16 %v10506_v46 }
0x1d7a   : > { %v6785_v8 = vpack.c.bf16 %v10513_v14, %v10512_v7  ;;  %v6610_v9 = vsel %vm572_vm3, %v10507_v61, %v10508_v51 }
0x1d7b   : > { %v10516_v54 = vpop.permute.xlu1 %10515  ;;  %v10521_v16 = vpop.permute.xlu0 %10520 }
0x1d7c   : > { %6876 = vrot.lane.b32.xlu0 %v6780_v28, %s14221_s10  ;;  %6864 = vrot.lane.b32.xlu1 %v6774_v6, %s14221_s10  ;;  %v10518_v62 = vunpack.i.h.bf16 %v10516_v54  ;;  %v10517_v35 = vunpack.i.l.bf16 %v10516_v54  ;;  %v10523_v15 = vunpack.i.h.bf16 %v10521_v16  ;;  %v10522_v30 = vunpack.i.l.bf16 %v10521_v16 }
0x1d7e   : > { %v6611_v23 = vsel %vm572_vm3, %v10517_v35, %v10518_v62  ;;  %v6771_v44 = vpack.c.bf16 %v10518_v62, %v10508_v51  ;;  %v6784_v26 = vpack.c.bf16 %v10523_v15, %v10522_v30 }
0x1d7f   : > { %v6527_v0 = vpop.permute.xlu1 %6526  ;;  %v6770_v22 = vpack.c.bf16 %v6611_v23, %v6610_v9  ;;  %v10526_v5 = vpop.permute.xlu0 %10525 }
0x1d80   : > { %6860 = vrot.lane.b32.xlu0 %v6772_v11, %s14221_s10  ;;  %6878 = vrot.lane.b32.xlu1 %v6781_v18, %s14221_s10  ;;  %v6533_v49 = vmul.f32 %v13205_v27, %v6527_v0  ;;  %v10528_v29 = vunpack.i.h.bf16 %v10526_v5  ;;  %v10527_v33 = vunpack.i.l.bf16 %v10526_v5  ;;  %v6534_v53 = vmul.f32 %v6527_v0, %v13338_v40  ;;  %v10894_v27 = vld [vmem:[%s14105_s4 + $0x154] ss:$12 sps:$4 sm:$0xff]   ;;  %v10895_v40 = vld [vmem:[%s14105_s4 + $0x158] ss:$12 sps:$4 sm:$0xff]  }
0x1d81   : > { %v6536_v60 = vmul.f32 %v6527_v0, %v13347_v32  ;;  %v6530_v52 = vmul.f32 %v6527_v0, %v13331_v21  ;;  %v6532_v39 = vmul.f32 %v6527_v0, %v13324_v47  ;;  %6964 = vmatprep.mubr.bf16.mxu0 %v10894_v27  ;;  %9459 = vmatprep.mubr.msk.bf16.mxu1 %vm2300_vm10, %v10895_v40 }
0x1d82   : > { %v6768_v63 = vpack.c.bf16 %v6533_v49, %v6533_v49  ;;  %v6783_v25 = vpack.c.bf16 %v10528_v29, %v10527_v33 }
0x1d83   : > { %v10531_v42 = vpop.permute.xlu1 %10530  ;;  %v6769_v20 = vpack.c.bf16 %v6536_v60, %v6534_v53  ;;  %v10536_v1 = vpop.permute.xlu0 %10535  ;;  %v6767_v32 = vpack.c.bf16 %v6532_v39, %v6530_v52  ;;  %v10897_v52 = vld [vmem:[%s14105_s4 + $0x16c] ss:$12 sps:$4 sm:$0xff]  }
0x1d84   : > { %6868 = vrot.lane.b32.xlu0 %v6776_v50, %s14221_s10  ;;  %6870 = vrot.lane.b32.xlu1 %v6777_v12, %s14221_s10  ;;  %v10538_v43 = vunpack.i.h.bf16 %v10536_v1  ;;  %v10537_v13 = vunpack.i.l.bf16 %v10536_v1  ;;  %v10533_v37 = vunpack.i.h.bf16 %v10531_v42  ;;  %v10532_v2 = vunpack.i.l.bf16 %v10531_v42  ;;  %v10892_v42 = vld [vmem:[%s14105_s4 + $0x150] ss:$12 sps:$4 sm:$0xff]  }
0x1d86   : > { %v6791_v21 = vpack.c.bf16 %v10538_v43, %v10537_v13  ;;  %v6782_v28 = vpack.c.bf16 %v10533_v37, %v10532_v2 }
0x1d87   : > { %v10541_v47 = vpop.permute.xlu1 %10540 }
0x1d88   : > { %6886 = vrot.lane.b32.xlu0 %v6785_v8, %s14221_s10  ;;  %6862 = vrot.lane.b32.xlu1 %v6773_v45, %s14221_s10  ;;  %v10543_v6 = vunpack.i.h.bf16 %v10541_v47  ;;  %v10542_v38 = vunpack.i.l.bf16 %v10541_v47 }
0x1d8a   : > { %v6790_v59 = vpack.c.bf16 %v10543_v6, %v10542_v38 }
0x1d8c   : > { %6858 = vrot.lane.b32.xlu0 %v6771_v44, %s14221_s10  ;;  %6856 = vrot.lane.b32.xlu1 %v6770_v22, %s14221_s10 }
0x1d90   : > { %6852 = vrot.lane.b32.xlu0 %v6768_v63, %s14221_s10  ;;  %6884 = vrot.lane.b32.xlu1 %v6784_v26, %s14221_s10 }
0x1d94   : > { %6882 = vrot.lane.b32.xlu0 %v6783_v25, %s14221_s10  ;;  %6854 = vrot.lane.b32.xlu1 %v6769_v20, %s14221_s10  ;;  %v10896_v25 = vld [vmem:[%s14105_s4 + $0x170] ss:$12 sps:$4 sm:$0xff]   ;;  %v10899_v20 = vld [vmem:[%s14105_s4 + $0x168] ss:$12 sps:$4 sm:$0xff]  }
0x1d98   : > { %6850 = vrot.lane.b32.xlu0 %v6767_v32, %s14221_s10  ;;  %6848 = vrot.lane.b32.xlu1 %v6768_v63, %s14221_s10 }
0x1d9c   : > { %6898 = vrot.lane.b32.xlu0 %v6791_v21, %s14221_s10  ;;  %6880 = vrot.lane.b32.xlu1 %v6782_v28, %s14221_s10 }
0x1da0   : > { %7106 = vperm.xlu0 %9773, %v9041_v36   ;;  %6896 = vrot.lane.b32.xlu1 %v6790_v59, %s14221_s10 }
0x1da4   : > { %7101 = vperm.xlu1 %9772, %v9040_v55  }
0x1da8   : > { %7111 = vperm.xlu1 %9772, %v9042_v57  }
0x1dac   : > { %7116 = vperm.xlu1 %9772, %v9043_v34  }
0x1dd0   : > { %v6875_v18 = vpop.permute.xlu0 %6874 }
0x1dd4   : > { %v6893_v11 = vpop.permute.xlu1 %6892 }
0x1de2   : > { %v6867_v31 = vpop.permute.xlu0 %6866 }
0x1de6   : > { %v6889_v46 = vpop.permute.xlu1 %6888  ;;  %v6895_v54 = vpop.permute.xlu0 %6894 }
0x1de7   : > { %9327 = vmatprep.subr.bf16.mxu0 %v6895_v54 }
0x1dea   : > { %v6891_v41 = vpop.permute.xlu0 %6890  ;;  %v6873_v12 = vpop.permute.xlu1 %6872 }
0x1deb   : > { %v6906_v16 = vsel %vm2273_vm11, %v6873_v12, %v6875_v18 }
0x1dee   : > { %v6877_v14 = vpop.permute.xlu0 %6876  ;;  %v6865_v7 = vpop.permute.xlu1 %6864 }
0x1def   : > { %v6904_v9 = vsel %vm2273_vm11, %v6865_v7, %v6867_v31 }
0x1df2   : > { %v6861_v50 = vpop.permute.xlu0 %6860  ;;  %v6879_v62 = vpop.permute.xlu1 %6878 }
0x1df3   : > { %v6907_v35 = vsel %vm2273_vm11, %v6877_v14, %v6879_v62 }
0x1df4   : > { %9328 = vmatpush3.bf16.msra.mxu0 %v6907_v35 }
0x1df5   : > { %9329 = vmatprep.subr.bf16.mxu0 %v6893_v11 }
0x1df6   : > { %v6869_v51 = vpop.permute.xlu0 %6868  ;;  %v6871_v61 = vpop.permute.xlu1 %6870 }
0x1df7   : > { %v6905_v23 = vsel %vm2273_vm11, %v6869_v51, %v6871_v61 }
0x1df8   : > { %9330 = vmatpush3.bf16.msra.mxu0 %v6906_v16 }
0x1df9   : > { %9331 = vmatprep.subr.bf16.mxu0 %v6891_v41 }
0x1dfa   : > { %v6887_v45 = vpop.permute.xlu0 %6886  ;;  %v6863_v8 = vpop.permute.xlu1 %6862 }
0x1dfb   : > { %v6903_v44 = vsel %vm2273_vm11, %v6861_v50, %v6863_v8  ;;  %v9047_v8 = vld [vmem:[%s14107_s6 + $0xf8] sm:$0xff] }
0x1dfc   : > { %9332 = vmatpush3.bf16.msra.mxu0 %v6905_v23  ;;  %v9044_v23 = vld [vmem:[%s14107_s6 + $0xe0] sm:$0xff] }
0x1dfd   : > { %9333 = vmatprep.subr.bf16.mxu0 %v6889_v46 }
0x1dfe   : > { %v6859_v0 = vpop.permute.xlu0 %6858  ;;  %v6857_v49 = vpop.permute.xlu1 %6856 }
0x1dff   : > { %v6902_v63 = vsel %vm2273_vm11, %v6857_v49, %v6859_v0  ;;  %v9046_v0 = vld [vmem:[%s14107_s6 + $0xf0] sm:$0xff]  ;;  %v10900_v49 = vld [vmem:[%s14113_s12] sm:$0xff]  }
0x1e00   : > { %9334 = vmatpush3.bf16.msra.mxu0 %v6904_v9  ;;  %v13540_v9 = vld [vmem:[#allocation2] sm:$0xff] }
0x1e01   : > { %9335 = vmatprep.subr.bf16.mxu0 %v6887_v45  ;;  %v9045_v45 = vld [vmem:[%s14107_s6 + $0xe8] sm:$0xff] }
0x1e02   : > { %v6853_v15 = vpop.permute.xlu0 %6852  ;;  %v6885_v30 = vpop.permute.xlu1 %6884 }
0x1e04   : > { %9336 = vmatpush3.bf16.msra.mxu0 %v6903_v44 }
0x1e05   : > { %9337 = vmatprep.subr.bf16.mxu0 %v6885_v30 }
0x1e06   : > { %v6883_v22 = vpop.permute.xlu0 %6882  ;;  %v6855_v5 = vpop.permute.xlu1 %6854 }
0x1e07   : > { %v6901_v33 = vsel %vm2273_vm11, %v6853_v15, %v6855_v5 }
0x1e08   : > { %9338 = vmatpush3.bf16.msra.mxu0 %v6902_v63 }
0x1e09   : > { %9339 = vmatprep.subr.bf16.mxu0 %v6883_v22 }
0x1e0a   : > { %v6851_v26 = vpop.permute.xlu0 %6850  ;;  %v6849_v29 = vpop.permute.xlu1 %6848 }
0x1e0b   : > { %v6900_v27 = vsel %vm2273_vm11, %v6849_v29, %v6851_v26 }
0x1e0c   : > { %9340 = vmatpush3.bf16.msra.mxu0 %v6901_v33 }
0x1e0e   : > { %v6899_v53 = vpop.permute.xlu0 %6898  ;;  %v6881_v60 = vpop.permute.xlu1 %6880 }
0x1e0f   : > { %9341 = vmatprep.subr.bf16.mxu0 %v6881_v60  ;;  %9455 = vmatprep.subr.bf16.mxu1 %v6899_v53 }
0x1e10   : > { %9342 = vmatpush3.bf16.msra.mxu0 %v6900_v27  ;;  %9456 = vmatpush3.bf16.msra.mxu1 %v6899_v53 }
0x1e12   : > { %v6897_v39 = vpop.permute.xlu1 %6896 }
0x1e13   : > { %6965 = vmatmul.mubr.bf16.vlgmr.msra.gmra.mxu0 %v10892_v42  ;;  %9457 = vmatprep.subr.bf16.mxu1 %v6897_v39 }
0x1e14   : > { %9458 = vmatpush3.bf16.msra.mxu1 %v6897_v39  ;;  %6972 = vmatprep.mubr.bf16.mxu0 %v10897_v52 }
0x1e15   : > { %9463 = vmatprep.subr.bf16.mxu1 %v10900_v49 }
0x1e17   : > { %9460 = vmatmul.mubr.msk.bf16.vlgmr.msra.gmra.mxu1 %vm2300_vm10, %v10896_v25 }
0x1e18   : > { %9464 = vmatpush3.bf16.msra.mxu1 %v10900_v49 }
0x1e19   : > { %9469 = vmatprep.subr.bf16.mxu1 %v13540_v9 }
0x1e1b   : > { %6973 = vmatmul.mubr.bf16.gmra.mxu0 %v10899_v20  ;;  %v7107_v44 = vpop.permute.xlu0 %7106 }
0x1e1f   : > { %v7102_v15 = vpop.permute.xlu1 %7101 }
0x1e23   : > { %v7112_v30 = vpop.permute.xlu1 %7111 }
0x1e27   : > { %v7117_v22 = vpop.permute.xlu1 %7116 }
0x1ed3   : > { %v9343_v1 = vpop.f32.mrf.mxu0 }
0x1ed5   : > { %v9344_v40 = vpop.f32.mrf.mxu0 }
0x1ed6   : > { %v9345_v13 = vadd.f32 %v9344_v40, %v9343_v1 }
0x1ed7   : > { %v9346_v32 = vpop.f32.mrf.mxu0  ;;  %v9461_v43 = vpop.f32.mrf.mxu1 }
0x1ed9   : > { %v9347_v37 = vpop.f32.mrf.mxu0  ;;  %v7015_v2 = vpop.f32.mrf.mxu1 }
0x1eda   : > { %v13487_v47 = vadd.f32 %v9345_v13, %v7015_v2  ;;  %v9348_v6 = vadd.f32 %v9347_v37, %v9346_v32 }
0x1edb   : > { %v9349_v21 = vpop.f32.mrf.mxu0  ;;  %v9462_v28 = vpop.f32.mrf.mxu1 }
0x1edc   : > { %v7030_v38 = vsel %vm1654_vm12, %v13487_v47, 0.0  ;;  %v7042_v36 = vmul.f32 %v13487_v47, %v13487_v47 }
0x1edd   : > { %v9350_v59 = vpop.f32.mrf.mxu0  ;;  %v7018_v55 = vpop.f32.mrf.mxu1  ;;  %7031 = vadd.xlane.f32.xlu0 %v7030_v38 }
0x1ede   : > { %v9351_v57 = vadd.f32 %v9350_v59, %v9349_v21  ;;  %v13493_v34 = vadd.f32 %v9348_v6, %v7018_v55  ;;  %v7046_v18 = vsel %vm1654_vm12, %v7042_v36, 0.0 }
0x1edf   : > { %v9352_v11 = vpop.f32.mrf.mxu0  ;;  %7047 = vadd.xlane.f32.xlu1 %v7046_v18 }
0x1ee0   : > { %v13496_v31 = vadd.f32 %v9461_v43, %v9351_v57  ;;  %v7043_v46 = vmul.f32 %v13493_v34, %v13493_v34  ;;  %v7033_v12 = vsel %vm1654_vm12, %v13493_v34, 0.0 }
0x1ee1   : > { %v9353_v54 = vpop.f32.mrf.mxu0 }
0x1ee2   : > { %v9354_v41 = vadd.f32 %v9353_v54, %v9352_v11  ;;  %v7049_v14 = vsel %vm1654_vm12, %v7043_v46, 0.0  ;;  %v7044_v7 = vmul.f32 %v13496_v31, %v13496_v31  ;;  %v7036_v35 = vsel %vm1654_vm12, %v13496_v31, 0.0 }
0x1ee3   : > { %7034 = vadd.xlane.f32.xlu1 %v7033_v12  ;;  %7050 = vadd.xlane.f32.xlu0 %v7049_v14 }
0x1ee4   : > { %v13505_v50 = vadd.f32 %v9462_v28, %v9354_v41  ;;  %v7052_v62 = vsel %vm1654_vm12, %v7044_v7, 0.0 }
0x1ee6   : > { %v7039_v51 = vsel %vm1654_vm12, %v13505_v50, 0.0  ;;  %v7045_v61 = vmul.f32 %v13505_v50, %v13505_v50 }
0x1ee7   : > { %7053 = vadd.xlane.f32.xlu1 %v7052_v62  ;;  %7037 = vadd.xlane.f32.xlu0 %v7036_v35 }
0x1ee8   : > { %v7055_v16 = vsel %vm1654_vm12, %v7045_v61, 0.0 }
0x1eeb   : > { %7040 = vadd.xlane.f32.xlu0 %v7039_v51 }
0x1eef   : > { %7056 = vadd.xlane.f32.xlu0 %v7055_v16 }
0x1ef8   : > { %7135 = vperm.xlu1 %9772, %v9045_v45  }
0x1efc   : > { %7145 = vperm.xlu1 %9772, %v9047_v8  }
0x1f00   : > { %7264 = vrot.lane.b32.xlu1 %v13298_v19, %s14222_s20 }
0x1f04   : > { %7286 = vrot.lane.b32.xlu1 %v13298_v19, %s14223_s28 }
0x1f05   : > { %7130 = vperm.xlu0 %9773, %v9044_v23  }
0x1f09   : > { %7140 = vperm.xlu0 %9773, %v9046_v0  }
0x1f0d   : > { %7275 = vrot.lane.b32.xlu0 %v13310_v56, %s14209_s22 }
0x1f11   : > { %7293 = vrot.lane.b32.xlu0 %v13310_v56, %s14224_s15 }
0x1f15   : > { %7300 = vrot.lane.b32.xlu0 %v13298_v19, %s14225_s18 }
0x1f66   : > { %v7032_v5 = vpop.xlane.xlu0 %7031 }
0x1f67   : > { %v7058_v63 = vmul.f32 0.0625, %v7032_v5 }
0x1f68   : > { %v7048_v56 = vpop.xlane.xlu1 %7047 }
0x1f69   : > { %v7066_v26 = vmul.f32 %v7058_v63, %v7058_v63  ;;  %v7062_v29 = vmul.f32 0.0625, %v7048_v56  ;;  %v7078_v18 = vsub.f32 %v13487_v47, %v7058_v63 }
0x1f6b   : > { %v7070_v19 = vsub.f32 %v7062_v29, %v7066_v26 }
0x1f6c   : > { %v7051_v33 = vpop.xlane.xlu0 %7050  ;;  %v7035_v53 = vpop.xlane.xlu1 %7034 }
0x1f6d   : > { %v7074_v60 = vmax.f32 %v7070_v19, 0.0  ;;  %v7059_v27 = vmul.f32 0.0625, %v7035_v53  ;;  %v7063_v52 = vmul.f32 0.0625, %v7051_v33 }
0x1f6f   : > { %v7082_v42 = vadd.f32 1e-05, %v7074_v60  ;;  %v7067_v39 = vmul.f32 %v7059_v27, %v7059_v27  ;;  %v7079_v12 = vsub.f32 %v13493_v34, %v7059_v27 }
0x1f70   : > { %v7038_v25 = vpop.xlane.xlu0 %7037  ;;  %v7054_v20 = vpop.xlane.xlu1 %7053 }
0x1f71   : > { %10989 = vrsqrt.f32 %v7082_v42  ;;  %v7071_v1 = vsub.f32 %v7063_v52, %v7067_v39  ;;  %v7060_v40 = vmul.f32 0.0625, %v7038_v25  ;;  %v7064_v13 = vmul.f32 0.0625, %v7054_v20 }
0x1f73   : > { %v7075_v32 = vmax.f32 %v7071_v1, 0.0  ;;  %v7068_v43 = vmul.f32 %v7060_v40, %v7060_v40  ;;  %v7080_v51 = vsub.f32 %v13496_v31, %v7060_v40 }
0x1f74   : > { %v7041_v37 = vpop.xlane.xlu0 %7040  ;;  %v7136_v8 = vpop.permute.xlu1 %7135 }
0x1f75   : > { %v7083_v2 = vadd.f32 1e-05, %v7075_v32  ;;  %v7072_v21 = vsub.f32 %v7064_v13, %v7068_v43  ;;  %v7061_v28 = vmul.f32 0.0625, %v7041_v37 }
0x1f77   : > { %10991 = vrsqrt.f32 %v7083_v2  ;;  %v7076_v6 = vmax.f32 %v7072_v21, 0.0  ;;  %v7069_v59 = vmul.f32 %v7061_v28, %v7061_v28  ;;  %v7081_v5 = vsub.f32 %v13505_v50, %v7061_v28 }
0x1f78   : > { %v7057_v38 = vpop.xlane.xlu0 %7056  ;;  %v7146_v29 = vpop.permute.xlu1 %7145 }
0x1f79   : > { %v7084_v36 = vadd.f32 1e-05, %v7076_v6  ;;  %v7065_v55 = vmul.f32 0.0625, %v7057_v38 }
0x1f7b   : > { %10993 = vrsqrt.f32 %v7084_v36  ;;  %v7073_v57 = vsub.f32 %v7065_v55, %v7069_v59 }
0x1f7c   : > { %v7265_v52 = vpop.permute.xlu1 %7264 }
0x1f7d   : > { %v7077_v11 = vmax.f32 %v7073_v57, 0.0  ;;  %v7271_v25 = vmul.f32 %v13540_v9, %v7265_v52 }
0x1f7e   : > { %v10990_v46 = vpop.eup %10989 }
0x1f7f   : > { %v7085_v54 = vadd.f32 1e-05, %v7077_v11  ;;  %v7090_v41 = vmul.f32 %v10990_v46, %v7078_v18 }
0x1f80   : > { %v7131_v35 = vpop.permute.xlu0 %7130 }
0x1f81   : > { %10995 = vrsqrt.f32 %v7085_v54  ;;  %v7119_v14 = vmul.f32 %v7102_v15, %v7090_v41 }
0x1f83   : > { %v7148_v16 = vadd.f32 %v7131_v35, %v7119_v14  ;;  %v7287_v14 = vpop.permute.xlu1 %7286 }
0x1f84   : > { %v10992_v7 = vpop.eup %10991  ;;  %v7141_v26 = vpop.permute.xlu0 %7140 }
0x1f85   : > { %v7091_v62 = vmul.f32 %v10992_v7, %v7079_v12  ;;  %v7152_v49 = vadd.f32 %v7148_v16, %v13087_v58 }
0x1f87   : > { %v7120_v61 = vmul.f32 %v7107_v44, %v7091_v62 }
0x1f88   : > { %v10994_v45 = vpop.eup %10993 }
0x1f89   : > { %v7149_v23 = vadd.f32 %v7136_v8, %v7120_v61  ;;  %v7092_v0 = vmul.f32 %v10994_v45, %v7080_v51 }
0x1f8b   : > { %v7153_v47 = vadd.f32 %v7149_v23, %v13082_v24  ;;  %v7121_v34 = vmul.f32 %v7112_v30, %v7092_v0 }
0x1f8d   : > { %v7156_v63 = vpack.c.bf16 %v7153_v47, %v7152_v49  ;;  %v7150_v44 = vadd.f32 %v7141_v26, %v7121_v34  ;;  %v11015_v34 = vld [vmem:[#allocation3 + $0x4] ss:$0 sm:$0xff] }
0x1f8e   : > { %v10996_v15 = vpop.eup %10995 }
0x1f8f   : > { %v7093_v56 = vmul.f32 %v10996_v15, %v7081_v5  ;;  %9465 = vmatprep.mubr.msk.bf16.mxu1 %vm1654_vm12, %v7156_v63  ;;  %v7154_v53 = vadd.f32 %v7150_v44, %v13093_v17 }
0x1f91   : > { %v7122_v31 = vmul.f32 %v7117_v22, %v7093_v56  ;;  %v7276_v22 = vpop.permute.xlu0 %7275 }
0x1f93   : > { %v7151_v19 = vadd.f32 %v7146_v29, %v7122_v31 }
0x1f95   : > { %v7155_v33 = vadd.f32 %v7151_v19, %v13106_v10  ;;  %v7282_v10 = vmul.f32 %v13540_v9, %v7276_v22  ;;  %v7294_v37 = vpop.permute.xlu0 %7293 }
0x1f97   : > { %v7157_v24 = vpack.c.bf16 %v7155_v33, %v7154_v53 }
0x1f99   : > { %9466 = vmatmul.mubr.msk.bf16.vlgmr.msra.gmra.mxu1 %vm1654_vm12, %v7157_v24  ;;  %v7301_v63 = vpop.permute.xlu0 %7300 }
0x1f9a   : > { %9473 = vmatprep.mubr.msk.bf16.mxu1 %vm11086_vm6, %v13540_v9 }
0x2059   : > { %v9467_v58 = vpop.f32.mrf.mxu1 }
0x205a   : > { %7231 = vst.msk [vmem:[#allocation2 + $0x48] sm:$0xff] %vm1383_vm14, %v9467_v58 }
0x205b   : > { %v7206_v50 = vpop.f32.mrf.mxu1 }
0x205c   : > { %7229 = vst.msk [vmem:[#allocation2 + $0x8] sm:$0xff] %vm1383_vm14, %v7206_v50 }
0x205d   : > { %v9468_v30 = vpop.f32.mrf.mxu1 }
0x205e   : > { %7232 = vst.msk [vmem:[#allocation2 + $0x68] sm:$0xff] %vm1383_vm14, %v9468_v30 }
0x205f   : > { %v7209_v60 = vpop.f32.mrf.mxu1 }
0x2060   : > { %7230 = vst.msk [vmem:[#allocation2 + $0x28] sm:$0xff] %vm1383_vm14, %v7209_v60 }
0x2061   : > { %v13558_v27 = vld [vmem:[#allocation2 + $0x48] sm:$0xff] }
0x2062   : > { %v7283_v17 = vmul.f32 %v7276_v22, %v13558_v27  ;;  %v7272_v20 = vmul.f32 %v7265_v52, %v13558_v27  ;;  %v7298_v36 = vmul.f32 %v7294_v37, %v13558_v27  ;;  %v10594_v41 = vpack.i.bf16 %v13558_v27, %v13540_v9 }
0x2063   : > { %v13561_v42 = vld [vmem:[#allocation2 + $0x8] sm:$0xff]  ;;  %v7291_v16 = vmul.f32 %v7287_v14, %v13558_v27  ;;  %v7305_v26 = vmul.f32 %v7301_v63, %v13558_v27 }
0x2064   : > { %v10544_v39 = vpack.i.bf16 %v7283_v17, %v7282_v10  ;;  %v7279_v1 = vmul.f32 %v7276_v22, %v13561_v42  ;;  %v7268_v32 = vmul.f32 %v7265_v52, %v13561_v42  ;;  %v10549_v13 = vpack.i.bf16 %v7272_v20, %v7271_v25 }
0x2065   : > { %v13568_v43 = vld [vmem:[#allocation2 + $0x68] sm:$0xff]  ;;  %v7296_v61 = vmul.f32 %v7294_v37, %v13561_v42  ;;  %v10619_v0 = vpack.i.bf16 %v13561_v42, %v13540_v9  ;;  %v7289_v49 = vmul.f32 %v7287_v14, %v13561_v42  ;;  %v7303_v31 = vmul.f32 %v7301_v63, %v13561_v42 }
0x2066   : > { %10545 = vrot.lane.b32.xlu1 %v10544_v39, %s14208_s23  ;;  %v10559_v40 = vpack.i.bf16 %v7279_v1, %v7282_v10  ;;  %v10564_v2 = vpack.i.bf16 %v7268_v32, %v7271_v25  ;;  %v7285_v21 = vmul.f32 %v7276_v22, %v13568_v43  ;;  %v10554_v28 = vpack.i.bf16 %v13568_v43, %v13558_v27 }
0x2067   : > { %v7299_v6 = vmul.f32 %v7294_v37, %v13568_v43  ;;  %v13576_v38 = vld [vmem:[#allocation2 + $0x28] sm:$0xff]  ;;  %v7274_v11 = vmul.f32 %v7265_v52, %v13568_v43  ;;  %v10599_v7 = vpack.i.bf16 %v13568_v43, %v13540_v9  ;;  %v7292_v35 = vmul.f32 %v7287_v14, %v13568_v43 }
0x2068   : > { %10560 = vrot.lane.b32.xlu0 %v10559_v40, %s14208_s23  ;;  %v10569_v59 = vpack.i.bf16 %v7285_v21, %v7282_v10  ;;  %v7281_v57 = vmul.f32 %v7276_v22, %v13576_v38  ;;  %v10574_v18 = vpack.i.bf16 %v13576_v38, %v13561_v42  ;;  %v7270_v12 = vmul.f32 %v7265_v52, %v13576_v38 }
0x2069   : > { %v10584_v55 = vpack.i.bf16 %v7299_v6, %v7298_v36  ;;  %v10579_v54 = vpack.i.bf16 %v7274_v11, %v7271_v25  ;;  %v7297_v62 = vmul.f32 %v7294_v37, %v13576_v38  ;;  %v10609_v8 = vpack.i.bf16 %v7292_v35, %v7291_v16 }
0x206a   : > { %10550 = vrot.lane.b32.xlu1 %v10549_v13, %s14204_s17  ;;  %v10589_v46 = vpack.i.bf16 %v7281_v57, %v7282_v10  ;;  %v10604_v51 = vpack.i.bf16 %v7270_v12, %v7271_v25  ;;  %v7290_v23 = vmul.f32 %v7287_v14, %v13576_v38  ;;  %v10624_v47 = vpack.i.bf16 %v13576_v38, %v13540_v9 }
0x206b   : > { %v10614_v45 = vpack.i.bf16 %v7297_v62, %v7296_v61  ;;  %v7306_v15 = vmul.f32 %v7301_v63, %v13568_v43  ;;  %v7304_v56 = vmul.f32 %v7301_v63, %v13576_v38 }
0x206c   : > { %10565 = vrot.lane.b32.xlu0 %v10564_v2, %s14204_s17  ;;  %v10629_v5 = vpack.i.bf16 %v7290_v23, %v7289_v49 }
0x206d   : > { %v10644_v44 = vpack.i.bf16 %v7306_v15, %v7305_v26  ;;  %v10649_v29 = vpack.i.bf16 %v7304_v56, %v7303_v31 }
0x206e   : > { %10555 = vrot.lane.b32.xlu1 %v10554_v28, %s14203_s30 }
0x2070   : > { %10570 = vrot.lane.b32.xlu0 %v10569_v59, %s14208_s23 }
0x2072   : > { %10585 = vrot.lane.b32.xlu1 %v10584_v55, %s14200_s16 }
0x2074   : > { %10575 = vrot.lane.b32.xlu0 %v10574_v18, %s14203_s30 }
0x2076   : > { %10590 = vrot.lane.b32.xlu1 %v10589_v46, %s14208_s23  ;;  %s14226_s23 = smov 110  }
0x2078   : > { %10580 = vrot.lane.b32.xlu0 %v10579_v54, %s14204_s17 }
0x207a   : > { %10595 = vrot.lane.b32.xlu1 %v10594_v41, %s14209_s22 }
0x207c   : > { %10600 = vrot.lane.b32.xlu0 %v10599_v7, %s14209_s22 }
0x207e   : > { %10605 = vrot.lane.b32.xlu1 %v10604_v51, %s14204_s17 }
0x2080   : > { %10615 = vrot.lane.b32.xlu0 %v10614_v45, %s14200_s16 }
0x2082   : > { %10610 = vrot.lane.b32.xlu1 %v10609_v8, %s14210_s25 }
0x2084   : > { %10620 = vrot.lane.b32.xlu0 %v10619_v0, %s14209_s22 }
0x2086   : > { %10625 = vrot.lane.b32.xlu1 %v10624_v47, %s14209_s22 }
0x2088   : > { %10630 = vrot.lane.b32.xlu0 %v10629_v5, %s14210_s25 }
0x208a   : > { %7247 = vrot.lane.b32.xlu1 %v11015_v34, %s14217_s0 }
0x208c   : > { %10635 = vrot.lane.b32.xlu0 %v10554_v28, %s14217_s0 }
0x208e   : > { %10640 = vrot.lane.b32.xlu1 %v10574_v18, %s14217_s0 }
0x2090   : > { %10645 = vrot.lane.b32.xlu0 %v10644_v44, %s14226_s23 }
0x2092   : > { %10650 = vrot.lane.b32.xlu1 %v10649_v29, %s14226_s23 }
0x20d8   : > { %v10546_v19 = vpop.permute.xlu1 %10545 }
0x20d9   : > { %v10548_v55 = vunpack.i.h.bf16 %v10546_v19  ;;  %v10547_v11 = vunpack.i.l.bf16 %v10546_v19 }
0x20da   : > { %v13622_v33 = vpop.permute.xlu0 %10560 }
0x20db   : > { %v7405_v61 = vsel %vm1527_vm13, %v10547_v11, %v10548_v55  ;;  %v10563_v26 = vunpack.i.h.bf16 %v13622_v33  ;;  %v10562_v44 = vunpack.i.l.bf16 %v13622_v33 }
0x20dc   : > { %v10551_v53 = vpop.permute.xlu1 %10550 }
0x20dd   : > { %v10553_v35 = vunpack.i.h.bf16 %v10551_v53  ;;  %v10552_v51 = vunpack.i.l.bf16 %v10551_v53 }
0x20de   : > { %v13624_v24 = vpop.permute.xlu0 %10565 }
0x20df   : > { %v7369_v47 = vsel %vm639_vm9, %v10552_v51, %v10553_v35 }
0x20e0   : > { %v10556_v58 = vpop.permute.xlu1 %10555 }
0x20e1   : > { %v10558_v50 = vunpack.i.h.bf16 %v10556_v58  ;;  %v10557_v30 = vunpack.i.l.bf16 %v10556_v58 }
0x20e2   : > { %v10571_v60 = vpop.permute.xlu0 %10570 }
0x20e3   : > { %v7510_v22 = vpack.c.bf16 %v10558_v50, %v10557_v30  ;;  %v10573_v37 = vunpack.i.h.bf16 %v10571_v60  ;;  %v10572_v57 = vunpack.i.l.bf16 %v10571_v60 }
0x20e4   : > { %v10586_v10 = vpop.permute.xlu1 %10585 }
0x20e5   : > { %7600 = vrot.lane.b32.xlu0 %v7510_v22, %s14225_s18  ;;  %v10588_v6 = vunpack.i.h.bf16 %v10586_v10  ;;  %v10587_v36 = vunpack.i.l.bf16 %v10586_v10  ;;  %v7502_v46 = vpack.c.bf16 %v10573_v37, %v10548_v55  ;;  %v7406_v14 = vsel %vm1527_vm13, %v10572_v57, %v10573_v37 }
0x20e6   : > { %v10576_v17 = vpop.permute.xlu0 %10575  ;;  %v7501_v23 = vpack.c.bf16 %v7406_v14, %v7405_v61  ;;  %v7403_v10 = vsel %vm1527_vm13, %v10562_v44, %v10563_v26 }
0x20e7   : > { %v10578_v54 = vunpack.i.h.bf16 %v10576_v17  ;;  %v10577_v41 = vunpack.i.l.bf16 %v10576_v17  ;;  %v7508_v12 = vpack.c.bf16 %v10588_v6, %v10587_v36 }
0x20e8   : > { %v10591_v52 = vpop.permute.xlu1 %10590 }
0x20e9   : > { %v7509_v16 = vpack.c.bf16 %v10578_v54, %v10577_v41  ;;  %v10593_v49 = vunpack.i.h.bf16 %v10591_v52  ;;  %v10592_v5 = vunpack.i.l.bf16 %v10591_v52 }
0x20ea   : > { %v10581_v39 = vpop.permute.xlu0 %10580 }
0x20eb   : > { %v10583_v7 = vunpack.i.h.bf16 %v10581_v39  ;;  %v10582_v62 = vunpack.i.l.bf16 %v10581_v39  ;;  %v7500_v29 = vpack.c.bf16 %v10593_v49, %v10563_v26  ;;  %v7404_v19 = vsel %vm1527_vm13, %v10592_v5, %v10593_v49 }
0x20ec   : > { %v10596_v25 = vpop.permute.xlu1 %10595  ;;  %v7499_v33 = vpack.c.bf16 %v7404_v19, %v7403_v10  ;;  %vm14239_vm13 = vcmask 785408  }
0x20ed   : > { %v10598_v20 = vunpack.i.h.bf16 %v10596_v25  ;;  %v10597_v1 = vunpack.i.l.bf16 %v10596_v25  ;;  %v7370_v0 = vsel %vm639_vm9, %v10582_v62, %v10583_v7  ;;  %v7498_v63 = vpack.c.bf16 %v10583_v7, %v10553_v35  ;;  %v10903_v62 = vld [vmem:[%s14227_s11 + $0x4] ss:$12 sps:$4 sm:$0xff]   ;;  %vm14241_vm15 = vmmov %vm14239_vm13 }
0x20ee   : > { %v10601_v40 = vpop.permute.xlu0 %10600  ;;  %v7497_v56 = vpack.c.bf16 %v7370_v0, %v7369_v47  ;;  %7667 = vmatprep.mubr.bf16.mxu0 %v10903_v62  ;;  %vm14242_vm6 = vmmov %vm14239_vm13 }
0x20ef   : > { %v10603_v32 = vunpack.i.h.bf16 %v10601_v40  ;;  %v10602_v13 = vunpack.i.l.bf16 %v10601_v40  ;;  %v7333_v2 = vsel %vm572_vm3, %v10597_v1, %v10598_v20  ;;  %v10568_v40 = vunpack.i.h.bf16 %v13624_v24 }
0x20f0   : > { %v13629_v18 = vpop.permute.xlu1 %10605 }
0x20f1   : > { %v7334_v21 = vsel %vm572_vm3, %v10602_v13, %v10603_v32  ;;  %v7494_v28 = vpack.c.bf16 %v10603_v32, %v10598_v20  ;;  %v10608_v39 = vunpack.i.h.bf16 %v13629_v18  ;;  %v10607_v25 = vunpack.i.l.bf16 %v13629_v18 }
0x20f2   : > { %v7493_v59 = vpack.c.bf16 %v7334_v21, %v7333_v2  ;;  %v10616_v8 = vpop.permute.xlu0 %10615  ;;  %v10567_v32 = vunpack.i.l.bf16 %v13624_v24 }
0x20f3   : > { %7568 = vrot.lane.b32.xlu1 %v7494_v28, %s14225_s18  ;;  %v10618_v34 = vunpack.i.h.bf16 %v10616_v8  ;;  %v10617_v15 = vunpack.i.l.bf16 %v10616_v8  ;;  %v7496_v21 = vpack.c.bf16 %v10608_v39, %v10568_v40  ;;  %v7368_v28 = vsel %vm639_vm9, %v10607_v25, %v10608_v39 }
0x20f4   : > { %7566 = vrot.lane.b32.xlu0 %v7493_v59, %s14225_s18  ;;  %v10611_v45 = vpop.permute.xlu1 %10610  ;;  %v7367_v36 = vsel %vm639_vm9, %v10567_v32, %v10568_v40 }
0x20f5   : > { %v7507_v53 = vpack.c.bf16 %v10618_v34, %v10617_v15  ;;  %v10613_v50 = vunpack.i.h.bf16 %v10611_v45  ;;  %v10612_v30 = vunpack.i.l.bf16 %v10611_v45  ;;  %v7495_v57 = vpack.c.bf16 %v7368_v28, %v7367_v36 }
0x20f6   : > { %v10621_v58 = vpop.permute.xlu0 %10620 }
0x20f7   : > { %7584 = vrot.lane.b32.xlu1 %v7502_v46, %s14225_s18  ;;  %v10623_v17 = vunpack.i.h.bf16 %v10621_v58  ;;  %v10622_v52 = vunpack.i.l.bf16 %v10621_v58  ;;  %v7506_v20 = vpack.c.bf16 %v10613_v50, %v10612_v30 }
0x20f8   : > { %7596 = vrot.lane.b32.xlu0 %v7508_v12, %s14225_s18  ;;  %v10626_v31 = vpop.permute.xlu1 %10625 }
0x20f9   : > { %v10628_v22 = vunpack.i.h.bf16 %v10626_v31  ;;  %v10627_v60 = vunpack.i.l.bf16 %v10626_v31  ;;  %v7331_v13 = vsel %vm572_vm3, %v10622_v52, %v10623_v17 }
0x20fa   : > { %v10631_v37 = vpop.permute.xlu0 %10630 }
0x20fb   : > { %7598 = vrot.lane.b32.xlu1 %v7509_v16, %s14225_s18  ;;  %v7332_v1 = vsel %vm572_vm3, %v10627_v60, %v10628_v22  ;;  %v10633_v55 = vunpack.i.h.bf16 %v10631_v37  ;;  %v10632_v24 = vunpack.i.l.bf16 %v10631_v37  ;;  %v7492_v18 = vpack.c.bf16 %v10628_v22, %v10623_v17 }
0x20fc   : > { %7582 = vrot.lane.b32.xlu0 %v7501_v23, %s14225_s18  ;;  %v7491_v2 = vpack.c.bf16 %v7332_v1, %v7331_v13  ;;  %v7248_v6 = vpop.permute.xlu1 %7247 }
0x20fd   : > { %v7254_v59 = vmul.f32 %v13540_v9, %v7248_v6  ;;  %v7505_v54 = vpack.c.bf16 %v10633_v55, %v10632_v24  ;;  %v7255_v41 = vmul.f32 %v7248_v6, %v13558_v27  ;;  %v7257_v12 = vmul.f32 %v7248_v6, %v13568_v43 }
0x20fe   : > { %v10636_v11 = vpop.permute.xlu0 %10635  ;;  %v7251_v16 = vmul.f32 %v7248_v6, %v13561_v42  ;;  %v7253_v27 = vmul.f32 %v7248_v6, %v13576_v38 }
0x20ff   : > { %7576 = vrot.lane.b32.xlu1 %v7498_v63, %s14225_s18  ;;  %v7489_v46 = vpack.c.bf16 %v7254_v59, %v7254_v59  ;;  %v10638_v14 = vunpack.i.h.bf16 %v10636_v11  ;;  %v10637_v7 = vunpack.i.l.bf16 %v10636_v11  ;;  %v7490_v51 = vpack.c.bf16 %v7257_v12, %v7255_v41  ;;  %v10904_v11 = vld [vmem:[%s14227_s11 + $0x8] ss:$12 sps:$4 sm:$0xff]  }
0x2100   : > { %7574 = vrot.lane.b32.xlu0 %v7497_v56, %s14225_s18  ;;  %v10641_v35 = vpop.permute.xlu1 %10640  ;;  %v7488_v49 = vpack.c.bf16 %v7253_v27, %v7251_v16 }
0x2101   : > { %v7504_v61 = vpack.c.bf16 %v10638_v14, %v10637_v7  ;;  %v10643_v43 = vunpack.i.h.bf16 %v10641_v35  ;;  %v10642_v8 = vunpack.i.l.bf16 %v10641_v35 }
0x2102   : > { %v10646_v45 = vpop.permute.xlu0 %10645 }
0x2103   : > { %7594 = vrot.lane.b32.xlu1 %v7507_v53, %s14225_s18  ;;  %v10648_v23 = vunpack.i.h.bf16 %v10646_v45  ;;  %v10647_v0 = vunpack.i.l.bf16 %v10646_v45  ;;  %v7503_v42 = vpack.c.bf16 %v10643_v43, %v10642_v8 }
0x2104   : > { %7580 = vrot.lane.b32.xlu0 %v7500_v29, %s14225_s18  ;;  %v10651_v47 = vpop.permute.xlu1 %10650 }
0x2105   : > { %v10653_v38 = vunpack.i.h.bf16 %v10651_v47  ;;  %v10652_v5 = vunpack.i.l.bf16 %v10651_v47  ;;  %v7512_v63 = vpack.c.bf16 %v10648_v23, %v10647_v0  ;;  %v10905_v47 = vld [vmem:[%s14228_s2 + $0x30] ss:$8 sps:$4 sm:$0xff]  }
0x2107   : > { %7578 = vrot.lane.b32.xlu1 %v7499_v33, %s14225_s18  ;;  %v7511_v34 = vpack.c.bf16 %v10653_v38, %v10652_v5  ;;  %v10908_v38 = vld [vmem:[%s14228_s2 + $0x20] ss:$8 sps:$4 sm:$0xff]   ;;  %v10913_v5 = vld [vmem:[%s14228_s2 + $0x14] ss:$8 sps:$4 sm:$0xff]  }
0x2108   : > { %7592 = vrot.lane.b32.xlu0 %v7506_v20, %s14225_s18 }
0x210b   : > { %7562 = vrot.lane.b32.xlu1 %v7491_v2, %s14225_s18 }
0x210c   : > { %7572 = vrot.lane.b32.xlu0 %v7496_v21, %s14225_s18 }
0x210f   : > { %7570 = vrot.lane.b32.xlu1 %v7495_v57, %s14225_s18  ;;  %v10901_v57 = vld [vmem:[%s14227_s11] ss:$12 sps:$4 sm:$0xff]  }
0x2110   : > { %7564 = vrot.lane.b32.xlu0 %v7492_v18, %s14225_s18 }
0x2113   : > { %7590 = vrot.lane.b32.xlu1 %v7505_v54, %s14225_s18 }
0x2114   : > { %7558 = vrot.lane.b32.xlu0 %v7489_v46, %s14225_s18 }
0x2117   : > { %7560 = vrot.lane.b32.xlu1 %v7490_v51, %s14225_s18 }
0x2118   : > { %7588 = vrot.lane.b32.xlu0 %v7504_v61, %s14225_s18 }
0x211b   : > { %7554 = vrot.lane.b32.xlu1 %v7489_v46, %s14225_s18 }
0x211c   : > { %7556 = vrot.lane.b32.xlu0 %v7488_v49, %s14225_s18  ;;  %v10907_v49 = vld [vmem:[%s14228_s2 + $0x34] ss:$8 sps:$4 sm:$0xff]  }
0x211f   : > { %7586 = vrot.lane.b32.xlu1 %v7503_v42, %s14225_s18  ;;  %v10910_v42 = vld [vmem:[%s14228_s2 + $0x24] ss:$8 sps:$4 sm:$0xff]  }
0x2120   : > { %7604 = vrot.lane.b32.xlu0 %v7512_v63, %s14225_s18  ;;  %v10911_v63 = vld [vmem:[%s14228_s2 + $0x10] ss:$8 sps:$4 sm:$0xff]  }
0x2123   : > { %7602 = vrot.lane.b32.xlu1 %v7511_v34, %s14225_s18  ;;  %v10916_v34 = vld [vmem:[%s14228_s2 + $0x4] ss:$8 sps:$4 sm:$0xff]  }
0x2157   : > { %v7601_v15 = vpop.permute.xlu0 %7600 }
0x2158   : > { %9362 = vmatprep.subr.bf16.mxu0 %v7601_v15  ;;  %v10914_v15 = vld [vmem:[%s14228_s2] ss:$8 sps:$4 sm:$0xff]  }
0x2165   : > { %v7569_v56 = vpop.permute.xlu1 %7568 }
0x2166   : > { %v7567_v26 = vpop.permute.xlu0 %7566 }
0x2167   : > { %v7609_v32 = vsel %vm1640_vm5, %v7567_v26, %v7569_v56  ;;  %v7859_v56 = vld [vmem:[#allocation3] ss:$2 sm:$0x3]  ;;  %v7883_v26 = vld [vmem:[#allocation3 + $0x1] ss:$2 sm:$0x3] }
0x2169   : > { %v7585_v31 = vpop.permute.xlu1 %7584 }
0x216a   : > { %v7597_v44 = vpop.permute.xlu0 %7596 }
0x216d   : > { %v7599_v29 = vpop.permute.xlu1 %7598 }
0x216e   : > { %v7583_v19 = vpop.permute.xlu0 %7582 }
0x216f   : > { %v7613_v53 = vsel %vm1640_vm5, %v7583_v19, %v7585_v31  ;;  %v13738_v31 = vrot.slane %v7859_v56, %v11200_v3  ;;  %v7888_v19 = vrot.slane %v7883_v26, %v11200_v3 }
0x2170   : > { %9363 = vmatpush3.bf16.msra.mxu0 %v7613_v53  ;;  %v7892_v53 = vrot.slane %v7883_v26, %v11202_v4 }
0x2171   : > { %v7577_v58 = vpop.permute.xlu1 %7576  ;;  %9364 = vmatprep.subr.bf16.mxu0 %v7599_v29  ;;  %v13743_v29 = vld [vmem:[#allocation2 + $0x18] sm:$0xff] }
0x2172   : > { %v7575_v50 = vpop.permute.xlu0 %7574  ;;  %8389 = vst.msk [vmem:[#allocation2 + $0x18] sm:$0xff] %vm516_vm0, %v13540_v9 }
0x2173   : > { %v7611_v33 = vsel %vm1640_vm5, %v7575_v50, %v7577_v58 }
0x2175   : > { %v7595_v30 = vpop.permute.xlu1 %7594 }
0x2176   : > { %v7581_v22 = vpop.permute.xlu0 %7580 }
0x2179   : > { %v7579_v60 = vpop.permute.xlu1 %7578 }
0x217a   : > { %v7612_v10 = vsel %vm1640_vm5, %v7579_v60, %v7581_v22  ;;  %v7593_v17 = vpop.permute.xlu0 %7592 }
0x217b   : > { %9365 = vmatpush3.bf16.msra.mxu0 %v7612_v10 }
0x217c   : > { %9366 = vmatprep.subr.bf16.mxu0 %v7597_v44  ;;  %v13741_v44 = vrot.slane %v7859_v56, %v11202_v4 }
0x217d   : > { %v7563_v52 = vpop.permute.xlu1 %7562 }
0x217e   : > { %v7573_v39 = vpop.permute.xlu0 %7572 }
0x217f   : > { %9367 = vmatpush3.bf16.msra.mxu0 %v7611_v33 }
0x2180   : > { %9368 = vmatprep.subr.bf16.mxu0 %v7595_v30 }
0x2181   : > { %v7571_v25 = vpop.permute.xlu1 %7570 }
0x2182   : > { %v7610_v20 = vsel %vm1640_vm5, %v7571_v25, %v7573_v39  ;;  %v7565_v1 = vpop.permute.xlu0 %7564 }
0x2183   : > { %9369 = vmatpush3.bf16.msra.mxu0 %v7610_v20  ;;  %v7608_v2 = vsel %vm1640_vm5, %v7563_v52, %v7565_v1 }
0x2184   : > { %9370 = vmatprep.subr.bf16.mxu0 %v7593_v17 }
0x2185   : > { %v7591_v40 = vpop.permute.xlu1 %7590 }
0x2186   : > { %v7559_v13 = vpop.permute.xlu0 %7558 }
0x2187   : > { %9371 = vmatpush3.bf16.msra.mxu0 %v7609_v32 }
0x2188   : > { %9372 = vmatprep.subr.bf16.mxu0 %v7591_v40 }
0x2189   : > { %v7561_v37 = vpop.permute.xlu1 %7560 }
0x218a   : > { %v7589_v21 = vpop.permute.xlu0 %7588  ;;  %v7607_v6 = vsel %vm1640_vm5, %v7559_v13, %v7561_v37 }
0x218b   : > { %9373 = vmatpush3.bf16.msra.mxu0 %v7608_v2 }
0x218c   : > { %9374 = vmatprep.subr.bf16.mxu0 %v7589_v21 }
0x218d   : > { %v7555_v28 = vpop.permute.xlu1 %7554 }
0x218e   : > { %v7557_v36 = vpop.permute.xlu0 %7556 }
0x218f   : > { %9375 = vmatpush3.bf16.msra.mxu0 %v7607_v6  ;;  %v7606_v55 = vsel %vm1640_vm5, %v7555_v28, %v7557_v36  ;;  %vm14235_vm5 = vcmask 908288  }
0x2190   : > { %vm14236_vm7 = vmmov %vm14235_vm5 }
0x2191   : > { %v7587_v59 = vpop.permute.xlu1 %7586 }
0x2192   : > { %9376 = vmatprep.subr.bf16.mxu0 %v7587_v59  ;;  %v7605_v24 = vpop.permute.xlu0 %7604 }
0x2193   : > { %9377 = vmatpush3.bf16.msra.mxu0 %v7606_v55  ;;  %9470 = vmatpush3.bf16.msra.mxu1 %v7605_v24 }
0x2194   : > { %9471 = vmatprep.subr.bf16.mxu1 %v13540_v9 }
0x2195   : > { %v7603_v18 = vpop.permute.xlu1 %7602 }
0x2196   : > { %7668 = vmatmul.mubr.bf16.vlgmr.msra.gmra.mxu0 %v10901_v57 }
0x2197   : > { %9472 = vmatpush3.bf16.msra.mxu1 %v7603_v18  ;;  %8705 = vmatprep.mubr.bf16.mxu0 %v11069_v48 }
0x2198   : > { %7811 = vmatprep.subr.bf16.mxu1 %v10907_v49 }
0x219a   : > { %9474 = vmatmul.mubr.msk.bf16.vlgmr.msra.gmra.mxu1 %vm2300_vm10, %v10904_v11  ;;  %vm14237_vm10 = vcmask 916480  }
0x219b   : > { %7835 = vmatprep.mubr.bf16.mxu1 %v11069_v48  ;;  %7812 = vmatpush1.bf16.msra.mxu1 %v10905_v47  ;;  %vm14238_vm11 = vmmov %vm14237_vm10 }
0x219c   : > { %7813 = vmatprep.subr.bf16.mxu1 %v10910_v42 }
0x219f   : > { %7814 = vmatpush1.bf16.msra.mxu1 %v10908_v38 }
0x21a0   : > { %7815 = vmatprep.subr.bf16.mxu1 %v10913_v5 }
0x21a3   : > { %7816 = vmatpush1.bf16.msra.mxu1 %v10911_v63 }
0x21a4   : > { %7817 = vmatprep.subr.bf16.mxu1 %v10916_v34 }
0x21a7   : > { %7818 = vmatpush1.bf16.msra.mxu1 %v10914_v15 }
0x2256   : > { %v9378_v46 = vpop.f32.mrf.mxu0 }
0x2258   : > { %v9379_v54 = vpop.f32.mrf.mxu0 }
0x2259   : > { %v9380_v41 = vadd.f32 %v9379_v54, %v9378_v46 }
0x225a   : > { %v9381_v12 = vpop.f32.mrf.mxu0  ;;  %v7710_v14 = vpop.f32.mrf.mxu1 }
0x225b   : > { %v13699_v7 = vadd.f32 %v9380_v41, %v7710_v14 }
0x225c   : > { %v9382_v62 = vpop.f32.mrf.mxu0  ;;  %v9475_v35 = vpop.f32.mrf.mxu1 }
0x225d   : > { %v9383_v51 = vadd.f32 %v9382_v62, %v9381_v12  ;;  %v7717_v61 = vsel %vm1383_vm14, %v13699_v7, 0.0  ;;  %v7723_v16 = vmul.f32 %v13699_v7, %v13699_v7 }
0x225e   : > { %7718 = vadd.xlane.f32.xlu0 %v7717_v61  ;;  %v7713_v27 = vpop.f32.mrf.mxu1 }
0x225f   : > { %v13705_v45 = vadd.f32 %v9383_v51, %v7713_v27  ;;  %v7725_v43 = vsel %vm1383_vm14, %v7723_v16, 0.0 }
0x2260   : > { %v9476_v48 = vpop.f32.mrf.mxu1 }
0x2261   : > { %v7720_v8 = vsel %vm1383_vm14, %v13705_v45, 0.0  ;;  %v7724_v23 = vmul.f32 %v13705_v45, %v13705_v45 }
0x2262   : > { %7726 = vadd.xlane.f32.xlu0 %v7725_v43  ;;  %7721 = vadd.xlane.f32.xlu1 %v7720_v8  ;;  %v13789_v43 = vld [vmem:[#allocation2 + $0x38] sm:$0xff] }
0x2263   : > { %v7728_v0 = vsel %vm1383_vm14, %v7724_v23, 0.0 }
0x2266   : > { %7729 = vadd.xlane.f32.xlu0 %v7728_v0 }
0x2273   : > { %7937 = vrot.lane.b32.xlu1 %v13738_v31, %s14229_s7 }
0x2277   : > { %7923 = vrot.lane.b32.xlu1 %v7888_v19, %s14223_s28 }
0x227b   : > { %7925 = vrot.lane.b32.xlu1 %v7892_v53, %s14223_s28 }
0x227c   : > { %7939 = vrot.lane.b32.xlu0 %v13741_v44, %s14229_s7 }
0x227f   : > { %7909 = vrot.lane.b32.xlu1 %v13741_v44, %s14209_s22 }
0x2280   : > { %7907 = vrot.lane.b32.xlu0 %v13738_v31, %s14209_s22 }
0x2283   : > { %7895 = vrot.lane.b32.xlu1 %v7892_v53, %s14230_s24 }
0x2284   : > { %7893 = vrot.lane.b32.xlu0 %v7888_v19, %s14230_s24 }
0x2287   : > { %7953 = vrot.lane.b32.xlu1 %v7892_v53, %s14231_s8 }
0x2288   : > { %7951 = vrot.lane.b32.xlu0 %v7888_v19, %s14231_s8 }
0x22e7   : > { %v7719_v58 = vpop.xlane.xlu0 %7718 }
0x22e8   : > { %v7731_v50 = vmul.f32 0.015625, %v7719_v58 }
0x22ea   : > { %v7735_v60 = vmul.f32 %v7731_v50, %v7731_v50  ;;  %v7741_v2 = vsub.f32 %v13699_v7, %v7731_v50 }
0x22eb   : > { %v7727_v30 = vpop.xlane.xlu0 %7726  ;;  %v7722_v22 = vpop.xlane.xlu1 %7721 }
0x22ec   : > { %v7733_v10 = vmul.f32 0.015625, %v7727_v30  ;;  %v7732_v17 = vmul.f32 0.015625, %v7722_v22 }
0x22ee   : > { %v7737_v52 = vsub.f32 %v7733_v10, %v7735_v60  ;;  %v7736_v25 = vmul.f32 %v7732_v17, %v7732_v17  ;;  %v7742_v21 = vsub.f32 %v13705_v45, %v7732_v17 }
0x22ef   : > { %v7730_v33 = vpop.xlane.xlu0 %7729  ;;  %v7938_v57 = vpop.permute.xlu1 %7937 }
0x22f0   : > { %v7739_v39 = vmax.f32 %v7737_v52, 0.0  ;;  %v7734_v20 = vmul.f32 0.015625, %v7730_v33 }
0x22f2   : > { %v7743_v1 = vadd.f32 1e-05, %v7739_v39  ;;  %v7738_v40 = vsub.f32 %v7734_v20, %v7736_v25 }
0x22f3   : > { %v7924_v18 = vpop.permute.xlu1 %7923  ;;  %v7940_v62 = vpop.permute.xlu0 %7939 }
0x22f4   : > { %10997 = vrsqrt.f32 %v7743_v1  ;;  %v7740_v32 = vmax.f32 %v7738_v40, 0.0  ;;  %v7941_v51 = vsel %vm597_vm1, %v7938_v57, %v7940_v62  ;;  %v7947_v8 = vmul.f32 %v7940_v62, %v13743_v29 }
0x22f5   : > { %v7950_v63 = vmul.f32 %v7940_v62, %v13789_v43 }
0x22f6   : > { %v7744_v13 = vadd.f32 1e-05, %v7740_v32 }
0x22f7   : > { %v7926_v46 = vpop.permute.xlu1 %7925  ;;  %v7908_v0 = vpop.permute.xlu0 %7907 }
0x22f8   : > { %10999 = vrsqrt.f32 %v7744_v13  ;;  %v7927_v54 = vsel %vm585_vm2, %v7924_v18, %v7926_v46  ;;  %v7933_v23 = vmul.f32 %v7926_v46, %v13743_v29  ;;  %v7915_v52 = vmul.f32 %v13540_v9, %v7908_v0 }
0x22f9   : > { %v7936_v20 = vmul.f32 %v7926_v46, %v13789_v43 }
0x22fa   : > { %v10709_v40 = vpack.i.bf16 %v7915_v52, %v7915_v52 }
0x22fb   : > { %v7910_v47 = vpop.permute.xlu1 %7909  ;;  %v7894_v26 = vpop.permute.xlu0 %7893 }
0x22fc   : > { %v7911_v53 = vsel %vm572_vm3, %v7908_v0, %v7910_v47  ;;  %v7901_v1 = vmul.f32 %v13540_v9, %v7894_v26 }
0x22fe   : > { %v10724_v13 = vpack.i.bf16 %v7901_v1, %v7901_v1 }
0x22ff   : > { %v7896_v19 = vpop.permute.xlu1 %7895 }
0x2300   : > { %v7897_v58 = vsel %vm560_vm4, %v7894_v26, %v7896_v19 }
0x2301   : > { %v10998_v37 = vpop.eup %10997 }
0x2302   : > { %v7747_v28 = vmul.f32 %v10998_v37, %v7741_v2 }
0x2304   : > { %v7749_v59 = vmax.f32 %v7747_v28, 0.0 }
0x2305   : > { %v11000_v6 = vpop.eup %10999 }
0x2306   : > { %v7748_v36 = vmul.f32 %v11000_v6, %v7742_v21 }
0x2308   : > { %v7750_v55 = vmax.f32 %v7748_v36, 0.0  ;;  %v7952_v36 = vpop.permute.xlu0 %7951 }
0x230a   : > { %v7751_v24 = vpack.c.bf16 %v7750_v55, %v7749_v59  ;;  %v7954_v59 = vpop.permute.xlu1 %7953  ;;  %v13829_v55 = vld [vmem:[#allocation2] sm:$0xff] }
0x230b   : > { %v7964_v62 = vmul.f32 %v7954_v59, %v13789_v43 }
0x230c   : > { %9065 = vmatmul.mubr.msk.bf16.vlgmr.msra.gmra.mxu1 %vm1383_vm14, %v7751_v24  ;;  %v10749_v24 = vpack.i.bf16 %v13829_v55, %v13829_v55  ;;  %vm14240_vm14 = vmmov %vm14239_vm13 }
0x23cc   : > { %v13766_v11 = vpop.f32.mrf.mxu1 }
0x23cd   : > { %v7931_v35 = vmul.f32 %v7924_v18, %v13766_v11  ;;  %v7945_v48 = vmul.f32 %v7938_v57, %v13766_v11  ;;  %v7916_v10 = vmul.f32 %v7911_v53, %v13766_v11  ;;  %v7902_v17 = vmul.f32 %v7897_v58, %v13766_v11 }
0x23ce   : > { %v13769_v41 = vpop.f32.mrf.mxu1 }
0x23cf   : > { %v10659_v12 = vpack.i.bf16 %v13769_v41, %v13766_v11  ;;  %v7932_v14 = vmul.f32 %v7927_v54, %v13769_v41  ;;  %v7946_v45 = vmul.f32 %v7941_v51, %v13769_v41  ;;  %v7903_v50 = vmul.f32 %v7896_v19, %v13769_v41 }
0x23d0   : > { %v13774_v7 = vpop.f32.mrf.mxu1  ;;  %v7917_v60 = vmul.f32 %v7910_v47, %v13769_v41 }
0x23d1   : > { %7851 = vst [vmem:[#allocation2 + $0x28] sm:$0xff] %v13774_v7  ;;  %10660 = vrot.lane.b32.xlu1 %v10659_v12, %s14203_s30  ;;  %10655 = vrot.lane.b32.xlu0 %v10659_v12, %s14232_s9  ;;  %v10674_v16 = vpack.i.bf16 %v7932_v14, %v7931_v35  ;;  %v10664_v27 = vpack.i.bf16 %v13774_v7, %v13743_v29 }
0x23d2   : > { %v13781_v61 = vpop.f32.mrf.mxu1  ;;  %v10669_v49 = vpack.i.bf16 %v7946_v45, %v7945_v48  ;;  %v7934_v38 = vmul.f32 %v7924_v18, %v13774_v7  ;;  %v7948_v5 = vmul.f32 %v7938_v57, %v13774_v7  ;;  %v10714_v33 = vpack.i.bf16 %v7903_v50, %v7902_v17 }
0x23d3   : > { %v10679_v42 = vpack.i.bf16 %v13789_v43, %v13781_v61  ;;  %v7949_v56 = vmul.f32 %v7941_v51, %v13781_v61  ;;  %v10694_v30 = vpack.i.bf16 %v13781_v61, %v13774_v7  ;;  %v10704_v39 = vpack.i.bf16 %v7917_v60, %v7916_v10 }
0x23d4   : > { %v10689_v34 = vpack.i.bf16 %v7934_v38, %v7933_v23  ;;  %v10684_v15 = vpack.i.bf16 %v7948_v5, %v7947_v8  ;;  %v7935_v25 = vmul.f32 %v7927_v54, %v13781_v61  ;;  %v7920_v37 = vmul.f32 %v7910_v47, %v13781_v61 }
0x23d5   : > { %10675 = vrot.lane.b32.xlu0 %v10674_v16, %s14226_s23  ;;  %10665 = vrot.lane.b32.xlu1 %v10664_v27, %s14232_s9  ;;  %v10699_v22 = vpack.i.bf16 %v7950_v63, %v7949_v56  ;;  %v7906_v2 = vmul.f32 %v7896_v19, %v13781_v61  ;;  %v7905_v21 = vmul.f32 %v7897_v58, %v13774_v7 }
0x23d6   : > { %v10719_v32 = vpack.i.bf16 %v7936_v20, %v7935_v25  ;;  %v7919_v28 = vmul.f32 %v7911_v53, %v13774_v7  ;;  %v7955_v57 = vsel %vm516_vm0, %v7952_v36, %v7954_v59  ;;  %v7962_v18 = vmul.f32 %v7952_v36, %v13774_v7 }
0x23d7   : > { %v10744_v6 = vpack.i.bf16 %v7906_v2, %v7905_v21  ;;  %v7960_v46 = vmul.f32 %v7955_v57, %v13769_v41  ;;  %v7961_v54 = vmul.f32 %v7954_v59, %v13743_v29  ;;  %v7963_v14 = vmul.f32 %v7955_v57, %v13781_v61 }
0x23d8   : > { %v10734_v9 = vpack.i.bf16 %v7920_v37, %v7919_v28 }
0x23d9   : > { %10670 = vrot.lane.b32.xlu1 %v10669_v49, %s14233_s27  ;;  %10680 = vrot.lane.b32.xlu0 %v10679_v42, %s14232_s9  ;;  %v10759_v51 = vpack.i.bf16 %v7962_v18, %v7961_v54  ;;  %v10764_v16 = vpack.i.bf16 %v7964_v62, %v7963_v14 }
0x23dd   : > { %10690 = vrot.lane.b32.xlu1 %v10689_v34, %s14226_s23  ;;  %10685 = vrot.lane.b32.xlu0 %v10684_v15, %s14233_s27 }
0x23e1   : > { %10695 = vrot.lane.b32.xlu0 %v10694_v30, %s14203_s30  ;;  %10700 = vrot.lane.b32.xlu1 %v10699_v22, %s14233_s27 }
0x23e5   : > { %10715 = vrot.lane.b32.xlu0 %v10714_v33, %s14204_s17  ;;  %10705 = vrot.lane.b32.xlu1 %v10704_v39, %s14200_s16 }
0x23e9   : > { %10710 = vrot.lane.b32.xlu1 %v10709_v40, %s14200_s16  ;;  %10720 = vrot.lane.b32.xlu0 %v10719_v32, %s14226_s23 }
0x23ed   : > { %10730 = vrot.lane.b32.xlu1 %v10659_v12, %s14209_s22  ;;  %10725 = vrot.lane.b32.xlu0 %v10724_v13, %s14204_s17  ;;  %v7959_v12 = vmul.f32 %v7952_v36, %v13766_v11 }
0x23ef   : > { %v10754_v35 = vpack.i.bf16 %v7960_v46, %v7959_v12 }
0x23f1   : > { %10735 = vrot.lane.b32.xlu0 %v10734_v9, %s14200_s16  ;;  %10745 = vrot.lane.b32.xlu1 %v10744_v6, %s14204_s17 }
0x23f5   : > { %10740 = vrot.lane.b32.xlu0 %v10694_v30, %s14209_s22  ;;  %10750 = vrot.lane.b32.xlu1 %v10749_v24, %s14209_s22 }
0x23f9   : > { %7869 = vrot.lane.b32.xlu0 %v13738_v31, %s14203_s30  ;;  %7871 = vrot.lane.b32.xlu1 %v13741_v44, %s14203_s30 }
0x23fd   : > { %10755 = vrot.lane.b32.xlu0 %v10754_v35, %s14234_s3  ;;  %10760 = vrot.lane.b32.xlu1 %v10759_v51, %s14234_s3 }
0x2401   : > { %10765 = vrot.lane.b32.xlu0 %v10764_v16, %s14234_s3 }
0x2443   : > { %v10661_v29 = vpop.permute.xlu1 %10660  ;;  %v10656_v27 = vpop.permute.xlu0 %10655 }
0x2444   : > { %v10657_v48 = vunpack.i.l.bf16 %v10656_v27  ;;  %v10663_v15 = vunpack.i.h.bf16 %v10661_v29  ;;  %v10662_v56 = vunpack.i.l.bf16 %v10661_v29  ;;  %v10658_v53 = vunpack.i.h.bf16 %v10656_v27 }
0x2446   : > { %v8135_v33 = vsel %vm705_vm8, %v10657_v48, %v10658_v53  ;;  %v8057_v28 = vsel %vm14236_vm7, %v10662_v56, %v10663_v15 }
0x2447   : > { %v13849_v45 = vpop.permute.xlu0 %10675  ;;  %v10666_v31 = vpop.permute.xlu1 %10665 }
0x2448   : > { %v10668_v44 = vunpack.i.h.bf16 %v10666_v31  ;;  %v10677_v49 = vunpack.i.l.bf16 %v13849_v45  ;;  %v10667_v39 = vunpack.i.l.bf16 %v10666_v31 }
0x244a   : > { %v8194_v8 = vpack.c.bf16 %v10668_v44, %v10657_v48  ;;  %v8136_v13 = vsel %vm705_vm8, %v10658_v53, %v10667_v39 }
0x244b   : > { %v13851_v23 = vpop.permute.xlu1 %10670  ;;  %v10681_v43 = vpop.permute.xlu0 %10680 }
0x244c   : > { %8275 = vrot.lane.b32.xlu1 %v8194_v8, %s14231_s8  ;;  %v10682_v5 = vunpack.i.l.bf16 %v10681_v43  ;;  %v10683_v22 = vunpack.i.h.bf16 %v10681_v43  ;;  %v10672_v52 = vunpack.i.l.bf16 %v13851_v23  ;;  %v10673_v62 = vunpack.i.h.bf16 %v13851_v23 }
0x244e   : > { %v8137_v60 = vsel %vm705_vm8, %v10668_v44, %v10682_v5  ;;  %v8138_v1 = vsel %vm705_vm8, %v10682_v5, %v10683_v22 }
0x244f   : > { %v13854_v0 = vpop.permute.xlu1 %10690  ;;  %v13856_v47 = vpop.permute.xlu0 %10685  ;;  %v8195_v25 = vpack.c.bf16 %v8137_v60, %v8135_v33  ;;  %v8196_v37 = vpack.c.bf16 %v8138_v1, %v8136_v13 }
0x2450   : > { %v10693_v42 = vunpack.i.h.bf16 %v13854_v0  ;;  %v10688_v58 = vunpack.i.h.bf16 %v13856_v47  ;;  %v10687_v35 = vunpack.i.l.bf16 %v13856_v47  ;;  %v10692_v23 = vunpack.i.l.bf16 %v13854_v0 }
0x2451   : > { %v10678_v47 = vunpack.i.h.bf16 %v13849_v45 }
0x2452   : > { %v8188_v38 = vpack.c.bf16 %v10693_v42, %v10677_v49  ;;  %v8191_v20 = vpack.c.bf16 %v10688_v58, %v10672_v52  ;;  %v8112_v5 = vsel %vm14242_vm6, %v10673_v62, %v10687_v35  ;;  %vm14251_vm6 = vcmask 769024  }
0x2453   : > { %v10696_v63 = vpop.permute.xlu0 %10695  ;;  %v10701_v34 = vpop.permute.xlu1 %10700 }
0x2454   : > { %v10698_v26 = vunpack.i.h.bf16 %v10696_v63  ;;  %v10697_v19 = vunpack.i.l.bf16 %v10696_v63  ;;  %8263 = vrot.lane.b32.xlu1 %v8188_v38, %s14231_s8  ;;  %v10703_v59 = vunpack.i.h.bf16 %v10701_v34  ;;  %v10702_v24 = vunpack.i.l.bf16 %v10701_v34 }
0x2455   : > { %v8111_v38 = vsel %vm14241_vm15, %v10672_v52, %v10673_v62  ;;  %vm14249_vm15 = vcmask 908288  }
0x2456   : > { %v8187_v50 = vpack.c.bf16 %v10698_v26, %v10663_v15  ;;  %v8185_v30 = vpack.c.bf16 %v10697_v19, %v10662_v56  ;;  %v8058_v2 = vsel %vm14235_vm5, %v10697_v19, %v10698_v26  ;;  %v8113_v27 = vsel %vm14239_vm13, %v10688_v58, %v10702_v24 }
0x2457   : > { %v13867_v10 = vpop.permute.xlu0 %10715  ;;  %v13869_v17 = vpop.permute.xlu1 %10705  ;;  %v8186_v9 = vpack.c.bf16 %v8058_v2, %v8057_v28  ;;  %v8114_v8 = vsel %vm14240_vm14, %v10702_v24, %v10703_v59  ;;  %v8192_v63 = vpack.c.bf16 %v8113_v27, %v8111_v38  ;;  %vm14243_vm5 = vcmask 900096   ;;  %v13942_v38 = vld [vmem:[%s14250_s21] sm:$0xff] }
0x2458   : > { %8257 = vrot.lane.b32.xlu0 %v8185_v30, %s14231_s8  ;;  %8261 = vrot.lane.b32.xlu1 %v8187_v50, %s14231_s8  ;;  %v10708_v57 = vunpack.i.h.bf16 %v13869_v17  ;;  %v10707_v46 = vunpack.i.l.bf16 %v13869_v17  ;;  %v8193_v15 = vpack.c.bf16 %v8114_v8, %v8112_v5  ;;  %vm14244_vm7 = vmmov %vm14243_vm5  ;;  %v10717_v17 = vunpack.i.l.bf16 %v13867_v10 }
0x2459   : > { %v10718_v39 = vunpack.i.h.bf16 %v13867_v10  ;;  %vm14247_vm13 = vcmask 916480  }
0x245a   : > { %vm14248_vm14 = vmmov %vm14247_vm13 }
0x245b   : > { %v10721_v40 = vpop.permute.xlu0 %10720  ;;  %v10711_v32 = vpop.permute.xlu1 %10710 }
0x245c   : > { %8269 = vrot.lane.b32.xlu0 %v8191_v20, %s14231_s8  ;;  %8277 = vrot.lane.b32.xlu1 %v8195_v25, %s14231_s8  ;;  %v10712_v6 = vunpack.i.l.bf16 %v10711_v32  ;;  %v10713_v54 = vunpack.i.h.bf16 %v10711_v32  ;;  %v10723_v31 = vunpack.i.h.bf16 %v10721_v40  ;;  %v10722_v48 = vunpack.i.l.bf16 %v10721_v40 }
0x245e   : > { %v8039_v51 = vsel %vm14237_vm10, %v10712_v6, %v10707_v46  ;;  %v8086_v56 = vsel %vm14243_vm5, %v10722_v48, %v10723_v31  ;;  %v8085_v19 = vsel %vm14244_vm7, %v10693_v42, %v10722_v48  ;;  %vm14245_vm10 = vmmov %vm14243_vm5 }
0x245f   : > { %v10726_v21 = vpop.permute.xlu0 %10725  ;;  %v13882_v36 = vpop.permute.xlu1 %10730  ;;  %v8084_v53 = vsel %vm14245_vm10, %v10678_v47, %v10692_v23 }
0x2460   : > { %8279 = vrot.lane.b32.xlu0 %v8196_v37, %s14231_s8  ;;  %v10728_v58 = vunpack.i.h.bf16 %v10726_v21  ;;  %v10727_v50 = vunpack.i.l.bf16 %v10726_v21  ;;  %v8190_v22 = vpack.c.bf16 %v8086_v56, %v8084_v53  ;;  %v10733_v40 = vunpack.i.h.bf16 %v13882_v36 }
0x2461   : > { %v8040_v37 = vsel %vm14248_vm14, %v10707_v46, %v10708_v57  ;;  %v10732_v10 = vunpack.i.l.bf16 %v13882_v36 }
0x2462   : > { %v8011_v25 = vsel %vm639_vm9, %v10727_v50, %v10717_v17 }
0x2463   : > { %v10736_v18 = vpop.permute.xlu0 %10735  ;;  %v10746_v43 = vpop.permute.xlu1 %10745 }
0x2464   : > { %v10738_v12 = vunpack.i.h.bf16 %v10736_v18  ;;  %v10737_v14 = vunpack.i.l.bf16 %v10736_v18  ;;  %8259 = vrot.lane.b32.xlu0 %v8186_v9, %s14231_s8  ;;  %v10747_v26 = vunpack.i.l.bf16 %v10746_v43  ;;  %v10748_v0 = vunpack.i.h.bf16 %v10746_v43 }
0x2466   : > { %v8184_v16 = vpack.c.bf16 %v10738_v12, %v10708_v57  ;;  %v8041_v29 = vsel %vm14238_vm11, %v10713_v54, %v10737_v14  ;;  %vm14246_vm11 = vmmov %vm14243_vm5  ;;  %v8013_v42 = vsel %vm639_vm9, %v10728_v58, %v10747_v26  ;;  %v8181_v1 = vpack.c.bf16 %v10748_v0, %v10718_v39 }
0x2467   : > { %v8182_v44 = vpack.c.bf16 %v8041_v29, %v8039_v51  ;;  %v10741_v34 = vpop.permute.xlu0 %10740  ;;  %v8083_v30 = vsel %vm14246_vm11, %v10677_v49, %v10678_v47  ;;  %v10751_v60 = vpop.permute.xlu1 %10750  ;;  %v8179_v45 = vpack.c.bf16 %v8013_v42, %v8011_v25  ;;  %v8042_v49 = vsel %vm14247_vm13, %v10737_v14, %v10738_v12  ;;  %vm14252_vm5 = vmmov %vm14251_vm6 }
0x2468   : > { %8255 = vrot.lane.b32.xlu0 %v8184_v16, %s14231_s8  ;;  %v8189_v52 = vpack.c.bf16 %v8085_v19, %v8083_v30  ;;  %v10743_v20 = vunpack.i.h.bf16 %v10741_v34  ;;  %v10742_v32 = vunpack.i.l.bf16 %v10741_v34  ;;  %v8183_v2 = vpack.c.bf16 %v8042_v49, %v8040_v37  ;;  %vm14253_vm7 = vmmov %vm14252_vm5 }
0x2469   : > { %8251 = vrot.lane.b32.xlu1 %v8182_v44, %s14231_s8  ;;  %v8014_v9 = vsel %vm639_vm9, %v10747_v26, %v10748_v0  ;;  %v10753_v6 = vunpack.i.h.bf16 %v10751_v60  ;;  %v10752_v59 = vunpack.i.l.bf16 %v10751_v60  ;;  %v8012_v54 = vsel %vm639_vm9, %v10717_v17, %v10718_v39  ;;  %vm14254_vm10 = vmmov %vm14252_vm5 }
0x246a   : > { %v8178_v21 = vpack.c.bf16 %v10743_v20, %v10733_v40  ;;  %v7986_v18 = vsel %vm572_vm3, %v10742_v32, %v10743_v20  ;;  %v7984_v57 = vsel %vm572_vm3, %v10732_v10, %v10733_v40  ;;  %v8180_v36 = vpack.c.bf16 %v8014_v9, %v8012_v54  ;;  %vm14259_vm13 = vmmov %vm14249_vm15 }
0x246b   : > { %v7870_v33 = vpop.permute.xlu0 %7869  ;;  %v7872_v13 = vpop.permute.xlu1 %7871  ;;  %v8177_v14 = vpack.c.bf16 %v7986_v18, %v7984_v57  ;;  %v7985_v62 = vsel %vm572_vm3, %v10753_v6, %v10742_v32  ;;  %v7983_v35 = vsel %vm572_vm3, %v10752_v59, %v10732_v10  ;;  %vm14260_vm14 = vmmov %vm14246_vm11 }
0x246c   : > { %8271 = vrot.lane.b32.xlu0 %v8192_v63, %s14231_s8  ;;  %v7873_v24 = vsel %vm14249_vm15, %v7870_v33, %v7872_v13  ;;  %v8176_v16 = vpack.c.bf16 %v7985_v62, %v7983_v35  ;;  %v7877_v29 = vmul.f32 %v13829_v55, %v7870_v33  ;;  %v7879_v48 = vmul.f32 %v7872_v13, %v13769_v41  ;;  %vm14262_vm15 = vmmov %vm14259_vm13 }
0x246d   : > { %8273 = vrot.lane.b32.xlu1 %v8193_v15, %s14231_s8  ;;  %v7878_v46 = vmul.f32 %v7873_v24, %v13766_v11  ;;  %v7881_v12 = vmul.f32 %v7873_v24, %v13774_v7  ;;  %v7882_v11 = vmul.f32 %v7872_v13, %v13781_v61  ;;  %v9067_v41 = vcombine.high %v13942_v38, %v13942_v38 }
0x246e   : > { %v8173_v23 = vpack.c.bf16 %v7877_v29, %v7877_v29 }
0x246f   : > { %v10756_v28 = vpop.permute.xlu0 %10755  ;;  %v8174_v27 = vpack.c.bf16 %v7881_v12, %v7878_v46  ;;  %v10761_v31 = vpop.permute.xlu1 %10760  ;;  %v8175_v61 = vpack.c.bf16 %v7882_v11, %v7879_v48  ;;  %9068 = vmatprep.mubr.msk.bf16.mxu1 %vm1654_vm12, %v9067_v41 }
0x2470   : > { %8267 = vrot.lane.b32.xlu0 %v8190_v22, %s14231_s8  ;;  %v10758_v8 = vunpack.i.h.bf16 %v10756_v28  ;;  %v10762_v43 = vunpack.i.l.bf16 %v10761_v31  ;;  %v10757_v47 = vunpack.i.l.bf16 %v10756_v28  ;;  %v10763_v5 = vunpack.i.h.bf16 %v10761_v31 }
0x2471   : > { %8265 = vrot.lane.b32.xlu1 %v8189_v52, %s14231_s8 }
0x2472   : > { %v8164_v15 = vsel %vm14253_vm7, %v10758_v8, %v10762_v43  ;;  %v8163_v56 = vsel %vm14254_vm10, %v10757_v47, %v10758_v8  ;;  %v8197_v53 = vpack.c.bf16 %v10763_v5, %v10757_v47  ;;  %vm8714_vm7 = vcmask 1042432  }
0x2473   : > { %v10766_v51 = vpop.permute.xlu0 %10765 }
0x2474   : > { %8245 = vrot.lane.b32.xlu0 %v8179_v45, %s14231_s8  ;;  %v10768_v7 = vunpack.i.h.bf16 %v10766_v51  ;;  %v10767_v44 = vunpack.i.l.bf16 %v10766_v51 }
0x2475   : > { %8249 = vrot.lane.b32.xlu1 %v8181_v1, %s14231_s8 }
0x2476   : > { %v8166_v63 = vsel %vm14251_vm6, %v10767_v44, %v10768_v7  ;;  %v8165_v34 = vsel %vm14252_vm5, %v10763_v5, %v10767_v44  ;;  %v9066_v44 = vcombine.low %v13942_v38, %v13942_v38 }
0x2477   : > { %v8199_v26 = vpack.c.bf16 %v8166_v63, %v8164_v15  ;;  %v8198_v19 = vpack.c.bf16 %v8165_v34, %v8163_v56  ;;  %v8416_v34 = vld [vmem:[#allocation3 + $0x1] ss:$2 sm:$0x3]  ;;  %v8395_v56 = vld [vmem:[#allocation3] ss:$2 sm:$0x3] }
0x2478   : > { %8243 = vrot.lane.b32.xlu0 %v8178_v21, %s14231_s8  ;;  %v8425_v15 = vrot.slane %v8416_v34, %v11202_v4  ;;  %v13980_v38 = vrot.slane %v8395_v56, %v11202_v4 }
0x2479   : > { %8253 = vrot.lane.b32.xlu1 %v8183_v2, %s14231_s8 }
0x247c   : > { %8247 = vrot.lane.b32.xlu0 %v8180_v36, %s14231_s8 }
0x247d   : > { %8241 = vrot.lane.b32.xlu1 %v8177_v14, %s14231_s8 }
0x2480   : > { %8235 = vrot.lane.b32.xlu0 %v8174_v27, %s14231_s8 }
0x2481   : > { %8239 = vrot.lane.b32.xlu1 %v8176_v16, %s14231_s8 }
0x2484   : > { %8233 = vrot.lane.b32.xlu0 %v8173_v23, %s14231_s8 }
0x2485   : > { %8237 = vrot.lane.b32.xlu1 %v8175_v61, %s14231_s8 }
0x2488   : > { %8285 = vrot.lane.b32.xlu0 %v8199_v26, %s14231_s8  ;;  %v8421_v26 = vrot.slane %v8416_v34, %v11200_v3 }
0x2489   : > { %8283 = vrot.lane.b32.xlu1 %v8198_v19, %s14231_s8  ;;  %v8400_v19 = vrot.slane %v8395_v56, %v11200_v3 }
0x248d   : > { %8281 = vrot.lane.b32.xlu1 %v8197_v53, %s14231_s8 }
0x24be   : > { %v8276_v58 = vpop.permute.xlu1 %8275 }
0x24c6   : > { %v8264_v50 = vpop.permute.xlu1 %8263 }
0x24ca   : > { %v8258_v30 = vpop.permute.xlu0 %8257  ;;  %v8262_v22 = vpop.permute.xlu1 %8261 }
0x24ce   : > { %v8270_v60 = vpop.permute.xlu0 %8269  ;;  %v8278_v17 = vpop.permute.xlu1 %8277 }
0x24cf   : > { %v8301_v42 = vsel %vm516_vm0, %v8276_v58, %v8278_v17 }
0x24d2   : > { %v8280_v52 = vpop.permute.xlu0 %8279 }
0x24d3   : > { %v8302_v0 = vsel %vm516_vm0, %v8278_v17, %v8280_v52 }
0x24d4   : > { %8326 = vmatprep.subr.bf16.mxu1 %v8302_v0 }
0x24d5   : > { %8327 = vmatpush1.bf16.msra.mxu1 %v8301_v42 }
0x24d6   : > { %v8260_v33 = vpop.permute.xlu0 %8259 }
0x24d7   : > { %v8296_v2 = vsel %vm516_vm0, %v8260_v33, %v8262_v22  ;;  %v8295_v28 = vsel %vm516_vm0, %v8258_v30, %v8260_v33  ;;  %v8448_v30 = vld [vmem:[#allocation2 + $0x18] sm:$0xff] }
0x24da   : > { %v8256_v39 = vpop.permute.xlu0 %8255 }
0x24db   : > { %v8252_v25 = vpop.permute.xlu1 %8251 }
0x24de   : > { %v8272_v45 = vpop.permute.xlu0 %8271 }
0x24df   : > { %v8274_v20 = vpop.permute.xlu1 %8273  ;;  %v8299_v1 = vsel %vm516_vm0, %v8270_v60, %v8272_v45 }
0x24e0   : > { %v8300_v49 = vsel %vm516_vm0, %v8272_v45, %v8274_v20 }
0x24e1   : > { %8328 = vmatprep.subr.bf16.mxu1 %v8300_v49 }
0x24e2   : > { %v8268_v40 = vpop.permute.xlu0 %8267  ;;  %8329 = vmatpush1.bf16.msra.mxu1 %v8299_v1 }
0x24e3   : > { %v8266_v32 = vpop.permute.xlu1 %8265 }
0x24e4   : > { %v8297_v13 = vsel %vm516_vm0, %v8264_v50, %v8266_v32  ;;  %v8298_v37 = vsel %vm516_vm0, %v8266_v32, %v8268_v40 }
0x24e5   : > { %8330 = vmatprep.subr.bf16.mxu1 %v8298_v37 }
0x24e6   : > { %8331 = vmatpush1.bf16.msra.mxu1 %v8297_v13  ;;  %v8246_v10 = vpop.permute.xlu0 %8245 }
0x24e7   : > { %8332 = vmatprep.subr.bf16.mxu1 %v8296_v2  ;;  %v8250_v21 = vpop.permute.xlu1 %8249 }
0x24ea   : > { %8333 = vmatpush1.bf16.msra.mxu1 %v8295_v28  ;;  %v8244_v9 = vpop.permute.xlu0 %8243 }
0x24eb   : > { %v8254_v6 = vpop.permute.xlu1 %8253 }
0x24ec   : > { %v8293_v59 = vsel %vm516_vm0, %v8252_v25, %v8254_v6  ;;  %v8294_v24 = vsel %vm516_vm0, %v8254_v6, %v8256_v39 }
0x24ed   : > { %8334 = vmatprep.subr.bf16.mxu1 %v8294_v24 }
0x24ee   : > { %8335 = vmatpush1.bf16.msra.mxu1 %v8293_v59  ;;  %v8248_v18 = vpop.permute.xlu0 %8247 }
0x24ef   : > { %v8242_v54 = vpop.permute.xlu1 %8241  ;;  %v8292_v57 = vsel %vm516_vm0, %v8248_v18, %v8250_v21  ;;  %v8291_v36 = vsel %vm516_vm0, %v8246_v10, %v8248_v18 }
0x24f0   : > { %8336 = vmatprep.subr.bf16.mxu1 %v8292_v57  ;;  %v8290_v12 = vsel %vm516_vm0, %v8242_v54, %v8244_v9 }
0x24f2   : > { %8337 = vmatpush1.bf16.msra.mxu1 %v8291_v36  ;;  %v8236_v46 = vpop.permute.xlu0 %8235 }
0x24f3   : > { %v8240_v14 = vpop.permute.xlu1 %8239  ;;  %8338 = vmatprep.subr.bf16.mxu1 %v8290_v12 }
0x24f4   : > { %v8289_v62 = vsel %vm516_vm0, %v8240_v14, %v8242_v54 }
0x24f6   : > { %8339 = vmatpush1.bf16.msra.mxu1 %v8289_v62  ;;  %v8234_v35 = vpop.permute.xlu0 %8233 }
0x24f7   : > { %v8238_v51 = vpop.permute.xlu1 %8237  ;;  %v8287_v29 = vsel %vm516_vm0, %v8234_v35, %v8236_v46 }
0x24f8   : > { %v8288_v16 = vsel %vm516_vm0, %v8236_v46, %v8238_v51 }
0x24f9   : > { %8340 = vmatprep.subr.bf16.mxu1 %v8288_v16 }
0x24fa   : > { %8341 = vmatpush1.bf16.msra.mxu1 %v8287_v29  ;;  %v8286_v27 = vpop.permute.xlu0 %8285 }
0x24fb   : > { %v8284_v31 = vpop.permute.xlu1 %8283 }
0x24fc   : > { %v8304_v48 = vsel %vm516_vm0, %v8284_v31, %v8286_v27 }
0x24fd   : > { %8356 = vmatprep.subr.bf16.mxu1 %v8304_v48 }
0x24ff   : > { %v8282_v11 = vpop.permute.xlu1 %8281 }
0x2500   : > { %v8303_v7 = vsel %vm516_vm0, %v8282_v11, %v8284_v31 }
0x2501   : > { %8357 = vmatpush2.bf16.msra.mxu1 %v8303_v7 }
0x2504   : > { %8359 = vmatmul.mubr.bf16.vlgmr.msra.gmra.mxu1 %v9066_v44 }
0x25c4   : > { %v8360_v8 = vpop.f32.mrf.mxu1 }
0x25c5   : > { %v8370_v23 = vmul.f32 %v8360_v8, %v8360_v8 }
0x25c6   : > { %v8362_v43 = vpop.f32.mrf.mxu1 }
0x25c7   : > { %v8367_v47 = vadd.f32 %v8362_v43, %v8360_v8  ;;  %v8371_v5 = vmul.f32 %v8362_v43, %v8362_v43 }
0x25c8   : > { %v8364_v41 = vpop.f32.mrf.mxu1 }
0x25c9   : > { %8368 = vadd.xlane.f32.xlu0 %v8367_v47  ;;  %v8372_v61 = vadd.f32 %v8371_v5, %v8370_v23 }
0x25ca   : > { %v8365_v63 = vpop.f32.mrf.mxu1 }
0x25cb   : > { %8373 = vadd.xlane.f32.xlu1 %v8372_v61 }
0x25dc   : > { %8473 = vrot.lane.b32.xlu1 %v8425_v15, %s14231_s8 }
0x25df   : > { %8471 = vrot.lane.b32.xlu0 %v8421_v26, %s14231_s8 }
0x25e0   : > { %8462 = vrot.lane.b32.xlu1 %v13980_v38, %s14229_s7 }
0x25e3   : > { %8460 = vrot.lane.b32.xlu0 %v8400_v19, %s14229_s7 }
0x25e4   : > { %8451 = vrot.lane.b32.xlu1 %v8425_v15, %s14223_s28 }
0x25e7   : > { %8449 = vrot.lane.b32.xlu0 %v8421_v26, %s14223_s28 }
0x25e8   : > { %8428 = vrot.lane.b32.xlu1 %v8425_v15, %s14230_s24 }
0x25eb   : > { %8426 = vrot.lane.b32.xlu0 %v8421_v26, %s14230_s24 }
0x25ec   : > { %8439 = vrot.lane.b32.xlu1 %v13980_v38, %s14209_s22 }
0x25ef   : > { %8437 = vrot.lane.b32.xlu0 %v8400_v19, %s14209_s22 }
0x2652   : > { %v8369_v4 = vpop.xlane.xlu0 %8368 }
0x2653   : > { %v8375_v3 = vmul.f32 0.00390625, %v8369_v4 }
0x2654   : > { %v8374_v53 = vpop.xlane.xlu1 %8373 }
0x2655   : > { %v8376_v58 = vmul.f32 0.00390625, %v8374_v53  ;;  %v8377_v50 = vmul.f32 %v8375_v3, %v8375_v3  ;;  %v8380_v32 = vsub.f32 %v8360_v8, %v8375_v3  ;;  %v8381_v13 = vsub.f32 %v8362_v43, %v8375_v3 }
0x2656   : > { %v8472_v22 = vpop.permute.xlu0 %8471 }
0x2657   : > { %v8378_v60 = vsub.f32 %v8376_v58, %v8377_v50 }
0x2658   : > { %v8474_v17 = vpop.permute.xlu1 %8473 }
0x2659   : > { %v8379_v52 = vmax.f32 %v8378_v60, 0.0  ;;  %v8481_v0 = vmul.f32 %v8474_v17, %v8448_v30  ;;  %v8475_v12 = vsel %vm516_vm0, %v8472_v22, %v8474_v17 }
0x265a   : > { %v8461_v42 = vpop.permute.xlu0 %8460 }
0x265b   : > { %v8382_v33 = vadd.f32 1e-05, %v8379_v52  ;;  %8579 = vrot.lane.b32.xlu1 %v8481_v0, %s14234_s3 }
0x265c   : > { %v8463_v39 = vpop.permute.xlu1 %8462 }
0x265d   : > { %11001 = vrsqrt.f32 %v8382_v33  ;;  %v8470_v25 = vmul.f32 %v8463_v39, %v8448_v30  ;;  %v8464_v51 = vsel %vm597_vm1, %v8461_v42, %v8463_v39  ;;  %vm14255_vm1 = vmmov %vm14252_vm5  ;;  %vm14267_vm5 = vcmask 588800  }
0x265e   : > { %v8450_v45 = vpop.permute.xlu0 %8449 }
0x265f   : > { %8553 = vrot.lane.b32.xlu1 %v8470_v25, %s14233_s27 }
0x2660   : > { %v8452_v20 = vpop.permute.xlu1 %8451 }
0x2661   : > { %v8459_v49 = vmul.f32 %v8452_v20, %v8448_v30  ;;  %v8453_v6 = vsel %vm585_vm2, %v8450_v45, %v8452_v20  ;;  %vm14256_vm2 = vmmov %vm14255_vm1 }
0x2662   : > { %v8427_v1 = vpop.permute.xlu0 %8426 }
0x2663   : > { %8565 = vrot.lane.b32.xlu1 %v8448_v30, %s14232_s9  ;;  %v8434_v40 = vmul.f32 %v13829_v55, %v8427_v1  ;;  %8539 = vrot.lane.b32.xlu0 %v8459_v49, %s14226_s23 }
0x2664   : > { %v8429_v9 = vpop.permute.xlu1 %8428 }
0x2665   : > { %v8430_v59 = vsel %vm560_vm4, %v8427_v1, %v8429_v9  ;;  %vm14257_vm4 = vcmask 785408  }
0x2666   : > { %v8438_v48 = vpop.permute.xlu0 %8437  ;;  %vm14258_vm12 = vmmov %vm14257_vm4 }
0x2667   : > { %8499 = vrot.lane.b32.xlu1 %v8434_v40, %s14204_s17  ;;  %v8445_v44 = vmul.f32 %v13829_v55, %v8438_v48 }
0x2668   : > { %v8440_v31 = vpop.permute.xlu1 %8439 }
0x2669   : > { %v8441_v7 = vsel %vm572_vm3, %v8438_v48, %v8440_v31 }
0x266a   : > { %v11002_v37 = vpop.eup %11001 }
0x266b   : > { %v8384_v10 = vmul.f32 %v11002_v37, %v8380_v32  ;;  %v8385_v2 = vmul.f32 %v11002_v37, %v8381_v13  ;;  %8405 = vrot.lane.b32.xlu1 %v8400_v19, %s14203_s30 }
0x266d   : > { %v14001_v21 = vmax.f32 %v8384_v10, 0.0  ;;  %v14003_v28 = vmax.f32 %v8385_v2, 0.0 }
0x266f   : > { %8390 = vst [vmem:[#allocation2 + $0x8] sm:$0xff] %v14001_v21  ;;  %v8457_v24 = vmul.f32 %v8450_v45, %v14001_v21  ;;  %v8458_v18 = vmul.f32 %v8453_v6, %v14003_v28  ;;  %v8435_v57 = vmul.f32 %v8430_v59, %v14001_v21  ;;  %v8436_v36 = vmul.f32 %v8429_v9, %v14003_v28 }
0x2670   : > { %v10769_v46 = vpack.i.bf16 %v14003_v28, %v14001_v21  ;;  %v8479_v14 = vmul.f32 %v8472_v22, %v14001_v21  ;;  %v8480_v62 = vmul.f32 %v8475_v12, %v14003_v28  ;;  %v8468_v29 = vmul.f32 %v8461_v42, %v14001_v21 }
0x2671   : > { %v10789_v54 = vpack.i.bf16 %v8458_v18, %v8457_v24  ;;  %v10794_v35 = vpack.i.bf16 %v8436_v36, %v8435_v57  ;;  %v8469_v27 = vmul.f32 %v8464_v51, %v14003_v28  ;;  %v8447_v8 = vmul.f32 %v8440_v31, %v14003_v28 }
0x2672   : > { %10770 = vrot.lane.b32.xlu0 %v10769_v46, %s14232_s9  ;;  %v10779_v16 = vpack.i.bf16 %v8480_v62, %v8479_v14  ;;  %v8446_v43 = vmul.f32 %v8441_v7, %v14001_v21 }
0x2673   : > { %10790 = vrot.lane.b32.xlu1 %v10789_v54, %s14226_s23  ;;  %v10784_v11 = vpack.i.bf16 %v8469_v27, %v8468_v29 }
0x2674   : > { %v10799_v23 = vpack.i.bf16 %v8447_v8, %v8446_v43 }
0x2676   : > { %10775 = vrot.lane.b32.xlu0 %v10769_v46, %s14203_s30 }
0x2677   : > { %10795 = vrot.lane.b32.xlu1 %v10794_v35, %s14204_s17  ;;  %s14266_s17 = sld [smem:[#allocation14_spill]] }
0x267a   : > { %10780 = vrot.lane.b32.xlu0 %v10779_v16, %s14234_s3 }
0x267b   : > { %10805 = vrot.lane.b32.xlu1 %v10769_v46, %s14209_s22 }
0x267e   : > { %10785 = vrot.lane.b32.xlu0 %v10784_v11, %s14233_s27 }
0x2682   : > { %8513 = vrot.lane.b32.xlu0 %v8445_v44, %s14200_s16 }
0x2686   : > { %10800 = vrot.lane.b32.xlu0 %v10799_v23, %s14200_s16 }
0x268a   : > { %8407 = vrot.lane.b32.xlu0 %v13980_v38, %s14203_s30 }
0x268e   : > { %8485 = vrot.lane.b32.xlu0 %v13829_v55, %s14209_s22  ;;  %s14268_s22 = sld [smem:[#allocation7_spill]] }
0x2694   : > { %s9074_s28 = sshll.u32 %s14268_s22, 3 }
0x2695   : > { %s507_s13 = scalar_lea.vmem %s14269_s26, %s9074_s28 }
0x26cd   : > { %v8580_v47 = vpop.permute.xlu1 %8579 }
0x26d1   : > { %v8554_v5 = vpop.permute.xlu1 %8553 }
0x26d5   : > { %v8566_v41 = vpop.permute.xlu1 %8565  ;;  %v8540_v61 = vpop.permute.xlu0 %8539 }
0x26d9   : > { %v14037_v63 = vpop.permute.xlu1 %8499 }
0x26dd   : > { %v14039_v15 = vpop.permute.xlu1 %8405 }
0x26e4   : > { %v10771_v34 = vpop.permute.xlu0 %10770 }
0x26e5   : > { %v10791_v4 = vpop.permute.xlu1 %10790  ;;  %v10772_v50 = vunpack.i.l.bf16 %v10771_v34  ;;  %v10773_v39 = vunpack.i.h.bf16 %v10771_v34 }
0x26e6   : > { %v10792_v30 = vunpack.i.l.bf16 %v10791_v4  ;;  %v10793_v20 = vunpack.i.h.bf16 %v10791_v4 }
0x26e7   : > { %v8568_v37 = vsel %vm705_vm8, %v10773_v39, %v8566_v41  ;;  %v8567_v10 = vsel %vm705_vm8, %v10772_v50, %v10773_v39  ;;  %vm14261_vm8 = vcmask 916480  }
0x26e8   : > { %v10776_v56 = vpop.permute.xlu0 %10775  ;;  %v8542_v6 = vsel %vm14246_vm11, %v10793_v20, %v8540_v61  ;;  %v8541_v57 = vsel %vm14260_vm14, %v10792_v30, %v10793_v20  ;;  %vm14263_vm6 = vmmov %vm14261_vm8 }
0x26e9   : > { %v10777_v3 = vunpack.i.l.bf16 %v10776_v56  ;;  %v10778_v49 = vunpack.i.h.bf16 %v10776_v56  ;;  %v10796_v13 = vpop.permute.xlu1 %10795 }
0x26ea   : > { %v10798_v36 = vunpack.i.h.bf16 %v10796_v13  ;;  %v10797_v46 = vunpack.i.l.bf16 %v10796_v13 }
0x26eb   : > { %v8592_v60 = vpack.c.bf16 %v10792_v30, %v10777_v3  ;;  %v8528_v59 = vsel %vm14259_vm13, %v10777_v3, %v10778_v49  ;;  %v8594_v12 = vpack.c.bf16 %v8542_v6, %v10778_v49 }
0x26ec   : > { %v10781_v26 = vpop.permute.xlu0 %10780  ;;  %v8593_v14 = vpack.c.bf16 %v8541_v57, %v8528_v59  ;;  %v8506_v16 = vsel %vm639_vm9, %v10797_v46, %v10798_v36  ;;  %v8505_v8 = vsel %vm639_vm9, %v14037_v63, %v10797_v46 }
0x26ed   : > { %v10782_v19 = vunpack.i.l.bf16 %v10781_v26  ;;  %v10783_v58 = vunpack.i.h.bf16 %v10781_v26  ;;  %v10806_v62 = vpop.permute.xlu1 %10805 }
0x26ee   : > { %v10808_v29 = vunpack.i.h.bf16 %v10806_v62  ;;  %v10807_v27 = vunpack.i.l.bf16 %v10806_v62 }
0x26ef   : > { %v8598_v53 = vpack.c.bf16 %v10782_v19, %v10782_v19  ;;  %v8582_v52 = vsel %vm14255_vm1, %v10783_v58, %v8580_v47  ;;  %v8581_v0 = vsel %vm14256_vm2, %v10782_v19, %v10783_v58 }
0x26f0   : > { %v10786_v38 = vpop.permute.xlu0 %10785  ;;  %v8600_v25 = vpack.c.bf16 %v8582_v52, %v8582_v52  ;;  %v8599_v45 = vpack.c.bf16 %v8581_v0, %v8581_v0  ;;  %v8492_v43 = vsel %vm572_vm3, %v10807_v27, %v10808_v29 }
0x26f1   : > { %v10787_v22 = vunpack.i.l.bf16 %v10786_v38  ;;  %8640 = vrot.lane.b32.xlu1 %v8598_v53, %s14231_s8  ;;  %v10788_v42 = vunpack.i.h.bf16 %v10786_v38 }
0x26f3   : > { %v8595_v17 = vpack.c.bf16 %v10772_v50, %v10787_v22  ;;  %v8556_v1 = vsel %vm14257_vm4, %v10788_v42, %v8554_v5  ;;  %v8555_v40 = vsel %vm14258_vm12, %v10787_v22, %v10788_v42 }
0x26f4   : > { %v8514_v33 = vpop.permute.xlu0 %8513  ;;  %v8596_v2 = vpack.c.bf16 %v8567_v10, %v8555_v40  ;;  %v8597_v9 = vpack.c.bf16 %v8568_v37, %v8556_v1  ;;  %v8388_v1 = vld [vmem:[%s14266_s17] sm:$0x3] }
0x26f5   : > { %8628 = vrot.lane.b32.xlu1 %v8592_v60, %s14231_s8  ;;  %8634 = vrot.lane.b32.xlu0 %v8595_v17, %s14231_s8 }
0x26f8   : > { %v10801_v32 = vpop.permute.xlu0 %10800 }
0x26f9   : > { %8644 = vrot.lane.b32.xlu1 %v8600_v25, %s14231_s8  ;;  %8642 = vrot.lane.b32.xlu0 %v8599_v45, %s14231_s8  ;;  %v10803_v24 = vunpack.i.h.bf16 %v10801_v32  ;;  %v10802_v18 = vunpack.i.l.bf16 %v10801_v32 }
0x26fb   : > { %v8520_v35 = vsel %vm14261_vm8, %v10802_v18, %v10803_v24  ;;  %v8591_v31 = vpack.c.bf16 %v10803_v24, %v10798_v36  ;;  %v8519_v7 = vsel %vm14263_vm6, %v8514_v33, %v10802_v18 }
0x26fc   : > { %v8408_v54 = vpop.permute.xlu0 %8407  ;;  %v8590_v48 = vpack.c.bf16 %v8520_v35, %v8506_v16  ;;  %v8589_v23 = vpack.c.bf16 %v8519_v7, %v8505_v8 }
0x26fd   : > { %8638 = vrot.lane.b32.xlu1 %v8597_v9, %s14231_s8  ;;  %8636 = vrot.lane.b32.xlu0 %v8596_v2, %s14231_s8  ;;  %v8409_v51 = vsel %vm14262_vm15, %v14039_v15, %v8408_v54  ;;  %v8415_v47 = vmul.f32 %v8408_v54, %v14003_v28 }
0x26fe   : > { %v8414_v11 = vmul.f32 %v8409_v51, %v14001_v21  ;;  %v8413_v21 = vmul.f32 %v13829_v55, %v14039_v15 }
0x26ff   : > { %v8588_v61 = vpack.c.bf16 %v10808_v29, %v8415_v47 }
0x2700   : > { %v8486_v44 = vpop.permute.xlu0 %8485  ;;  %v8587_v5 = vpack.c.bf16 %v8492_v43, %v8414_v11 }
0x2701   : > { %8630 = vrot.lane.b32.xlu1 %v8593_v14, %s14231_s8  ;;  %8632 = vrot.lane.b32.xlu0 %v8594_v12, %s14231_s8  ;;  %v8491_v41 = vsel %vm572_vm3, %v8486_v44, %v10807_v27  ;;  %vm14264_vm3 = vcmask 1043456  }
0x2702   : > { %v8586_v34 = vpack.c.bf16 %v8491_v41, %v8413_v21  ;;  %vm14265_vm9 = vmmov %vm14264_vm3 }
0x2705   : > { %8626 = vrot.lane.b32.xlu1 %v8591_v31, %s14231_s8  ;;  %8624 = vrot.lane.b32.xlu0 %v8590_v48, %s14231_s8 }
0x2709   : > { %8618 = vrot.lane.b32.xlu1 %v8587_v5, %s14231_s8  ;;  %8622 = vrot.lane.b32.xlu0 %v8589_v23, %s14231_s8 }
0x270d   : > { %8616 = vrot.lane.b32.xlu1 %v8586_v34, %s14231_s8  ;;  %8620 = vrot.lane.b32.xlu0 %v8588_v61, %s14231_s8 }
0x2763   : > { %v8641_v63 = vpop.permute.xlu1 %8640 }
0x2767   : > { %v8629_v56 = vpop.permute.xlu1 %8628  ;;  %v8635_v26 = vpop.permute.xlu0 %8634 }
0x276b   : > { %v8645_v28 = vpop.permute.xlu1 %8644  ;;  %v8643_v19 = vpop.permute.xlu0 %8642 }
0x276c   : > { %v8654_v4 = vsel %vm516_vm0, %v8641_v63, %v8643_v19  ;;  %v8655_v3 = vsel %vm516_vm0, %v8643_v19, %v8645_v28 }
0x276d   : > { %v8668_v55 = vsel %vm14264_vm3, %v8654_v4, 0  ;;  %9069 = vmatprep.subr.msk.bf16.mxu0 %vm14265_vm9, %v8655_v3 }
0x276e   : > { %8680 = vmatpush1.bf16.msra.mxu0 %v8668_v55 }
0x276f   : > { %v8639_v15 = vpop.permute.xlu1 %8638  ;;  %v8637_v53 = vpop.permute.xlu0 %8636 }
0x2770   : > { %v8652_v58 = vsel %vm516_vm0, %v8635_v26, %v8637_v53  ;;  %v8653_v38 = vsel %vm516_vm0, %v8637_v53, %v8639_v15 }
0x2771   : > { %8681 = vmatprep.subr.bf16.mxu0 %v8653_v38 }
0x2772   : > { %8682 = vmatpush1.bf16.msra.mxu0 %v8652_v58 }
0x2773   : > { %v8631_v50 = vpop.permute.xlu1 %8630  ;;  %v8633_v30 = vpop.permute.xlu0 %8632 }
0x2774   : > { %v8650_v22 = vsel %vm516_vm0, %v8629_v56, %v8631_v50  ;;  %v8651_v60 = vsel %vm516_vm0, %v8631_v50, %v8633_v30 }
0x2775   : > { %8683 = vmatprep.subr.bf16.mxu0 %v8651_v60 }
0x2776   : > { %8684 = vmatpush1.bf16.msra.mxu0 %v8650_v22 }
0x2777   : > { %v8627_v17 = vpop.permute.xlu1 %8626  ;;  %v8625_v52 = vpop.permute.xlu0 %8624 }
0x2778   : > { %v8649_v0 = vsel %vm516_vm0, %v8625_v52, %v8627_v17 }
0x2779   : > { %8685 = vmatprep.subr.bf16.mxu0 %v8649_v0 }
0x277b   : > { %v8619_v42 = vpop.permute.xlu1 %8618  ;;  %v8623_v33 = vpop.permute.xlu0 %8622 }
0x277c   : > { %v8648_v39 = vsel %vm516_vm0, %v8623_v33, %v8625_v52 }
0x277d   : > { %8686 = vmatpush1.bf16.msra.mxu0 %v8648_v39 }
0x277f   : > { %v8617_v25 = vpop.permute.xlu1 %8616  ;;  %v8621_v45 = vpop.permute.xlu0 %8620 }
0x2780   : > { %v8646_v20 = vsel %vm516_vm0, %v8617_v25, %v8619_v42  ;;  %v8647_v49 = vsel %vm516_vm0, %v8619_v42, %v8621_v45 }
0x2781   : > { %8687 = vmatprep.subr.bf16.mxu0 %v8647_v49 }
0x2782   : > { %8688 = vmatpush1.bf16.msra.mxu0 %v8646_v20 }
0x2785   : > { %9070 = vmatmul.mubr.msk.bf16.vlgmr.msra.gmra.mxu0 %vm14267_vm5, %v8388_v1 }
0x2845   : > { %v8707_v40 = vpop.f32.mrf.mxu0 }
0x2846   : > { %v8720_v32 = vmul.f32 %v8707_v40, %v8707_v40  ;;  %v8715_v37 = vsel %vm8714_vm7, %v8707_v40, 0.0 }
0x2847   : > { %v8709_v13 = vpop.f32.mrf.mxu0 }
0x2848   : > { %v8716_v10 = vsel %vm8714_vm7, %v8709_v13, 0.0  ;;  %v8721_v2 = vmul.f32 %v8709_v13, %v8709_v13  ;;  %v8722_v59 = vsel %vm8714_vm7, %v8720_v32, 0.0 }
0x2849   : > { %v8717_v9 = vadd.f32 %v8716_v10, %v8715_v37  ;;  %v8711_v6 = vpop.f32.mrf.mxu0 }
0x284a   : > { %v8723_v24 = vsel %vm8714_vm7, %v8721_v2, 0.0 }
0x284b   : > { %8718 = vadd.xlane.f32.xlu0 %v8717_v9  ;;  %v8724_v18 = vadd.f32 %v8723_v24, %v8722_v59  ;;  %v8712_v54 = vpop.f32.mrf.mxu0 }
0x284d   : > { %8725 = vadd.xlane.f32.xlu1 %v8724_v18 }
0x28d4   : > { %v8719_v57 = vpop.xlane.xlu0 %8718 }
0x28d5   : > { %v8727_v36 = vmul.f32 0.00390625, %v8719_v57 }
0x28d6   : > { %v8726_v46 = vpop.xlane.xlu1 %8725 }
0x28d7   : > { %v8728_v12 = vmul.f32 0.00390625, %v8726_v46  ;;  %v8729_v14 = vmul.f32 %v8727_v36, %v8727_v36  ;;  %v8732_v16 = vsub.f32 %v8707_v40, %v8727_v36  ;;  %v8733_v29 = vsub.f32 %v8709_v13, %v8727_v36 }
0x28d9   : > { %v8730_v62 = vsub.f32 %v8728_v12, %v8729_v14 }
0x28db   : > { %v8731_v35 = vmax.f32 %v8730_v62, 0.0 }
0x28dd   : > { %v8734_v51 = vadd.f32 1e-05, %v8731_v35 }
0x28df   : > { %11003 = vrsqrt.f32 %v8734_v51 }
0x28ec   : > { %v11004_v27 = vpop.eup %11003 }
0x28ed   : > { %v8736_v31 = vmul.f32 %v11004_v27, %v8732_v16  ;;  %v8737_v48 = vmul.f32 %v11004_v27, %v8733_v29 }
0x28ef   : > { %v8740_v11 = vcombine.low %v8736_v31, %v8737_v48 }
0x28f1   : > { %8742 = vst [vmem:[%s507_s13] sm:$0x77] %v8740_v11 }
0x28f2 PF: > { %s14270_s15 = sld [smem:[#allocation6_spill]] }
0x28f8   : > { %s26_s18 = sadd.s32 1, %s14270_s15  }
0x28f9   : > { %p23_p1 = scmp.ge.s32.totalorder %s26_s18, 4  }
0x28fb   :  { %25 = sbr.rel (!%p23_p1) target bundleno = 14 (0xe), region = 137 }
0x2900   :  { %8764 = vsyncpa [#allocation4], 1 }
0x2901   :  { %8766 = vsyncpa [#allocation4 + $0x1], 1 }

</bundles_post_ra>
